<compile_context>
chip_gen: v7x
topology: tpu7x:2x2x1
jax: 0.10.0
libtpu: 0.0.40
codegen_flags: <defaults>
</compile_context>

<pallas_src>
import functools
import itertools

import numpy as np

import jax
import jax.numpy as jnp
from jax.experimental import pallas as pl
from jax.experimental.pallas import tpu as pltpu

_HI = jax.lax.Precision.HIGHEST


# ----------------------------------------------------------------------------------
# Pallas kernel: one grid step == one image, channels-last (N, C) slabs (C on lanes).
# ----------------------------------------------------------------------------------
def attnffn_kernel(x_ref, wq_ref, bq_ref, wk_ref, bk_ref, wv_ref, bv_ref,
                   wvl_ref, bvl_ref, mask_ref, ab_ref,
                   w1_ref, w2_ref, b2_ref,
                   wp_ref, bp_ref, ls1_ref,
                   wf1_ref, bf1_ref, wm_ref, bm_ref, wf2_ref, bf2_ref, ls2_ref,
                   o_ref, pad_v_ref, pad_m_ref,
                   *, num_heads, d, H, W):
    N = H * W
    PAD = W + 1                       # covers the max |tap shift| of a 3x3 dw conv
    f32 = jnp.float32
    bf16 = jnp.bfloat16

    def mm(a, w):
        # 1x1 conv (+ folded BN) as a bf16 MXU matmul with f32 accumulation.
        return jnp.dot(a.astype(bf16), w, preferred_element_type=f32)

    def dwconv3x3(v2, wdw_ref, bdw_ref, pad_ref):
        # Zero-padded 3x3 depthwise conv (+ folded BN) on an (N, Ch) slab.
        # The 9 taps are shifted-window reads of a zero-padded VMEM scratch plus
        # masked per-channel FMAs on the VPU -- no MXU matmuls and no (B,N,N)
        # shift-matrix broadcasts (the previous version's main overhead).
        Ch = v2.shape[-1]
        pad_ref[pl.ds(0, PAD), :] = jnp.zeros((PAD, Ch), f32)
        pad_ref[pl.ds(PAD + N, PAD), :] = jnp.zeros((PAD, Ch), f32)
        pad_ref[pl.ds(PAD, N), :] = v2
        acc = jnp.zeros((N, Ch), f32)
        for kh in range(3):
            for kw in range(3):
                t = kh * 3 + kw
                s = (kh - 1) * W + (kw - 1)
                m_t = mask_ref[:, pl.ds(t, 1)]                 # (N, 1) validity mask
                win = pad_ref[pl.ds(PAD + s, N), :]            # (N, Ch) shifted window
                acc = acc + win * (m_t * wdw_ref[t])
        return acc + bdw_ref[...]

    x2 = x_ref[0]                                              # (N, C) f32
    xb = x2.astype(bf16)

    # --------------------------- Attention4D token mixer ---------------------------
    v = mm(xb, wv_ref[...]) + bv_ref[...]                      # (N, dh) f32
    v_local = dwconv3x3(v, wvl_ref, bvl_ref, pad_v_ref)        # (N, dh) f32
    # pad_v_ref rows [PAD, PAD+N) still hold v -> reused below for per-head attn @ v.

    # per-head logits (attention scale folded into the q weights) + rel-pos bias;
    # q/k come from head-indexed weight refs (no value lane-slicing in the head loop).
    logits = []
    for h in range(num_heads):
        q_h = mm(xb, wq_ref[h]) + bq_ref[h]                    # (N, key_dim) f32
        k_h = mm(xb, wk_ref[h]) + bk_ref[h]
        s_h = jax.lax.dot_general(q_h.astype(bf16), k_h.astype(bf16),
                                  (((1,), (1,)), ((), ())),
                                  preferred_element_type=f32)  # (N, N)
        logits.append(s_h + ab_ref[h])

    # talking-head-1 -> softmax (head mixing as SMEM-scalar FMAs on the VPU; the
    # talking-head-1 bias is a per-row constant == softmax no-op and is dropped).
    probs = []
    for g in range(num_heads):
        t_g = sum(w1_ref[g, h] * logits[h] for h in range(num_heads))
        t_g = t_g - jnp.max(t_g, axis=-1, keepdims=True)
        e_g = jnp.exp(t_g)
        probs.append(e_g * pl.reciprocal(jnp.sum(e_g, axis=-1, keepdims=True),
                                         approx=True))

    # talking-head-2 and attn @ v per head; head outputs are assembled on the lane
    # axis so the output projection is ONE (N, dh) @ (dh, C) matmul (K = dh = 128).
    xa_heads = []
    for g in range(num_heads):
        u_g = b2_ref[0, g] + sum(w2_ref[g, h] * probs[h] for h in range(num_heads))
        v_h = pad_v_ref[pl.ds(PAD, N), pl.ds(g * d, d)]        # (N, d) window of v
        xa_heads.append(mm(u_g, v_h.astype(bf16)))             # (N, d) f32
    xa = jnp.concatenate(xa_heads, axis=-1)                    # (N, dh)

    r = jnp.maximum(xa + v_local, 0.0)
    tm = mm(r, wp_ref[...]) + bp_ref[...]                      # proj 1x1 conv + BN
    x1 = x2 + ls1_ref[...] * tm                                # residual 1 (+ layer_scale_1)

    # -------- MLP: 1x1 -> BN -> ReLU -> dw3x3 -> BN -> ReLU -> 1x1 -> BN -----------
    y = jnp.maximum(mm(x1, wf1_ref[...]) + bf1_ref[...], 0.0)          # (N, hid)
    y = jnp.maximum(dwconv3x3(y, wm_ref, bm_ref, pad_m_ref), 0.0)      # (N, hid)
    y = mm(y, wf2_ref[...]) + bf2_ref[...]                             # (N, C)

    o_ref[0] = x1 + ls2_ref[...] * y                           # residual 2 (+ layer_scale_2)


# ----------------------------------------------------------------------------------
# Wrapper: parameter folding (eval-mode BN), bf16 weight casts, layout, pallas_call.
# ----------------------------------------------------------------------------------
def _fold_conv_bn(w, b, bn, eps):
    gamma, beta, mean, var = bn
    s = gamma / jnp.sqrt(var + eps)
    return w * s[:, None, None, None], (b - mean) * s + beta


def attnffn_forward(x, p, *, num_heads, key_dim, attn_ratio, eps=1e-5):
    """x: (B, C, H, W) NCHW float32 -> (B, C, H, W) NCHW float32."""
    B, C, H, W = x.shape
    N = H * W
    d = int(attn_ratio * key_dim)
    dh = num_heads * d
    scale = key_dim ** (-0.5)
    npad = N + 2 * (W + 1)

    # ---- parameter folding only (no data-sized tensors materialized here) ----
    def fold_1x1(wk_, bk_, bnk_, extra_scale=1.0):
        wf, bf = _fold_conv_bn(p[wk_], p[bk_], p[bnk_], eps)
        w2d = (jnp.transpose(wf[:, :, 0, 0]) * extra_scale).astype(jnp.bfloat16)
        return w2d, (bf * extra_scale).reshape(1, -1).astype(jnp.float32)

    wq, bq = fold_1x1('q_w', 'q_b', 'q_bn', extra_scale=scale)   # attn scale folded into q
    wk, bk = fold_1x1('k_w', 'k_b', 'k_bn')
    wv, bv = fold_1x1('v_w', 'v_b', 'v_bn')
    wp, bp = fold_1x1('proj_w', 'proj_b', 'proj_bn')
    wf1, bf1 = fold_1x1('fc1_w', 'fc1_b', 'fc1_bn')
    wf2, bf2 = fold_1x1('fc2_w', 'fc2_b', 'fc2_bn')
    hid = wf1.shape[1]

    # q/k laid out per head so the kernel indexes weight refs by head
    wq = jnp.transpose(wq.reshape(C, num_heads, key_dim), (1, 0, 2))   # (heads, C, kd) bf16
    wk = jnp.transpose(wk.reshape(C, num_heads, key_dim), (1, 0, 2))
    bq = bq.reshape(num_heads, key_dim)                                # (heads, kd) f32
    bk = bk.reshape(num_heads, key_dim)

    def fold_dw(wk_, bk_, bnk_):
        wf, bf = _fold_conv_bn(p[wk_], p[bk_], p[bnk_], eps)
        return (jnp.transpose(wf[:, 0].reshape(-1, 9)).astype(jnp.float32),   # (9, Ch)
                bf.reshape(1, -1).astype(jnp.float32))                        # (1, Ch)

    wvl9, bvl = fold_dw('vl_w', 'vl_b', 'vl_bn')
    wm9, bm = fold_dw('mid_w', 'mid_b', 'mid_bn')

    w1 = p['th1_w'][:, :, 0, 0].astype(jnp.float32)            # talking-head weights (SMEM)
    w2 = p['th2_w'][:, :, 0, 0].astype(jnp.float32)
    b2 = p['th2_b'].reshape(1, num_heads).astype(jnp.float32)

    # eval-mode relative position bias; bicubic resize to (N, N) is the identity here
    # because H*W == resolution**2.
    ab = p['ab_seg'][:, p['ab_idx']].astype(jnp.bfloat16)       # (heads, N, N)

    ls1 = p['ls1'].reshape(1, C).astype(jnp.float32)
    ls2 = p['ls2'].reshape(1, C).astype(jnp.float32)

    # per-tap validity mask of the zero-padded 3x3 depthwise conv: mask[n, t]
    mask = np.zeros((N, 9), np.float32)
    for kh_ in range(3):
        for kw_ in range(3):
            t = kh_ * 3 + kw_
            for i in range(H):
                for j in range(W):
                    if 0 <= i + kh_ - 1 < H and 0 <= j + kw_ - 1 < W:
                        mask[i * W + j, t] = 1.0
    mask = jnp.asarray(mask)

    # channels-last activations: (B, N, C) with channels on the lane axis
    x3 = jnp.transpose(x, (0, 2, 3, 1)).reshape(B, N, C).astype(jnp.float32)

    kernel = functools.partial(attnffn_kernel, num_heads=num_heads, d=d, H=H, W=W)

    def full(shape):
        if len(shape) == 2:
            return pl.BlockSpec(shape, lambda b: (0, 0))
        return pl.BlockSpec(shape, lambda b: (0, 0, 0))

    smem = pl.BlockSpec(memory_space=pltpu.MemorySpace.SMEM)

    in_specs = ([pl.BlockSpec((1, N, C), lambda b: (b, 0, 0))]
                + [full(a.shape) for a in (wq, bq, wk, bk, wv, bv, wvl9, bvl, mask, ab)]
                + [smem, smem, smem]
                + [full(a.shape) for a in (wp, bp, ls1, wf1, bf1, wm9, bm, wf2, bf2, ls2)])

    out3 = pl.pallas_call(
        kernel,
        out_shape=jax.ShapeDtypeStruct((B, N, C), jnp.float32),
        grid=(B,),                      # one image per step; "parallel" -> both v7x cores
        in_specs=in_specs,
        out_specs=pl.BlockSpec((1, N, C), lambda b: (b, 0, 0)),
        scratch_shapes=[pltpu.VMEM((npad, dh), jnp.float32),
                        pltpu.VMEM((npad, hid), jnp.float32)],
        compiler_params=pltpu.CompilerParams(dimension_semantics=("parallel",)),
    )(x3, wq, bq, wk, bk, wv, bv, wvl9, bvl, mask, ab,
      w1, w2, b2,
      wp, bp, ls1, wf1, bf1, wm9, bm, wf2, bf2, ls2)

    return jnp.transpose(out3.reshape(B, H, W, C), (0, 3, 1, 2))      # back to NCHW


# ----------------------------------------------------------------------------------
# Pure-JAX f32 reference in NCHW (mirrors the PyTorch forward, eval-mode BN).
# ----------------------------------------------------------------------------------
def attnffn_ref(x, p, *, num_heads, key_dim, attn_ratio, eps=1e-5):
    B, C, H, W = x.shape
    N = H * W
    d = int(attn_ratio * key_dim)
    dh = num_heads * d
    scale = key_dim ** (-0.5)

    def bn(y, prm):
        g, b, m, v = prm
        return ((y - m[None, :, None, None]) / jnp.sqrt(v[None, :, None, None] + eps)
                * g[None, :, None, None] + b[None, :, None, None])

    def conv1x1(y, w, b):
        return jnp.einsum('bchw,oc->bohw', y, w[:, :, 0, 0], precision=_HI) \
            + b[None, :, None, None]

    def dwconv(y, w, b):
        ch = y.shape[1]
        z = jax.lax.conv_general_dilated(
            y, w, (1, 1), ((1, 1), (1, 1)), feature_group_count=ch,
            dimension_numbers=('NCHW', 'OIHW', 'NCHW'), precision=_HI)
        return z + b[None, :, None, None]

    q = bn(conv1x1(x, p['q_w'], p['q_b']), p['q_bn'])
    k = bn(conv1x1(x, p['k_w'], p['k_b']), p['k_bn'])
    v = bn(conv1x1(x, p['v_w'], p['v_b']), p['v_bn'])
    v_local = bn(dwconv(v, p['vl_w'], p['vl_b']), p['vl_bn'])

    qh = q.reshape(B, num_heads, key_dim, N).transpose(0, 1, 3, 2)
    kh = k.reshape(B, num_heads, key_dim, N)
    vh = v.reshape(B, num_heads, d, N).transpose(0, 1, 3, 2)

    attn = jnp.einsum('bhnk,bhkm->bhnm', qh, kh, precision=_HI) * scale
    ab = p['ab_seg'][:, p['ab_idx']]            # bicubic resize to (N, N) == identity
    attn = attn + ab[None]
    attn = (jnp.einsum('gh,bhnm->bgnm', p['th1_w'][:, :, 0, 0], attn, precision=_HI)
            + p['th1_b'][None, :, None, None])
    attn = jax.nn.softmax(attn, axis=-1)
    attn = (jnp.einsum('gh,bhnm->bgnm', p['th2_w'][:, :, 0, 0], attn, precision=_HI)
            + p['th2_b'][None, :, None, None])

    xo = jnp.einsum('bhnm,bhmd->bhnd', attn, vh, precision=_HI)
    out = xo.transpose(0, 1, 3, 2).reshape(B, dh, H, W) + v_local
    out = bn(conv1x1(jax.nn.relu(out), p['proj_w'], p['proj_b']), p['proj_bn'])

    x1 = x + p['ls1'][None, :, None, None] * out

    y = jax.nn.relu(bn(conv1x1(x1, p['fc1_w'], p['fc1_b']), p['fc1_bn']))
    y = jax.nn.relu(bn(dwconv(y, p['mid_w'], p['mid_b']), p['mid_bn']))
    y = bn(conv1x1(y, p['fc2_w'], p['fc2_b']), p['fc2_bn'])

    return x1 + p['ls2'][None, :, None, None] * y


# ----------------------------------------------------------------------------------
# Deterministic synthetic parameters (shapes as in AttnFFN / Attention4D / Mlp).
# ----------------------------------------------------------------------------------
def init_params(key, dim, num_heads, key_dim, attn_ratio, mlp_ratio, resolution):
    d = int(attn_ratio * key_dim)
    nh_kd = num_heads * key_dim
    dh = num_heads * d
    hid = int(dim * mlp_ratio)
    N = resolution * resolution

    # attention-bias index table, exactly as in Attention4D.__init__
    points = list(itertools.product(range(resolution), range(resolution)))
    offsets = {}
    idxs = []
    for p1 in points:
        for p2 in points:
            off = (abs(p1[0] - p2[0]), abs(p1[1] - p2[1]))
            if off not in offsets:
                offsets[off] = len(offsets)
            idxs.append(offsets[off])
    ab_idx = jnp.asarray(np.asarray(idxs, np.int32).reshape(N, N))

    ks = iter(jax.random.split(key, 64))

    def conv(co, ci, kh, kw, s=0.05):
        return s * jax.random.normal(next(ks), (co, ci, kh, kw), jnp.float32)

    def vec(n, s=0.05):
        return s * jax.random.normal(next(ks), (n,), jnp.float32)

    def bnp(n):
        return (1.0 + 0.1 * jax.random.normal(next(ks), (n,), jnp.float32),   # gamma
                0.1 * jax.random.normal(next(ks), (n,), jnp.float32),         # beta
                0.1 * jax.random.normal(next(ks), (n,), jnp.float32),         # running mean
                1.0 + 0.1 * jax.random.uniform(next(ks), (n,), jnp.float32))  # running var

    return dict(
        q_w=conv(nh_kd, dim, 1, 1), q_b=vec(nh_kd), q_bn=bnp(nh_kd),
        k_w=conv(nh_kd, dim, 1, 1), k_b=vec(nh_kd), k_bn=bnp(nh_kd),
        v_w=conv(dh, dim, 1, 1), v_b=vec(dh), v_bn=bnp(dh),
        vl_w=conv(dh, 1, 3, 3, s=0.2), vl_b=vec(dh), vl_bn=bnp(dh),
        th1_w=conv(num_heads, num_heads, 1, 1, s=0.3), th1_b=vec(num_heads),
        th2_w=conv(num_heads, num_heads, 1, 1, s=0.3), th2_b=vec(num_heads),
        proj_w=conv(dim, dh, 1, 1), proj_b=vec(dim), proj_bn=bnp(dim),
        ab_seg=0.2 * jax.random.normal(next(ks), (num_heads, len(offsets)), jnp.float32),
        ab_idx=ab_idx,
        ls1=0.5 + 0.1 * jax.random.normal(next(ks), (dim,), jnp.float32),
        ls2=0.5 + 0.1 * jax.random.normal(next(ks), (dim,), jnp.float32),
        fc1_w=conv(hid, dim, 1, 1), fc1_b=vec(hid), fc1_bn=bnp(hid),
        mid_w=conv(hid, 1, 3, 3, s=0.2), mid_b=vec(hid), mid_bn=bnp(hid),
        fc2_w=conv(dim, hid, 1, 1), fc2_b=vec(dim), fc2_bn=bnp(dim),
    )


if __name__ == "__main__":
    # Lane-dense configuration (channel dims are multiples of 128 on the lane axis);
    # resolution=7 as in AttnFFN(resolution=7), stride=None.
    B = 2
    dim = 128
    resolution = 7
    num_heads = 4
    key_dim = 16
    attn_ratio = 2.0
    mlp_ratio = 4.0
    H = W = resolution

    key = jax.random.PRNGKey(0)
    kx, kp = jax.random.split(key)
    x = jax.random.normal(kx, (B, dim, H, W), jnp.float32)
    params = init_params(kp, dim, num_heads, key_dim, attn_ratio, mlp_ratio, resolution)

    out = attnffn_forward(x, params, num_heads=num_heads, key_dim=key_dim,
                          attn_ratio=attn_ratio)
    out = jax.block_until_ready(out)

    ref = attnffn_ref(x, params, num_heads=num_heads, key_dim=key_dim,
                      attn_ratio=attn_ratio)
    err = float(jnp.max(jnp.abs(out - ref)))
    assert out.shape == (B, dim, H, W), out.shape
    # bf16 MXU operands (f32 accumulation) -> tolerance relaxed vs. the pure-f32 kernel
    assert err < 3e-2, f"max abs error too large: {err}"

    print("KERNEL_OK")
</pallas_src>

<mosaic_0001>
module attributes {stable_mosaic.version = 11 : i64} {
  func.func @attnffn_kernel(%arg0: i32, %arg1: memref<1x49x128xf32, #tpu.memory_space<vmem>>, %arg2: memref<4x128x16xbf16, #tpu.memory_space<vmem>>, %arg3: memref<4x16xf32, #tpu.memory_space<vmem>>, %arg4: memref<4x128x16xbf16, #tpu.memory_space<vmem>>, %arg5: memref<4x16xf32, #tpu.memory_space<vmem>>, %arg6: memref<128x128xbf16, #tpu.memory_space<vmem>>, %arg7: memref<1x128xf32, #tpu.memory_space<vmem>>, %arg8: memref<9x128xf32, #tpu.memory_space<vmem>>, %arg9: memref<1x128xf32, #tpu.memory_space<vmem>>, %arg10: memref<49x9xf32, #tpu.memory_space<vmem>>, %arg11: memref<4x49x49xbf16, #tpu.memory_space<vmem>>, %arg12: memref<4x4xf32, #tpu.memory_space<smem>>, %arg13: memref<4x4xf32, #tpu.memory_space<smem>>, %arg14: memref<1x4xf32, #tpu.memory_space<smem>>, %arg15: memref<128x128xbf16, #tpu.memory_space<vmem>>, %arg16: memref<1x128xf32, #tpu.memory_space<vmem>>, %arg17: memref<1x128xf32, #tpu.memory_space<vmem>>, %arg18: memref<128x512xbf16, #tpu.memory_space<vmem>>, %arg19: memref<1x512xf32, #tpu.memory_space<vmem>>, %arg20: memref<9x512xf32, #tpu.memory_space<vmem>>, %arg21: memref<1x512xf32, #tpu.memory_space<vmem>>, %arg22: memref<512x128xbf16, #tpu.memory_space<vmem>>, %arg23: memref<1x128xf32, #tpu.memory_space<vmem>>, %arg24: memref<1x128xf32, #tpu.memory_space<vmem>>, %arg25: memref<1x49x128xf32, #tpu.memory_space<vmem>>, %arg26: memref<65x128xf32, #tpu.memory_space<vmem>>, %arg27: memref<65x512xf32, #tpu.memory_space<vmem>>) attributes {dimension_semantics = [#tpu.dimension_semantics<parallel>], iteration_bounds = array<i64: 2>, scalar_prefetch = 0 : i64, scratch_operands = 2 : i64, tpu.core_type = #tpu.core_type<tc>, window_params = [{transform_indices = @transform_0, window_bounds = array<i64: 1, 49, 128>}, {pipeline_mode = #tpu.pipeline_mode<synchronous>, transform_indices = @transform_1, window_bounds = array<i64: 4, 128, 16>}, {pipeline_mode = #tpu.pipeline_mode<synchronous>, transform_indices = @transform_2, window_bounds = array<i64: 4, 16>}, {pipeline_mode = #tpu.pipeline_mode<synchronous>, transform_indices = @transform_3, window_bounds = array<i64: 4, 128, 16>}, {pipeline_mode = #tpu.pipeline_mode<synchronous>, transform_indices = @transform_4, window_bounds = array<i64: 4, 16>}, {pipeline_mode = #tpu.pipeline_mode<synchronous>, transform_indices = @transform_5, window_bounds = array<i64: 128, 128>}, {pipeline_mode = #tpu.pipeline_mode<synchronous>, transform_indices = @transform_6, window_bounds = array<i64: 1, 128>}, {pipeline_mode = #tpu.pipeline_mode<synchronous>, transform_indices = @transform_7, window_bounds = array<i64: 9, 128>}, {pipeline_mode = #tpu.pipeline_mode<synchronous>, transform_indices = @transform_8, window_bounds = array<i64: 1, 128>}, {pipeline_mode = #tpu.pipeline_mode<synchronous>, transform_indices = @transform_9, window_bounds = array<i64: 49, 9>}, {pipeline_mode = #tpu.pipeline_mode<synchronous>, transform_indices = @transform_10, window_bounds = array<i64: 4, 49, 49>}, {transform_indices = @transform_11, window_bounds = array<i64: 4, 4>}, {transform_indices = @transform_12, window_bounds = array<i64: 4, 4>}, {transform_indices = @transform_13, window_bounds = array<i64: 1, 4>}, {pipeline_mode = #tpu.pipeline_mode<synchronous>, transform_indices = @transform_14, window_bounds = array<i64: 128, 128>}, {pipeline_mode = #tpu.pipeline_mode<synchronous>, transform_indices = @transform_15, window_bounds = array<i64: 1, 128>}, {pipeline_mode = #tpu.pipeline_mode<synchronous>, transform_indices = @transform_16, window_bounds = array<i64: 1, 128>}, {pipeline_mode = #tpu.pipeline_mode<synchronous>, transform_indices = @transform_17, window_bounds = array<i64: 128, 512>}, {pipeline_mode = #tpu.pipeline_mode<synchronous>, transform_indices = @transform_18, window_bounds = array<i64: 1, 512>}, {pipeline_mode = #tpu.pipeline_mode<synchronous>, transform_indices = @transform_19, window_bounds = array<i64: 9, 512>}, {pipeline_mode = #tpu.pipeline_mode<synchronous>, transform_indices = @transform_20, window_bounds = array<i64: 1, 512>}, {pipeline_mode = #tpu.pipeline_mode<synchronous>, transform_indices = @transform_21, window_bounds = array<i64: 512, 128>}, {pipeline_mode = #tpu.pipeline_mode<synchronous>, transform_indices = @transform_22, window_bounds = array<i64: 1, 128>}, {pipeline_mode = #tpu.pipeline_mode<synchronous>, transform_indices = @transform_23, window_bounds = array<i64: 1, 128>}, {transform_indices = @transform_24, window_bounds = array<i64: 1, 49, 128>}]} {
    %c0 = arith.constant 0 : index
    %c0_0 = arith.constant 0 : index
    %c0_1 = arith.constant 0 : index
    %0 = vector.load %arg1[%c0, %c0_0, %c0_1] : memref<1x49x128xf32, #tpu.memory_space<vmem>>, vector<1x49x128xf32>
    %1 = vector.shape_cast %0 : vector<1x49x128xf32> to vector<49x128xf32>
    %2 = arith.truncf %1 : vector<49x128xf32> to vector<49x128xbf16>
    %c0_2 = arith.constant 0 : index
    %c0_3 = arith.constant 0 : index
    %3 = vector.load %arg6[%c0_2, %c0_3] : memref<128x128xbf16, #tpu.memory_space<vmem>>, vector<128x128xbf16>
    %cst = arith.constant dense<0.000000e+00> : vector<49x128xf32>
    %4 = tpu.matmul %2, %3, %cst {dimension_numbers = #tpu.dot_dimension_numbers<[1], [0], [0], [1], [0, 0, 1, 1], [], []>} : vector<49x128xbf16>, vector<128x128xbf16>, vector<49x128xf32> -> vector<49x128xf32>
    %c0_4 = arith.constant 0 : index
    %c0_5 = arith.constant 0 : index
    %5 = vector.load %arg7[%c0_4, %c0_5] : memref<1x128xf32, #tpu.memory_space<vmem>>, vector<1x128xf32>
    %6 = vector.broadcast %5 : vector<1x128xf32> to vector<49x128xf32>
    %7 = arith.addf %4, %6 : vector<49x128xf32>
    %cst_6 = arith.constant 0.000000e+00 : f32
    %8 = vector.broadcast %cst_6 : f32 to vector<8x128xf32>
    %c0_7 = arith.constant 0 : index
    %c0_8 = arith.constant 0 : index
    %9 = vector.load %arg26[%c0_7, %c0_8] : memref<65x128xf32, #tpu.memory_space<vmem>>, vector<8x128xf32>
    tpu.vector_store %arg26[%c0_7, %c0_8], %8 {strides = array<i32>} : memref<65x128xf32, #tpu.memory_space<vmem>>, vector<8x128xf32>,
    %cst_9 = arith.constant 0.000000e+00 : f32
    %10 = vector.broadcast %cst_9 : f32 to vector<8x128xf32>
    %c57 = arith.constant 57 : index
    %c0_10 = arith.constant 0 : index
    %11 = vector.load %arg26[%c57, %c0_10] : memref<65x128xf32, #tpu.memory_space<vmem>>, vector<8x128xf32>
    tpu.vector_store %arg26[%c57, %c0_10], %10 {strides = array<i32>} : memref<65x128xf32, #tpu.memory_space<vmem>>, vector<8x128xf32>,
    %c8 = arith.constant 8 : index
    %c0_11 = arith.constant 0 : index
    %12 = vector.load %arg26[%c8, %c0_11] : memref<65x128xf32, #tpu.memory_space<vmem>>, vector<49x128xf32>
    tpu.vector_store %arg26[%c8, %c0_11], %7 {strides = array<i32>} : memref<65x128xf32, #tpu.memory_space<vmem>>, vector<49x128xf32>,
    %cst_12 = arith.constant 0.000000e+00 : f32
    %13 = vector.broadcast %cst_12 : f32 to vector<49x128xf32>
    %c0_13 = arith.constant 0 : index
    %c0_14 = arith.constant 0 : index
    %14 = vector.load %arg10[%c0_13, %c0_14] : memref<49x9xf32, #tpu.memory_space<vmem>>, vector<49x1xf32>
    %c0_15 = arith.constant 0 : index
    %c0_16 = arith.constant 0 : index
    %15 = vector.load %arg26[%c0_15, %c0_16] : memref<65x128xf32, #tpu.memory_space<vmem>>, vector<49x128xf32>
    %c0_17 = arith.constant 0 : index
    %c0_18 = arith.constant 0 : index
    %16 = vector.load %arg8[%c0_17, %c0_18] : memref<9x128xf32, #tpu.memory_space<vmem>>, vector<1x128xf32>
    %17 = vector.shape_cast %16 : vector<1x128xf32> to vector<128xf32>
    %18 = vector.shape_cast %17 : vector<128xf32> to vector<1x128xf32>
    %19 = vector.broadcast %14 : vector<49x1xf32> to vector<49x128xf32>
    %20 = vector.broadcast %18 : vector<1x128xf32> to vector<49x128xf32>
    %21 = arith.mulf %19, %20 : vector<49x128xf32>
    %22 = arith.mulf %15, %21 : vector<49x128xf32>
    %23 = arith.addf %13, %22 : vector<49x128xf32>
    %c0_19 = arith.constant 0 : index
    %c1 = arith.constant 1 : index
    %24 = vector.load %arg10[%c0_19, %c1] : memref<49x9xf32, #tpu.memory_space<vmem>>, vector<49x1xf32>
    %c1_20 = arith.constant 1 : index
    %c0_21 = arith.constant 0 : index
    %25 = vector.load %arg26[%c1_20, %c0_21] : memref<65x128xf32, #tpu.memory_space<vmem>>, vector<49x128xf32>
    %c1_22 = arith.constant 1 : index
    %c0_23 = arith.constant 0 : index
    %26 = vector.load %arg8[%c1_22, %c0_23] : memref<9x128xf32, #tpu.memory_space<vmem>>, vector<1x128xf32>
    %27 = vector.shape_cast %26 : vector<1x128xf32> to vector<128xf32>
    %28 = vector.shape_cast %27 : vector<128xf32> to vector<1x128xf32>
    %29 = vector.broadcast %24 : vector<49x1xf32> to vector<49x128xf32>
    %30 = vector.broadcast %28 : vector<1x128xf32> to vector<49x128xf32>
    %31 = arith.mulf %29, %30 : vector<49x128xf32>
    %32 = arith.mulf %25, %31 : vector<49x128xf32>
    %33 = arith.addf %23, %32 : vector<49x128xf32>
    %c0_24 = arith.constant 0 : index
    %c2 = arith.constant 2 : index
    %34 = vector.load %arg10[%c0_24, %c2] : memref<49x9xf32, #tpu.memory_space<vmem>>, vector<49x1xf32>
    %c2_25 = arith.constant 2 : index
    %c0_26 = arith.constant 0 : index
    %35 = vector.load %arg26[%c2_25, %c0_26] : memref<65x128xf32, #tpu.memory_space<vmem>>, vector<49x128xf32>
    %c2_27 = arith.constant 2 : index
    %c0_28 = arith.constant 0 : index
    %36 = vector.load %arg8[%c2_27, %c0_28] : memref<9x128xf32, #tpu.memory_space<vmem>>, vector<1x128xf32>
    %37 = vector.shape_cast %36 : vector<1x128xf32> to vector<128xf32>
    %38 = vector.shape_cast %37 : vector<128xf32> to vector<1x128xf32>
    %39 = vector.broadcast %34 : vector<49x1xf32> to vector<49x128xf32>
    %40 = vector.broadcast %38 : vector<1x128xf32> to vector<49x128xf32>
    %41 = arith.mulf %39, %40 : vector<49x128xf32>
    %42 = arith.mulf %35, %41 : vector<49x128xf32>
    %43 = arith.addf %33, %42 : vector<49x128xf32>
    %c0_29 = arith.constant 0 : index
    %c3 = arith.constant 3 : index
    %44 = vector.load %arg10[%c0_29, %c3] : memref<49x9xf32, #tpu.memory_space<vmem>>, vector<49x1xf32>
    %c7 = arith.constant 7 : index
    %c0_30 = arith.constant 0 : index
    %45 = vector.load %arg26[%c7, %c0_30] : memref<65x128xf32, #tpu.memory_space<vmem>>, vector<49x128xf32>
    %c3_31 = arith.constant 3 : index
    %c0_32 = arith.constant 0 : index
    %46 = vector.load %arg8[%c3_31, %c0_32] : memref<9x128xf32, #tpu.memory_space<vmem>>, vector<1x128xf32>
    %47 = vector.shape_cast %46 : vector<1x128xf32> to vector<128xf32>
    %48 = vector.shape_cast %47 : vector<128xf32> to vector<1x128xf32>
    %49 = vector.broadcast %44 : vector<49x1xf32> to vector<49x128xf32>
    %50 = vector.broadcast %48 : vector<1x128xf32> to vector<49x128xf32>
    %51 = arith.mulf %49, %50 : vector<49x128xf32>
    %52 = arith.mulf %45, %51 : vector<49x128xf32>
    %53 = arith.addf %43, %52 : vector<49x128xf32>
    %c0_33 = arith.constant 0 : index
    %c4 = arith.constant 4 : index
    %54 = vector.load %arg10[%c0_33, %c4] : memref<49x9xf32, #tpu.memory_space<vmem>>, vector<49x1xf32>
    %c8_34 = arith.constant 8 : index
    %c0_35 = arith.constant 0 : index
    %55 = vector.load %arg26[%c8_34, %c0_35] : memref<65x128xf32, #tpu.memory_space<vmem>>, vector<49x128xf32>
    %c4_36 = arith.constant 4 : index
    %c0_37 = arith.constant 0 : index
    %56 = vector.load %arg8[%c4_36, %c0_37] : memref<9x128xf32, #tpu.memory_space<vmem>>, vector<1x128xf32>
    %57 = vector.shape_cast %56 : vector<1x128xf32> to vector<128xf32>
    %58 = vector.shape_cast %57 : vector<128xf32> to vector<1x128xf32>
    %59 = vector.broadcast %54 : vector<49x1xf32> to vector<49x128xf32>
    %60 = vector.broadcast %58 : vector<1x128xf32> to vector<49x128xf32>
    %61 = arith.mulf %59, %60 : vector<49x128xf32>
    %62 = arith.mulf %55, %61 : vector<49x128xf32>
    %63 = arith.addf %53, %62 : vector<49x128xf32>
    %c0_38 = arith.constant 0 : index
    %c5 = arith.constant 5 : index
    %64 = vector.load %arg10[%c0_38, %c5] : memref<49x9xf32, #tpu.memory_space<vmem>>, vector<49x1xf32>
    %c9 = arith.constant 9 : index
    %c0_39 = arith.constant 0 : index
    %65 = vector.load %arg26[%c9, %c0_39] : memref<65x128xf32, #tpu.memory_space<vmem>>, vector<49x128xf32>
    %c5_40 = arith.constant 5 : index
    %c0_41 = arith.constant 0 : index
    %66 = vector.load %arg8[%c5_40, %c0_41] : memref<9x128xf32, #tpu.memory_space<vmem>>, vector<1x128xf32>
    %67 = vector.shape_cast %66 : vector<1x128xf32> to vector<128xf32>
    %68 = vector.shape_cast %67 : vector<128xf32> to vector<1x128xf32>
    %69 = vector.broadcast %64 : vector<49x1xf32> to vector<49x128xf32>
    %70 = vector.broadcast %68 : vector<1x128xf32> to vector<49x128xf32>
    %71 = arith.mulf %69, %70 : vector<49x128xf32>
    %72 = arith.mulf %65, %71 : vector<49x128xf32>
    %73 = arith.addf %63, %72 : vector<49x128xf32>
    %c0_42 = arith.constant 0 : index
    %c6 = arith.constant 6 : index
    %74 = vector.load %arg10[%c0_42, %c6] : memref<49x9xf32, #tpu.memory_space<vmem>>, vector<49x1xf32>
    %c14 = arith.constant 14 : index
    %c0_43 = arith.constant 0 : index
    %75 = vector.load %arg26[%c14, %c0_43] : memref<65x128xf32, #tpu.memory_space<vmem>>, vector<49x128xf32>
    %c6_44 = arith.constant 6 : index
    %c0_45 = arith.constant 0 : index
    %76 = vector.load %arg8[%c6_44, %c0_45] : memref<9x128xf32, #tpu.memory_space<vmem>>, vector<1x128xf32>
    %77 = vector.shape_cast %76 : vector<1x128xf32> to vector<128xf32>
    %78 = vector.shape_cast %77 : vector<128xf32> to vector<1x128xf32>
    %79 = vector.broadcast %74 : vector<49x1xf32> to vector<49x128xf32>
    %80 = vector.broadcast %78 : vector<1x128xf32> to vector<49x128xf32>
    %81 = arith.mulf %79, %80 : vector<49x128xf32>
    %82 = arith.mulf %75, %81 : vector<49x128xf32>
    %83 = arith.addf %73, %82 : vector<49x128xf32>
    %c0_46 = arith.constant 0 : index
    %c7_47 = arith.constant 7 : index
    %84 = vector.load %arg10[%c0_46, %c7_47] : memref<49x9xf32, #tpu.memory_space<vmem>>, vector<49x1xf32>
    %c15 = arith.constant 15 : index
    %c0_48 = arith.constant 0 : index
    %85 = vector.load %arg26[%c15, %c0_48] : memref<65x128xf32, #tpu.memory_space<vmem>>, vector<49x128xf32>
    %c7_49 = arith.constant 7 : index
    %c0_50 = arith.constant 0 : index
    %86 = vector.load %arg8[%c7_49, %c0_50] : memref<9x128xf32, #tpu.memory_space<vmem>>, vector<1x128xf32>
    %87 = vector.shape_cast %86 : vector<1x128xf32> to vector<128xf32>
    %88 = vector.shape_cast %87 : vector<128xf32> to vector<1x128xf32>
    %89 = vector.broadcast %84 : vector<49x1xf32> to vector<49x128xf32>
    %90 = vector.broadcast %88 : vector<1x128xf32> to vector<49x128xf32>
    %91 = arith.mulf %89, %90 : vector<49x128xf32>
    %92 = arith.mulf %85, %91 : vector<49x128xf32>
    %93 = arith.addf %83, %92 : vector<49x128xf32>
    %c0_51 = arith.constant 0 : index
    %c8_52 = arith.constant 8 : index
    %94 = vector.load %arg10[%c0_51, %c8_52] : memref<49x9xf32, #tpu.memory_space<vmem>>, vector<49x1xf32>
    %c16 = arith.constant 16 : index
    %c0_53 = arith.constant 0 : index
    %95 = vector.load %arg26[%c16, %c0_53] : memref<65x128xf32, #tpu.memory_space<vmem>>, vector<49x128xf32>
    %c8_54 = arith.constant 8 : index
    %c0_55 = arith.constant 0 : index
    %96 = vector.load %arg8[%c8_54, %c0_55] : memref<9x128xf32, #tpu.memory_space<vmem>>, vector<1x128xf32>
    %97 = vector.shape_cast %96 : vector<1x128xf32> to vector<128xf32>
    %98 = vector.shape_cast %97 : vector<128xf32> to vector<1x128xf32>
    %99 = vector.broadcast %94 : vector<49x1xf32> to vector<49x128xf32>
    %100 = vector.broadcast %98 : vector<1x128xf32> to vector<49x128xf32>
    %101 = arith.mulf %99, %100 : vector<49x128xf32>
    %102 = arith.mulf %95, %101 : vector<49x128xf32>
    %103 = arith.addf %93, %102 : vector<49x128xf32>
    %c0_56 = arith.constant 0 : index
    %c0_57 = arith.constant 0 : index
    %104 = vector.load %arg9[%c0_56, %c0_57] : memref<1x128xf32, #tpu.memory_space<vmem>>, vector<1x128xf32>
    %105 = vector.broadcast %104 : vector<1x128xf32> to vector<49x128xf32>
    %106 = arith.addf %103, %105 : vector<49x128xf32>
    %c0_58 = arith.constant 0 : index
    %c0_59 = arith.constant 0 : index
    %c0_60 = arith.constant 0 : index
    %107 = vector.load %arg2[%c0_58, %c0_59, %c0_60] : memref<4x128x16xbf16, #tpu.memory_space<vmem>>, vector<1x128x16xbf16>
    %108 = vector.shape_cast %107 : vector<1x128x16xbf16> to vector<128x16xbf16>
    %cst_61 = arith.constant dense<0.000000e+00> : vector<49x16xf32>
    %109 = tpu.matmul %2, %108, %cst_61 {dimension_numbers = #tpu.dot_dimension_numbers<[1], [0], [0], [1], [0, 0, 1, 1], [], []>} : vector<49x128xbf16>, vector<128x16xbf16>, vector<49x16xf32> -> vector<49x16xf32>
    %c0_62 = arith.constant 0 : index
    %c0_63 = arith.constant 0 : index
    %110 = vector.load %arg3[%c0_62, %c0_63] : memref<4x16xf32, #tpu.memory_space<vmem>>, vector<1x16xf32>
    %111 = vector.shape_cast %110 : vector<1x16xf32> to vector<16xf32>
    %112 = vector.shape_cast %111 : vector<16xf32> to vector<1x16xf32>
    %113 = vector.broadcast %112 : vector<1x16xf32> to vector<49x16xf32>
    %114 = arith.addf %109, %113 : vector<49x16xf32>
    %c0_64 = arith.constant 0 : index
    %c0_65 = arith.constant 0 : index
    %c0_66 = arith.constant 0 : index
    %115 = vector.load %arg4[%c0_64, %c0_65, %c0_66] : memref<4x128x16xbf16, #tpu.memory_space<vmem>>, vector<1x128x16xbf16>
    %116 = vector.shape_cast %115 : vector<1x128x16xbf16> to vector<128x16xbf16>
    %cst_67 = arith.constant dense<0.000000e+00> : vector<49x16xf32>
    %117 = tpu.matmul %2, %116, %cst_67 {dimension_numbers = #tpu.dot_dimension_numbers<[1], [0], [0], [1], [0, 0, 1, 1], [], []>} : vector<49x128xbf16>, vector<128x16xbf16>, vector<49x16xf32> -> vector<49x16xf32>
    %c0_68 = arith.constant 0 : index
    %c0_69 = arith.constant 0 : index
    %118 = vector.load %arg5[%c0_68, %c0_69] : memref<4x16xf32, #tpu.memory_space<vmem>>, vector<1x16xf32>
    %119 = vector.shape_cast %118 : vector<1x16xf32> to vector<16xf32>
    %120 = vector.shape_cast %119 : vector<16xf32> to vector<1x16xf32>
    %121 = vector.broadcast %120 : vector<1x16xf32> to vector<49x16xf32>
    %122 = arith.addf %117, %121 : vector<49x16xf32>
    %123 = arith.truncf %114 : vector<49x16xf32> to vector<49x16xbf16>
    %124 = arith.truncf %122 : vector<49x16xf32> to vector<49x16xbf16>
    %cst_70 = arith.constant dense<0.000000e+00> : vector<49x49xf32>
    %125 = tpu.matmul %123, %124, %cst_70 {dimension_numbers = #tpu.dot_dimension_numbers<[1], [1], [0], [0], [0, 0, 1, 0], [], []>} : vector<49x16xbf16>, vector<49x16xbf16>, vector<49x49xf32> -> vector<49x49xf32>
    %c0_71 = arith.constant 0 : index
    %c0_72 = arith.constant 0 : index
    %c0_73 = arith.constant 0 : index
    %126 = vector.load %arg11[%c0_71, %c0_72, %c0_73] : memref<4x49x49xbf16, #tpu.memory_space<vmem>>, vector<1x49x49xbf16>
    %127 = vector.shape_cast %126 : vector<1x49x49xbf16> to vector<49x49xbf16>
    %128 = arith.extf %127 : vector<49x49xbf16> to vector<49x49xf32>
    %129 = arith.addf %125, %128 : vector<49x49xf32>
    %c1_74 = arith.constant 1 : index
    %c0_75 = arith.constant 0 : index
    %c0_76 = arith.constant 0 : index
    %130 = vector.load %arg2[%c1_74, %c0_75, %c0_76] : memref<4x128x16xbf16, #tpu.memory_space<vmem>>, vector<1x128x16xbf16>
    %131 = vector.shape_cast %130 : vector<1x128x16xbf16> to vector<128x16xbf16>
    %cst_77 = arith.constant dense<0.000000e+00> : vector<49x16xf32>
    %132 = tpu.matmul %2, %131, %cst_77 {dimension_numbers = #tpu.dot_dimension_numbers<[1], [0], [0], [1], [0, 0, 1, 1], [], []>} : vector<49x128xbf16>, vector<128x16xbf16>, vector<49x16xf32> -> vector<49x16xf32>
    %c1_78 = arith.constant 1 : index
    %c0_79 = arith.constant 0 : index
    %133 = vector.load %arg3[%c1_78, %c0_79] : memref<4x16xf32, #tpu.memory_space<vmem>>, vector<1x16xf32>
    %134 = vector.shape_cast %133 : vector<1x16xf32> to vector<16xf32>
    %135 = vector.shape_cast %134 : vector<16xf32> to vector<1x16xf32>
    %136 = vector.broadcast %135 : vector<1x16xf32> to vector<49x16xf32>
    %137 = arith.addf %132, %136 : vector<49x16xf32>
    %c1_80 = arith.constant 1 : index
    %c0_81 = arith.constant 0 : index
    %c0_82 = arith.constant 0 : index
    %138 = vector.load %arg4[%c1_80, %c0_81, %c0_82] : memref<4x128x16xbf16, #tpu.memory_space<vmem>>, vector<1x128x16xbf16>
    %139 = vector.shape_cast %138 : vector<1x128x16xbf16> to vector<128x16xbf16>
    %cst_83 = arith.constant dense<0.000000e+00> : vector<49x16xf32>
    %140 = tpu.matmul %2, %139, %cst_83 {dimension_numbers = #tpu.dot_dimension_numbers<[1], [0], [0], [1], [0, 0, 1, 1], [], []>} : vector<49x128xbf16>, vector<128x16xbf16>, vector<49x16xf32> -> vector<49x16xf32>
    %c1_84 = arith.constant 1 : index
    %c0_85 = arith.constant 0 : index
    %141 = vector.load %arg5[%c1_84, %c0_85] : memref<4x16xf32, #tpu.memory_space<vmem>>, vector<1x16xf32>
    %142 = vector.shape_cast %141 : vector<1x16xf32> to vector<16xf32>
    %143 = vector.shape_cast %142 : vector<16xf32> to vector<1x16xf32>
    %144 = vector.broadcast %143 : vector<1x16xf32> to vector<49x16xf32>
    %145 = arith.addf %140, %144 : vector<49x16xf32>
    %146 = arith.truncf %137 : vector<49x16xf32> to vector<49x16xbf16>
    %147 = arith.truncf %145 : vector<49x16xf32> to vector<49x16xbf16>
    %cst_86 = arith.constant dense<0.000000e+00> : vector<49x49xf32>
    %148 = tpu.matmul %146, %147, %cst_86 {dimension_numbers = #tpu.dot_dimension_numbers<[1], [1], [0], [0], [0, 0, 1, 0], [], []>} : vector<49x16xbf16>, vector<49x16xbf16>, vector<49x49xf32> -> vector<49x49xf32>
    %c1_87 = arith.constant 1 : index
    %c0_88 = arith.constant 0 : index
    %c0_89 = arith.constant 0 : index
    %149 = vector.load %arg11[%c1_87, %c0_88, %c0_89] : memref<4x49x49xbf16, #tpu.memory_space<vmem>>, vector<1x49x49xbf16>
    %150 = vector.shape_cast %149 : vector<1x49x49xbf16> to vector<49x49xbf16>
    %151 = arith.extf %150 : vector<49x49xbf16> to vector<49x49xf32>
    %152 = arith.addf %148, %151 : vector<49x49xf32>
    %c2_90 = arith.constant 2 : index
    %c0_91 = arith.constant 0 : index
    %c0_92 = arith.constant 0 : index
    %153 = vector.load %arg2[%c2_90, %c0_91, %c0_92] : memref<4x128x16xbf16, #tpu.memory_space<vmem>>, vector<1x128x16xbf16>
    %154 = vector.shape_cast %153 : vector<1x128x16xbf16> to vector<128x16xbf16>
    %cst_93 = arith.constant dense<0.000000e+00> : vector<49x16xf32>
    %155 = tpu.matmul %2, %154, %cst_93 {dimension_numbers = #tpu.dot_dimension_numbers<[1], [0], [0], [1], [0, 0, 1, 1], [], []>} : vector<49x128xbf16>, vector<128x16xbf16>, vector<49x16xf32> -> vector<49x16xf32>
    %c2_94 = arith.constant 2 : index
    %c0_95 = arith.constant 0 : index
    %156 = vector.load %arg3[%c2_94, %c0_95] : memref<4x16xf32, #tpu.memory_space<vmem>>, vector<1x16xf32>
    %157 = vector.shape_cast %156 : vector<1x16xf32> to vector<16xf32>
    %158 = vector.shape_cast %157 : vector<16xf32> to vector<1x16xf32>
    %159 = vector.broadcast %158 : vector<1x16xf32> to vector<49x16xf32>
    %160 = arith.addf %155, %159 : vector<49x16xf32>
    %c2_96 = arith.constant 2 : index
    %c0_97 = arith.constant 0 : index
    %c0_98 = arith.constant 0 : index
    %161 = vector.load %arg4[%c2_96, %c0_97, %c0_98] : memref<4x128x16xbf16, #tpu.memory_space<vmem>>, vector<1x128x16xbf16>
    %162 = vector.shape_cast %161 : vector<1x128x16xbf16> to vector<128x16xbf16>
    %cst_99 = arith.constant dense<0.000000e+00> : vector<49x16xf32>
    %163 = tpu.matmul %2, %162, %cst_99 {dimension_numbers = #tpu.dot_dimension_numbers<[1], [0], [0], [1], [0, 0, 1, 1], [], []>} : vector<49x128xbf16>, vector<128x16xbf16>, vector<49x16xf32> -> vector<49x16xf32>
    %c2_100 = arith.constant 2 : index
    %c0_101 = arith.constant 0 : index
    %164 = vector.load %arg5[%c2_100, %c0_101] : memref<4x16xf32, #tpu.memory_space<vmem>>, vector<1x16xf32>
    %165 = vector.shape_cast %164 : vector<1x16xf32> to vector<16xf32>
    %166 = vector.shape_cast %165 : vector<16xf32> to vector<1x16xf32>
    %167 = vector.broadcast %166 : vector<1x16xf32> to vector<49x16xf32>
    %168 = arith.addf %163, %167 : vector<49x16xf32>
    %169 = arith.truncf %160 : vector<49x16xf32> to vector<49x16xbf16>
    %170 = arith.truncf %168 : vector<49x16xf32> to vector<49x16xbf16>
    %cst_102 = arith.constant dense<0.000000e+00> : vector<49x49xf32>
    %171 = tpu.matmul %169, %170, %cst_102 {dimension_numbers = #tpu.dot_dimension_numbers<[1], [1], [0], [0], [0, 0, 1, 0], [], []>} : vector<49x16xbf16>, vector<49x16xbf16>, vector<49x49xf32> -> vector<49x49xf32>
    %c2_103 = arith.constant 2 : index
    %c0_104 = arith.constant 0 : index
    %c0_105 = arith.constant 0 : index
    %172 = vector.load %arg11[%c2_103, %c0_104, %c0_105] : memref<4x49x49xbf16, #tpu.memory_space<vmem>>, vector<1x49x49xbf16>
    %173 = vector.shape_cast %172 : vector<1x49x49xbf16> to vector<49x49xbf16>
    %174 = arith.extf %173 : vector<49x49xbf16> to vector<49x49xf32>
    %175 = arith.addf %171, %174 : vector<49x49xf32>
    %c3_106 = arith.constant 3 : index
    %c0_107 = arith.constant 0 : index
    %c0_108 = arith.constant 0 : index
    %176 = vector.load %arg2[%c3_106, %c0_107, %c0_108] : memref<4x128x16xbf16, #tpu.memory_space<vmem>>, vector<1x128x16xbf16>
    %177 = vector.shape_cast %176 : vector<1x128x16xbf16> to vector<128x16xbf16>
    %cst_109 = arith.constant dense<0.000000e+00> : vector<49x16xf32>
    %178 = tpu.matmul %2, %177, %cst_109 {dimension_numbers = #tpu.dot_dimension_numbers<[1], [0], [0], [1], [0, 0, 1, 1], [], []>} : vector<49x128xbf16>, vector<128x16xbf16>, vector<49x16xf32> -> vector<49x16xf32>
    %c3_110 = arith.constant 3 : index
    %c0_111 = arith.constant 0 : index
    %179 = vector.load %arg3[%c3_110, %c0_111] : memref<4x16xf32, #tpu.memory_space<vmem>>, vector<1x16xf32>
    %180 = vector.shape_cast %179 : vector<1x16xf32> to vector<16xf32>
    %181 = vector.shape_cast %180 : vector<16xf32> to vector<1x16xf32>
    %182 = vector.broadcast %181 : vector<1x16xf32> to vector<49x16xf32>
    %183 = arith.addf %178, %182 : vector<49x16xf32>
    %c3_112 = arith.constant 3 : index
    %c0_113 = arith.constant 0 : index
    %c0_114 = arith.constant 0 : index
    %184 = vector.load %arg4[%c3_112, %c0_113, %c0_114] : memref<4x128x16xbf16, #tpu.memory_space<vmem>>, vector<1x128x16xbf16>
    %185 = vector.shape_cast %184 : vector<1x128x16xbf16> to vector<128x16xbf16>
    %cst_115 = arith.constant dense<0.000000e+00> : vector<49x16xf32>
    %186 = tpu.matmul %2, %185, %cst_115 {dimension_numbers = #tpu.dot_dimension_numbers<[1], [0], [0], [1], [0, 0, 1, 1], [], []>} : vector<49x128xbf16>, vector<128x16xbf16>, vector<49x16xf32> -> vector<49x16xf32>
    %c3_116 = arith.constant 3 : index
    %c0_117 = arith.constant 0 : index
    %187 = vector.load %arg5[%c3_116, %c0_117] : memref<4x16xf32, #tpu.memory_space<vmem>>, vector<1x16xf32>
    %188 = vector.shape_cast %187 : vector<1x16xf32> to vector<16xf32>
    %189 = vector.shape_cast %188 : vector<16xf32> to vector<1x16xf32>
    %190 = vector.broadcast %189 : vector<1x16xf32> to vector<49x16xf32>
    %191 = arith.addf %186, %190 : vector<49x16xf32>
    %192 = arith.truncf %183 : vector<49x16xf32> to vector<49x16xbf16>
    %193 = arith.truncf %191 : vector<49x16xf32> to vector<49x16xbf16>
    %cst_118 = arith.constant dense<0.000000e+00> : vector<49x49xf32>
    %194 = tpu.matmul %192, %193, %cst_118 {dimension_numbers = #tpu.dot_dimension_numbers<[1], [1], [0], [0], [0, 0, 1, 0], [], []>} : vector<49x16xbf16>, vector<49x16xbf16>, vector<49x49xf32> -> vector<49x49xf32>
    %c3_119 = arith.constant 3 : index
    %c0_120 = arith.constant 0 : index
    %c0_121 = arith.constant 0 : index
    %195 = vector.load %arg11[%c3_119, %c0_120, %c0_121] : memref<4x49x49xbf16, #tpu.memory_space<vmem>>, vector<1x49x49xbf16>
    %196 = vector.shape_cast %195 : vector<1x49x49xbf16> to vector<49x49xbf16>
    %197 = arith.extf %196 : vector<49x49xbf16> to vector<49x49xf32>
    %198 = arith.addf %194, %197 : vector<49x49xf32>
    %c0_122 = arith.constant 0 : index
    %c0_123 = arith.constant 0 : index
    %199 = memref.load %arg12[%c0_122, %c0_123] : memref<4x4xf32, #tpu.memory_space<smem>>
    %200 = vector.broadcast %199 : f32 to vector<49x49xf32>
    %201 = arith.mulf %200, %129 : vector<49x49xf32>
    %cst_124 = arith.constant 0.000000e+00 : f32
    %202 = vector.broadcast %cst_124 : f32 to vector<49x49xf32>
    %203 = arith.addf %202, %201 : vector<49x49xf32>
    %c0_125 = arith.constant 0 : index
    %c1_126 = arith.constant 1 : index
    %204 = memref.load %arg12[%c0_125, %c1_126] : memref<4x4xf32, #tpu.memory_space<smem>>
    %205 = vector.broadcast %204 : f32 to vector<49x49xf32>
    %206 = arith.mulf %205, %152 : vector<49x49xf32>
    %207 = arith.addf %203, %206 : vector<49x49xf32>
    %c0_127 = arith.constant 0 : index
    %c2_128 = arith.constant 2 : index
    %208 = memref.load %arg12[%c0_127, %c2_128] : memref<4x4xf32, #tpu.memory_space<smem>>
    %209 = vector.broadcast %208 : f32 to vector<49x49xf32>
    %210 = arith.mulf %209, %175 : vector<49x49xf32>
    %211 = arith.addf %207, %210 : vector<49x49xf32>
    %c0_129 = arith.constant 0 : index
    %c3_130 = arith.constant 3 : index
    %212 = memref.load %arg12[%c0_129, %c3_130] : memref<4x4xf32, #tpu.memory_space<smem>>
    %213 = vector.broadcast %212 : f32 to vector<49x49xf32>
    %214 = arith.mulf %213, %198 : vector<49x49xf32>
    %215 = arith.addf %211, %214 : vector<49x49xf32>
    %cst_131 = arith.constant dense<0xFF800000> : vector<49xf32>
    %216 = vector.multi_reduction <maximumf>, %215, %cst_131 [1] : vector<49x49xf32> to vector<49xf32>
    %217 = vector.shape_cast %216 : vector<49xf32> to vector<49x1xf32>
    %218 = vector.broadcast %217 : vector<49x1xf32> to vector<49x49xf32>
    %219 = arith.subf %215, %218 : vector<49x49xf32>
    %220 = math.exp %219 : vector<49x49xf32>
    %cst_132 = arith.constant dense<0.000000e+00> : vector<49xf32>
    %221 = vector.multi_reduction <add>, %220, %cst_132 [1] : vector<49x49xf32> to vector<49xf32>
    %222 = vector.shape_cast %221 : vector<49xf32> to vector<49x1xf32>
    %223 = tpu.reciprocal %222 {approx = true} : vector<49x1xf32> -> vector<49x1xf32>
    %224 = vector.broadcast %223 : vector<49x1xf32> to vector<49x49xf32>
    %225 = arith.mulf %220, %224 : vector<49x49xf32>
    %c1_133 = arith.constant 1 : index
    %c0_134 = arith.constant 0 : index
    %226 = memref.load %arg12[%c1_133, %c0_134] : memref<4x4xf32, #tpu.memory_space<smem>>
    %227 = vector.broadcast %226 : f32 to vector<49x49xf32>
    %228 = arith.mulf %227, %129 : vector<49x49xf32>
    %cst_135 = arith.constant 0.000000e+00 : f32
    %229 = vector.broadcast %cst_135 : f32 to vector<49x49xf32>
    %230 = arith.addf %229, %228 : vector<49x49xf32>
    %c1_136 = arith.constant 1 : index
    %c1_137 = arith.constant 1 : index
    %231 = memref.load %arg12[%c1_136, %c1_137] : memref<4x4xf32, #tpu.memory_space<smem>>
    %232 = vector.broadcast %231 : f32 to vector<49x49xf32>
    %233 = arith.mulf %232, %152 : vector<49x49xf32>
    %234 = arith.addf %230, %233 : vector<49x49xf32>
    %c1_138 = arith.constant 1 : index
    %c2_139 = arith.constant 2 : index
    %235 = memref.load %arg12[%c1_138, %c2_139] : memref<4x4xf32, #tpu.memory_space<smem>>
    %236 = vector.broadcast %235 : f32 to vector<49x49xf32>
    %237 = arith.mulf %236, %175 : vector<49x49xf32>
    %238 = arith.addf %234, %237 : vector<49x49xf32>
    %c1_140 = arith.constant 1 : index
    %c3_141 = arith.constant 3 : index
    %239 = memref.load %arg12[%c1_140, %c3_141] : memref<4x4xf32, #tpu.memory_space<smem>>
    %240 = vector.broadcast %239 : f32 to vector<49x49xf32>
    %241 = arith.mulf %240, %198 : vector<49x49xf32>
    %242 = arith.addf %238, %241 : vector<49x49xf32>
    %cst_142 = arith.constant dense<0xFF800000> : vector<49xf32>
    %243 = vector.multi_reduction <maximumf>, %242, %cst_142 [1] : vector<49x49xf32> to vector<49xf32>
    %244 = vector.shape_cast %243 : vector<49xf32> to vector<49x1xf32>
    %245 = vector.broadcast %244 : vector<49x1xf32> to vector<49x49xf32>
    %246 = arith.subf %242, %245 : vector<49x49xf32>
    %247 = math.exp %246 : vector<49x49xf32>
    %cst_143 = arith.constant dense<0.000000e+00> : vector<49xf32>
    %248 = vector.multi_reduction <add>, %247, %cst_143 [1] : vector<49x49xf32> to vector<49xf32>
    %249 = vector.shape_cast %248 : vector<49xf32> to vector<49x1xf32>
    %250 = tpu.reciprocal %249 {approx = true} : vector<49x1xf32> -> vector<49x1xf32>
    %251 = vector.broadcast %250 : vector<49x1xf32> to vector<49x49xf32>
    %252 = arith.mulf %247, %251 : vector<49x49xf32>
    %c2_144 = arith.constant 2 : index
    %c0_145 = arith.constant 0 : index
    %253 = memref.load %arg12[%c2_144, %c0_145] : memref<4x4xf32, #tpu.memory_space<smem>>
    %254 = vector.broadcast %253 : f32 to vector<49x49xf32>
    %255 = arith.mulf %254, %129 : vector<49x49xf32>
    %cst_146 = arith.constant 0.000000e+00 : f32
    %256 = vector.broadcast %cst_146 : f32 to vector<49x49xf32>
    %257 = arith.addf %256, %255 : vector<49x49xf32>
    %c2_147 = arith.constant 2 : index
    %c1_148 = arith.constant 1 : index
    %258 = memref.load %arg12[%c2_147, %c1_148] : memref<4x4xf32, #tpu.memory_space<smem>>
    %259 = vector.broadcast %258 : f32 to vector<49x49xf32>
    %260 = arith.mulf %259, %152 : vector<49x49xf32>
    %261 = arith.addf %257, %260 : vector<49x49xf32>
    %c2_149 = arith.constant 2 : index
    %c2_150 = arith.constant 2 : index
    %262 = memref.load %arg12[%c2_149, %c2_150] : memref<4x4xf32, #tpu.memory_space<smem>>
    %263 = vector.broadcast %262 : f32 to vector<49x49xf32>
    %264 = arith.mulf %263, %175 : vector<49x49xf32>
    %265 = arith.addf %261, %264 : vector<49x49xf32>
    %c2_151 = arith.constant 2 : index
    %c3_152 = arith.constant 3 : index
    %266 = memref.load %arg12[%c2_151, %c3_152] : memref<4x4xf32, #tpu.memory_space<smem>>
    %267 = vector.broadcast %266 : f32 to vector<49x49xf32>
    %268 = arith.mulf %267, %198 : vector<49x49xf32>
    %269 = arith.addf %265, %268 : vector<49x49xf32>
    %cst_153 = arith.constant dense<0xFF800000> : vector<49xf32>
    %270 = vector.multi_reduction <maximumf>, %269, %cst_153 [1] : vector<49x49xf32> to vector<49xf32>
    %271 = vector.shape_cast %270 : vector<49xf32> to vector<49x1xf32>
    %272 = vector.broadcast %271 : vector<49x1xf32> to vector<49x49xf32>
    %273 = arith.subf %269, %272 : vector<49x49xf32>
    %274 = math.exp %273 : vector<49x49xf32>
    %cst_154 = arith.constant dense<0.000000e+00> : vector<49xf32>
    %275 = vector.multi_reduction <add>, %274, %cst_154 [1] : vector<49x49xf32> to vector<49xf32>
    %276 = vector.shape_cast %275 : vector<49xf32> to vector<49x1xf32>
    %277 = tpu.reciprocal %276 {approx = true} : vector<49x1xf32> -> vector<49x1xf32>
    %278 = vector.broadcast %277 : vector<49x1xf32> to vector<49x49xf32>
    %279 = arith.mulf %274, %278 : vector<49x49xf32>
    %c3_155 = arith.constant 3 : index
    %c0_156 = arith.constant 0 : index
    %280 = memref.load %arg12[%c3_155, %c0_156] : memref<4x4xf32, #tpu.memory_space<smem>>
    %281 = vector.broadcast %280 : f32 to vector<49x49xf32>
    %282 = arith.mulf %281, %129 : vector<49x49xf32>
    %cst_157 = arith.constant 0.000000e+00 : f32
    %283 = vector.broadcast %cst_157 : f32 to vector<49x49xf32>
    %284 = arith.addf %283, %282 : vector<49x49xf32>
    %c3_158 = arith.constant 3 : index
    %c1_159 = arith.constant 1 : index
    %285 = memref.load %arg12[%c3_158, %c1_159] : memref<4x4xf32, #tpu.memory_space<smem>>
    %286 = vector.broadcast %285 : f32 to vector<49x49xf32>
    %287 = arith.mulf %286, %152 : vector<49x49xf32>
    %288 = arith.addf %284, %287 : vector<49x49xf32>
    %c3_160 = arith.constant 3 : index
    %c2_161 = arith.constant 2 : index
    %289 = memref.load %arg12[%c3_160, %c2_161] : memref<4x4xf32, #tpu.memory_space<smem>>
    %290 = vector.broadcast %289 : f32 to vector<49x49xf32>
    %291 = arith.mulf %290, %175 : vector<49x49xf32>
    %292 = arith.addf %288, %291 : vector<49x49xf32>
    %c3_162 = arith.constant 3 : index
    %c3_163 = arith.constant 3 : index
    %293 = memref.load %arg12[%c3_162, %c3_163] : memref<4x4xf32, #tpu.memory_space<smem>>
    %294 = vector.broadcast %293 : f32 to vector<49x49xf32>
    %295 = arith.mulf %294, %198 : vector<49x49xf32>
    %296 = arith.addf %292, %295 : vector<49x49xf32>
    %cst_164 = arith.constant dense<0xFF800000> : vector<49xf32>
    %297 = vector.multi_reduction <maximumf>, %296, %cst_164 [1] : vector<49x49xf32> to vector<49xf32>
    %298 = vector.shape_cast %297 : vector<49xf32> to vector<49x1xf32>
    %299 = vector.broadcast %298 : vector<49x1xf32> to vector<49x49xf32>
    %300 = arith.subf %296, %299 : vector<49x49xf32>
    %301 = math.exp %300 : vector<49x49xf32>
    %cst_165 = arith.constant dense<0.000000e+00> : vector<49xf32>
    %302 = vector.multi_reduction <add>, %301, %cst_165 [1] : vector<49x49xf32> to vector<49xf32>
    %303 = vector.shape_cast %302 : vector<49xf32> to vector<49x1xf32>
    %304 = tpu.reciprocal %303 {approx = true} : vector<49x1xf32> -> vector<49x1xf32>
    %305 = vector.broadcast %304 : vector<49x1xf32> to vector<49x49xf32>
    %306 = arith.mulf %301, %305 : vector<49x49xf32>
    %c0_166 = arith.constant 0 : index
    %c0_167 = arith.constant 0 : index
    %307 = memref.load %arg14[%c0_166, %c0_167] : memref<1x4xf32, #tpu.memory_space<smem>>
    %c0_168 = arith.constant 0 : index
    %c0_169 = arith.constant 0 : index
    %308 = memref.load %arg13[%c0_168, %c0_169] : memref<4x4xf32, #tpu.memory_space<smem>>
    %309 = vector.broadcast %308 : f32 to vector<49x49xf32>
    %310 = arith.mulf %309, %225 : vector<49x49xf32>
    %cst_170 = arith.constant 0.000000e+00 : f32
    %311 = vector.broadcast %cst_170 : f32 to vector<49x49xf32>
    %312 = arith.addf %311, %310 : vector<49x49xf32>
    %c0_171 = arith.constant 0 : index
    %c1_172 = arith.constant 1 : index
    %313 = memref.load %arg13[%c0_171, %c1_172] : memref<4x4xf32, #tpu.memory_space<smem>>
    %314 = vector.broadcast %313 : f32 to vector<49x49xf32>
    %315 = arith.mulf %314, %252 : vector<49x49xf32>
    %316 = arith.addf %312, %315 : vector<49x49xf32>
    %c0_173 = arith.constant 0 : index
    %c2_174 = arith.constant 2 : index
    %317 = memref.load %arg13[%c0_173, %c2_174] : memref<4x4xf32, #tpu.memory_space<smem>>
    %318 = vector.broadcast %317 : f32 to vector<49x49xf32>
    %319 = arith.mulf %318, %279 : vector<49x49xf32>
    %320 = arith.addf %316, %319 : vector<49x49xf32>
    %c0_175 = arith.constant 0 : index
    %c3_176 = arith.constant 3 : index
    %321 = memref.load %arg13[%c0_175, %c3_176] : memref<4x4xf32, #tpu.memory_space<smem>>
    %322 = vector.broadcast %321 : f32 to vector<49x49xf32>
    %323 = arith.mulf %322, %306 : vector<49x49xf32>
    %324 = arith.addf %320, %323 : vector<49x49xf32>
    %325 = vector.broadcast %307 : f32 to vector<49x49xf32>
    %326 = arith.addf %325, %324 : vector<49x49xf32>
    %c8_177 = arith.constant 8 : index
    %c0_178 = arith.constant 0 : index
    %327 = vector.load %arg26[%c8_177, %c0_178] : memref<65x128xf32, #tpu.memory_space<vmem>>, vector<49x32xf32>
    %328 = arith.truncf %327 : vector<49x32xf32> to vector<49x32xbf16>
    %329 = arith.truncf %326 : vector<49x49xf32> to vector<49x49xbf16>
    %cst_179 = arith.constant dense<0.000000e+00> : vector<49x32xf32>
    %330 = tpu.matmul %329, %328, %cst_179 {dimension_numbers = #tpu.dot_dimension_numbers<[1], [0], [0], [1], [0, 0, 1, 1], [], []>} : vector<49x49xbf16>, vector<49x32xbf16>, vector<49x32xf32> -> vector<49x32xf32>
    %c0_180 = arith.constant 0 : index
    %c1_181 = arith.constant 1 : index
    %331 = memref.load %arg14[%c0_180, %c1_181] : memref<1x4xf32, #tpu.memory_space<smem>>
    %c1_182 = arith.constant 1 : index
    %c0_183 = arith.constant 0 : index
    %332 = memref.load %arg13[%c1_182, %c0_183] : memref<4x4xf32, #tpu.memory_space<smem>>
    %333 = vector.broadcast %332 : f32 to vector<49x49xf32>
    %334 = arith.mulf %333, %225 : vector<49x49xf32>
    %cst_184 = arith.constant 0.000000e+00 : f32
    %335 = vector.broadcast %cst_184 : f32 to vector<49x49xf32>
    %336 = arith.addf %335, %334 : vector<49x49xf32>
    %c1_185 = arith.constant 1 : index
    %c1_186 = arith.constant 1 : index
    %337 = memref.load %arg13[%c1_185, %c1_186] : memref<4x4xf32, #tpu.memory_space<smem>>
    %338 = vector.broadcast %337 : f32 to vector<49x49xf32>
    %339 = arith.mulf %338, %252 : vector<49x49xf32>
    %340 = arith.addf %336, %339 : vector<49x49xf32>
    %c1_187 = arith.constant 1 : index
    %c2_188 = arith.constant 2 : index
    %341 = memref.load %arg13[%c1_187, %c2_188] : memref<4x4xf32, #tpu.memory_space<smem>>
    %342 = vector.broadcast %341 : f32 to vector<49x49xf32>
    %343 = arith.mulf %342, %279 : vector<49x49xf32>
    %344 = arith.addf %340, %343 : vector<49x49xf32>
    %c1_189 = arith.constant 1 : index
    %c3_190 = arith.constant 3 : index
    %345 = memref.load %arg13[%c1_189, %c3_190] : memref<4x4xf32, #tpu.memory_space<smem>>
    %346 = vector.broadcast %345 : f32 to vector<49x49xf32>
    %347 = arith.mulf %346, %306 : vector<49x49xf32>
    %348 = arith.addf %344, %347 : vector<49x49xf32>
    %349 = vector.broadcast %331 : f32 to vector<49x49xf32>
    %350 = arith.addf %349, %348 : vector<49x49xf32>
    %c8_191 = arith.constant 8 : index
    %c32 = arith.constant 32 : index
    %351 = vector.load %arg26[%c8_191, %c32] : memref<65x128xf32, #tpu.memory_space<vmem>>, vector<49x32xf32>
    %352 = arith.truncf %351 : vector<49x32xf32> to vector<49x32xbf16>
    %353 = arith.truncf %350 : vector<49x49xf32> to vector<49x49xbf16>
    %cst_192 = arith.constant dense<0.000000e+00> : vector<49x32xf32>
    %354 = tpu.matmul %353, %352, %cst_192 {dimension_numbers = #tpu.dot_dimension_numbers<[1], [0], [0], [1], [0, 0, 1, 1], [], []>} : vector<49x49xbf16>, vector<49x32xbf16>, vector<49x32xf32> -> vector<49x32xf32>
    %c0_193 = arith.constant 0 : index
    %c2_194 = arith.constant 2 : index
    %355 = memref.load %arg14[%c0_193, %c2_194] : memref<1x4xf32, #tpu.memory_space<smem>>
    %c2_195 = arith.constant 2 : index
    %c0_196 = arith.constant 0 : index
    %356 = memref.load %arg13[%c2_195, %c0_196] : memref<4x4xf32, #tpu.memory_space<smem>>
    %357 = vector.broadcast %356 : f32 to vector<49x49xf32>
    %358 = arith.mulf %357, %225 : vector<49x49xf32>
    %cst_197 = arith.constant 0.000000e+00 : f32
    %359 = vector.broadcast %cst_197 : f32 to vector<49x49xf32>
    %360 = arith.addf %359, %358 : vector<49x49xf32>
    %c2_198 = arith.constant 2 : index
    %c1_199 = arith.constant 1 : index
    %361 = memref.load %arg13[%c2_198, %c1_199] : memref<4x4xf32, #tpu.memory_space<smem>>
    %362 = vector.broadcast %361 : f32 to vector<49x49xf32>
    %363 = arith.mulf %362, %252 : vector<49x49xf32>
    %364 = arith.addf %360, %363 : vector<49x49xf32>
    %c2_200 = arith.constant 2 : index
    %c2_201 = arith.constant 2 : index
    %365 = memref.load %arg13[%c2_200, %c2_201] : memref<4x4xf32, #tpu.memory_space<smem>>
    %366 = vector.broadcast %365 : f32 to vector<49x49xf32>
    %367 = arith.mulf %366, %279 : vector<49x49xf32>
    %368 = arith.addf %364, %367 : vector<49x49xf32>
    %c2_202 = arith.constant 2 : index
    %c3_203 = arith.constant 3 : index
    %369 = memref.load %arg13[%c2_202, %c3_203] : memref<4x4xf32, #tpu.memory_space<smem>>
    %370 = vector.broadcast %369 : f32 to vector<49x49xf32>
    %371 = arith.mulf %370, %306 : vector<49x49xf32>
    %372 = arith.addf %368, %371 : vector<49x49xf32>
    %373 = vector.broadcast %355 : f32 to vector<49x49xf32>
    %374 = arith.addf %373, %372 : vector<49x49xf32>
    %c8_204 = arith.constant 8 : index
    %c64 = arith.constant 64 : index
    %375 = vector.load %arg26[%c8_204, %c64] : memref<65x128xf32, #tpu.memory_space<vmem>>, vector<49x32xf32>
    %376 = arith.truncf %375 : vector<49x32xf32> to vector<49x32xbf16>
    %377 = arith.truncf %374 : vector<49x49xf32> to vector<49x49xbf16>
    %cst_205 = arith.constant dense<0.000000e+00> : vector<49x32xf32>
    %378 = tpu.matmul %377, %376, %cst_205 {dimension_numbers = #tpu.dot_dimension_numbers<[1], [0], [0], [1], [0, 0, 1, 1], [], []>} : vector<49x49xbf16>, vector<49x32xbf16>, vector<49x32xf32> -> vector<49x32xf32>
    %c0_206 = arith.constant 0 : index
    %c3_207 = arith.constant 3 : index
    %379 = memref.load %arg14[%c0_206, %c3_207] : memref<1x4xf32, #tpu.memory_space<smem>>
    %c3_208 = arith.constant 3 : index
    %c0_209 = arith.constant 0 : index
    %380 = memref.load %arg13[%c3_208, %c0_209] : memref<4x4xf32, #tpu.memory_space<smem>>
    %381 = vector.broadcast %380 : f32 to vector<49x49xf32>
    %382 = arith.mulf %381, %225 : vector<49x49xf32>
    %cst_210 = arith.constant 0.000000e+00 : f32
    %383 = vector.broadcast %cst_210 : f32 to vector<49x49xf32>
    %384 = arith.addf %383, %382 : vector<49x49xf32>
    %c3_211 = arith.constant 3 : index
    %c1_212 = arith.constant 1 : index
    %385 = memref.load %arg13[%c3_211, %c1_212] : memref<4x4xf32, #tpu.memory_space<smem>>
    %386 = vector.broadcast %385 : f32 to vector<49x49xf32>
    %387 = arith.mulf %386, %252 : vector<49x49xf32>
    %388 = arith.addf %384, %387 : vector<49x49xf32>
    %c3_213 = arith.constant 3 : index
    %c2_214 = arith.constant 2 : index
    %389 = memref.load %arg13[%c3_213, %c2_214] : memref<4x4xf32, #tpu.memory_space<smem>>
    %390 = vector.broadcast %389 : f32 to vector<49x49xf32>
    %391 = arith.mulf %390, %279 : vector<49x49xf32>
    %392 = arith.addf %388, %391 : vector<49x49xf32>
    %c3_215 = arith.constant 3 : index
    %c3_216 = arith.constant 3 : index
    %393 = memref.load %arg13[%c3_215, %c3_216] : memref<4x4xf32, #tpu.memory_space<smem>>
    %394 = vector.broadcast %393 : f32 to vector<49x49xf32>
    %395 = arith.mulf %394, %306 : vector<49x49xf32>
    %396 = arith.addf %392, %395 : vector<49x49xf32>
    %397 = vector.broadcast %379 : f32 to vector<49x49xf32>
    %398 = arith.addf %397, %396 : vector<49x49xf32>
    %c8_217 = arith.constant 8 : index
    %c96 = arith.constant 96 : index
    %399 = vector.load %arg26[%c8_217, %c96] : memref<65x128xf32, #tpu.memory_space<vmem>>, vector<49x32xf32>
    %400 = arith.truncf %399 : vector<49x32xf32> to vector<49x32xbf16>
    %401 = arith.truncf %398 : vector<49x49xf32> to vector<49x49xbf16>
    %cst_218 = arith.constant dense<0.000000e+00> : vector<49x32xf32>
    %402 = tpu.matmul %401, %400, %cst_218 {dimension_numbers = #tpu.dot_dimension_numbers<[1], [0], [0], [1], [0, 0, 1, 1], [], []>} : vector<49x49xbf16>, vector<49x32xbf16>, vector<49x32xf32> -> vector<49x32xf32>
    %403 = tpu.concatenate %330, %354, %378, %402 in 1 : vector<49x32xf32>, vector<49x32xf32>, vector<49x32xf32>, vector<49x32xf32> -> vector<49x128xf32>
    %404 = arith.addf %403, %106 : vector<49x128xf32>
    %cst_219 = arith.constant 0.000000e+00 : f32
    %405 = vector.broadcast %cst_219 : f32 to vector<49x128xf32>
    %406 = arith.maximumf %404, %405 : vector<49x128xf32>
    %c0_220 = arith.constant 0 : index
    %c0_221 = arith.constant 0 : index
    %407 = vector.load %arg15[%c0_220, %c0_221] : memref<128x128xbf16, #tpu.memory_space<vmem>>, vector<128x128xbf16>
    %408 = arith.truncf %406 : vector<49x128xf32> to vector<49x128xbf16>
    %cst_222 = arith.constant dense<0.000000e+00> : vector<49x128xf32>
    %409 = tpu.matmul %408, %407, %cst_222 {dimension_numbers = #tpu.dot_dimension_numbers<[1], [0], [0], [1], [0, 0, 1, 1], [], []>} : vector<49x128xbf16>, vector<128x128xbf16>, vector<49x128xf32> -> vector<49x128xf32>
    %c0_223 = arith.constant 0 : index
    %c0_224 = arith.constant 0 : index
    %410 = vector.load %arg16[%c0_223, %c0_224] : memref<1x128xf32, #tpu.memory_space<vmem>>, vector<1x128xf32>
    %411 = vector.broadcast %410 : vector<1x128xf32> to vector<49x128xf32>
    %412 = arith.addf %409, %411 : vector<49x128xf32>
    %c0_225 = arith.constant 0 : index
    %c0_226 = arith.constant 0 : index
    %413 = vector.load %arg17[%c0_225, %c0_226] : memref<1x128xf32, #tpu.memory_space<vmem>>, vector<1x128xf32>
    %414 = vector.broadcast %413 : vector<1x128xf32> to vector<49x128xf32>
    %415 = arith.mulf %414, %412 : vector<49x128xf32>
    %416 = arith.addf %1, %415 : vector<49x128xf32>
    %c0_227 = arith.constant 0 : index
    %c0_228 = arith.constant 0 : index
    %417 = vector.load %arg18[%c0_227, %c0_228] : memref<128x512xbf16, #tpu.memory_space<vmem>>, vector<128x512xbf16>
    %418 = arith.truncf %416 : vector<49x128xf32> to vector<49x128xbf16>
    %cst_229 = arith.constant dense<0.000000e+00> : vector<49x512xf32>
    %419 = tpu.matmul %418, %417, %cst_229 {dimension_numbers = #tpu.dot_dimension_numbers<[1], [0], [0], [1], [0, 0, 1, 1], [], []>} : vector<49x128xbf16>, vector<128x512xbf16>, vector<49x512xf32> -> vector<49x512xf32>
    %c0_230 = arith.constant 0 : index
    %c0_231 = arith.constant 0 : index
    %420 = vector.load %arg19[%c0_230, %c0_231] : memref<1x512xf32, #tpu.memory_space<vmem>>, vector<1x512xf32>
    %421 = vector.broadcast %420 : vector<1x512xf32> to vector<49x512xf32>
    %422 = arith.addf %419, %421 : vector<49x512xf32>
    %cst_232 = arith.constant 0.000000e+00 : f32
    %423 = vector.broadcast %cst_232 : f32 to vector<49x512xf32>
    %424 = arith.maximumf %422, %423 : vector<49x512xf32>
    %cst_233 = arith.constant 0.000000e+00 : f32
    %425 = vector.broadcast %cst_233 : f32 to vector<8x512xf32>
    %c0_234 = arith.constant 0 : index
    %c0_235 = arith.constant 0 : index
    %426 = vector.load %arg27[%c0_234, %c0_235] : memref<65x512xf32, #tpu.memory_space<vmem>>, vector<8x512xf32>
    tpu.vector_store %arg27[%c0_234, %c0_235], %425 {strides = array<i32>} : memref<65x512xf32, #tpu.memory_space<vmem>>, vector<8x512xf32>,
    %cst_236 = arith.constant 0.000000e+00 : f32
    %427 = vector.broadcast %cst_236 : f32 to vector<8x512xf32>
    %c57_237 = arith.constant 57 : index
    %c0_238 = arith.constant 0 : index
    %428 = vector.load %arg27[%c57_237, %c0_238] : memref<65x512xf32, #tpu.memory_space<vmem>>, vector<8x512xf32>
    tpu.vector_store %arg27[%c57_237, %c0_238], %427 {strides = array<i32>} : memref<65x512xf32, #tpu.memory_space<vmem>>, vector<8x512xf32>,
    %c8_239 = arith.constant 8 : index
    %c0_240 = arith.constant 0 : index
    %429 = vector.load %arg27[%c8_239, %c0_240] : memref<65x512xf32, #tpu.memory_space<vmem>>, vector<49x512xf32>
    tpu.vector_store %arg27[%c8_239, %c0_240], %424 {strides = array<i32>} : memref<65x512xf32, #tpu.memory_space<vmem>>, vector<49x512xf32>,
    %cst_241 = arith.constant 0.000000e+00 : f32
    %430 = vector.broadcast %cst_241 : f32 to vector<49x512xf32>
    %c0_242 = arith.constant 0 : index
    %c0_243 = arith.constant 0 : index
    %431 = vector.load %arg10[%c0_242, %c0_243] : memref<49x9xf32, #tpu.memory_space<vmem>>, vector<49x1xf32>
    %c0_244 = arith.constant 0 : index
    %c0_245 = arith.constant 0 : index
    %432 = vector.load %arg27[%c0_244, %c0_245] : memref<65x512xf32, #tpu.memory_space<vmem>>, vector<49x512xf32>
    %c0_246 = arith.constant 0 : index
    %c0_247 = arith.constant 0 : index
    %433 = vector.load %arg20[%c0_246, %c0_247] : memref<9x512xf32, #tpu.memory_space<vmem>>, vector<1x512xf32>
    %434 = vector.shape_cast %433 : vector<1x512xf32> to vector<512xf32>
    %435 = vector.shape_cast %434 : vector<512xf32> to vector<1x512xf32>
    %436 = vector.broadcast %431 : vector<49x1xf32> to vector<49x512xf32>
    %437 = vector.broadcast %435 : vector<1x512xf32> to vector<49x512xf32>
    %438 = arith.mulf %436, %437 : vector<49x512xf32>
    %439 = arith.mulf %432, %438 : vector<49x512xf32>
    %440 = arith.addf %430, %439 : vector<49x512xf32>
    %c0_248 = arith.constant 0 : index
    %c1_249 = arith.constant 1 : index
    %441 = vector.load %arg10[%c0_248, %c1_249] : memref<49x9xf32, #tpu.memory_space<vmem>>, vector<49x1xf32>
    %c1_250 = arith.constant 1 : index
    %c0_251 = arith.constant 0 : index
    %442 = vector.load %arg27[%c1_250, %c0_251] : memref<65x512xf32, #tpu.memory_space<vmem>>, vector<49x512xf32>
    %c1_252 = arith.constant 1 : index
    %c0_253 = arith.constant 0 : index
    %443 = vector.load %arg20[%c1_252, %c0_253] : memref<9x512xf32, #tpu.memory_space<vmem>>, vector<1x512xf32>
    %444 = vector.shape_cast %443 : vector<1x512xf32> to vector<512xf32>
    %445 = vector.shape_cast %444 : vector<512xf32> to vector<1x512xf32>
    %446 = vector.broadcast %441 : vector<49x1xf32> to vector<49x512xf32>
    %447 = vector.broadcast %445 : vector<1x512xf32> to vector<49x512xf32>
    %448 = arith.mulf %446, %447 : vector<49x512xf32>
    %449 = arith.mulf %442, %448 : vector<49x512xf32>
    %450 = arith.addf %440, %449 : vector<49x512xf32>
    %c0_254 = arith.constant 0 : index
    %c2_255 = arith.constant 2 : index
    %451 = vector.load %arg10[%c0_254, %c2_255] : memref<49x9xf32, #tpu.memory_space<vmem>>, vector<49x1xf32>
    %c2_256 = arith.constant 2 : index
    %c0_257 = arith.constant 0 : index
    %452 = vector.load %arg27[%c2_256, %c0_257] : memref<65x512xf32, #tpu.memory_space<vmem>>, vector<49x512xf32>
    %c2_258 = arith.constant 2 : index
    %c0_259 = arith.constant 0 : index
    %453 = vector.load %arg20[%c2_258, %c0_259] : memref<9x512xf32, #tpu.memory_space<vmem>>, vector<1x512xf32>
    %454 = vector.shape_cast %453 : vector<1x512xf32> to vector<512xf32>
    %455 = vector.shape_cast %454 : vector<512xf32> to vector<1x512xf32>
    %456 = vector.broadcast %451 : vector<49x1xf32> to vector<49x512xf32>
    %457 = vector.broadcast %455 : vector<1x512xf32> to vector<49x512xf32>
    %458 = arith.mulf %456, %457 : vector<49x512xf32>
    %459 = arith.mulf %452, %458 : vector<49x512xf32>
    %460 = arith.addf %450, %459 : vector<49x512xf32>
    %c0_260 = arith.constant 0 : index
    %c3_261 = arith.constant 3 : index
    %461 = vector.load %arg10[%c0_260, %c3_261] : memref<49x9xf32, #tpu.memory_space<vmem>>, vector<49x1xf32>
    %c7_262 = arith.constant 7 : index
    %c0_263 = arith.constant 0 : index
    %462 = vector.load %arg27[%c7_262, %c0_263] : memref<65x512xf32, #tpu.memory_space<vmem>>, vector<49x512xf32>
    %c3_264 = arith.constant 3 : index
    %c0_265 = arith.constant 0 : index
    %463 = vector.load %arg20[%c3_264, %c0_265] : memref<9x512xf32, #tpu.memory_space<vmem>>, vector<1x512xf32>
    %464 = vector.shape_cast %463 : vector<1x512xf32> to vector<512xf32>
    %465 = vector.shape_cast %464 : vector<512xf32> to vector<1x512xf32>
    %466 = vector.broadcast %461 : vector<49x1xf32> to vector<49x512xf32>
    %467 = vector.broadcast %465 : vector<1x512xf32> to vector<49x512xf32>
    %468 = arith.mulf %466, %467 : vector<49x512xf32>
    %469 = arith.mulf %462, %468 : vector<49x512xf32>
    %470 = arith.addf %460, %469 : vector<49x512xf32>
    %c0_266 = arith.constant 0 : index
    %c4_267 = arith.constant 4 : index
    %471 = vector.load %arg10[%c0_266, %c4_267] : memref<49x9xf32, #tpu.memory_space<vmem>>, vector<49x1xf32>
    %c8_268 = arith.constant 8 : index
    %c0_269 = arith.constant 0 : index
    %472 = vector.load %arg27[%c8_268, %c0_269] : memref<65x512xf32, #tpu.memory_space<vmem>>, vector<49x512xf32>
    %c4_270 = arith.constant 4 : index
    %c0_271 = arith.constant 0 : index
    %473 = vector.load %arg20[%c4_270, %c0_271] : memref<9x512xf32, #tpu.memory_space<vmem>>, vector<1x512xf32>
    %474 = vector.shape_cast %473 : vector<1x512xf32> to vector<512xf32>
    %475 = vector.shape_cast %474 : vector<512xf32> to vector<1x512xf32>
    %476 = vector.broadcast %471 : vector<49x1xf32> to vector<49x512xf32>
    %477 = vector.broadcast %475 : vector<1x512xf32> to vector<49x512xf32>
    %478 = arith.mulf %476, %477 : vector<49x512xf32>
    %479 = arith.mulf %472, %478 : vector<49x512xf32>
    %480 = arith.addf %470, %479 : vector<49x512xf32>
    %c0_272 = arith.constant 0 : index
    %c5_273 = arith.constant 5 : index
    %481 = vector.load %arg10[%c0_272, %c5_273] : memref<49x9xf32, #tpu.memory_space<vmem>>, vector<49x1xf32>
    %c9_274 = arith.constant 9 : index
    %c0_275 = arith.constant 0 : index
    %482 = vector.load %arg27[%c9_274, %c0_275] : memref<65x512xf32, #tpu.memory_space<vmem>>, vector<49x512xf32>
    %c5_276 = arith.constant 5 : index
    %c0_277 = arith.constant 0 : index
    %483 = vector.load %arg20[%c5_276, %c0_277] : memref<9x512xf32, #tpu.memory_space<vmem>>, vector<1x512xf32>
    %484 = vector.shape_cast %483 : vector<1x512xf32> to vector<512xf32>
    %485 = vector.shape_cast %484 : vector<512xf32> to vector<1x512xf32>
    %486 = vector.broadcast %481 : vector<49x1xf32> to vector<49x512xf32>
    %487 = vector.broadcast %485 : vector<1x512xf32> to vector<49x512xf32>
    %488 = arith.mulf %486, %487 : vector<49x512xf32>
    %489 = arith.mulf %482, %488 : vector<49x512xf32>
    %490 = arith.addf %480, %489 : vector<49x512xf32>
    %c0_278 = arith.constant 0 : index
    %c6_279 = arith.constant 6 : index
    %491 = vector.load %arg10[%c0_278, %c6_279] : memref<49x9xf32, #tpu.memory_space<vmem>>, vector<49x1xf32>
    %c14_280 = arith.constant 14 : index
    %c0_281 = arith.constant 0 : index
    %492 = vector.load %arg27[%c14_280, %c0_281] : memref<65x512xf32, #tpu.memory_space<vmem>>, vector<49x512xf32>
    %c6_282 = arith.constant 6 : index
    %c0_283 = arith.constant 0 : index
    %493 = vector.load %arg20[%c6_282, %c0_283] : memref<9x512xf32, #tpu.memory_space<vmem>>, vector<1x512xf32>
    %494 = vector.shape_cast %493 : vector<1x512xf32> to vector<512xf32>
    %495 = vector.shape_cast %494 : vector<512xf32> to vector<1x512xf32>
    %496 = vector.broadcast %491 : vector<49x1xf32> to vector<49x512xf32>
    %497 = vector.broadcast %495 : vector<1x512xf32> to vector<49x512xf32>
    %498 = arith.mulf %496, %497 : vector<49x512xf32>
    %499 = arith.mulf %492, %498 : vector<49x512xf32>
    %500 = arith.addf %490, %499 : vector<49x512xf32>
    %c0_284 = arith.constant 0 : index
    %c7_285 = arith.constant 7 : index
    %501 = vector.load %arg10[%c0_284, %c7_285] : memref<49x9xf32, #tpu.memory_space<vmem>>, vector<49x1xf32>
    %c15_286 = arith.constant 15 : index
    %c0_287 = arith.constant 0 : index
    %502 = vector.load %arg27[%c15_286, %c0_287] : memref<65x512xf32, #tpu.memory_space<vmem>>, vector<49x512xf32>
    %c7_288 = arith.constant 7 : index
    %c0_289 = arith.constant 0 : index
    %503 = vector.load %arg20[%c7_288, %c0_289] : memref<9x512xf32, #tpu.memory_space<vmem>>, vector<1x512xf32>
    %504 = vector.shape_cast %503 : vector<1x512xf32> to vector<512xf32>
    %505 = vector.shape_cast %504 : vector<512xf32> to vector<1x512xf32>
    %506 = vector.broadcast %501 : vector<49x1xf32> to vector<49x512xf32>
    %507 = vector.broadcast %505 : vector<1x512xf32> to vector<49x512xf32>
    %508 = arith.mulf %506, %507 : vector<49x512xf32>
    %509 = arith.mulf %502, %508 : vector<49x512xf32>
    %510 = arith.addf %500, %509 : vector<49x512xf32>
    %c0_290 = arith.constant 0 : index
    %c8_291 = arith.constant 8 : index
    %511 = vector.load %arg10[%c0_290, %c8_291] : memref<49x9xf32, #tpu.memory_space<vmem>>, vector<49x1xf32>
    %c16_292 = arith.constant 16 : index
    %c0_293 = arith.constant 0 : index
    %512 = vector.load %arg27[%c16_292, %c0_293] : memref<65x512xf32, #tpu.memory_space<vmem>>, vector<49x512xf32>
    %c8_294 = arith.constant 8 : index
    %c0_295 = arith.constant 0 : index
    %513 = vector.load %arg20[%c8_294, %c0_295] : memref<9x512xf32, #tpu.memory_space<vmem>>, vector<1x512xf32>
    %514 = vector.shape_cast %513 : vector<1x512xf32> to vector<512xf32>
    %515 = vector.shape_cast %514 : vector<512xf32> to vector<1x512xf32>
    %516 = vector.broadcast %511 : vector<49x1xf32> to vector<49x512xf32>
    %517 = vector.broadcast %515 : vector<1x512xf32> to vector<49x512xf32>
    %518 = arith.mulf %516, %517 : vector<49x512xf32>
    %519 = arith.mulf %512, %518 : vector<49x512xf32>
    %520 = arith.addf %510, %519 : vector<49x512xf32>
    %c0_296 = arith.constant 0 : index
    %c0_297 = arith.constant 0 : index
    %521 = vector.load %arg21[%c0_296, %c0_297] : memref<1x512xf32, #tpu.memory_space<vmem>>, vector<1x512xf32>
    %522 = vector.broadcast %521 : vector<1x512xf32> to vector<49x512xf32>
    %523 = arith.addf %520, %522 : vector<49x512xf32>
    %cst_298 = arith.constant 0.000000e+00 : f32
    %524 = vector.broadcast %cst_298 : f32 to vector<49x512xf32>
    %525 = arith.maximumf %523, %524 : vector<49x512xf32>
    %c0_299 = arith.constant 0 : index
    %c0_300 = arith.constant 0 : index
    %526 = vector.load %arg22[%c0_299, %c0_300] : memref<512x128xbf16, #tpu.memory_space<vmem>>, vector<512x128xbf16>
    %527 = arith.truncf %525 : vector<49x512xf32> to vector<49x512xbf16>
    %cst_301 = arith.constant dense<0.000000e+00> : vector<49x128xf32>
    %528 = tpu.matmul %527, %526, %cst_301 {dimension_numbers = #tpu.dot_dimension_numbers<[1], [0], [0], [1], [0, 0, 1, 1], [], []>} : vector<49x512xbf16>, vector<512x128xbf16>, vector<49x128xf32> -> vector<49x128xf32>
    %c0_302 = arith.constant 0 : index
    %c0_303 = arith.constant 0 : index
    %529 = vector.load %arg23[%c0_302, %c0_303] : memref<1x128xf32, #tpu.memory_space<vmem>>, vector<1x128xf32>
    %530 = vector.broadcast %529 : vector<1x128xf32> to vector<49x128xf32>
    %531 = arith.addf %528, %530 : vector<49x128xf32>
    %c0_304 = arith.constant 0 : index
    %c0_305 = arith.constant 0 : index
    %532 = vector.load %arg24[%c0_304, %c0_305] : memref<1x128xf32, #tpu.memory_space<vmem>>, vector<1x128xf32>
    %533 = vector.broadcast %532 : vector<1x128xf32> to vector<49x128xf32>
    %534 = arith.mulf %533, %531 : vector<49x128xf32>
    %535 = arith.addf %416, %534 : vector<49x128xf32>
    %c0_306 = arith.constant 0 : index
    %c0_307 = arith.constant 0 : index
    %c0_308 = arith.constant 0 : index
    %536 = vector.load %arg25[%c0_306, %c0_307, %c0_308] : memref<1x49x128xf32, #tpu.memory_space<vmem>>, vector<1x49x128xf32>
    %537 = vector.shape_cast %536 : vector<1x49x128xf32> to vector<49x128xf32>
    %538 = vector.shape_cast %535 : vector<49x128xf32> to vector<1x49x128xf32>
    tpu.vector_store %arg25[%c0_306, %c0_307, %c0_308], %538 {strides = array<i32>} : memref<1x49x128xf32, #tpu.memory_space<vmem>>, vector<1x49x128xf32>,
    return
  }
  func.func @transform_0(%arg0: i32) -> (i32, i32, i32) {
    %c0_i32 = arith.constant 0 : i32
    %c0_i32_0 = arith.constant 0 : i32
    %c0_i32_1 = arith.constant 0 : i32
    return %arg0, %c0_i32, %c0_i32_0 : i32, i32, i32
  }
  func.func @transform_1(%arg0: i32) -> (i32, i32, i32) {
    %c0_i32 = arith.constant 0 : i32
    %c0_i32_0 = arith.constant 0 : i32
    %c0_i32_1 = arith.constant 0 : i32
    %c0_i32_2 = arith.constant 0 : i32
    return %c0_i32, %c0_i32_0, %c0_i32_1 : i32, i32, i32
  }
  func.func @transform_2(%arg0: i32) -> (i32, i32) {
    %c0_i32 = arith.constant 0 : i32
    %c0_i32_0 = arith.constant 0 : i32
    %c0_i32_1 = arith.constant 0 : i32
    return %c0_i32, %c0_i32_0 : i32, i32
  }
  func.func @transform_3(%arg0: i32) -> (i32, i32, i32) {
    %c0_i32 = arith.constant 0 : i32
    %c0_i32_0 = arith.constant 0 : i32
    %c0_i32_1 = arith.constant 0 : i32
    %c0_i32_2 = arith.constant 0 : i32
    return %c0_i32, %c0_i32_0, %c0_i32_1 : i32, i32, i32
  }
  func.func @transform_4(%arg0: i32) -> (i32, i32) {
    %c0_i32 = arith.constant 0 : i32
    %c0_i32_0 = arith.constant 0 : i32
    %c0_i32_1 = arith.constant 0 : i32
    return %c0_i32, %c0_i32_0 : i32, i32
  }
  func.func @transform_5(%arg0: i32) -> (i32, i32) {
    %c0_i32 = arith.constant 0 : i32
    %c0_i32_0 = arith.constant 0 : i32
    %c0_i32_1 = arith.constant 0 : i32
    return %c0_i32, %c0_i32_0 : i32, i32
  }
  func.func @transform_6(%arg0: i32) -> (i32, i32) {
    %c0_i32 = arith.constant 0 : i32
    %c0_i32_0 = arith.constant 0 : i32
    %c0_i32_1 = arith.constant 0 : i32
    return %c0_i32, %c0_i32_0 : i32, i32
  }
  func.func @transform_7(%arg0: i32) -> (i32, i32) {
    %c0_i32 = arith.constant 0 : i32
    %c0_i32_0 = arith.constant 0 : i32
    %c0_i32_1 = arith.constant 0 : i32
    return %c0_i32, %c0_i32_0 : i32, i32
  }
  func.func @transform_8(%arg0: i32) -> (i32, i32) {
    %c0_i32 = arith.constant 0 : i32
    %c0_i32_0 = arith.constant 0 : i32
    %c0_i32_1 = arith.constant 0 : i32
    return %c0_i32, %c0_i32_0 : i32, i32
  }
  func.func @transform_9(%arg0: i32) -> (i32, i32) {
    %c0_i32 = arith.constant 0 : i32
    %c0_i32_0 = arith.constant 0 : i32
    %c0_i32_1 = arith.constant 0 : i32
    return %c0_i32, %c0_i32_0 : i32, i32
  }
  func.func @transform_10(%arg0: i32) -> (i32, i32, i32) {
    %c0_i32 = arith.constant 0 : i32
    %c0_i32_0 = arith.constant 0 : i32
    %c0_i32_1 = arith.constant 0 : i32
    %c0_i32_2 = arith.constant 0 : i32
    return %c0_i32, %c0_i32_0, %c0_i32_1 : i32, i32, i32
  }
  func.func @transform_11(%arg0: i32) -> (i32, i32) {
    %c0_i32 = arith.constant 0 : i32
    %c0_i32_0 = arith.constant 0 : i32
    %c0_i32_1 = arith.constant 0 : i32
    return %c0_i32, %c0_i32_0 : i32, i32
  }
  func.func @transform_12(%arg0: i32) -> (i32, i32) {
    %c0_i32 = arith.constant 0 : i32
    %c0_i32_0 = arith.constant 0 : i32
    %c0_i32_1 = arith.constant 0 : i32
    return %c0_i32, %c0_i32_0 : i32, i32
  }
  func.func @transform_13(%arg0: i32) -> (i32, i32) {
    %c0_i32 = arith.constant 0 : i32
    %c0_i32_0 = arith.constant 0 : i32
    %c0_i32_1 = arith.constant 0 : i32
    return %c0_i32, %c0_i32_0 : i32, i32
  }
  func.func @transform_14(%arg0: i32) -> (i32, i32) {
    %c0_i32 = arith.constant 0 : i32
    %c0_i32_0 = arith.constant 0 : i32
    %c0_i32_1 = arith.constant 0 : i32
    return %c0_i32, %c0_i32_0 : i32, i32
  }
  func.func @transform_15(%arg0: i32) -> (i32, i32) {
    %c0_i32 = arith.constant 0 : i32
    %c0_i32_0 = arith.constant 0 : i32
    %c0_i32_1 = arith.constant 0 : i32
    return %c0_i32, %c0_i32_0 : i32, i32
  }
  func.func @transform_16(%arg0: i32) -> (i32, i32) {
    %c0_i32 = arith.constant 0 : i32
    %c0_i32_0 = arith.constant 0 : i32
    %c0_i32_1 = arith.constant 0 : i32
    return %c0_i32, %c0_i32_0 : i32, i32
  }
  func.func @transform_17(%arg0: i32) -> (i32, i32) {
    %c0_i32 = arith.constant 0 : i32
    %c0_i32_0 = arith.constant 0 : i32
    %c0_i32_1 = arith.constant 0 : i32
    return %c0_i32, %c0_i32_0 : i32, i32
  }
  func.func @transform_18(%arg0: i32) -> (i32, i32) {
    %c0_i32 = arith.constant 0 : i32
    %c0_i32_0 = arith.constant 0 : i32
    %c0_i32_1 = arith.constant 0 : i32
    return %c0_i32, %c0_i32_0 : i32, i32
  }
  func.func @transform_19(%arg0: i32) -> (i32, i32) {
    %c0_i32 = arith.constant 0 : i32
    %c0_i32_0 = arith.constant 0 : i32
    %c0_i32_1 = arith.constant 0 : i32
    return %c0_i32, %c0_i32_0 : i32, i32
  }
  func.func @transform_20(%arg0: i32) -> (i32, i32) {
    %c0_i32 = arith.constant 0 : i32
    %c0_i32_0 = arith.constant 0 : i32
    %c0_i32_1 = arith.constant 0 : i32
    return %c0_i32, %c0_i32_0 : i32, i32
  }
  func.func @transform_21(%arg0: i32) -> (i32, i32) {
    %c0_i32 = arith.constant 0 : i32
    %c0_i32_0 = arith.constant 0 : i32
    %c0_i32_1 = arith.constant 0 : i32
    return %c0_i32, %c0_i32_0 : i32, i32
  }
  func.func @transform_22(%arg0: i32) -> (i32, i32) {
    %c0_i32 = arith.constant 0 : i32
    %c0_i32_0 = arith.constant 0 : i32
    %c0_i32_1 = arith.constant 0 : i32
    return %c0_i32, %c0_i32_0 : i32, i32
  }
  func.func @transform_23(%arg0: i32) -> (i32, i32) {
    %c0_i32 = arith.constant 0 : i32
    %c0_i32_0 = arith.constant 0 : i32
    %c0_i32_1 = arith.constant 0 : i32
    return %c0_i32, %c0_i32_0 : i32, i32
  }
  func.func @transform_24(%arg0: i32) -> (i32, i32, i32) {
    %c0_i32 = arith.constant 0 : i32
    %c0_i32_0 = arith.constant 0 : i32
    %c0_i32_1 = arith.constant 0 : i32
    return %arg0, %c0_i32, %c0_i32_0 : i32, i32, i32
  }
}

</mosaic_0001>

<bundles_post_ra>
// kernel: tpu_custom_call.1
= control target key start
LH: loop header
LB: loop body
LE: loop exit
PB: predicated region body
PF: predicated region fallthrough
CT: control target
= control target key end

     0   :  { %s16123_s0 = inlined_call_operand.vmem [shape: f32[2,49,128], index: 0, kind: input, shape index: {}]   ;;  %s16124_s1 = inlined_call_operand.vmem [shape: bf16[4,128,16], index: 1, kind: input, shape index: {}]   ;;  %s16125_s2 = inlined_call_operand.vmem [shape: f32[4,16], index: 2, kind: input, shape index: {}]   ;;  %s16126_s3 = inlined_call_operand.vmem [shape: bf16[4,128,16], index: 3, kind: input, shape index: {}]   ;;  %s16127_s4 = inlined_call_operand.vmem [shape: f32[4,16], index: 4, kind: input, shape index: {}]   ;;  %s16128_s5 = inlined_call_operand.vmem [shape: bf16[128,128], index: 5, kind: input, shape index: {}]   ;;  %s16129_s6 = inlined_call_operand.vmem [shape: f32[1,128], index: 6, kind: input, shape index: {}]   ;;  %s16130_s7 = inlined_call_operand.vmem [shape: f32[9,128], index: 7, kind: input, shape index: {}]   ;;  %s16131_s8 = inlined_call_operand.vmem [shape: f32[1,128], index: 8, kind: input, shape index: {}]   ;;  %s16132_s9 = inlined_call_operand.vmem [shape: f32[49,9], index: 9, kind: input, shape index: {}]   ;;  %s16133_s10 = inlined_call_operand.vmem [shape: bf16[4,49,49], index: 10, kind: input, shape index: {}]   ;;  %s16134_s11 = inlined_call_operand.vmem [shape: f32[4,4], index: 11, kind: input, shape index: {}]   ;;  %s16135_s12 = inlined_call_operand.vmem [shape: f32[4,4], index: 12, kind: input, shape index: {}]   ;;  %s16136_s13 = inlined_call_operand.vmem [shape: f32[1,4], index: 13, kind: input, shape index: {}]   ;;  %s16137_s14 = inlined_call_operand.vmem [shape: bf16[128,128], index: 14, kind: input, shape index: {}]   ;;  %s16138_s15 = inlined_call_operand.vmem [shape: f32[1,128], index: 15, kind: input, shape index: {}]   ;;  %s16139_s16 = inlined_call_operand.vmem [shape: f32[1,128], index: 16, kind: input, shape index: {}]   ;;  %s16140_s17 = inlined_call_operand.vmem [shape: bf16[128,512], index: 17, kind: input, shape index: {}]   ;;  %s16141_s18 = inlined_call_operand.vmem [shape: f32[1,512], index: 18, kind: input, shape index: {}]   ;;  %s16142_s19 = inlined_call_operand.vmem [shape: f32[9,512], index: 19, kind: input, shape index: {}]   ;;  %s16143_s20 = inlined_call_operand.vmem [shape: f32[1,512], index: 20, kind: input, shape index: {}]   ;;  %s16144_s21 = inlined_call_operand.vmem [shape: bf16[512,128], index: 21, kind: input, shape index: {}]   ;;  %s16145_s22 = inlined_call_operand.vmem [shape: f32[1,128], index: 22, kind: input, shape index: {}]   ;;  %s16146_s23 = inlined_call_operand.vmem [shape: f32[1,128], index: 23, kind: input, shape index: {}]   ;;  %s16147_s24 = inlined_call_operand.vmem [shape: f32[2,49,128], index: 24, kind: output, shape index: {}]  }
   0x1   :  { %16508 = sst [smem:[#allocation252_spill]] %s16123_s0 }
   0x2   :  { %16509 = sst [smem:[#allocation253_spill]] %s16124_s1 }
   0x3   :  { %16510 = sst [smem:[#allocation254_spill]] %s16125_s2 }
   0x4   :  { %16511 = sst [smem:[#allocation255_spill]] %s16126_s3 }
   0x5   :  { %16512 = sst [smem:[#allocation256_spill]] %s16127_s4 }
   0x6   :  { %16513 = sst [smem:[#allocation257_spill]] %s16128_s5 }
   0x7   :  { %16514 = sst [smem:[#allocation258_spill]] %s16129_s6 }
   0x8   :  { %16515 = sst [smem:[#allocation259_spill]] %s16130_s7 }
   0x9   :  { %16516 = sst [smem:[#allocation260_spill]] %s16131_s8 }
   0xa   :  { %16517 = sst [smem:[#allocation261_spill]] %s16134_s11 }
   0xb   :  { %16518 = sst [smem:[#allocation262_spill]] %s16135_s12 }
   0xc   :  { %16519 = sst [smem:[#allocation263_spill]] %s16136_s13 }
   0xd   :  { %29 = vsyncpa [#allocation5], 0 }
   0xe   :  { %30 = vsyncpa [#allocation7], 0  ;;  %s9914_s5 = smov 0  }
   0xf LB: > { %16520 = sst [smem:[#allocation11_spill]] %s9771_s5  ;;  %s9920_s26 = sadd.s32 4294967295, %s9771_s5   ;;  %s9771_s5 = sphi %s9914_s5, %s36_s5  }
  0x10   : > { %p8228_p0 = scmp.ge.s32.totalorder %s9771_s5, 1  ;;  %p576_p1 = scmp.lt.s32.totalorder %s9771_s5, 3 }
  0x11   : > { %s16521_s12 = sld [smem:[#allocation262_spill]]  ;;  %p16154_p3 = scmp.eq.s32.totalorder %s9920_s26, 0 }
  0x12   : > { %p9927_p2 = pnand %p8228_p0, %p576_p1  ;;  %s16523_s11 = sld [smem:[#allocation261_spill]] }
  0x13   : > { %s16524_s13 = sld [smem:[#allocation263_spill]] }
  0x14   : > { %s16522_s2 = scalar_select %p9927_p2, 1, 0 }
  0x15   : > { %p9308_p4 = pneg %p9927_p2 }
  0x17   : > { %s630_s6 = sshll.u32 %s16521_s12, 4  ;;  %p9942_p5 = pnand %p16154_p3, %p9308_p4  ;;  %s631_s6 = int_to_ptr.vmem [resolvable:$true] %s630_s6 }
  0x18   : > { %s619_s7 = sshll.u32 %s16523_s11, 4  ;;  %s9712_s4 = scalar_lea.vmem %s631_s6, 64  ;;  %s620_s7 = int_to_ptr.vmem [resolvable:$true] %s619_s7 }
  0x19   : > { %s641_s25 = sshll.u32 %s16524_s13, 4  ;;  %p9713_p6 = scmp.ne.s32.totalorder %s631_s6, %s9712_s4  ;;  %s9946_s25 = int_to_ptr.vmem [resolvable:$true] %s641_s25 }
  0x1a   : > { %p9714_p7 = pneg %p9942_p5  ;;  %p9720_p10 = scmp.lt.s32.totalorder %s631_s6, %s631_s6 }
  0x1b   : > { %p9721_p11 = scmp.lt.s32.totalorder %s9712_s4, %s9712_s4 }
  0x1c   : > { %p9715_p8 = pnand %p9714_p7, %p9713_p6 }
  0x1d   : > { %p9722_p12 = por %p9721_p11, %p9720_p10 }
  0x1e   : > { %p9716_p9 = pneg %p9715_p8 }
  0x20   : > { %p9723_p13 = pnand %p9722_p12, %p9716_p9 }
  0x22   : > { %9726 = shalt.err (!%p9723_p13)
}
  0x23   : > { %s9773_s1 = smov [#allocation6]   ;;  %s9727_s27 = scalar_lea.vmem %s620_s7, 64 }
  0x24   : > { %9314 = dma.vmem_to_smem (!%p9942_p5), %s631_s6, 64, %s9773_s1, [#allocation7]  }
  0x25   : > { %p9728_p0 = scmp.ne.s32.totalorder %s620_s7, %s9727_s27  ;;  %p9735_p3 = scmp.lt.s32.totalorder %s620_s7, %s620_s7 }
  0x26   : > { %p9736_p2 = scmp.lt.s32.totalorder %s9727_s27, %s9727_s27 }
  0x27   : > { %p9730_p1 = pnand %p9728_p0, %p9714_p7 }
  0x28   : > { %p9737_p6 = por %p9736_p2, %p9735_p3 }
  0x29   : > { %p9731_p4 = pneg %p9730_p1 }
  0x2b   : > { %p9738_p8 = pnand %p9737_p6, %p9731_p4 }
  0x2d   : > { %9741 = shalt.err (!%p9738_p8)
}
  0x2e   : > { %s9774_s28 = smov [#allocation4]   ;;  %s9742_s6 = scalar_lea.vmem %s9946_s25, 16 }
  0x2f   : > { %9311 = dma.vmem_to_smem (!%p9942_p5), %s620_s7, 64, %s9774_s28, [#allocation5]  }
  0x30   : > { %p9743_p9 = scmp.ne.s32.totalorder %s9946_s25, %s9742_s6  ;;  %p9750_p12 = scmp.lt.s32.totalorder %s9946_s25, %s9946_s25 }
  0x31   : > { %p9751_p13 = scmp.lt.s32.totalorder %s9742_s6, %s9742_s6 }
  0x32   : > { %p9745_p10 = pnand %p9743_p9, %p9714_p7 }
  0x33   : > { %p9752_p2 = por %p9751_p13, %p9750_p12 }
  0x34   : > { %p9746_p11 = pneg %p9745_p10 }
  0x36   : > { %p9753_p3 = pnand %p9752_p2, %p9746_p11 }
  0x38   : > { %9756 = shalt.err (!%p9753_p3)
}
  0x39   : > { %s9775_s29 = smov [#allocation8]   ;;  %p16526_p0 = scmp.ne.s32.totalorder %s16522_s2, 0 }
  0x3a   : > { %9317 = dma.vmem_to_smem (!%p9942_p5), %s9946_s25, 16, %s9775_s29, [#allocation7]  }
  0x3b   : > { %692 = sbr.rel (%p16526_p0) target bundleno = 3167 (0xc5f), region = 116 }
  0x42   : > { %p16527_p1 = scmp.eq.s32.totalorder %s9920_s26, 0 }
  0x44   : > { %9762 = dma.done.wait (%p16527_p1), [#allocation5], 64   ;;  %p16528_p7 = pmov %p16527_p1 }
  0x45   : > { %p16529_p4 = pmov %p16527_p1 }
  0x46   : > { %9764 = vsyncadd (%p16528_p7), [#allocation5], 4294967232 }
  0x47   : > { %9766 = dma.done.wait (%p16529_p4), [#allocation7], 80   ;;  %p16530_p6 = pmov %p16527_p1 }
  0x49   : > { %9768 = vsyncadd (%p16530_p6), [#allocation7], 4294967216 }
  0x4a   : > { %706 = sfence }
  0x4b   : > { %s16531_s30 = sld [smem:[#allocation257_spill]]  ;;  %p767_p5 = scmp.lt.s32.totalorder %s9920_s26, 1  ;;  %v9776_v35 = vmov 0.0   ;;  %v16159_v36 = vmov 0   ;;  %vm1798_vm0 = vcmask 130048   ;;  %vm3683_vm1 = vcmask 1040384  }
  0x4c   : > { %s16532_s28 = sld [smem:[#allocation252_spill]]  ;;  %s16533_s29 = sld [smem:[#allocation253_spill]]  ;;  %924 = vst [vmem:[#allocation2] sm:$0xff] %v9776_v35  ;;  %925 = vst [vmem:[#allocation2 + $0x39] sm:$0xff] %v9776_v35  ;;  %9348 = vset.pattern.permute.xlu1 %v16159_v36  ;;  %vm3088_vm2 = vcmask 400384   ;;  %vm3107_vm3 = vcmask 393216  }
  0x4d   : > { %s17729_s26 = smov (!%p767_p5, %s9920_s26), 1  ;;  %4928 = vst [vmem:[#allocation3] sm:$0xff] %v9776_v35  ;;  %4929 = vst [vmem:[#allocation3 + $0x8] sm:$0xff] %v9776_v35  ;;  %s16541_s3 = sld [smem:[#allocation254_spill]]  ;;  %vm4342_vm4 = vcmask 261120   ;;  %vm4350_vm5 = vcmask 523264  }
  0x4e   : > { %s16156_s4 = smul.u32 56, %s17729_s26  ;;  %4930 = vst [vmem:[#allocation3 + $0x10] sm:$0xff] %v9776_v35  ;;  %4931 = vst [vmem:[#allocation3 + $0x18] sm:$0xff] %v9776_v35  ;;  %s16542_s1 = sld [smem:[#allocation256_spill]]  ;;  %vm4358_vm6 = vcmask 785408   ;;  %vm5395_vm7 = vcmask 1046528  }
  0x4f   : > { %4932 = vst [vmem:[#allocation3 + $0xe0] sm:$0xfe] %v9776_v35  ;;  %4933 = vst [vmem:[#allocation3 + $0xe8] sm:$0xfe] %v9776_v35  ;;  %s3024_s2 = sld [smem:[#allocation4]]  ;;  %s10358_s25 = sld [smem:[#allocation4 + $0x1]] }
  0x50   : > { %4934 = vst [vmem:[#allocation3 + $0xf0] sm:$0xfe] %v9776_v35  ;;  %4935 = vst [vmem:[#allocation3 + $0xf8] sm:$0xfe] %v9776_v35  ;;  %s8466_s8 = sld [smem:[#allocation4 + $0x80]]  ;;  %s8464_s11 = sld [smem:[#allocation4 + $0x2]] }
  0x51   : > { %v9414_v0 = vld [vmem:[%s16531_s30] sm:$0xff]   ;;  %v9415_v1 = vld [vmem:[%s16531_s30 + $0x8] sm:$0xff]   ;;  %v9416_v2 = vld [vmem:[%s16531_s30 + $0x10] sm:$0xff]   ;;  %4936 = vst [vmem:[#allocation3 + $0x100] sm:$0x1] %v9776_v35  ;;  %s8470_s27 = sld [smem:[#allocation4 + $0x100]] }
  0x52   : > { %8911 = vmatprep.subr.bf16.mxu0 %v9414_v0  ;;  %s9999_s6 = scalar_lea.vmem %s16532_s28, %s16156_s4  ;;  %v9417_v3 = vld [vmem:[%s16531_s30 + $0x18] sm:$0xff]   ;;  %v9418_v7 = vld [vmem:[%s16531_s30 + $0x20] sm:$0xff]   ;;  %v9419_v8 = vld [vmem:[%s16531_s30 + $0x28] sm:$0xff]   ;;  %s16534_s28 = sld [smem:[#allocation255_spill]]  ;;  %4937 = vst [vmem:[#allocation3 + $0x108] sm:$0x1] %v9776_v35 }
  0x53   : > { %8912 = vmatpush3.bf16.msra.mxu0 %v9414_v0  ;;  %v778_v4 = vld [vmem:[%s9999_s6] sm:$0xff]  ;;  %v779_v5 = vld [vmem:[%s9999_s6 + $0x8] sm:$0xff]  ;;  %v9420_v9 = vld [vmem:[%s16531_s30 + $0x30] sm:$0xff]   ;;  %4938 = vst [vmem:[#allocation3 + $0x110] sm:$0x1] %v9776_v35  ;;  %s16535_s4 = sld [smem:[#allocation258_spill]] }
  0x54   : > { %8913 = vmatprep.subr.bf16.mxu0 %v9415_v1  ;;  %v10006_v6 = vpack.c.bf16 %v779_v5, %v778_v4  ;;  %v9430_v10 = vld [vmem:[%s16533_s29] sm:$0xff]   ;;  %v9431_v11 = vld [vmem:[%s16533_s29 + $0x8] sm:$0xff]   ;;  %v9432_v12 = vld [vmem:[%s16533_s29 + $0x10] sm:$0xff]   ;;  %4939 = vst [vmem:[#allocation3 + $0x118] sm:$0x1] %v9776_v35  ;;  %s8474_s5 = sld [smem:[#allocation4 + $0x180]] }
  0x55   : > { %8935 = vmatprep.subr.bf16.mxu1 %v9430_v10  ;;  %v9421_v13 = vld [vmem:[%s16531_s30 + $0x38] sm:$0xff]   ;;  %v780_v14 = vld [vmem:[%s9999_s6 + $0x10] sm:$0xff]  ;;  %v782_v17 = vld [vmem:[%s9999_s6 + $0x20] sm:$0xff]  ;;  %s8468_s12 = sld [smem:[#allocation4 + $0x82]]  ;;  %s8504_s0 = sld [smem:[#allocation6 + $0x180]]  ;;  %vm5756_vm8 = vcmask 1045504  }
  0x56   : > { %8927 = vmatprep.mubr.bf16.mxu0 %v10006_v6  ;;  %8951 = vmatprep.mubr.bf16.mxu1 %v10006_v6  ;;  %v781_v15 = vld [vmem:[%s9999_s6 + $0x18] sm:$0xff]  ;;  %v783_v18 = vld [vmem:[%s9999_s6 + $0x28] sm:$0xff]  ;;  %v9434_v22 = vld [vmem:[%s16533_s29 + $0x20] sm:$0xff]   ;;  %s8505_s7 = sld [smem:[#allocation6 + $0x181]]  ;;  %s11362_s13 = sld [smem:[#allocation8]]  ;;  %vm5619_vm9 = vcmask 1041408  }
  0x57   : > { %8914 = vmatpush3.bf16.msra.mxu0 %v9415_v1  ;;  %8936 = vmatpush3.bf16.msra.mxu1 %v9430_v10  ;;  %v9433_v19 = vld [vmem:[%s16533_s29 + $0x18] sm:$0xff]   ;;  %v10041_v20 = vpack.c.bf16 %v781_v15, %v780_v14  ;;  %v10049_v23 = vpack.c.bf16 %v783_v18, %v782_v17  ;;  %v784_v24 = vld [vmem:[%s9999_s6 + $0x30] sm:$0x1]  ;;  %v9435_v25 = vld [vmem:[%s16533_s29 + $0x28] sm:$0xff]   ;;  %s8486_s30 = sld [smem:[#allocation6 + $0x80]] }
  0x58   : > { %8915 = vmatprep.subr.bf16.mxu0 %v9416_v2  ;;  %8937 = vmatprep.subr.bf16.mxu1 %v9431_v11  ;;  %v9422_v16 = vld [vmem:[%s16534_s28] sm:$0xff]   ;;  %v9423_v21 = vld [vmem:[%s16534_s28 + $0x8] sm:$0xff]   ;;  %v9424_v26 = vld [vmem:[%s16534_s28 + $0x10] sm:$0xff]   ;;  %v10060_v27 = vpack.c.bf16 %v784_v24, %v784_v24 }
  0x59   : > { %v9425_v28 = vld [vmem:[%s16534_s28 + $0x18] sm:$0xff]   ;;  %v9436_v29 = vld [vmem:[%s16533_s29 + $0x30] sm:$0xff]   ;;  %v9426_v31 = vld [vmem:[%s16534_s28 + $0x20] sm:$0xff]  }
  0x5a   : > { %v9437_v30 = vld [vmem:[%s16533_s29 + $0x38] sm:$0xff]   ;;  %v9427_v32 = vld [vmem:[%s16534_s28 + $0x28] sm:$0xff]   ;;  %v9428_v33 = vld [vmem:[%s16534_s28 + $0x30] sm:$0xff]  }
  0x5b   : > { %8916 = vmatpush3.bf16.msra.mxu0 %v9416_v2  ;;  %8938 = vmatpush3.bf16.msra.mxu1 %v9431_v11  ;;  %v9429_v34 = vld [vmem:[%s16534_s28 + $0x38] sm:$0xff]   ;;  %v9446_v37 = vld [vmem:[%s16533_s29 + $0x40] sm:$0xff]   ;;  %v9447_v38 = vld [vmem:[%s16533_s29 + $0x48] sm:$0xff]  }
  0x5c   : > { %8917 = vmatprep.subr.bf16.mxu0 %v9417_v3  ;;  %8939 = vmatprep.subr.bf16.mxu1 %v9432_v12  ;;  %v9448_v39 = vld [vmem:[%s16533_s29 + $0x50] sm:$0xff]   ;;  %v9449_v40 = vld [vmem:[%s16533_s29 + $0x58] sm:$0xff]   ;;  %v9450_v41 = vld [vmem:[%s16533_s29 + $0x60] sm:$0xff]  }
  0x5d   : > { %v9451_v42 = vld [vmem:[%s16533_s29 + $0x68] sm:$0xff]   ;;  %v9452_v43 = vld [vmem:[%s16533_s29 + $0x70] sm:$0xff]   ;;  %v9453_v44 = vld [vmem:[%s16533_s29 + $0x78] sm:$0xff]  }
  0x5e   : > { %v8239_v45 = vld [vmem:[%s16535_s4] ss:$0 sm:$0xff]  ;;  %s8472_s4 = sld [smem:[#allocation4 + $0x102]] }
  0x5f   : > { %8918 = vmatpush3.bf16.msra.mxu0 %v9417_v3  ;;  %8940 = vmatpush3.bf16.msra.mxu1 %v9432_v12  ;;  %v8258_v61 = vld [vmem:[%s16541_s3] ss:$0 sm:$0xff] }
  0x60   : > { %8919 = vmatprep.subr.bf16.mxu0 %v9418_v7  ;;  %8941 = vmatprep.subr.bf16.mxu1 %v9433_v19 }
  0x63   : > { %8920 = vmatpush3.bf16.msra.mxu0 %v9418_v7  ;;  %8942 = vmatpush3.bf16.msra.mxu1 %v9433_v19 }
  0x64   : > { %8921 = vmatprep.subr.bf16.mxu0 %v9419_v8  ;;  %8943 = vmatprep.subr.bf16.mxu1 %v9434_v22 }
  0x67   : > { %8922 = vmatpush3.bf16.msra.mxu0 %v9419_v8  ;;  %8944 = vmatpush3.bf16.msra.mxu1 %v9434_v22 }
  0x68   : > { %8923 = vmatprep.subr.bf16.mxu0 %v9420_v9  ;;  %8945 = vmatprep.subr.bf16.mxu1 %v9435_v25 }
  0x6b   : > { %8924 = vmatpush3.bf16.msra.mxu0 %v9420_v9  ;;  %8946 = vmatpush3.bf16.msra.mxu1 %v9435_v25 }
  0x6c   : > { %8925 = vmatprep.subr.bf16.mxu0 %v9421_v13  ;;  %8947 = vmatprep.subr.bf16.mxu1 %v9436_v29 }
  0x6f   : > { %8926 = vmatpush3.bf16.msra.mxu0 %v9421_v13  ;;  %8948 = vmatpush3.bf16.msra.mxu1 %v9436_v29 }
  0x70   : > { %8959 = vmatprep.subr.bf16.mxu0 %v9422_v16  ;;  %8949 = vmatprep.subr.bf16.mxu1 %v9437_v30 }
  0x72   : > { %8928 = vmatmul.mubr.bf16.vlgmr.msra.gmra.mrb[0].mxu0 %v10041_v20 }
  0x73   : > { %8960 = vmatpush3.bf16.msra.mxu0 %v9422_v16  ;;  %8931 = vmatprep.mubr.bf16.mxu0 %v10049_v23  ;;  %v8267_v16 = vld [vmem:[%s16542_s1] ss:$0 sm:$0xff] }
  0x74   : > { %8961 = vmatprep.subr.bf16.mxu0 %v9423_v21  ;;  %8950 = vmatpush3.bf16.msra.mxu1 %v9437_v30 }
  0x77   : > { %8962 = vmatpush3.bf16.msra.mxu0 %v9423_v21  ;;  %8952 = vmatmul.mubr.bf16.vlgmr.msra.gmra.mrb[0].mxu1 %v10041_v20 }
  0x78   : > { %8963 = vmatprep.subr.bf16.mxu0 %v9424_v26  ;;  %8955 = vmatprep.mubr.bf16.mxu1 %v10049_v23 }
  0x7a   : > { %8932 = vmatmul.mubr.bf16.gmra.mrb[4].mxu0 %v10060_v27 }
  0x7b   : > { %8964 = vmatpush3.bf16.msra.mxu0 %v9424_v26  ;;  %8975 = vmatprep.mubr.bf16.mxu0 %v10006_v6 }
  0x7c   : > { %8965 = vmatprep.subr.bf16.mxu0 %v9425_v28 }
  0x7f   : > { %8966 = vmatpush3.bf16.msra.mxu0 %v9425_v28  ;;  %8956 = vmatmul.mubr.bf16.gmra.mrb[4].mxu1 %v10060_v27 }
  0x80   : > { %8967 = vmatprep.subr.bf16.mxu0 %v9426_v31 }
  0x83   : > { %8968 = vmatpush3.bf16.msra.mxu0 %v9426_v31 }
  0x84   : > { %8969 = vmatprep.subr.bf16.mxu0 %v9427_v32 }
  0x87   : > { %8970 = vmatpush3.bf16.msra.mxu0 %v9427_v32 }
  0x88   : > { %8971 = vmatprep.subr.bf16.mxu0 %v9428_v33 }
  0x8b   : > { %8972 = vmatpush3.bf16.msra.mxu0 %v9428_v33 }
  0x8c   : > { %8973 = vmatprep.subr.bf16.mxu0 %v9429_v34 }
  0x8f   : > { %8974 = vmatpush3.bf16.msra.mxu0 %v9429_v34 }
  0x90   : > { %8999 = vmatprep.subr.bf16.mxu0 %v9446_v37 }
  0x92   : > { %8976 = vmatmul.mubr.bf16.vlgmr.msra.gmra.mrb[8].mxu0 %v10041_v20 }
  0x93   : > { %8979 = vmatprep.mubr.bf16.mxu0 %v10049_v23  ;;  %9000 = vmatpush3.bf16.msra.mxu0 %v9446_v37 }
  0x94   : > { %9001 = vmatprep.subr.bf16.mxu0 %v9447_v38 }
  0x97   : > { %9002 = vmatpush3.bf16.msra.mxu0 %v9447_v38 }
  0x98   : > { %9003 = vmatprep.subr.bf16.mxu0 %v9448_v39 }
  0x9a   : > { %8980 = vmatmul.mubr.bf16.gmra.mrb[12].mxu0 %v10060_v27 }
  0x9b   : > { %9015 = vmatprep.mubr.bf16.mxu0 %v10006_v6  ;;  %9004 = vmatpush3.bf16.msra.mxu0 %v9448_v39 }
  0x9c   : > { %9005 = vmatprep.subr.bf16.mxu0 %v9449_v40 }
  0x9f   : > { %9006 = vmatpush3.bf16.msra.mxu0 %v9449_v40 }
  0xa0   : > { %9007 = vmatprep.subr.bf16.mxu0 %v9450_v41 }
  0xa3   : > { %9008 = vmatpush3.bf16.msra.mxu0 %v9450_v41 }
  0xa4   : > { %9009 = vmatprep.subr.bf16.mxu0 %v9451_v42 }
  0xa7   : > { %9010 = vmatpush3.bf16.msra.mxu0 %v9451_v42 }
  0xa8   : > { %9011 = vmatprep.subr.bf16.mxu0 %v9452_v43 }
  0xab   : > { %9012 = vmatpush3.bf16.msra.mxu0 %v9452_v43  ;;  %v9438_v43 = vld [vmem:[%s16534_s28 + $0x40] sm:$0xff]  }
  0xac   : > { %9013 = vmatprep.subr.bf16.mxu0 %v9453_v44 }
  0xaf   : > { %9014 = vmatpush3.bf16.msra.mxu0 %v9453_v44 }
  0xb2   : > { %9016 = vmatmul.mubr.bf16.vlgmr.msra.gmra.mrb[16].mxu0 %v10041_v20 }
  0xb3   : > { %9019 = vmatprep.mubr.bf16.mxu0 %v10049_v23 }
  0xba   : > { %9020 = vmatmul.mubr.bf16.gmra.mrb[20].mxu0 %v10060_v27 }
 0x145   : > { %v8929_v46 = vpop.f32.mrb[0].mxu0 }
 0x146   : > { %v10120_v47 = vadd.f32 %v8929_v46, %v8239_v45  ;;  %v894_v48 = vpop.f32.mrb[1].mxu0 }
 0x147   : > { %v10122_v49 = vadd.f32 %v8239_v45, %v894_v48  ;;  %v8930_v50 = vpop.f32.mrb[2].mxu0  ;;  %v9440_v48 = vld [vmem:[%s16534_s28 + $0x50] sm:$0xff]  }
 0x148   : > { %16536 = vst [vmem:[#allocation12_spill] sm:$0xff] %v10120_v47  ;;  %928 = vst [vmem:[#allocation2 + $0x18] sm:$0xff] %v10120_v47  ;;  %v10125_v51 = vadd.f32 %v8930_v50, %v8239_v45  ;;  %v897_v52 = vpop.f32.mrb[3].mxu0 }
 0x149   : > { %926 = vst [vmem:[#allocation2 + $0x8] sm:$0xff] %v10122_v49  ;;  %v10128_v53 = vadd.f32 %v8239_v45, %v897_v52  ;;  %v9441_v52 = vld [vmem:[%s16534_s28 + $0x58] sm:$0xff]  }
 0x14a   : > { %16537 = vst [vmem:[#allocation13_spill] sm:$0xff] %v10125_v51  ;;  %929 = vst [vmem:[#allocation2 + $0x20] sm:$0xff] %v10125_v51  ;;  %v8953_v62 = vpop.f32.mrb[0].mxu1 }
 0x14b   : > { %16538 = vst [vmem:[#allocation14_spill] sm:$0xff] %v10128_v53  ;;  %927 = vst [vmem:[#allocation2 + $0x10] sm:$0xff] %v10128_v53  ;;  %v1622_v63 = vadd.f32 %v8953_v62, %v8258_v61  ;;  %v1613_v0 = vpop.f32.mrb[1].mxu1 }
 0x14c   : > { %v1614_v1 = vadd.f32 %v8258_v61, %v1613_v0  ;;  %v8954_v2 = vpop.f32.mrb[2].mxu1 }
 0x14d   : > { %v8933_v54 = vpop.f32.mrb[4].mxu0  ;;  %v1625_v3 = vadd.f32 %v8954_v2, %v8258_v61  ;;  %v1616_v4 = vpop.f32.mrb[3].mxu1 }
 0x14e   : > { %v919_v55 = vadd.f32 %v8933_v54, %v8239_v45  ;;  %v910_v56 = vpop.f32.mrb[5].mxu0  ;;  %v1617_v5 = vadd.f32 %v8258_v61, %v1616_v4  ;;  %v9442_v54 = vld [vmem:[%s16534_s28 + $0x60] sm:$0xff]  }
 0x14f   : > { %v10134_v57 = vadd.f32 %v8239_v45, %v910_v56  ;;  %v8934_v58 = vpop.f32.mrb[6].mxu0  ;;  %v1777_v7 = vpack.c.bf16 %v1625_v3, %v1622_v63  ;;  %v9444_v56 = vld [vmem:[%s16534_s28 + $0x70] sm:$0xff]  }
 0x150   : > { %932 = vst [vmem:[#allocation2 + $0x38] sm:$0x1] %v919_v55  ;;  %v913_v59 = vpop.f32.mrb[7].mxu0  ;;  %v1776_v8 = vpack.c.bf16 %v1617_v5, %v1614_v1  ;;  %v9443_v55 = vld [vmem:[%s16534_s28 + $0x68] sm:$0xff]   ;;  %v9445_v58 = vld [vmem:[%s16534_s28 + $0x78] sm:$0xff]  }
 0x151   : > { %16539 = vst [vmem:[#allocation15_spill] sm:$0xff] %v10134_v57  ;;  %930 = vst [vmem:[#allocation2 + $0x28] sm:$0xff] %v10134_v57  ;;  %v10137_v60 = vadd.f32 %v8239_v45, %v913_v59  ;;  %v9439_v45 = vld [vmem:[%s16534_s28 + $0x48] sm:$0xff]   ;;  %v8296_v59 = vld [vmem:[%s16541_s3 + $0x1] ss:$0 sm:$0xff] }
 0x152   : > { %8991 = vmatprep.mubr.msk.bf16.mxu1 %vm1798_vm0, %v1776_v8  ;;  %v8957_v9 = vpop.f32.mrb[4].mxu1 }
 0x153   : > { %16540 = vst [vmem:[#allocation16_spill] sm:$0xff] %v10137_v60  ;;  %931 = vst [vmem:[#allocation2 + $0x30] sm:$0xff] %v10137_v60  ;;  %v1629_v10 = vpop.f32.mrb[5].mxu1  ;;  %v1638_v46 = vadd.f32 %v8957_v9, %v8258_v61 }
 0x154   : > { %v1630_v11 = vadd.f32 %v8258_v61, %v1629_v10  ;;  %v8958_v12 = vpop.f32.mrb[6].mxu1 }
 0x155   : > { %v1632_v13 = vpop.f32.mrb[7].mxu1  ;;  %v1779_v50 = vpack.c.bf16 %v1638_v46, %v1638_v46 }
 0x156   : > { %v1633_v14 = vadd.f32 %v8258_v61, %v1632_v13 }
 0x158   : > { %v1778_v18 = vpack.c.bf16 %v1633_v14, %v1630_v11 }
 0x165   : > { %v8977_v15 = vpop.f32.mrb[8].mxu0 }
 0x166   : > { %v1746_v17 = vpop.f32.mrb[9].mxu0  ;;  %v1755_v21 = vadd.f32 %v8977_v15, %v8267_v16 }
 0x167   : > { %v8978_v19 = vpop.f32.mrb[10].mxu0  ;;  %v1747_v25 = vadd.f32 %v8267_v16, %v1746_v17  ;;  %v9463_v17 = vld [vmem:[%s16533_s29 + $0x88] sm:$0xff]  }
 0x168   : > { %v1758_v22 = vadd.f32 %v8978_v19, %v8267_v16  ;;  %v1749_v24 = vpop.f32.mrb[11].mxu0  ;;  %v9465_v19 = vld [vmem:[%s16533_s29 + $0x98] sm:$0xff]  }
 0x169   : > { %v1750_v26 = vadd.f32 %v8267_v16, %v1749_v24  ;;  %v9468_v24 = vld [vmem:[%s16533_s29 + $0xb0] sm:$0xff]  }
 0x16a   : > { %v1781_v28 = vpack.c.bf16 %v1758_v22, %v1755_v21  ;;  %v9466_v21 = vld [vmem:[%s16533_s29 + $0xa0] sm:$0xff]   ;;  %v9467_v22 = vld [vmem:[%s16533_s29 + $0xa8] sm:$0xff]  }
 0x16b   : > { %v1780_v29 = vpack.c.bf16 %v1750_v26, %v1747_v25  ;;  %v9469_v25 = vld [vmem:[%s16533_s29 + $0xb8] sm:$0xff]  }
 0x16c   : > { %v1815_v39 = vsel %vm1798_vm0, %v1781_v28, 0 }
 0x16d   : > { %9279 = vmatprep.subr.msk.bf16.mxu1 %vm1798_vm0, %v1780_v29  ;;  %v1812_v30 = vsel %vm1798_vm0, %v1780_v29, 0  ;;  %v8981_v31 = vpop.f32.mrb[12].mxu0 }
 0x16e   : > { %8984 = vmatpush3.bf16.xpose.msra.mxu1 %v1812_v30  ;;  %v1762_v32 = vpop.f32.mrb[13].mxu0  ;;  %v1771_v40 = vadd.f32 %v8981_v31, %v8267_v16 }
 0x16f   : > { %9280 = vmatprep.subr.msk.bf16.mxu1 %vm1798_vm0, %v1781_v28  ;;  %v1763_v33 = vadd.f32 %v8267_v16, %v1762_v32  ;;  %v8982_v34 = vpop.f32.mrb[14].mxu0 }
 0x170   : > { %v1765_v35 = vpop.f32.mrb[15].mxu0  ;;  %v1783_v41 = vpack.c.bf16 %v1771_v40, %v1771_v40 }
 0x171   : > { %v1766_v37 = vadd.f32 %v8267_v16, %v1765_v35  ;;  %v9462_v16 = vld [vmem:[%s16533_s29 + $0x80] sm:$0xff]  }
 0x172   : > { %v1821_v44 = vsel %vm1798_vm0, %v1783_v41, 0 }
 0x173   : > { %v1782_v38 = vpack.c.bf16 %v1766_v37, %v1763_v33  ;;  %v8321_v37 = vld [vmem:[%s16542_s1 + $0x1] ss:$0 sm:$0xff] }
 0x175   : > { %v1818_v42 = vsel %vm1798_vm0, %v1782_v38, 0 }
 0x176   : > { %8986 = vmatpush3.bf16.xpose.msra.mxu1 %v1815_v39 }
 0x177   : > { %9281 = vmatprep.subr.msk.bf16.mxu1 %vm1798_vm0, %v1782_v38 }
 0x17e   : > { %8988 = vmatpush3.bf16.xpose.msra.mxu1 %v1818_v42 }
 0x17f   : > { %9282 = vmatprep.subr.msk.bf16.mxu1 %vm1798_vm0, %v1783_v41 }
 0x185   : > { %v9017_v61 = vpop.f32.mrb[16].mxu0 }
 0x186   : > { %8990 = vmatpush3.bf16.xpose.msra.mxu1 %v1821_v44  ;;  %v10191_v62 = vadd.f32 %v9017_v61, %v8296_v59  ;;  %v1991_v63 = vpop.f32.mrb[17].mxu0 }
 0x187   : > { %9023 = vmatprep.subr.bf16.mxu1 %v9438_v43  ;;  %v1992_v0 = vadd.f32 %v8296_v59, %v1991_v63  ;;  %v9018_v1 = vpop.f32.mrb[18].mxu0 }
 0x188   : > { %v10193_v2 = vadd.f32 %v9018_v1, %v8296_v59  ;;  %v1994_v3 = vpop.f32.mrb[19].mxu0 }
 0x189   : > { %v1995_v4 = vadd.f32 %v8296_v59, %v1994_v3  ;;  %v9454_v3 = vld [vmem:[%s16534_s28 + $0x80] sm:$0xff]  }
 0x18a   : > { %v2156_v5 = vpack.c.bf16 %v10193_v2, %v10191_v62  ;;  %v9457_v62 = vld [vmem:[%s16534_s28 + $0x98] sm:$0xff]   ;;  %v9458_v2 = vld [vmem:[%s16534_s28 + $0xa0] sm:$0xff]  }
 0x18d   : > { %8992 = vmatmul.mubr.msk.bf16.vlgmr.msra.gmra.mrb[8].mxu1 %vm1798_vm0, %v1777_v7  ;;  %v2155_v7 = vpack.c.bf16 %v1995_v4, %v1992_v0  ;;  %v9021_v8 = vpop.f32.mrb[20].mxu0 }
 0x18e   : > { %9024 = vmatpush3.bf16.msra.mxu1 %v9438_v43  ;;  %8995 = vmatprep.mubr.msk.bf16.mxu1 %vm1798_vm0, %v1778_v18  ;;  %v10198_v9 = vadd.f32 %v9021_v8, %v8296_v59  ;;  %v2007_v10 = vpop.f32.mrb[21].mxu0  ;;  %v9464_v18 = vld [vmem:[%s16533_s29 + $0x90] sm:$0xff]  }
 0x18f   : > { %9025 = vmatprep.subr.bf16.mxu1 %v9439_v45  ;;  %9055 = vmatprep.mubr.msk.bf16.mxu0 %vm1798_vm0, %v2155_v7  ;;  %v10200_v11 = vadd.f32 %v8296_v59, %v2007_v10  ;;  %v9022_v12 = vpop.f32.mrb[22].mxu0  ;;  %v9455_v7 = vld [vmem:[%s16534_s28 + $0x88] sm:$0xff]   ;;  %v9456_v8 = vld [vmem:[%s16534_s28 + $0x90] sm:$0xff]  }
 0x190   : > { %v2010_v13 = vpop.f32.mrb[23].mxu0  ;;  %v2158_v10 = vpack.c.bf16 %v10198_v9, %v10198_v9  ;;  %v9460_v9 = vld [vmem:[%s16534_s28 + $0xb0] sm:$0xff]   ;;  %v8357_v12 = vld [vmem:[%s16541_s3 + $0x2] ss:$0 sm:$0xff] }
 0x191   : > { %v10202_v14 = vadd.f32 %v8296_v59, %v2010_v13 }
 0x192   : > { %9026 = vmatpush3.bf16.msra.mxu1 %v9439_v45 }
 0x193   : > { %9027 = vmatprep.subr.bf16.mxu1 %v9440_v48  ;;  %v2157_v15 = vpack.c.bf16 %v10202_v14, %v10200_v11  ;;  %v9461_v11 = vld [vmem:[%s16534_s28 + $0xb8] sm:$0xff]  }
 0x195   : > { %8996 = vmatmul.mubr.msk.bf16.gmra.mrb[12].mxu1 %vm1798_vm0, %v1779_v50 }
 0x196   : > { %9028 = vmatpush3.bf16.msra.mxu1 %v9440_v48  ;;  %9039 = vmatprep.mubr.bf16.mxu1 %v10006_v6 }
 0x197   : > { %9029 = vmatprep.subr.bf16.mxu1 %v9441_v52 }
 0x19a   : > { %9030 = vmatpush3.bf16.msra.mxu1 %v9441_v52 }
 0x19b   : > { %9031 = vmatprep.subr.bf16.mxu1 %v9442_v54 }
 0x19e   : > { %9032 = vmatpush3.bf16.msra.mxu1 %v9442_v54 }
 0x19f   : > { %9033 = vmatprep.subr.bf16.mxu1 %v9443_v55 }
 0x1a2   : > { %9034 = vmatpush3.bf16.msra.mxu1 %v9443_v55 }
 0x1a3   : > { %9035 = vmatprep.subr.bf16.mxu1 %v9444_v56 }
 0x1a6   : > { %9036 = vmatpush3.bf16.msra.mxu1 %v9444_v56 }
 0x1a7   : > { %9037 = vmatprep.subr.bf16.mxu1 %v9445_v58 }
 0x1aa   : > { %9038 = vmatpush3.bf16.msra.mxu1 %v9445_v58 }
 0x1ab   : > { %9063 = vmatprep.subr.bf16.mxu1 %v9462_v16 }
 0x1ad   : > { %9040 = vmatmul.mubr.bf16.vlgmr.msra.gmra.mrb[16].mxu1 %v10041_v20 }
 0x1ae   : > { %9043 = vmatprep.mubr.bf16.mxu1 %v10049_v23  ;;  %9064 = vmatpush3.bf16.msra.mxu1 %v9462_v16 }
 0x1af   : > { %9065 = vmatprep.subr.bf16.mxu1 %v9463_v17 }
 0x1b2   : > { %9066 = vmatpush3.bf16.msra.mxu1 %v9463_v17 }
 0x1b3   : > { %9067 = vmatprep.subr.bf16.mxu1 %v9464_v18 }
 0x1b5   : > { %9044 = vmatmul.mubr.bf16.gmra.mrb[20].mxu1 %v10060_v27 }
 0x1b6   : > { %9079 = vmatprep.mubr.bf16.mxu1 %v10006_v6  ;;  %9068 = vmatpush3.bf16.msra.mxu1 %v9464_v18 }
 0x1b7   : > { %9069 = vmatprep.subr.bf16.mxu1 %v9465_v19 }
 0x1ba   : > { %9070 = vmatpush3.bf16.msra.mxu1 %v9465_v19 }
 0x1bb   : > { %9071 = vmatprep.subr.bf16.mxu1 %v9466_v21 }
 0x1be   : > { %9072 = vmatpush3.bf16.msra.mxu1 %v9466_v21 }
 0x1bf   : > { %9073 = vmatprep.subr.bf16.mxu1 %v9467_v22 }
 0x1c2   : > { %9074 = vmatpush3.bf16.msra.mxu1 %v9467_v22 }
 0x1c3   : > { %9075 = vmatprep.subr.bf16.mxu1 %v9468_v24 }
 0x1c6   : > { %9076 = vmatpush3.bf16.msra.mxu1 %v9468_v24 }
 0x1c7   : > { %9077 = vmatprep.subr.bf16.mxu1 %v9469_v25 }
 0x1ca   : > { %9078 = vmatpush3.bf16.msra.mxu1 %v9469_v25 }
 0x1cd   : > { %9080 = vmatmul.mubr.bf16.vlgmr.msra.gmra.mrb[24].mxu1 %v10041_v20 }
 0x1ce   : > { %9083 = vmatprep.mubr.bf16.mxu1 %v10049_v23 }
 0x1d5   : > { %9084 = vmatmul.mubr.bf16.gmra.mrb[28].mxu1 %v10060_v27 }
 0x260   : > { %v10230_v26 = vpop.f32.mrb[8].mxu1 }
 0x261   : > { %v10232_v28 = vpop.f32.mrb[9].mxu1 }
 0x262   : > { %v10234_v29 = vpop.f32.mrb[10].mxu1 }
 0x263   : > { %v10236_v30 = vpop.f32.mrb[11].mxu1 }
 0x268   : > { %v10240_v31 = vpop.f32.mrb[12].mxu1 }
 0x269   : > { %v10242_v32 = vpop.f32.mrb[13].mxu1 }
 0x26a   : > { %v8998_v33 = vpop.f32.mrb[14].mxu1 }
 0x26b   : > { %v10244_v34 = vpop.f32.mrb[15].mxu1 }
 0x280   : > { %v9041_v35 = vpop.f32.mrb[16].mxu1 }
 0x281   : > { %v2125_v38 = vpop.f32.mrb[17].mxu1  ;;  %v2134_v40 = vadd.f32 %v9041_v35, %v8321_v37 }
 0x282   : > { %v9042_v39 = vpop.f32.mrb[18].mxu1  ;;  %v2126_v43 = vadd.f32 %v8321_v37, %v2125_v38 }
 0x283   : > { %v2137_v41 = vadd.f32 %v9042_v39, %v8321_v37  ;;  %v2128_v42 = vpop.f32.mrb[19].mxu1 }
 0x284   : > { %v2129_v44 = vadd.f32 %v8321_v37, %v2128_v42  ;;  %v9477_v42 = vld [vmem:[%s16533_s29 + $0xc0] sm:$0xff]  }
 0x285   : > { %v2160_v45 = vpack.c.bf16 %v2137_v41, %v2134_v40 }
 0x286   : > { %v2159_v46 = vpack.c.bf16 %v2129_v44, %v2126_v43  ;;  %v9479_v43 = vld [vmem:[%s16533_s29 + $0xc8] sm:$0xff]   ;;  %v9480_v44 = vld [vmem:[%s16533_s29 + $0xd0] sm:$0xff]  }
 0x287   : > { %v2194_v61 = vsel %vm1798_vm0, %v2160_v45, 0 }
 0x288   : > { %9283 = vmatprep.subr.msk.bf16.mxu0 %vm1798_vm0, %v2159_v46  ;;  %v2191_v48 = vsel %vm1798_vm0, %v2159_v46, 0  ;;  %v9045_v50 = vpop.f32.mrb[20].mxu1  ;;  %v8599_v46 = vld [vmem:[%s16133_s10] sm:$0xff]  }
 0x289   : > { %9048 = vmatpush3.bf16.xpose.msra.mxu0 %v2191_v48  ;;  %v2141_v52 = vpop.f32.mrb[21].mxu1  ;;  %v2150_v63 = vadd.f32 %v9045_v50, %v8321_v37  ;;  %v9481_v48 = vld [vmem:[%s16533_s29 + $0xd8] sm:$0xff]  }
 0x28a   : > { %9284 = vmatprep.subr.msk.bf16.mxu0 %vm1798_vm0, %v2160_v45  ;;  %v2142_v54 = vadd.f32 %v8321_v37, %v2141_v52  ;;  %v9046_v55 = vpop.f32.mrb[22].mxu1  ;;  %v8638_v45 = vld [vmem:[%s16133_s10 + $0x8] sm:$0xff]   ;;  %v8600_v52 = vunpack.c.l.bf16 %v8599_v46 }
 0x28b   : > { %v2144_v56 = vpop.f32.mrb[23].mxu1  ;;  %v2162_v0 = vpack.c.bf16 %v2150_v63, %v2150_v63  ;;  %v8604_v50 = vunpack.c.l.bf16 %v8638_v45  ;;  %v1790_v55 = vld [vmem:[%s16133_s10 + $0x18] sm:$0x1]  ;;  %v3025_v63 = vstv %s3024_s2  ;;  %s8476_s2 = sld [smem:[#allocation4 + $0x182]] }
 0x28c   : > { %v2145_v58 = vadd.f32 %v8321_v37, %v2144_v56  ;;  %v9482_v56 = vld [vmem:[%s16533_s29 + $0xe0] sm:$0xff]  }
 0x28d   : > { %v2200_v4 = vsel %vm1798_vm0, %v2162_v0, 0 }
 0x28e   : > { %v2161_v59 = vpack.c.bf16 %v2145_v58, %v2142_v54  ;;  %v8605_v54 = vunpack.c.h.bf16 %v8638_v45  ;;  %v8601_v58 = vunpack.c.h.bf16 %v8599_v46 }
 0x290   : > { %v2197_v1 = vsel %vm1798_vm0, %v2161_v59, 0 }
 0x291   : > { %9050 = vmatpush3.bf16.xpose.msra.mxu0 %v2194_v61  ;;  %v1866_v61 = vadd.f32 %v10230_v26, %v8604_v50 }
 0x292   : > { %9285 = vmatprep.subr.msk.bf16.mxu0 %vm1798_vm0, %v2161_v59  ;;  %v8639_v59 = vld [vmem:[%s16133_s10 + $0x10] sm:$0xff]  }
 0x293   : > { %v8608_v26 = vunpack.c.l.bf16 %v8639_v59 }
 0x299   : > { %9052 = vmatpush3.bf16.xpose.msra.mxu0 %v2197_v1  ;;  %v1797_v1 = vunpack.c.l.bf16 %v1790_v55 }
 0x29a   : > { %9286 = vmatprep.subr.msk.bf16.mxu0 %vm1798_vm0, %v2162_v0  ;;  %v1858_v0 = vadd.f32 %v8600_v52, %v10232_v28  ;;  %v9484_v28 = vld [vmem:[%s16533_s29 + $0xf0] sm:$0xff]  }
 0x2a0   : > { %v9081_v13 = vpop.f32.mrb[24].mxu1 }
 0x2a1   : > { %9054 = vmatpush3.bf16.xpose.msra.mxu0 %v2200_v4  ;;  %v10301_v14 = vadd.f32 %v9081_v13, %v8357_v12  ;;  %v9483_v4 = vld [vmem:[%s16533_s29 + $0xe8] sm:$0xff]   ;;  %v1882_v13 = vadd.f32 %v10240_v31, %v1797_v1 }
 0x2a2   : > { %9087 = vmatprep.subr.bf16.mxu0 %v9454_v3 }
 0x2a3   : > { %v10415_v46 = vmul.f32 %v3025_v63, %v1882_v13 }
 0x2a8   : > { %9056 = vmatmul.mubr.msk.bf16.vlgmr.msra.gmra.mrb[24].mxu0 %vm1798_vm0, %v2156_v5  ;;  %v9459_v5 = vld [vmem:[%s16534_s28 + $0xa8] sm:$0xff]  }
 0x2a9   : > { %9088 = vmatpush3.bf16.msra.mxu0 %v9454_v3  ;;  %9059 = vmatprep.mubr.msk.bf16.mxu0 %vm1798_vm0, %v2157_v15  ;;  %v2370_v15 = vpop.f32.mrb[25].mxu1  ;;  %v10348_v3 = vld [vmem:[%s16133_s10 + $0x20] sm:$0xff]  }
 0x2aa   : > { %9089 = vmatprep.subr.bf16.mxu0 %v9455_v7  ;;  %v2371_v16 = vadd.f32 %v8357_v12, %v2370_v15  ;;  %v9082_v17 = vpop.f32.mrb[26].mxu1 }
 0x2ab   : > { %v10303_v18 = vadd.f32 %v9082_v17, %v8357_v12  ;;  %v2373_v19 = vpop.f32.mrb[27].mxu1  ;;  %v1874_v17 = vadd.f32 %v8608_v26, %v10242_v32  ;;  %v8612_v26 = vunpack.c.l.bf16 %v10348_v3 }
 0x2ac   : > { %v2374_v21 = vadd.f32 %v8357_v12, %v2373_v19  ;;  %v9085_v25 = vpop.f32.mrb[28].mxu1  ;;  %v9485_v19 = vld [vmem:[%s16533_s29 + $0xf8] sm:$0xff]  }
 0x2ad   : > { %9090 = vmatpush3.bf16.msra.mxu0 %v9455_v7  ;;  %v10308_v33 = vadd.f32 %v9085_v25, %v8357_v12  ;;  %v2386_v35 = vpop.f32.mrb[29].mxu1  ;;  %v3168_v7 = vstv %s8466_s8  ;;  %s10363_s8 = sld [smem:[#allocation4 + $0x81]] }
 0x2ae   : > { %9091 = vmatprep.subr.bf16.mxu0 %v9456_v8  ;;  %v2534_v24 = vpack.c.bf16 %v2374_v21, %v2371_v16  ;;  %v10310_v37 = vadd.f32 %v8357_v12, %v2386_v35  ;;  %v9086_v38 = vpop.f32.mrb[30].mxu1  ;;  %v10378_v16 = vmul.f32 %v3025_v63, %v1858_v0  ;;  %v10394_v35 = vld [vmem:[%s16133_s10 + $0x1c] ss:$20 sps:$4 sm:$0xff]  }
 0x2af   : > { %v2389_v39 = vpop.f32.mrb[31].mxu1  ;;  %v2176_v57 = vunpack.c.h.bf16 %v10394_v35 }
 0x2b0   : > { %9060 = vmatmul.mubr.msk.bf16.gmra.mrb[28].mxu0 %vm1798_vm0, %v2158_v10  ;;  %9119 = vmatprep.mubr.msk.bf16.mxu1 %vm1798_vm0, %v2534_v24  ;;  %v10312_v40 = vadd.f32 %v8357_v12, %v2389_v39  ;;  %v1869_v10 = vadd.f32 %v10234_v29, %v8605_v54  ;;  %v10365_v12 = vmul.f32 %v3168_v7, %v1866_v61  ;;  %v2171_v54 = vunpack.c.l.bf16 %v10394_v35 }
 0x2b1   : > { %9092 = vmatpush3.bf16.msra.mxu0 %v9456_v8  ;;  %9103 = vmatprep.mubr.bf16.mxu0 %v10006_v6  ;;  %v3309_v8 = vstv %s8470_s27  ;;  %s10369_s27 = sld [smem:[#allocation4 + $0x101]] }
 0x2b2   : > { %9093 = vmatprep.subr.bf16.mxu0 %v9457_v62  ;;  %v10367_v29 = vmul.f32 %v3309_v8, %v1866_v61  ;;  %v10384_v21 = vmul.f32 %v3025_v63, %v1869_v10  ;;  %v10386_v24 = vmul.f32 %v3168_v7, %v1869_v10  ;;  %v10388_v31 = vmul.f32 %v3309_v8, %v1869_v10 }
 0x2b3   : > { %v10398_v32 = vmul.f32 %v3309_v8, %v1858_v0  ;;  %v10419_v50 = vmul.f32 %v3309_v8, %v1882_v13 }
 0x2b5   : > { %9094 = vmatpush3.bf16.msra.mxu0 %v9457_v62  ;;  %v3450_v62 = vstv %s8474_s5  ;;  %s10376_s5 = sld [smem:[#allocation4 + $0x181]] }
 0x2b6   : > { %9095 = vmatprep.subr.bf16.mxu0 %v9458_v2  ;;  %v10374_v15 = vmul.f32 %v3450_v62, %v1866_v61  ;;  %v10396_v38 = vmul.f32 %v3450_v62, %v1869_v10  ;;  %v10421_v52 = vmul.f32 %v3450_v62, %v1882_v13  ;;  %v10424_v55 = vmul.f32 %v3450_v62, %v1874_v17 }
 0x2b9   : > { %9096 = vmatpush3.bf16.msra.mxu0 %v9458_v2  ;;  %v1861_v2 = vadd.f32 %v8601_v58, %v10236_v30  ;;  %v10372_v30 = vmul.f32 %v3168_v7, %v1858_v0  ;;  %v10428_v58 = vmul.f32 %v3168_v7, %v1874_v17 }
 0x2ba   : > { %9097 = vmatprep.subr.bf16.mxu0 %v9459_v5 }
 0x2bb   : > { %v10400_v39 = vmul.f32 %v3168_v7, %v1861_v2  ;;  %v10413_v45 = vmul.f32 %v3450_v62, %v1861_v2  ;;  %v10451_v41 = vstv %s10376_s5  ;;  %s11298_s5 = sld [smem:[#allocation6 + $0x3]] }
 0x2bd   : > { %9098 = vmatpush3.bf16.msra.mxu0 %v9459_v5  ;;  %v8609_v5 = vunpack.c.h.bf16 %v8639_v59 }
 0x2be   : > { %9099 = vmatprep.subr.bf16.mxu0 %v9460_v9 }
 0x2bf   : > { %v1877_v25 = vadd.f32 %v8609_v5, %v10244_v34  ;;  %v10411_v34 = vmul.f32 %v3025_v63, %v1861_v2  ;;  %v10448_v5 = vstv %s10369_s27  ;;  %s8479_s27 = sld [smem:[#allocation6 + $0x2]] }
 0x2c1   : > { %9100 = vmatpush3.bf16.msra.mxu0 %v9460_v9  ;;  %v8613_v9 = vunpack.c.h.bf16 %v10348_v3  ;;  %v10436_v1 = vmul.f32 %v3168_v7, %v1877_v25 }
 0x2c2   : > { %9101 = vmatprep.subr.bf16.mxu0 %v9461_v11 }
 0x2c5   : > { %9102 = vmatpush3.bf16.msra.mxu0 %v9461_v11  ;;  %v10361_v11 = vmul.f32 %v3025_v63, %v1866_v61  ;;  %v8336_v61 = vld [vmem:[%s16133_s10 + $0x34] sm:$0x1] }
 0x2c6   : > { %9127 = vmatprep.subr.bf16.mxu0 %v9477_v42  ;;  %v2177_v60 = vunpack.c.l.bf16 %v8336_v61 }
 0x2c8   : > { %9104 = vmatmul.mubr.bf16.vlgmr.msra.gmra.mrb[32].mxu0 %v10041_v20 }
 0x2c9   : > { %9107 = vmatprep.mubr.bf16.mxu0 %v10049_v23  ;;  %9128 = vmatpush3.bf16.msra.mxu0 %v9477_v42  ;;  %v10405_v42 = vld [vmem:[%s16133_s10 + $0x28] sm:$0xff]  }
 0x2ca   : > { %9129 = vmatprep.subr.bf16.mxu0 %v9479_v43  ;;  %v8616_v59 = vunpack.c.l.bf16 %v10405_v42  ;;  %v8617_v3 = vunpack.c.h.bf16 %v10405_v42 }
 0x2cd   : > { %9130 = vmatpush3.bf16.msra.mxu0 %v9479_v43  ;;  %v10407_v43 = vmul.f32 %v3450_v62, %v1858_v0  ;;  %v10434_v0 = vmul.f32 %v3025_v63, %v1877_v25 }
 0x2ce   : > { %9131 = vmatprep.subr.bf16.mxu0 %v9480_v44 }
 0x2d0   : > { %9108 = vmatmul.mubr.bf16.gmra.mrb[36].mxu0 %v10060_v27 }
 0x2d1   : > { %9143 = vmatprep.mubr.bf16.mxu0 %v10006_v6  ;;  %9132 = vmatpush3.bf16.msra.mxu0 %v9480_v44  ;;  %v10409_v44 = vmul.f32 %v3309_v8, %v1861_v2  ;;  %v10445_v2 = vstv %s10363_s8  ;;  %s8477_s8 = sld [smem:[#allocation4 + $0x183]] }
 0x2d2   : > { %9133 = vmatprep.subr.bf16.mxu0 %v9481_v48 }
 0x2d5   : > { %9134 = vmatpush3.bf16.msra.mxu0 %v9481_v48  ;;  %v10417_v48 = vmul.f32 %v3168_v7, %v1882_v13  ;;  %v10455_v7 = vmul.f32 %v3450_v62, %v1877_v25 }
 0x2d6   : > { %9135 = vmatprep.subr.bf16.mxu0 %v9482_v56 }
 0x2d9   : > { %9136 = vmatpush3.bf16.msra.mxu0 %v9482_v56  ;;  %v10426_v56 = vmul.f32 %v3025_v63, %v1874_v17  ;;  %v10453_v63 = vmul.f32 %v3309_v8, %v1877_v25 }
 0x2da   : > { %9137 = vmatprep.subr.bf16.mxu0 %v9483_v4 }
 0x2dd   : > { %9138 = vmatpush3.bf16.msra.mxu0 %v9483_v4  ;;  %v10438_v4 = vmul.f32 %v3309_v8, %v1874_v17 }
 0x2de   : > { %9139 = vmatprep.subr.bf16.mxu0 %v9484_v28 }
 0x2e1   : > { %9140 = vmatpush3.bf16.msra.mxu0 %v9484_v28  ;;  %v10442_v28 = vstv %s10358_s25  ;;  %s8473_s25 = sld [smem:[#allocation4 + $0x103]] }
 0x2e2   : > { %9141 = vmatprep.subr.bf16.mxu0 %v9485_v19 }
 0x2e5   : > { %9142 = vmatpush3.bf16.msra.mxu0 %v9485_v19 }
 0x2e8   : > { %9144 = vmatmul.mubr.bf16.vlgmr.msra.gmra.mrb[40].mxu0 %v10041_v20 }
 0x2e9   : > { %9147 = vmatprep.mubr.bf16.mxu0 %v10049_v23 }
 0x2f0   : > { %9148 = vmatmul.mubr.bf16.gmra.mrb[44].mxu0 %v10060_v27 }
 0x37b   : > { %v9057_v10 = vpop.f32.mrb[24].mxu0 }
 0x37c   : > { %v2245_v13 = vadd.f32 %v9057_v10, %v8613_v9  ;;  %v2236_v36 = vpop.f32.mrb[25].mxu0 }
 0x37d   : > { %v2237_v17 = vadd.f32 %v2236_v36, %v2171_v54  ;;  %v9058_v22 = vpop.f32.mrb[26].mxu0 }
 0x37e   : > { %v2248_v51 = vadd.f32 %v9058_v22, %v8616_v59  ;;  %v2239_v47 = vpop.f32.mrb[27].mxu0  ;;  %v3044_v53 = vmul.f32 %v10442_v28, %v2245_v13  ;;  %v3187_v9 = vmul.f32 %v10445_v2, %v2245_v13  ;;  %v3328_v19 = vmul.f32 %v10448_v5, %v2245_v13 }
 0x37f   : > { %v2240_v10 = vadd.f32 %v8612_v26, %v2239_v47  ;;  %v3185_v8 = vmul.f32 %v10445_v2, %v2237_v17  ;;  %v3469_v36 = vmul.f32 %v10451_v41, %v2245_v13  ;;  %v3042_v62 = vmul.f32 %v10442_v28, %v2237_v17 }
 0x380   : > { %v10468_v22 = vadd.f32 %v3044_v53, %v10361_v11  ;;  %v10471_v25 = vadd.f32 %v3187_v9, %v10365_v12  ;;  %v3045_v35 = vmul.f32 %v10442_v28, %v2248_v51  ;;  %v10475_v47 = vadd.f32 %v3328_v19, %v10367_v29 }
 0x381   : > { %v10478_v42 = vadd.f32 %v3185_v8, %v10372_v30  ;;  %v3188_v54 = vmul.f32 %v10445_v2, %v2248_v51  ;;  %v10482_v59 = vadd.f32 %v3469_v36, %v10374_v15  ;;  %v3329_v61 = vmul.f32 %v10448_v5, %v2248_v51 }
 0x382   : > { %v10486_v53 = vadd.f32 %v3045_v35, %v10384_v21  ;;  %v10489_v11 = vadd.f32 %v3042_v62, %v10378_v16  ;;  %v3470_v12 = vmul.f32 %v10451_v41, %v2248_v51  ;;  %v3326_v29 = vmul.f32 %v10448_v5, %v2237_v17 }
 0x383   : > { %v9061_v26 = vpop.f32.mrb[28].mxu0  ;;  %v10494_v30 = vadd.f32 %v3188_v54, %v10386_v24  ;;  %v10497_v13 = vadd.f32 %v3329_v61, %v10388_v31  ;;  %v3186_v15 = vmul.f32 %v10445_v2, %v2240_v10  ;;  %v3467_v9 = vmul.f32 %v10451_v41, %v2237_v17 }
 0x384   : > { %v2261_v21 = vadd.f32 %v9061_v26, %v2177_v60  ;;  %v2252_v19 = vpop.f32.mrb[29].mxu0  ;;  %v10502_v16 = vadd.f32 %v3470_v12, %v10396_v38  ;;  %v10505_v51 = vadd.f32 %v3326_v29, %v10398_v32  ;;  %v3327_v8 = vmul.f32 %v10448_v5, %v2240_v10 }
 0x385   : > { %v2253_v36 = vadd.f32 %v8617_v3, %v2252_v19  ;;  %v9062_v24 = vpop.f32.mrb[30].mxu0  ;;  %v10509_v62 = vadd.f32 %v3186_v15, %v10400_v39  ;;  %v10512_v31 = vadd.f32 %v3467_v9, %v10407_v43  ;;  %v3043_v17 = vmul.f32 %v10442_v28, %v2240_v10 }
 0x386   : > { %v2255_v60 = vpop.f32.mrb[31].mxu0  ;;  %v10516_v35 = vadd.f32 %v3327_v8, %v10409_v44  ;;  %v3468_v38 = vmul.f32 %v10451_v41, %v2240_v10  ;;  %v3048_v32 = vmul.f32 %v10442_v28, %v2261_v21  ;;  %v3191_v54 = vmul.f32 %v10445_v2, %v2261_v21 }
 0x387   : > { %v2256_v3 = vadd.f32 %v2255_v60, %v2176_v57  ;;  %v10523_v39 = vadd.f32 %v3043_v17, %v10411_v34  ;;  %v3332_v43 = vmul.f32 %v10448_v5, %v2261_v21  ;;  %v3471_v61 = vmul.f32 %v10451_v41, %v2253_v36 }
 0x388   : > { %v10528_v12 = vadd.f32 %v3468_v38, %v10413_v45  ;;  %v10531_v44 = vadd.f32 %v3048_v32, %v10415_v46  ;;  %v10534_v10 = vadd.f32 %v3191_v54, %v10417_v48  ;;  %v3046_v57 = vmul.f32 %v10442_v28, %v2253_v36 }
 0x389   : > { %v10538_v29 = vadd.f32 %v3332_v43, %v10419_v50  ;;  %v10541_v34 = vadd.f32 %v3471_v61, %v10424_v55  ;;  %v3047_v26 = vmul.f32 %v10442_v28, %v2256_v3  ;;  %v3189_v15 = vmul.f32 %v10445_v2, %v2253_v36 }
 0x38a   : > { %v10546_v45 = vadd.f32 %v3046_v57, %v10426_v56  ;;  %v3190_v46 = vmul.f32 %v10445_v2, %v2256_v3  ;;  %v3330_v48 = vmul.f32 %v10448_v5, %v2253_v36  ;;  %v3331_v9 = vmul.f32 %v10448_v5, %v2256_v3 }
 0x38b   : > { %v10552_v19 = vadd.f32 %v3047_v26, %v10434_v0  ;;  %v10555_v50 = vadd.f32 %v3189_v15, %v10428_v58  ;;  %v3472_v55 = vmul.f32 %v10451_v41, %v2256_v3  ;;  %v3473_v28 = vmul.f32 %v10451_v41, %v2261_v21  ;;  %v8382_v41 = vld [vmem:[%s16542_s1 + $0x2] ss:$0 sm:$0xff] }
 0x38c   : > { %v10560_v8 = vadd.f32 %v3190_v46, %v10436_v1  ;;  %v10563_v56 = vadd.f32 %v3330_v48, %v10438_v4  ;;  %v10566_v2 = vadd.f32 %v3331_v9, %v10453_v63  ;;  %v9470_v9 = vld [vmem:[%s16534_s28 + $0xc0] sm:$0xff]  }
 0x38d   : > { %v10569_v5 = vadd.f32 %v3472_v55, %v10455_v7  ;;  %v10572_v0 = vadd.f32 %v3473_v28, %v10421_v52  ;;  %v9471_v28 = vld [vmem:[%s16534_s28 + $0xc8] sm:$0xff]  }
 0x39b   : > { %v9105_v58 = vpop.f32.mrb[32].mxu0 }
 0x39c   : > { %v2504_v21 = vpop.f32.mrb[33].mxu0  ;;  %v2513_v36 = vadd.f32 %v9105_v58, %v8382_v41  ;;  %v16543_v58 = vpack.c.bf16 %v10303_v18, %v10301_v14  ;;  %v9473_v14 = vld [vmem:[%s16534_s28 + $0xd8] sm:$0xff]   ;;  %v9474_v18 = vld [vmem:[%s16534_s28 + $0xe0] sm:$0xff]  }
 0x39d   : > { %v9106_v1 = vpop.f32.mrb[34].mxu0  ;;  %v2505_v17 = vadd.f32 %v8382_v41, %v2504_v21  ;;  %v9472_v21 = vld [vmem:[%s16534_s28 + $0xd0] sm:$0xff]  }
 0x39e   : > { %v2516_v24 = vadd.f32 %v9106_v1, %v8382_v41  ;;  %v2507_v4 = vpop.f32.mrb[35].mxu0  ;;  %v2537_v1 = vpack.c.bf16 %v10308_v33, %v10308_v33  ;;  %v9475_v33 = vld [vmem:[%s16534_s28 + $0xe8] sm:$0xff]  }
 0x39f   : > { %v2508_v60 = vadd.f32 %v8382_v41, %v2507_v4  ;;  %v16547_v4 = vld [vmem:[#allocation13_spill] sm:$0xff] }
 0x3a0   : > { %v2539_v63 = vpack.c.bf16 %v2516_v24, %v2513_v36  ;;  %v16546_v24 = vld [vmem:[#allocation12_spill] sm:$0xff] }
 0x3a1   : > { %v2538_v38 = vpack.c.bf16 %v2508_v60, %v2505_v17  ;;  %v10629_v17 = vpack.c.bf16 %v16547_v4, %v16546_v24  ;;  %v1197_v60 = vld [vmem:[#allocation2 + $0x38] sm:$0x1]  ;;  %v8397_v24 = vld [vmem:[%s16133_s10 + $0x50] sm:$0x1]  ;;  %v8644_v4 = vld [vmem:[%s16133_s10 + $0x48] sm:$0xff]  }
 0x3a2   : > { %v2573_v26 = vsel %vm1798_vm0, %v2539_v63, 0 }
 0x3a3   : > { %9287 = vmatprep.subr.msk.bf16.mxu1 %vm1798_vm0, %v2538_v38  ;;  %v2570_v7 = vsel %vm1798_vm0, %v2538_v38, 0  ;;  %v9109_v52 = vpop.f32.mrb[36].mxu0 }
 0x3a4   : > { %9112 = vmatpush3.bf16.xpose.msra.mxu1 %v2570_v7  ;;  %v2520_v32 = vpop.f32.mrb[37].mxu0  ;;  %v2529_v15 = vadd.f32 %v9109_v52, %v8382_v41  ;;  %v10638_v7 = vpack.c.bf16 %v1197_v60, %v1197_v60 }
 0x3a5   : > { %9288 = vmatprep.subr.msk.bf16.mxu1 %vm1798_vm0, %v2539_v63  ;;  %v2521_v54 = vadd.f32 %v8382_v41, %v2520_v32  ;;  %v9110_v3 = vpop.f32.mrb[38].mxu0  ;;  %v16548_v63 = vld [vmem:[#allocation15_spill] sm:$0xff] }
 0x3a6   : > { %v2523_v43 = vpop.f32.mrb[39].mxu0  ;;  %v2541_v46 = vpack.c.bf16 %v2529_v15, %v2529_v15  ;;  %v8418_v32 = vld [vmem:[%s16541_s3 + $0x3] ss:$0 sm:$0xff] }
 0x3a7   : > { %v2524_v61 = vadd.f32 %v8382_v41, %v2523_v43  ;;  %v16544_v41 = vpack.c.bf16 %v10312_v40, %v10310_v37  ;;  %v9476_v37 = vld [vmem:[%s16534_s28 + $0xf0] sm:$0xff]   ;;  %v16545_v40 = vld [vmem:[#allocation14_spill] sm:$0xff] }
 0x3a8   : > { %v2579_v55 = vsel %vm1798_vm0, %v2541_v46, 0  ;;  %v10623_v36 = vpack.c.bf16 %v16545_v40, %v10122_v49  ;;  %v16549_v49 = vld [vmem:[#allocation16_spill] sm:$0xff] }
 0x3a9   : > { %v2540_v57 = vpack.c.bf16 %v2524_v61, %v2521_v54  ;;  %v10636_v38 = vpack.c.bf16 %v16549_v49, %v16548_v63  ;;  %v3057_v49 = vstv %s8464_s11  ;;  %s8506_s11 = sld [smem:[#allocation6 + $0x182]] }
 0x3ab   : > { %v2576_v48 = vsel %vm1798_vm0, %v2540_v57, 0 }
 0x3ac   : > { %9114 = vmatpush3.bf16.xpose.msra.mxu1 %v2573_v26 }
 0x3ad   : > { %9289 = vmatprep.subr.msk.bf16.mxu1 %vm1798_vm0, %v2540_v57 }
 0x3b4   : > { %9116 = vmatpush3.bf16.xpose.msra.mxu1 %v2576_v48 }
 0x3b5   : > { %9290 = vmatprep.subr.msk.bf16.mxu1 %vm1798_vm0, %v2541_v46 }
 0x3bb   : > { %v9145_v54 = vpop.f32.mrb[40].mxu0 }
 0x3bc   : > { %9118 = vmatpush3.bf16.xpose.msra.mxu1 %v2579_v55  ;;  %v10653_v3 = vadd.f32 %v9145_v54, %v8418_v32  ;;  %v2749_v43 = vpop.f32.mrb[41].mxu0 }
 0x3bd   : > { %9151 = vmatprep.subr.bf16.mxu1 %v9470_v9  ;;  %v2750_v61 = vadd.f32 %v8418_v32, %v2749_v43  ;;  %v9146_v57 = vpop.f32.mrb[42].mxu0 }
 0x3be   : > { %v10655_v26 = vadd.f32 %v9146_v57, %v8418_v32  ;;  %v2752_v15 = vpop.f32.mrb[43].mxu0 }
 0x3bf   : > { %v2753_v46 = vadd.f32 %v8418_v32, %v2752_v15 }
 0x3c1   : > { %v2913_v48 = vpack.c.bf16 %v2753_v46, %v2750_v61  ;;  %v10684_v61 = vstv %s8476_s2  ;;  %v2556_v46 = vunpack.c.l.bf16 %v8397_v24  ;;  %s8469_s2 = sld [smem:[#allocation4 + $0x83]] }
 0x3c3   : > { %9120 = vmatmul.mubr.msk.bf16.vlgmr.msra.gmra.mrb[32].mxu1 %vm1798_vm0, %v16543_v58  ;;  %9183 = vmatprep.mubr.msk.bf16.mxu0 %vm1798_vm0, %v2913_v48  ;;  %v8628_v48 = vunpack.c.l.bf16 %v8644_v4 }
 0x3c4   : > { %9152 = vmatpush3.bf16.msra.mxu1 %v9470_v9  ;;  %9123 = vmatprep.mubr.msk.bf16.mxu1 %vm1798_vm0, %v16544_v41  ;;  %v9149_v9 = vpop.f32.mrb[44].mxu0 }
 0x3c5   : > { %9153 = vmatprep.subr.bf16.mxu1 %v9471_v28  ;;  %v10660_v55 = vadd.f32 %v9149_v9, %v8418_v32  ;;  %v8629_v9 = vunpack.c.h.bf16 %v8644_v4 }
 0x3c8   : > { %9154 = vmatpush3.bf16.msra.mxu1 %v9471_v28  ;;  %v2765_v28 = vpop.f32.mrb[45].mxu0 }
 0x3c9   : > { %9155 = vmatprep.subr.bf16.mxu1 %v9472_v21  ;;  %v10662_v58 = vadd.f32 %v8418_v32, %v2765_v28  ;;  %v9150_v41 = vpop.f32.mrb[46].mxu0 }
 0x3cb   : > { %9124 = vmatmul.mubr.msk.bf16.gmra.mrb[36].mxu1 %vm1798_vm0, %v2537_v1 }
 0x3cc   : > { %9156 = vmatpush3.bf16.msra.mxu1 %v9472_v21  ;;  %9167 = vmatprep.mubr.bf16.mxu1 %v10006_v6  ;;  %v9478_v6 = vld [vmem:[%s16534_s28 + $0xf8] sm:$0xff]   ;;  %v2768_v21 = vpop.f32.mrb[47].mxu0 }
 0x3cd   : > { %9157 = vmatprep.subr.bf16.mxu1 %v9473_v14  ;;  %v10664_v1 = vadd.f32 %v8418_v32, %v2768_v21  ;;  %v10682_v32 = vstv %s8472_s4  ;;  %s8465_s4 = sld [smem:[#allocation4 + $0x3]] }
 0x3d0   : > { %9158 = vmatpush3.bf16.msra.mxu1 %v9473_v14 }
 0x3d1   : > { %9159 = vmatprep.subr.bf16.mxu1 %v9474_v18 }
 0x3d4   : > { %9160 = vmatpush3.bf16.msra.mxu1 %v9474_v18  ;;  %v8643_v18 = vld [vmem:[%s16133_s10 + $0x40] sm:$0xff]  }
 0x3d5   : > { %9161 = vmatprep.subr.bf16.mxu1 %v9475_v33  ;;  %v8625_v40 = vunpack.c.h.bf16 %v8643_v18 }
 0x3d8   : > { %9162 = vmatpush3.bf16.msra.mxu1 %v9475_v33  ;;  %v8642_v33 = vld [vmem:[%s16133_s10 + $0x38] sm:$0xff]  }
 0x3d9   : > { %9163 = vmatprep.subr.bf16.mxu1 %v9476_v37  ;;  %v8621_v63 = vunpack.c.h.bf16 %v8642_v33 }
 0x3dc   : > { %9164 = vmatpush3.bf16.msra.mxu1 %v9476_v37  ;;  %v8624_v37 = vunpack.c.l.bf16 %v8643_v18 }
 0x3dd   : > { %9165 = vmatprep.subr.bf16.mxu1 %v9478_v6 }
 0x3e0   : > { %9166 = vmatpush3.bf16.msra.mxu1 %v9478_v6  ;;  %v8620_v6 = vunpack.c.l.bf16 %v8642_v33 }
 0x3e1   : > { %9191 = vmatprep.subr.bf16.mxu1 %v10623_v36 }
 0x3e3   : > { %9168 = vmatmul.mubr.bf16.vlgmr.msra.gmra.mrb[40].mxu1 %v10041_v20  ;;  %v16550_v20 = vmov 0  }
 0x3e4   : > { %9192 = vmatpush3.bf16.msra.mxu1 %v10623_v36  ;;  %9171 = vmatprep.mubr.bf16.mxu1 %v10049_v23  ;;  %v10643_v52 = vsel %vm3683_vm1, 65535, %v16550_v20 }
 0x3e5   : > { %9193 = vmatprep.subr.bf16.mxu1 %v10629_v17  ;;  %16551 = vst [vmem:[#allocation14_spill] sm:$0xff] %v10643_v52  ;;  %v3687_v23 = vand.u32 %v10643_v52, %v10638_v7 }
 0x3e8   : > { %9194 = vmatpush3.bf16.msra.mxu1 %v10629_v17 }
 0x3e9   : > { %9195 = vmatprep.subr.bf16.mxu1 %v10636_v38 }
 0x3eb   : > { %9172 = vmatmul.mubr.bf16.gmra.mrb[44].mxu1 %v10060_v27 }
 0x3ec   : > { %9196 = vmatpush3.bf16.msra.mxu1 %v10636_v38 }
 0x3ed   : > { %9197 = vmatprep.subr.bf16.mxu1 %v3687_v23 }
 0x3f0   : > { %9198 = vmatpush3.bf16.msra.mxu1 %v3687_v23  ;;  %v10680_v23 = vstv %s8468_s12  ;;  %s8478_s12 = sld [smem:[#allocation6 + $0x1]] }
 0x496   : > { %v9121_v60 = vpop.f32.mrb[32].mxu1 }
 0x497   : > { %v2624_v54 = vadd.f32 %v9121_v60, %v8624_v37  ;;  %v2615_v43 = vpop.f32.mrb[33].mxu1 }
 0x498   : > { %v2616_v57 = vadd.f32 %v8620_v6, %v2615_v43  ;;  %v9122_v15 = vpop.f32.mrb[34].mxu1 }
 0x499   : > { %v2627_v28 = vadd.f32 %v9122_v15, %v8625_v40  ;;  %v2618_v41 = vpop.f32.mrb[35].mxu1  ;;  %v3060_v21 = vmul.f32 %v3057_v49, %v2624_v54  ;;  %v3203_v18 = vmul.f32 %v10680_v23, %v2624_v54  ;;  %v3344_v33 = vmul.f32 %v10682_v32, %v2624_v54 }
 0x49a   : > { %v2619_v14 = vadd.f32 %v8621_v63, %v2618_v41  ;;  %v3201_v27 = vmul.f32 %v10680_v23, %v2616_v57  ;;  %v3485_v37 = vmul.f32 %v10684_v61, %v2624_v54  ;;  %v3058_v60 = vmul.f32 %v3057_v49, %v2616_v57 }
 0x49b   : > { %v10691_v52 = vadd.f32 %v3060_v21, %v10468_v22  ;;  %v10694_v6 = vadd.f32 %v3203_v18, %v10471_v25  ;;  %v3061_v24 = vmul.f32 %v3057_v49, %v2627_v28  ;;  %v10697_v40 = vadd.f32 %v3344_v33, %v10475_v47 }
 0x49c   : > { %v10700_v4 = vadd.f32 %v3201_v27, %v10478_v42  ;;  %v3204_v63 = vmul.f32 %v10680_v23, %v2627_v28  ;;  %v10704_v43 = vadd.f32 %v3485_v37, %v10482_v59  ;;  %v3345_v54 = vmul.f32 %v10682_v32, %v2627_v28 }
 0x49d   : > { %v10708_v22 = vadd.f32 %v3061_v24, %v10486_v53  ;;  %v10711_v25 = vadd.f32 %v3058_v60, %v10489_v11  ;;  %v3486_v15 = vmul.f32 %v10684_v61, %v2627_v28  ;;  %v3342_v47 = vmul.f32 %v10682_v32, %v2616_v57 }
 0x49e   : > { %v9125_v41 = vpop.f32.mrb[36].mxu1  ;;  %v10716_v42 = vadd.f32 %v3204_v63, %v10494_v30  ;;  %v10719_v27 = vadd.f32 %v3345_v54, %v10497_v13  ;;  %v3202_v59 = vmul.f32 %v10680_v23, %v2619_v14  ;;  %v3483_v21 = vmul.f32 %v10684_v61, %v2616_v57 }
 0x49f   : > { %v2640_v53 = vadd.f32 %v9125_v41, %v2556_v46  ;;  %v2631_v18 = vpop.f32.mrb[37].mxu1  ;;  %v10724_v11 = vadd.f32 %v3486_v15, %v10502_v16  ;;  %v10727_v28 = vadd.f32 %v3342_v47, %v10505_v51  ;;  %v3343_v33 = vmul.f32 %v10682_v32, %v2619_v14 }
 0x4a0   : > { %v2632_v37 = vadd.f32 %v8628_v48, %v2631_v18  ;;  %v9126_v30 = vpop.f32.mrb[38].mxu1  ;;  %v10731_v60 = vadd.f32 %v3202_v59, %v10509_v62  ;;  %v10734_v13 = vadd.f32 %v3483_v21, %v10512_v31  ;;  %v3059_v24 = vmul.f32 %v3057_v49, %v2619_v14 }
 0x4a1   : > { %v2634_v57 = vpop.f32.mrb[39].mxu1  ;;  %v10737_v46 = vadd.f32 %v3343_v33, %v10516_v35  ;;  %v3484_v16 = vmul.f32 %v10684_v61, %v2619_v14  ;;  %v3064_v63 = vmul.f32 %v3057_v49, %v2640_v53  ;;  %v3207_v51 = vmul.f32 %v10680_v23, %v2640_v53 }
 0x4a2   : > { %v2635_v54 = vadd.f32 %v8629_v9, %v2634_v57  ;;  %v10742_v48 = vadd.f32 %v3059_v24, %v10523_v39  ;;  %v3348_v62 = vmul.f32 %v10682_v32, %v2640_v53  ;;  %v3487_v15 = vmul.f32 %v10684_v61, %v2632_v37 }
 0x4a3   : > { %v10747_v31 = vadd.f32 %v3484_v16, %v10528_v12  ;;  %v10750_v47 = vadd.f32 %v3064_v63, %v10531_v44  ;;  %v10753_v35 = vadd.f32 %v3207_v51, %v10534_v10  ;;  %v3062_v14 = vmul.f32 %v3057_v49, %v2632_v37 }
 0x4a4   : > { %v10756_v41 = vadd.f32 %v3348_v62, %v10538_v29  ;;  %v10759_v39 = vadd.f32 %v3487_v15, %v10541_v34  ;;  %v3063_v9 = vmul.f32 %v3057_v49, %v2635_v54  ;;  %v3205_v59 = vmul.f32 %v10680_v23, %v2632_v37 }
 0x4a5   : > { %v10763_v21 = vadd.f32 %v3062_v14, %v10546_v45  ;;  %v3206_v12 = vmul.f32 %v10680_v23, %v2635_v54  ;;  %v3346_v44 = vmul.f32 %v10682_v32, %v2632_v37  ;;  %v3347_v10 = vmul.f32 %v10682_v32, %v2635_v54 }
 0x4a6   : > { %v10769_v18 = vadd.f32 %v3063_v9, %v10552_v19  ;;  %v10772_v29 = vadd.f32 %v3205_v59, %v10555_v50  ;;  %v3488_v34 = vmul.f32 %v10684_v61, %v2635_v54  ;;  %v3489_v49 = vmul.f32 %v10684_v61, %v2640_v53  ;;  %v8443_v61 = vld [vmem:[%s16542_s1 + $0x3] ss:$0 sm:$0xff] }
 0x4a7   : > { %v10777_v33 = vadd.f32 %v3206_v12, %v10560_v8  ;;  %v10780_v45 = vadd.f32 %v3346_v44, %v10563_v56  ;;  %v10783_v23 = vadd.f32 %v3347_v10, %v10566_v2 }
 0x4a8   : > { %v10786_v32 = vadd.f32 %v3488_v34, %v10569_v5  ;;  %v10789_v19 = vadd.f32 %v3489_v49, %v10572_v0  ;;  %v16552_v34 = vpack.c.bf16 %v10655_v26, %v10653_v3  ;;  %v16553_v49 = vpack.c.bf16 %v10664_v1, %v10662_v58  ;;  %v8645_v3 = vld [vmem:[%s16133_s10 + $0x58] sm:$0xff]   ;;  %v10819_v26 = vld [vmem:[%s16133_s10 + $0x54] ss:$20 sps:$4 sm:$0xff]   ;;  %v8646_v58 = vld [vmem:[%s16133_s10 + $0x60] sm:$0xff]  }
 0x4a9   : > { %v2929_v1 = vunpack.c.l.bf16 %v10819_v26 }
 0x4b6   : > { %v9169_v50 = vpop.f32.mrb[40].mxu1 }
 0x4b7   : > { %v2883_v53 = vpop.f32.mrb[41].mxu1  ;;  %v2892_v37 = vadd.f32 %v9169_v50, %v8443_v61  ;;  %v2916_v50 = vpack.c.bf16 %v10660_v55, %v10660_v55  ;;  %v8633_v55 = vunpack.c.h.bf16 %v8645_v3 }
 0x4b8   : > { %v9170_v8 = vpop.f32.mrb[42].mxu1  ;;  %v2884_v24 = vadd.f32 %v8443_v61, %v2883_v53 }
 0x4b9   : > { %v2895_v30 = vadd.f32 %v9170_v8, %v8443_v61  ;;  %v2886_v56 = vpop.f32.mrb[43].mxu1  ;;  %v10825_v8 = vstv %s8465_s4  ;;  %s9779_s4 = smov 96  }
 0x4ba   : > { %v2887_v57 = vadd.f32 %v8443_v61, %v2886_v56 }
 0x4bb   : > { %v2918_v2 = vpack.c.bf16 %v2895_v30, %v2892_v37  ;;  %v10827_v37 = vstv %s8469_s2  ;;  %v10829_v30 = vstv %s8473_s25  ;;  %s9780_s2 = smov 64   ;;  %s9781_s25 = smov 32  }
 0x4bc   : > { %v2917_v16 = vpack.c.bf16 %v2887_v57, %v2884_v24  ;;  %v8458_v57 = vld [vmem:[%s16133_s10 + $0x6c] sm:$0x1] }
 0x4bd   : > { %v2952_v9 = vsel %vm1798_vm0, %v2918_v2, 0 }
 0x4be   : > { %9291 = vmatprep.subr.msk.bf16.mxu0 %vm1798_vm0, %v2917_v16  ;;  %v2949_v5 = vsel %vm1798_vm0, %v2917_v16, 0  ;;  %v9173_v0 = vpop.f32.mrb[44].mxu1 }
 0x4bf   : > { %9176 = vmatpush3.bf16.xpose.msra.mxu0 %v2949_v5  ;;  %v2899_v63 = vpop.f32.mrb[45].mxu1  ;;  %v2908_v59 = vadd.f32 %v9173_v0, %v8443_v61  ;;  %v8632_v0 = vunpack.c.l.bf16 %v8645_v3 }
 0x4c0   : > { %9292 = vmatprep.subr.msk.bf16.mxu0 %vm1798_vm0, %v2918_v2  ;;  %v2900_v51 = vadd.f32 %v8443_v61, %v2899_v63  ;;  %v9174_v54 = vpop.f32.mrb[46].mxu1  ;;  %v10834_v2 = vstv %s8477_s8  ;;  %s3591_s8 = sld [smem:[#allocation6]] }
 0x4c1   : > { %v2902_v62 = vpop.f32.mrb[47].mxu1  ;;  %v2920_v12 = vpack.c.bf16 %v2908_v59, %v2908_v59 }
 0x4c2   : > { %v2903_v15 = vadd.f32 %v8443_v61, %v2902_v62  ;;  %v8636_v61 = vunpack.c.l.bf16 %v8646_v58 }
 0x4c3   : > { %v2958_v10 = vsel %vm1798_vm0, %v2920_v12, 0 }
 0x4c4   : > { %v2919_v14 = vpack.c.bf16 %v2903_v15, %v2900_v51 }
 0x4c6   : > { %v2955_v44 = vsel %vm1798_vm0, %v2919_v14, 0 }
 0x4c7   : > { %9178 = vmatpush3.bf16.xpose.msra.mxu0 %v2952_v9 }
 0x4c8   : > { %9293 = vmatprep.subr.msk.bf16.mxu0 %vm1798_vm0, %v2919_v14  ;;  %v2935_v14 = vunpack.c.l.bf16 %v8458_v57 }
 0x4cf   : > { %9180 = vmatpush3.bf16.xpose.msra.mxu0 %v2955_v44 }
 0x4d0   : > { %9294 = vmatprep.subr.msk.bf16.mxu0 %vm1798_vm0, %v2920_v12 }
 0x4d7   : > { %9182 = vmatpush3.bf16.xpose.msra.mxu0 %v2958_v10 }
 0x4de   : > { %9184 = vmatmul.mubr.msk.bf16.vlgmr.msra.gmra.mrb[48].mxu0 %vm1798_vm0, %v16552_v34 }
 0x4df   : > { %9187 = vmatprep.mubr.msk.bf16.mxu0 %vm1798_vm0, %v16553_v49 }
 0x4e6   : > { %9188 = vmatmul.mubr.msk.bf16.gmra.mrb[52].mxu0 %vm1798_vm0, %v2916_v50 }
 0x5b1   : > { %v9185_v53 = vpop.f32.mrb[48].mxu0 }
 0x5b2   : > { %v3003_v56 = vadd.f32 %v9185_v53, %v8633_v55  ;;  %v2994_v24 = vpop.f32.mrb[49].mxu0 }
 0x5b3   : > { %v2995_v16 = vadd.f32 %v2994_v24, %v2929_v1  ;;  %v9186_v5 = vpop.f32.mrb[50].mxu0 }
 0x5b4   : > { %v3006_v63 = vadd.f32 %v9186_v5, %v8636_v61  ;;  %v2997_v51 = vpop.f32.mrb[51].mxu0  ;;  %v3076_v54 = vmul.f32 %v10825_v8, %v3003_v56  ;;  %v3219_v62 = vmul.f32 %v10827_v37, %v3003_v56  ;;  %v3360_v15 = vmul.f32 %v10829_v30, %v3003_v56 }
 0x5b5   : > { %v3217_v9 = vmul.f32 %v10827_v37, %v2995_v16  ;;  %v3501_v59 = vmul.f32 %v10834_v2, %v3003_v56  ;;  %v3074_v12 = vmul.f32 %v10825_v8, %v2995_v16  ;;  %v8637_v56 = vunpack.c.h.bf16 %v8646_v58 }
 0x5b6   : > { %v10843_v44 = vadd.f32 %v3076_v54, %v10691_v52  ;;  %v10846_v10 = vadd.f32 %v3219_v62, %v10694_v6  ;;  %v3077_v34 = vmul.f32 %v10825_v8, %v3006_v63  ;;  %v10850_v49 = vadd.f32 %v3360_v15, %v10697_v40 }
 0x5b7   : > { %v10853_v50 = vadd.f32 %v3217_v9, %v10700_v4  ;;  %v3220_v3 = vmul.f32 %v10827_v37, %v3006_v63  ;;  %v10857_v55 = vadd.f32 %v3501_v59, %v10704_v43  ;;  %v3361_v1 = vmul.f32 %v10829_v30, %v3006_v63 }
 0x5b8   : > { %v2998_v52 = vadd.f32 %v8632_v0, %v2997_v51  ;;  %v3095_v6 = vsel %vm3088_vm2, %v10843_v44, -inf  ;;  %v10863_v61 = vadd.f32 %v3077_v34, %v10708_v22  ;;  %v10874_v57 = vadd.f32 %v3074_v12, %v10711_v25 }
 0x5b9   : > { %3096 = vmax.xlane.f32.xlu0 %v3095_v6  ;;  %v9189_v40 = vpop.f32.mrb[52].mxu0  ;;  %v3231_v4 = vsel %vm3088_vm2, %v10853_v50, -inf  ;;  %v10868_v53 = vadd.f32 %v3220_v3, %v10716_v42  ;;  %v10871_v43 = vadd.f32 %v3361_v1, %v10719_v27  ;;  %v3502_v22 = vmul.f32 %v10834_v2, %v3006_v63 }
 0x5ba   : > { %v3010_v24 = vpop.f32.mrb[53].mxu0  ;;  %3232 = vmax.xlane.f32.xlu1 %v3231_v4  ;;  %v3019_v5 = vadd.f32 %v9189_v40, %v2935_v14  ;;  %v2934_v51 = vunpack.c.h.bf16 %v10819_v26  ;;  %v3358_v54 = vmul.f32 %v10829_v30, %v2995_v16  ;;  %v3237_v42 = vsel %vm3088_vm2, %v10846_v10, -inf }
 0x5bb   : > { %v9190_v0 = vpop.f32.mrb[54].mxu0  ;;  %v10882_v27 = vadd.f32 %v3502_v22, %v10724_v11  ;;  %v3218_v58 = vmul.f32 %v10827_v37, %v2998_v52  ;;  %v3499_v25 = vmul.f32 %v10834_v2, %v2995_v16  ;;  %v3098_v63 = vsel %vm3088_vm2, %v10863_v61, -inf }
 0x5bc   : > { %v3013_v62 = vpop.f32.mrb[55].mxu0  ;;  %v10889_v15 = vadd.f32 %v3358_v54, %v10727_v28  ;;  %v3359_v26 = vmul.f32 %v10829_v30, %v2998_v52  ;;  %v3075_v14 = vmul.f32 %v10825_v8, %v2998_v52  ;;  %v3011_v9 = vadd.f32 %v8637_v56, %v3010_v24 }
 0x5bd   : > { %3238 = vmax.xlane.f32.xlu0 %v3237_v42  ;;  %v10894_v11 = vadd.f32 %v3218_v58, %v10731_v60  ;;  %v10897_v59 = vadd.f32 %v3499_v25, %v10734_v13  ;;  %v3500_v16 = vmul.f32 %v10834_v2, %v2998_v52  ;;  %v3014_v12 = vadd.f32 %v3013_v62, %v2934_v51 }
 0x5be   : > { %3099 = vmax.xlane.f32.xlu1 %v3098_v63  ;;  %v10901_v34 = vadd.f32 %v3359_v26, %v10737_v46  ;;  %v10904_v28 = vadd.f32 %v3075_v14, %v10742_v48  ;;  %v3080_v3 = vmul.f32 %v10825_v8, %v3019_v5  ;;  %v3378_v1 = vsel %vm3088_vm2, %v10850_v49, -inf }
 0x5bf   : > { %v10910_v60 = vadd.f32 %v3500_v16, %v10747_v31  ;;  %v3223_v13 = vmul.f32 %v10827_v37, %v3019_v5  ;;  %v3240_v52 = vsel %vm3088_vm2, %v10868_v53, -inf  ;;  %v3364_v48 = vmul.f32 %v10829_v30, %v3019_v5 }
 0x5c0   : > { %v10916_v46 = vadd.f32 %v3080_v3, %v10750_v47  ;;  %v3503_v40 = vmul.f32 %v10834_v2, %v3011_v9  ;;  %v3078_v31 = vmul.f32 %v10825_v8, %v3011_v9  ;;  %v3079_v56 = vmul.f32 %v10825_v8, %v3014_v12 }
 0x5c1   : > { %3379 = vmax.xlane.f32.xlu0 %v3378_v1  ;;  %v10920_v6 = vadd.f32 %v3223_v13, %v10753_v35  ;;  %v10925_v4 = vadd.f32 %v3364_v48, %v10756_v41  ;;  %v3221_v24 = vmul.f32 %v10827_v37, %v3011_v9  ;;  %v3519_v47 = vsel %vm3088_vm2, %v10857_v55, -inf }
 0x5c2   : > { %3241 = vmax.xlane.f32.xlu1 %v3240_v52  ;;  %v10932_v22 = vadd.f32 %v3503_v40, %v10759_v39  ;;  %v10935_v35 = vadd.f32 %v3078_v31, %v10763_v21  ;;  %v3222_v0 = vmul.f32 %v10827_v37, %v3014_v12  ;;  %v3381_v41 = vsel %vm3088_vm2, %v10871_v43, -inf }
 0x5c3   : > { %v10941_v51 = vadd.f32 %v3079_v56, %v10769_v18  ;;  %v10944_v8 = vadd.f32 %v3221_v24, %v10772_v29  ;;  %v3362_v54 = vmul.f32 %v10829_v30, %v3011_v9  ;;  %v3363_v21 = vmul.f32 %v10829_v30, %v3014_v12 }
 0x5c4   : > { %v10948_v39 = vadd.f32 %v3222_v0, %v10777_v33  ;;  %v3504_v62 = vmul.f32 %v10834_v2, %v3014_v12  ;;  %v3089_v18 = vsel %vm3088_vm2, %v10874_v57, -inf  ;;  %v3505_v29 = vmul.f32 %v10834_v2, %v3019_v5 }
 0x5c5   : > { %3520 = vmax.xlane.f32.xlu0 %v3519_v47  ;;  %v10952_v37 = vadd.f32 %v3362_v54, %v10780_v45  ;;  %v10958_v42 = vadd.f32 %v3363_v21, %v10783_v23  ;;  %v3522_v33 = vsel %vm3088_vm2, %v10882_v27, -inf  ;;  %v3372_v30 = vsel %vm3088_vm2, %v10889_v15, -inf }
 0x5c6   : > { %3382 = vmax.xlane.f32.xlu1 %v3381_v41  ;;  %v10964_v58 = vadd.f32 %v3504_v62, %v10786_v32  ;;  %v10967_v45 = vadd.f32 %v3505_v29, %v10789_v19  ;;  %v3234_v23 = vsel %vm3088_vm2, %v10894_v11, -inf  ;;  %v3513_v2 = vsel %vm3088_vm2, %v10897_v59, -inf }
 0x5c7   : > { %v3375_v32 = vsel %vm3088_vm2, %v10901_v34, -inf  ;;  %v3092_v19 = vsel %vm3088_vm2, %v10904_v28, -inf  ;;  %v3516_v5 = vsel %vm3088_vm2, %v10910_v60, -inf  ;;  %v3108_v25 = vsel %vm3107_vm3, %v10916_v46, -inf }
 0x5c8   : > { %v3249_v63 = vsel %vm3107_vm3, %v10920_v6, -inf  ;;  %v3390_v26 = vsel %vm3107_vm3, %v10925_v4, -inf  ;;  %v3525_v14 = vsel %vm3088_vm2, %v10932_v22, -inf  ;;  %v3101_v9 = vsel %vm3088_vm2, %v10935_v35, -inf }
 0x5c9   : > { %3090 = vmax.xlane.f32.xlu0 %v3089_v18  ;;  %v3104_v16 = vsel %vm3088_vm2, %v10941_v51, -inf  ;;  %v3243_v12 = vsel %vm3088_vm2, %v10944_v8, -inf  ;;  %v3246_v3 = vsel %vm3088_vm2, %v10948_v39, -inf  ;;  %v3384_v1 = vsel %vm3088_vm2, %v10952_v37, -inf }
 0x5ca   : > { %3523 = vmax.xlane.f32.xlu1 %v3522_v33  ;;  %v3387_v13 = vsel %vm3088_vm2, %v10958_v42, -inf  ;;  %v3528_v52 = vsel %vm3088_vm2, %v10964_v58, -inf  ;;  %v3531_v48 = vsel %vm3107_vm3, %v10967_v45, -inf  ;;  %v16176_v40 = vmov 1  }
 0x5cb   : > { %9350 = vset.pattern.permute.xlu0 %v16176_v40 }
 0x5cd   : > { %3373 = vmax.xlane.f32.xlu0 %v3372_v30 }
 0x5ce   : > { %3235 = vmax.xlane.f32.xlu1 %v3234_v23 }
 0x5d1   : > { %3514 = vmax.xlane.f32.xlu0 %v3513_v2 }
 0x5d2   : > { %3376 = vmax.xlane.f32.xlu1 %v3375_v32 }
 0x5d5   : > { %3093 = vmax.xlane.f32.xlu0 %v3092_v19 }
 0x5d6   : > { %3517 = vmax.xlane.f32.xlu1 %v3516_v5 }
 0x5d9   : > { %3109 = vmax.xlane.f32.xlu0 %v3108_v25 }
 0x5da   : > { %3250 = vmax.xlane.f32.xlu1 %v3249_v63 }
 0x5dd   : > { %3391 = vmax.xlane.f32.xlu0 %v3390_v26 }
 0x5de   : > { %3526 = vmax.xlane.f32.xlu1 %v3525_v14 }
 0x5e1   : > { %3102 = vmax.xlane.f32.xlu0 %v3101_v9 }
 0x5e2   : > { %3105 = vmax.xlane.f32.xlu1 %v3104_v16 }
 0x5e5   : > { %3244 = vmax.xlane.f32.xlu0 %v3243_v12 }
 0x5e6   : > { %3247 = vmax.xlane.f32.xlu1 %v3246_v3 }
 0x5e9   : > { %3385 = vmax.xlane.f32.xlu0 %v3384_v1 }
 0x5ea   : > { %3388 = vmax.xlane.f32.xlu1 %v3387_v13 }
 0x5ed   : > { %3529 = vmax.xlane.f32.xlu0 %v3528_v52 }
 0x5ee   : > { %3532 = vmax.xlane.f32.xlu1 %v3531_v48 }
 0x646   : > { %v3097_v31 = vpop.xlane.xlu0 %3096 }
 0x647   : > { %v3113_v56 = vsub.f32 %v10843_v44, %v3097_v31  ;;  %v3233_v24 = vpop.xlane.xlu1 %3232 }
 0x648   : > { %v3252_v25 = vsub.f32 %v10853_v50, %v3233_v24 }
 0x649   : > { %v3122_v47 = vmul.f32 1.442695, %v3113_v56 }
 0x64a   : > { %v3239_v0 = vpop.xlane.xlu0 %3238 }
 0x64b   : > { %9574 = vpow2.f32 %v3122_v47  ;;  %v3254_v41 = vsub.f32 %v10846_v10, %v3239_v0  ;;  %v3100_v54 = vpop.xlane.xlu1 %3099 }
 0x64c   : > { %v3114_v21 = vsub.f32 %v10863_v61, %v3100_v54 }
 0x64d   : > { %v3263_v62 = vmul.f32 1.442695, %v3254_v41 }
 0x64e   : > { %v3124_v18 = vmul.f32 1.442695, %v3114_v21  ;;  %v3380_v29 = vpop.xlane.xlu0 %3379 }
 0x64f   : > { %9576 = vpow2.f32 %v3263_v62  ;;  %v3395_v33 = vsub.f32 %v10850_v49, %v3380_v29  ;;  %v3242_v30 = vpop.xlane.xlu1 %3241 }
 0x650   : > { %9578 = vpow2.f32 %v3124_v18  ;;  %v3255_v23 = vsub.f32 %v10868_v53, %v3242_v30 }
 0x651   : > { %v3404_v44 = vmul.f32 1.442695, %v3395_v33 }
 0x652   : > { %v3265_v2 = vmul.f32 1.442695, %v3255_v23  ;;  %v3521_v32 = vpop.xlane.xlu0 %3520 }
 0x653   : > { %9580 = vpow2.f32 %v3404_v44  ;;  %v3536_v19 = vsub.f32 %v10857_v55, %v3521_v32  ;;  %v3383_v10 = vpop.xlane.xlu1 %3382 }
 0x654   : > { %9582 = vpow2.f32 %v3265_v2  ;;  %v3396_v61 = vsub.f32 %v10871_v43, %v3383_v10  ;;  %v3259_v43 = vmul.f32 1.442695, %v3252_v25 }
 0x655   : > { %v11013_v5 = vpop.eup %9574  ;;  %v3545_v63 = vmul.f32 1.442695, %v3536_v19 }
 0x656   : > { %v3406_v49 = vmul.f32 1.442695, %v3396_v61  ;;  %v3091_v26 = vpop.xlane.xlu0 %3090  ;;  %v3138_v53 = vsel %vm3088_vm2, %v11013_v5, 0.0 }
 0x657   : > { %9584 = vpow2.f32 %v3545_v63  ;;  %v3111_v14 = vsub.f32 %v10874_v57, %v3091_v26  ;;  %v3524_v9 = vpop.xlane.xlu1 %3523  ;;  %3139 = vadd.xlane.f32.xlu0 %v3138_v53 }
 0x658   : > { %9586 = vpow2.f32 %v3406_v49  ;;  %v3537_v55 = vsub.f32 %v10882_v27, %v3524_v9 }
 0x659   : > { %v11020_v16 = vpop.eup %9576  ;;  %v3118_v12 = vmul.f32 1.442695, %v3111_v14 }
 0x65a   : > { %v11022_v3 = vpop.eup %9578  ;;  %v3547_v50 = vmul.f32 1.442695, %v3537_v55  ;;  %v3374_v1 = vpop.xlane.xlu0 %3373  ;;  %v3279_v13 = vsel %vm3088_vm2, %v11020_v16, 0.0 }
 0x65b   : > { %9588 = vpow2.f32 %v3118_v12  ;;  %v3393_v52 = vsub.f32 %v10889_v15, %v3374_v1  ;;  %v3236_v57 = vpop.xlane.xlu1 %3235  ;;  %3280 = vadd.xlane.f32.xlu0 %v3279_v13  ;;  %v3141_v48 = vsel %vm3088_vm2, %v11022_v3, 0.0 }
 0x65c   : > { %9590 = vpow2.f32 %v3547_v50  ;;  %3142 = vadd.xlane.f32.xlu1 %v3141_v48  ;;  %v3253_v21 = vsub.f32 %v10894_v11, %v3236_v57 }
 0x65d   : > { %v11029_v27 = vpop.eup %9580  ;;  %9592 = vpow2.f32 %v3259_v43  ;;  %v3400_v31 = vmul.f32 1.442695, %v3393_v52 }
 0x65e   : > { %v11031_v56 = vpop.eup %9582  ;;  %v3515_v24 = vpop.xlane.xlu0 %3514  ;;  %v3420_v47 = vsel %vm3088_vm2, %v11029_v27, 0.0  ;;  %v3261_v2 = vmul.f32 1.442695, %v3253_v21 }
 0x65f   : > { %v3534_v0 = vsub.f32 %v10897_v59, %v3515_v24  ;;  %v3377_v15 = vpop.xlane.xlu1 %3376  ;;  %3421 = vadd.xlane.f32.xlu0 %v3420_v47  ;;  %v3282_v41 = vsel %vm3088_vm2, %v11031_v56, 0.0  ;;  %9594 = vpow2.f32 %v3400_v31 }
 0x660   : > { %3283 = vadd.xlane.f32.xlu1 %v3282_v41  ;;  %v3394_v11 = vsub.f32 %v10901_v34, %v3377_v15 }
 0x661   : > { %v11038_v54 = vpop.eup %9584  ;;  %v3541_v62 = vmul.f32 1.442695, %v3534_v0 }
 0x662   : > { %v11041_v18 = vpop.eup %9586  ;;  %v3094_v29 = vpop.xlane.xlu0 %3093  ;;  %v3561_v33 = vsel %vm3088_vm2, %v11038_v54, 0.0  ;;  %v3402_v34 = vmul.f32 1.442695, %v3394_v11 }
 0x663   : > { %v3112_v59 = vsub.f32 %v10904_v28, %v3094_v29  ;;  %v3518_v30 = vpop.xlane.xlu1 %3517  ;;  %3562 = vadd.xlane.f32.xlu0 %v3561_v33  ;;  %v3423_v23 = vsel %vm3088_vm2, %v11041_v18, 0.0  ;;  %9596 = vpow2.f32 %v3541_v62 }
 0x664   : > { %3424 = vadd.xlane.f32.xlu1 %v3423_v23  ;;  %v3535_v26 = vsub.f32 %v10910_v60, %v3518_v30 }
 0x665   : > { %v11048_v44 = vpop.eup %9588  ;;  %v3120_v32 = vmul.f32 1.442695, %v3112_v59 }
 0x666   : > { %v11051_v19 = vpop.eup %9590  ;;  %v3110_v10 = vpop.xlane.xlu0 %3109  ;;  %v3132_v61 = vsel %vm3088_vm2, %v11048_v44, 0.0  ;;  %v3543_v12 = vmul.f32 1.442695, %v3535_v26 }
 0x667   : > { %v11055_v28 = vpop.eup %9592  ;;  %9598 = vpow2.f32 %v3120_v32  ;;  %v3117_v25 = vsub.f32 %v10916_v46, %v3110_v10  ;;  %v3251_v63 = vpop.xlane.xlu1 %3250  ;;  %3133 = vadd.xlane.f32.xlu0 %v3132_v61  ;;  %v3564_v49 = vsel %vm3088_vm2, %v11051_v19, 0.0 }
 0x668   : > { %3565 = vadd.xlane.f32.xlu1 %v3564_v49  ;;  %9600 = vpow2.f32 %v3261_v2  ;;  %v3273_v9 = vsel %vm3088_vm2, %v11055_v28, 0.0  ;;  %v3258_v50 = vsub.f32 %v10920_v6, %v3251_v63 }
 0x669   : > { %v3130_v53 = vmul.f32 1.442695, %v3117_v25  ;;  %v11063_v55 = vpop.eup %9594 }
 0x66a   : > { %v3392_v14 = vpop.xlane.xlu0 %3391  ;;  %v3414_v60 = vsel %vm3088_vm2, %v11063_v55, 0.0 }
 0x66b   : > { %9602 = vpow2.f32 %v3130_v53  ;;  %v3399_v46 = vsub.f32 %v10925_v4, %v3392_v14  ;;  %v3527_v43 = vpop.xlane.xlu1 %3526  ;;  %3274 = vadd.xlane.f32.xlu0 %v3273_v9  ;;  %v3271_v4 = vmul.f32 1.442695, %v3258_v50 }
 0x66c   : > { %9604 = vpow2.f32 %v3402_v34  ;;  %v3538_v11 = vsub.f32 %v10932_v22, %v3527_v43 }
 0x66d   : > { %v3412_v1 = vmul.f32 1.442695, %v3399_v46  ;;  %v11069_v52 = vpop.eup %9596 }
 0x66e   : > { %v3103_v13 = vpop.xlane.xlu0 %3102  ;;  %v3555_v6 = vsel %vm3088_vm2, %v11069_v52, 0.0  ;;  %v3549_v22 = vmul.f32 1.442695, %v3538_v11  ;;  %v11196_v11 = vld [vmem:[%s16132_s9 + $0x30] sm:$0x1] }
 0x66f   : > { %9606 = vpow2.f32 %v3412_v1  ;;  %v3115_v57 = vsub.f32 %v10935_v35, %v3103_v13  ;;  %v3106_v48 = vpop.xlane.xlu1 %3105  ;;  %3415 = vadd.xlane.f32.xlu0 %v3414_v60  ;;  %16560 = vst [vmem:[#allocation19_spill] sm:$0xff] %v11196_v11 }
 0x670   : > { %9608 = vpow2.f32 %v3543_v12  ;;  %v3116_v14 = vsub.f32 %v10941_v51, %v3106_v48 }
 0x671   : > { %v11072_v31 = vpop.eup %9598  ;;  %v3126_v24 = vmul.f32 1.442695, %v3115_v57 }
 0x672   : > { %v3245_v47 = vpop.xlane.xlu0 %3244  ;;  %v3135_v0 = vsel %vm3088_vm2, %v11072_v31, 0.0  ;;  %v11078_v15 = vpop.eup %9600 }
 0x673   : > { %9610 = vpow2.f32 %v3126_v24  ;;  %v3256_v41 = vsub.f32 %v10944_v8, %v3245_v47  ;;  %v3248_v35 = vpop.xlane.xlu1 %3247  ;;  %3556 = vadd.xlane.f32.xlu0 %v3555_v6  ;;  %3136 = vadd.xlane.f32.xlu1 %v3135_v0  ;;  %v3276_v33 = vsel %vm3088_vm2, %v11078_v15, 0.0 }
 0x674   : > { %9612 = vpow2.f32 %v3271_v4  ;;  %v3257_v50 = vsub.f32 %v10948_v39, %v3248_v35 }
 0x675   : > { %v11081_v21 = vpop.eup %9602  ;;  %v3267_v62 = vmul.f32 1.442695, %v3256_v41 }
 0x676   : > { %v3386_v29 = vpop.xlane.xlu0 %3385  ;;  %v3150_v59 = vsel %vm3107_vm3, %v11081_v21, 0.0  ;;  %v11087_v30 = vpop.eup %9604  ;;  %v3269_v60 = vmul.f32 1.442695, %v3257_v50 }
 0x677   : > { %9614 = vpow2.f32 %v3267_v62  ;;  %v3397_v23 = vsub.f32 %v10952_v37, %v3386_v29  ;;  %v3389_v8 = vpop.xlane.xlu1 %3388  ;;  %3277 = vadd.xlane.f32.xlu1 %v3276_v33  ;;  %3151 = vadd.xlane.f32.xlu0 %v3150_v59  ;;  %v3417_v61 = vsel %vm3088_vm2, %v11087_v30, 0.0 }
 0x678   : > { %v3398_v57 = vsub.f32 %v10958_v42, %v3389_v8  ;;  %v11188_v8 = vld [vmem:[%s16132_s9 + $0x28] sm:$0xff] }
 0x679   : > { %v11090_v2 = vpop.eup %9606  ;;  %v3408_v32 = vmul.f32 1.442695, %v3397_v23  ;;  %v11163_v23 = vld [vmem:[%s16132_s9 + $0x8] sm:$0xff]  ;;  %16559 = vst [vmem:[#allocation18_spill] sm:$0xff] %v11188_v8 }
 0x67a   : > { %v3530_v10 = vpop.xlane.xlu0 %3529  ;;  %v3432_v25 = vsel %vm3107_vm3, %v11090_v2, 0.0  ;;  %v11097_v63 = vpop.eup %9608  ;;  %v3410_v24 = vmul.f32 1.442695, %v3398_v57 }
 0x67b   : > { %9616 = vpow2.f32 %v3408_v32  ;;  %v3539_v37 = vsub.f32 %v10964_v58, %v3530_v10  ;;  %v3533_v49 = vpop.xlane.xlu1 %3532  ;;  %3418 = vadd.xlane.f32.xlu1 %v3417_v61  ;;  %3433 = vadd.xlane.f32.xlu0 %v3432_v25  ;;  %v3558_v46 = vsel %vm3088_vm2, %v11097_v63, 0.0  ;;  %v16174_v32 = vmov 2  }
 0x67c   : > { %v3540_v34 = vsub.f32 %v10967_v45, %v3533_v49  ;;  %v3128_v45 = vmul.f32 1.442695, %v3116_v14  ;;  %v16172_v10 = vmov 4   ;;  %v16170_v25 = vmov 5  }
 0x67d   : > { %v11101_v26 = vpop.eup %9610  ;;  %v3551_v53 = vmul.f32 1.442695, %v3539_v37  ;;  %v16168_v14 = vmov 6  }
 0x67e   : > { %v3553_v9 = vmul.f32 1.442695, %v3540_v34  ;;  %v3144_v43 = vsel %vm3088_vm2, %v11101_v26, 0.0  ;;  %v11108_v12 = vpop.eup %9612  ;;  %v16182_v34 = vmov 3  }
 0x67f   : > { %9618 = vpow2.f32 %v3551_v53  ;;  %3559 = vadd.xlane.f32.xlu1 %v3558_v46  ;;  %3145 = vadd.xlane.f32.xlu0 %v3144_v43  ;;  %v3291_v51 = vsel %vm3107_vm3, %v11108_v12, 0.0 }
 0x680   : > { %9620 = vpow2.f32 %v3553_v9 }
 0x681   : > { %v11110_v58 = vpop.eup %9614  ;;  %9622 = vpow2.f32 %v3549_v22 }
 0x682   : > { %v3285_v1 = vsel %vm3088_vm2, %v11110_v58, 0.0  ;;  %9624 = vpow2.f32 %v3128_v45 }
 0x683   : > { %3292 = vadd.xlane.f32.xlu1 %v3291_v51  ;;  %3286 = vadd.xlane.f32.xlu0 %v3285_v1  ;;  %9626 = vpow2.f32 %v3269_v60  ;;  %v11242_v51 = vstv %s8504_s0  ;;  %v11244_v1 = vstv %s8505_s7  ;;  %s8487_s0 = sld [smem:[#allocation6 + $0x81]]  ;;  %s8507_s7 = sld [smem:[#allocation6 + $0x183]] }
 0x684   : > { %9628 = vpow2.f32 %v3410_v24  ;;  %16562 = vst [vmem:[#allocation21_spill] sm:$0xff] %v11242_v51  ;;  %16563 = vst [vmem:[#allocation22_spill] sm:$0xff] %v11244_v1 }
 0x685   : > { %v11117_v13 = vpop.eup %9616 }
 0x686   : > { %v3426_v48 = vsel %vm3088_vm2, %v11117_v13, 0.0 }
 0x687   : > { %3427 = vadd.xlane.f32.xlu0 %v3426_v48 }
 0x689   : > { %v11122_v4 = vpop.eup %9618 }
 0x68a   : > { %16554 = vst [vmem:[#allocation12_spill] sm:$0xff] %v11122_v4  ;;  %v11124_v39 = vpop.eup %9620  ;;  %v3570_v47 = vsel %vm3088_vm2, %v11122_v4, 0.0 }
 0x68b   : > { %v11128_v6 = vpop.eup %9622  ;;  %3571 = vadd.xlane.f32.xlu0 %v3570_v47  ;;  %v3573_v0 = vsel %vm3107_vm3, %v11124_v39, 0.0 }
 0x68c   : > { %16555 = vst [vmem:[#allocation13_spill] sm:$0xff] %v11128_v6  ;;  %3574 = vadd.xlane.f32.xlu1 %v3573_v0  ;;  %v3567_v42 = vsel %vm3088_vm2, %v11128_v6, 0.0  ;;  %v11134_v41 = vpop.eup %9624 }
 0x68d   : > { %16556 = vst [vmem:[#allocation15_spill] sm:$0xff] %v11134_v41  ;;  %v3147_v35 = vsel %vm3088_vm2, %v11134_v41, 0.0  ;;  %v11138_v62 = vpop.eup %9626 }
 0x68e   : > { %16557 = vst [vmem:[#allocation16_spill] sm:$0xff] %v11138_v62  ;;  %v3288_v29 = vsel %vm3088_vm2, %v11138_v62, 0.0  ;;  %v11142_v33 = vpop.eup %9628 }
 0x68f   : > { %16558 = vst [vmem:[#allocation17_spill] sm:$0xff] %v11142_v33  ;;  %v3429_v59 = vsel %vm3088_vm2, %v11142_v33, 0.0 }
 0x690   : > { %3568 = vadd.xlane.f32.xlu1 %v3567_v42 }
 0x694   : > { %3148 = vadd.xlane.f32.xlu1 %v3147_v35 }
 0x698   : > { %3289 = vadd.xlane.f32.xlu1 %v3288_v29 }
 0x69c   : > { %3430 = vadd.xlane.f32.xlu1 %v3429_v59 }
 0x6a1   : > { %3834 = vrot.lane.b32.xlu0 %v10623_v36, %s9779_s4 }
 0x6a5   : > { %4001 = vrot.lane.b32.xlu0 %v10623_v36, %s9780_s2 }
 0x6a9   : > { %4005 = vrot.lane.b32.xlu0 %v10636_v38, %s9780_s2 }
 0x6ad   : > { %3836 = vrot.lane.b32.xlu1 %v10629_v17, %s9779_s4  ;;  %4168 = vrot.lane.b32.xlu0 %v10623_v36, %s9781_s25  ;;  %v11171_v36 = vld [vmem:[%s16132_s9 + $0x10] sm:$0xff] }
 0x6b1   : > { %3838 = vrot.lane.b32.xlu1 %v10636_v38, %s9779_s4  ;;  %4172 = vrot.lane.b32.xlu0 %v10636_v38, %s9781_s25  ;;  %v11179_v38 = vld [vmem:[%s16132_s9] sm:$0xff] }
 0x6b5   : > { %3840 = vrot.lane.b32.xlu1 %v10638_v7, %s9779_s4  ;;  %1021 = vperm.xlu0 %9350, %v11163_v23  }
 0x6b9   : > { %4003 = vrot.lane.b32.xlu1 %v10629_v17, %s9780_s2  ;;  %1025 = vperm.xlu0 %9350, %v11171_v36  }
 0x6bd   : > { %4007 = vrot.lane.b32.xlu1 %v10638_v7, %s9780_s2  ;;  %9352 = vset.pattern.permute.xlu0 %v16550_v20 }
 0x6be   : > { %950 = vperm.xlu0 %9352, %v11179_v38  }
 0x6c1   : > { %4170 = vrot.lane.b32.xlu1 %v10629_v17, %s9781_s25  ;;  %v11207_v17 = vld [vmem:[%s16132_s9 + $0x18] sm:$0xff] }
 0x6c2   : > { %975 = vperm.xlu0 %9352, %v11188_v8  }
 0x6c5   : > { %4174 = vrot.lane.b32.xlu1 %v10638_v7, %s9781_s25  ;;  %v11215_v7 = vld [vmem:[%s16132_s9 + $0x20] sm:$0xff] }
 0x6c6   : > { %980 = vperm.xlu0 %9352, %v11196_v11  }
 0x6c9   : > { %955 = vperm.xlu1 %9348, %v11163_v23  }
 0x6ca   : > { %9363 = vset.pattern.permute.xlu0 %v16174_v32 }
 0x6cb   : > { %1078 = vperm.xlu0 %9363, %v11179_v38  }
 0x6cd   : > { %9349 = vset.pattern.permute.xlu1 %v16176_v40 }
 0x6ce   : > { %1017 = vperm.xlu1 %9349, %v11179_v38  }
 0x6cf   : > { %1090 = vperm.xlu0 %9363, %v11207_v17  }
 0x6d2   : > { %9351 = vset.pattern.permute.xlu1 %v16550_v20 }
 0x6d3   : > { %960 = vperm.xlu1 %9351, %v11171_v36   ;;  %1094 = vperm.xlu0 %9363, %v11215_v7  }
 0x6d7   : > { %965 = vperm.xlu1 %9351, %v11207_v17   ;;  %9364 = vset.pattern.permute.xlu0 %v16172_v10 }
 0x6d8   : > { %1200 = vperm.xlu0 %9364, %v11179_v38  }
 0x6db   : > { %9353 = vset.pattern.permute.xlu1 %v16176_v40 }
 0x6dc   : > { %1029 = vperm.xlu1 %9353, %v11207_v17   ;;  %1212 = vperm.xlu0 %9364, %v11207_v17  }
 0x6e0   : > { %9354 = vset.pattern.permute.xlu1 %v16174_v32  ;;  %1216 = vperm.xlu0 %9364, %v11215_v7  }
 0x6e1   : > { %1082 = vperm.xlu1 %9354, %v11163_v23  }
 0x6e4   : > { %v3140_v61 = vpop.xlane.xlu0 %3139  ;;  %9367 = vset.pattern.permute.xlu0 %v16170_v25 }
 0x6e5   : > { %9630 = vrcp.f32 %v3140_v61  ;;  %1086 = vperm.xlu1 %9354, %v11171_v36   ;;  %1265 = vperm.xlu0 %9367, %v11163_v23  }
 0x6e8   : > { %v3281_v37 = vpop.xlane.xlu0 %3280 }
 0x6e9   : > { %9632 = vrcp.f32 %v3281_v37  ;;  %v3143_v49 = vpop.xlane.xlu1 %3142  ;;  %9355 = vset.pattern.permute.xlu1 %v16182_v34  ;;  %1277 = vperm.xlu0 %9367, %v11215_v7  }
 0x6ea   : > { %1139 = vperm.xlu1 %9355, %v11179_v38   ;;  %9634 = vrcp.f32 %v3143_v49  ;;  %v16180_v49 = vmov 7  }
 0x6ec   : > { %v3422_v22 = vpop.xlane.xlu0 %3421 }
 0x6ed   : > { %9636 = vrcp.f32 %v3422_v22  ;;  %v3284_v53 = vpop.xlane.xlu1 %3283  ;;  %9369 = vset.pattern.permute.xlu0 %v16168_v14 }
 0x6ee   : > { %9638 = vrcp.f32 %v3284_v53  ;;  %1147 = vperm.xlu1 %9355, %v11171_v36   ;;  %1322 = vperm.xlu0 %9369, %v11179_v38  }
 0x6ef   : > { %v9631_v9 = vpop.eup %9630 }
 0x6f0   : > { %v3563_v46 = vpop.xlane.xlu0 %3562  ;;  %v11239_v45 = vmul.f32 %v9631_v9, %v11013_v5 }
 0x6f1   : > { %v3425_v43 = vpop.xlane.xlu1 %3424 }
 0x6f2   : > { %16561 = vst [vmem:[#allocation20_spill] sm:$0xff] %v11239_v45  ;;  %1151 = vperm.xlu1 %9355, %v11207_v17   ;;  %9640 = vrcp.f32 %v3425_v43  ;;  %1334 = vperm.xlu0 %9369, %v11207_v17   ;;  %v4096_v24 = vmul.f32 %v11242_v51, %v11239_v45 }
 0x6f3   : > { %v9633_v50 = vpop.eup %9632 }
 0x6f4   : > { %v11248_v60 = vmul.f32 %v9633_v50, %v11020_v16  ;;  %v3134_v57 = vpop.xlane.xlu0 %3133  ;;  %v9635_v48 = vpop.eup %9634  ;;  %v11259_v16 = vstv %s8506_s11  ;;  %s8495_s11 = sld [smem:[#allocation6 + $0x100]] }
 0x6f5   : > { %v11257_v35 = vmul.f32 %v9635_v48, %v11022_v3  ;;  %16566 = vst [vmem:[#allocation25_spill] sm:$0xff] %v11259_v16  ;;  %v3566_v53 = vpop.xlane.xlu1 %3565  ;;  %9642 = vrcp.f32 %v3134_v57 }
 0x6f6   : > { %16564 = vst [vmem:[#allocation23_spill] sm:$0xff] %v11248_v60  ;;  %v4112_v5 = vmul.f32 %v11244_v1, %v11248_v60  ;;  %9356 = vset.pattern.permute.xlu1 %v16172_v10  ;;  %1338 = vperm.xlu0 %9369, %v11215_v7  }
 0x6f7   : > { %v9637_v47 = vpop.eup %9636  ;;  %16565 = vst [vmem:[#allocation24_spill] sm:$0xff] %v11257_v35  ;;  %1204 = vperm.xlu1 %9356, %v11163_v23   ;;  %v4097_v3 = vmul.f32 %v11242_v51, %v11257_v35 }
 0x6f8   : > { %v9639_v0 = vpop.eup %9638  ;;  %v4119_v42 = vadd.f32 %v4112_v5, %v4096_v24  ;;  %v3275_v29 = vpop.xlane.xlu0 %3274  ;;  %v11263_v59 = vmul.f32 %v9637_v47, %v11029_v27 }
 0x6f9   : > { %v11266_v61 = vmul.f32 %v9639_v0, %v11031_v56  ;;  %9644 = vrcp.f32 %v3275_v29  ;;  %v16178_v0 = vmov 8  }
 0x6fa   : > { %16567 = vst [vmem:[#allocation26_spill] sm:$0xff] %v11263_v59  ;;  %v4128_v37 = vmul.f32 %v11259_v16, %v11263_v59  ;;  %9371 = vset.pattern.permute.xlu0 %v16180_v49  ;;  %9646 = vrcp.f32 %v3563_v46 }
 0x6fb   : > { %16568 = vst [vmem:[#allocation27_spill] sm:$0xff] %v11266_v61  ;;  %v4113_v22 = vmul.f32 %v11244_v1, %v11266_v61  ;;  %1208 = vperm.xlu1 %9356, %v11171_v36   ;;  %1387 = vperm.xlu0 %9371, %v11163_v23   ;;  %9648 = vrcp.f32 %v3566_v53 }
 0x6fc   : > { %v3416_v27 = vpop.xlane.xlu0 %3415  ;;  %v9641_v9 = vpop.eup %9640  ;;  %v11276_v43 = vadd.f32 %v4128_v37, %v4119_v42 }
 0x6fd   : > { %v4120_v56 = vadd.f32 %v4113_v22, %v4097_v3  ;;  %v11280_v50 = vmul.f32 %v9641_v9, %v11041_v18  ;;  %9650 = vrcp.f32 %v3416_v27 }
 0x6fe   : > { %16569 = vst [vmem:[#allocation28_spill] sm:$0xff] %v11276_v43 }
 0x6ff   : > { %16570 = vst [vmem:[#allocation29_spill] sm:$0xff] %v11280_v50  ;;  %9357 = vset.pattern.permute.xlu1 %v16170_v25  ;;  %1399 = vperm.xlu0 %9371, %v11215_v7   ;;  %v4129_v5 = vmul.f32 %v11259_v16, %v11280_v50  ;;  %v9643_v46 = vpop.eup %9642 }
 0x700   : > { %v3137_v48 = vpop.xlane.xlu1 %3136  ;;  %v3557_v24 = vpop.xlane.xlu0 %3556  ;;  %1261 = vperm.xlu1 %9357, %v11179_v38   ;;  %v11301_v22 = vmul.f32 %v9643_v46, %v11048_v44 }
 0x701   : > { %v11287_v57 = vadd.f32 %v4129_v5, %v4120_v56  ;;  %9652 = vrcp.f32 %v3137_v48 }
 0x702   : > { %9654 = vrcp.f32 %v3557_v24  ;;  %16572 = vst [vmem:[#allocation31_spill] sm:$0xff] %v11301_v22  ;;  %v4094_v44 = vmul.f32 %v11242_v51, %v11301_v22 }
 0x703   : > { %16571 = vst [vmem:[#allocation30_spill] sm:$0xff] %v11287_v57  ;;  %9373 = vset.pattern.permute.xlu0 %v16178_v0  ;;  %v9645_v42 = vpop.eup %9644 }
 0x704   : > { %v3278_v47 = vpop.xlane.xlu1 %3277  ;;  %v11289_v18 = vpop.xlane.xlu0 %3151  ;;  %1269 = vperm.xlu1 %9357, %v11171_v36   ;;  %1444 = vperm.xlu0 %9373, %v11179_v38   ;;  %v11304_v53 = vmul.f32 %v9645_v42, %v11055_v28  ;;  %v11317_v42 = vstv %s3591_s8  ;;  %s11400_s8 = sld [smem:[#allocation6 + $0x83]] }
 0x705   : > { %9656 = vrcp.f32 %v3278_v47  ;;  %v9647_v3 = vpop.eup %9646  ;;  %v11310_v47 = vstv %s8478_s12  ;;  %s8488_s12 = sld [smem:[#allocation6 + $0x82]] }
 0x706   : > { %v9649_v27 = vpop.eup %9648  ;;  %v4110_v28 = vmul.f32 %v11244_v1, %v11304_v53  ;;  %v3612_v25 = vmul.f32 %v11310_v47, %v11266_v61  ;;  %v3611_v0 = vmul.f32 %v11310_v47, %v11248_v60 }
 0x707   : > { %v9651_v48 = vpop.eup %9650  ;;  %v11329_v10 = vmul.f32 %v9649_v27, %v11051_v19  ;;  %v3609_v19 = vmul.f32 %v11310_v47, %v11304_v53 }
 0x708   : > { %v3419_v29 = vpop.xlane.xlu1 %3418  ;;  %v11294_v37 = vpop.xlane.xlu0 %3433  ;;  %1273 = vperm.xlu1 %9357, %v11207_v17   ;;  %1456 = vperm.xlu0 %9373, %v11207_v17   ;;  %v11334_v40 = vadd.f32 %v4110_v28, %v4094_v44  ;;  %v11353_v44 = vmul.f32 %v9647_v3, %v11038_v54  ;;  %v3595_v28 = vmul.f32 %v11317_v42, %v11239_v45 }
 0x709   : > { %9658 = vrcp.f32 %v3419_v29  ;;  %v11319_v29 = vstv %s8479_s27  ;;  %s11436_s27 = sld [smem:[#allocation8 + $0x3]] }
 0x70a   : > { %v3618_v57 = vadd.f32 %v3611_v0, %v3595_v28 }
 0x70b   : > { %v9653_v24 = vpop.eup %9652 }
 0x70c   : > { %v3560_v9 = vpop.xlane.xlu1 %3559  ;;  %v11306_v56 = vpop.xlane.xlu0 %3145  ;;  %9358 = vset.pattern.permute.xlu1 %v16168_v14  ;;  %1460 = vperm.xlu0 %9373, %v11215_v7   ;;  %v11339_v49 = vmul.f32 %v9653_v24, %v11072_v31  ;;  %v3628_v31 = vmul.f32 %v11319_v29, %v11280_v50 }
 0x70d   : > { %9660 = vrcp.f32 %v3560_v9  ;;  %v9655_v5 = vpop.eup %9654  ;;  %1326 = vperm.xlu1 %9358, %v11163_v23   ;;  %v11322_v9 = vmul.f32 %v9651_v48, %v11063_v55  ;;  %v11350_v48 = vstv %s11298_s5  ;;  %s11469_s5 = sld [smem:[#allocation6 + $0x101]] }
 0x70e   : > { %v11342_v55 = vmul.f32 %v9655_v5, %v11069_v52  ;;  %v3593_v5 = vmul.f32 %v11317_v42, %v11301_v22  ;;  %v3594_v11 = vmul.f32 %v11317_v42, %v11339_v49  ;;  %9662 = vrcp.f32 %v11289_v18 }
 0x70f   : > { %v9657_v46 = vpop.eup %9656  ;;  %16573 = vst [vmem:[#allocation32_spill] sm:$0xff] %v11322_v9  ;;  %v3625_v3 = vmul.f32 %v11319_v29, %v11322_v9  ;;  %9664 = vrcp.f32 %v11294_v37  ;;  %v11410_v37 = vstv %s8486_s30  ;;  %s11600_s30 = sld [smem:[#allocation6 + $0x102]] }
 0x710   : > { %v11324_v14 = vpop.xlane.xlu0 %3286  ;;  %v11332_v32 = vmul.f32 %v9657_v46, %v11078_v15  ;;  %16574 = vst [vmem:[#allocation33_spill] sm:$0xff] %v11342_v55  ;;  %9375 = vset.pattern.permute.xlu0 %v16182_v34  ;;  %v3596_v15 = vmul.f32 %v11317_v42, %v11257_v35  ;;  %v3627_v46 = vmul.f32 %v11319_v29, %v11263_v59  ;;  %v3293_v34 = vpop.xlane.xlu1 %3292  ;;  %9666 = vrcp.f32 %v11306_v56 }
 0x711   : > { %1330 = vperm.xlu1 %9358, %v11171_v36   ;;  %1143 = vperm.xlu0 %9375, %v11163_v23   ;;  %v3616_v50 = vadd.f32 %v3609_v19, %v3593_v5  ;;  %v3641_v33 = vmul.f32 %v11350_v48, %v11342_v55  ;;  %v3643_v59 = vmul.f32 %v11350_v48, %v11353_v44  ;;  %9668 = vrcp.f32 %v3293_v34 }
 0x712   : > { %v3610_v54 = vmul.f32 %v11310_v47, %v11332_v32  ;;  %v3634_v41 = vadd.f32 %v3627_v46, %v3618_v57  ;;  %9670 = vrcp.f32 %v11324_v14  ;;  %v11412_v14 = vstv %s8487_s0  ;;  %s11604_s0 = sld [smem:[#allocation6 + $0x103]] }
 0x713   : > { %v9659_v27 = vpop.eup %9658  ;;  %v3632_v62 = vadd.f32 %v3625_v3, %v3616_v50  ;;  %v11420_v3 = vstv %s8495_s11  ;;  %v11422_v46 = vstv %s8488_s12  ;;  %s16684_s11 = sld [smem:[#allocation260_spill]] }
 0x714   : > { %v11360_v52 = vmul.f32 %v9659_v27, %v11087_v30  ;;  %v3428_v24 = vpop.xlane.xlu0 %3427  ;;  %v3619_v30 = vadd.f32 %v3612_v25, %v3596_v15  ;;  %v3644_v27 = vmul.f32 %v11350_v48, %v11329_v10  ;;  %v16576_v15 = vmov 7  }
 0x715   : > { %9359 = vset.pattern.permute.xlu1 %v16576_v15  ;;  %1155 = vperm.xlu0 %9375, %v11215_v7   ;;  %v3617_v5 = vadd.f32 %v3610_v54, %v3594_v11  ;;  %v11397_v11 = vstv %s11362_s13  ;;  %9672 = vrcp.f32 %v3428_v24  ;;  %v11415_v54 = vstv %s8507_s7  ;;  %s11485_s13 = sld [smem:[#allocation8 + $0x1]]  ;;  %s11657_s7 = sld [smem:[#allocation8 + $0x2]] }
 0x716   : > { %16575 = vst [vmem:[#allocation34_spill] sm:$0xff] %v11360_v52  ;;  %v3626_v8 = vmul.f32 %v11319_v29, %v11360_v52  ;;  %v3635_v25 = vadd.f32 %v3628_v31, %v3619_v30  ;;  %1383 = vperm.xlu1 %9359, %v11179_v38   ;;  %v3648_v30 = vadd.f32 %v3641_v33, %v3632_v62  ;;  %16578 = vst [vmem:[#allocation36_spill] sm:$0xff] %v11415_v54 }
 0x717   : > { %v9661_v4 = vpop.eup %9660 }
 0x718   : > { %v11387_v43 = vmul.f32 %v9661_v4, %v11097_v63  ;;  %v3572_v19 = vpop.xlane.xlu0 %3571  ;;  %v3651_v0 = vadd.f32 %v3644_v27, %v3635_v25  ;;  %v3633_v28 = vadd.f32 %v3626_v8, %v3617_v5  ;;  %v3650_v63 = vadd.f32 %v3643_v59, %v3634_v41  ;;  %v9663_v56 = vpop.eup %9662 }
 0x719   : > { %v3575_v6 = vpop.xlane.xlu1 %3574  ;;  %v3656_v41 = vadd.f32 %v11397_v11, %v3648_v30  ;;  %v11427_v5 = vmul.f32 %v11410_v37, %v11239_v45  ;;  %v4144_v30 = vmul.f32 %v11415_v54, %v11353_v44  ;;  %v16583_v45 = vld [vmem:[#allocation13_spill] sm:$0xff] }
 0x71a   : > { %16577 = vst [vmem:[#allocation35_spill] sm:$0xff] %v11387_v43  ;;  %v3642_v31 = vmul.f32 %v11350_v48, %v11387_v43  ;;  %1391 = vperm.xlu1 %9359, %v11171_v36   ;;  %v3659_v62 = vadd.f32 %v11397_v11, %v3651_v0  ;;  %v3658_v59 = vadd.f32 %v11397_v11, %v3650_v63  ;;  %9674 = vrcp.f32 %v3575_v6  ;;  %v9665_v6 = vpop.eup %9664 }
 0x71b   : > { %v9667_v25 = vpop.eup %9666  ;;  %v11431_v0 = vmul.f32 %v11412_v14, %v11248_v60  ;;  %v3772_v63 = vmul.f32 %v11412_v14, %v11304_v53  ;;  %v16585_v60 = vld [vmem:[#allocation16_spill] sm:$0xff] }
 0x71c   : > { %v3835_v4 = vpop.permute.xlu0 %3834  ;;  %v3649_v38 = vadd.f32 %v3642_v31, %v3633_v28  ;;  %v3668_v18 = vpack.c.bf16 %v3659_v62, %v3658_v59  ;;  %v11434_v28 = vstv %s11400_s8  ;;  %v9669_v31 = vpop.eup %9668  ;;  %v4126_v62 = vmul.f32 %v11259_v16, %v11322_v9 }
 0x71d   : > { %v3569_v8 = vpop.xlane.xlu1 %3568  ;;  %9207 = vmatprep.subr.bf16.mxu1 %v3835_v4  ;;  %v11462_v59 = vmul.f32 %v9665_v6, %v11090_v2  ;;  %v11480_v6 = vmul.f32 %v9667_v25, %v11101_v26  ;;  %v4143_v26 = vmul.f32 %v11415_v54, %v11387_v43 }
 0x71e   : > { %v3657_v33 = vadd.f32 %v11397_v11, %v3649_v38  ;;  %1395 = vperm.xlu1 %9359, %v11207_v17   ;;  %9676 = vrcp.f32 %v3569_v8  ;;  %v16579_v17 = vmov 8   ;;  %v4095_v38 = vmul.f32 %v11242_v51, %v11339_v49 }
 0x71f   : > { %v4111_v8 = vmul.f32 %v11244_v1, %v11332_v32  ;;  %16581 = vst [vmem:[#allocation38_spill] sm:$0xff] %v11462_v59  ;;  %v4133_v2 = vadd.f32 %v4126_v62, %v11334_v40  ;;  %v4142_v40 = vmul.f32 %v11415_v54, %v11342_v55  ;;  %v11502_v62 = vmul.f32 %v11434_v28, %v11342_v55  ;;  %v16584_v55 = vld [vmem:[#allocation15_spill] sm:$0xff] }
 0x720   : > { %v11407_v50 = vpop.permute.xlu0 %4001  ;;  %v3667_v57 = vpack.c.bf16 %v3657_v33, %v3656_v41  ;;  %v4127_v41 = vmul.f32 %v11259_v16, %v11360_v52  ;;  %v11459_v33 = vmul.f32 %v9663_v56, %v11081_v21  ;;  %v3597_v16 = vmul.f32 %v11317_v42, %v11480_v6 }
 0x721   : > { %v3149_v34 = vpop.xlane.xlu1 %3148  ;;  %v4118_v21 = vadd.f32 %v4111_v8, %v4095_v38 }
 0x722   : > { %9199 = vmatprep.mubr.msk.bf16.mxu1 %vm3088_vm2, %v3667_v57  ;;  %9678 = vrcp.f32 %v3149_v34  ;;  %9360 = vset.pattern.permute.xlu1 %v16579_v17  ;;  %v3756_v34 = vmul.f32 %v11410_v37, %v11301_v22 }
 0x723   : > { %9200 = vmatmul.mubr.msk.bf16.vlgmr.msra.gmra.mrb[48].mxu1 %vm3088_vm2, %v3668_v18  ;;  %9680 = vrcp.f32 %v3572_v19  ;;  %1448 = vperm.xlu1 %9360, %v11163_v23   ;;  %v11440_v19 = vmul.f32 %v11410_v37, %v11257_v35  ;;  %v11444_v23 = vmul.f32 %v11412_v14, %v11266_v61  ;;  %v3773_v18 = vmul.f32 %v11412_v14, %v11332_v32 }
 0x724   : > { %9208 = vmatpush3.bf16.msra.mxu1 %v3835_v4  ;;  %v11418_v24 = vpop.permute.xlu0 %4005  ;;  %v9671_v4 = vpop.eup %9670  ;;  %v4134_v38 = vadd.f32 %v4127_v41, %v4118_v21  ;;  %v3631_v21 = vmul.f32 %v11319_v29, %v11462_v59 }
 0x725   : > { %16580 = vst [vmem:[#allocation37_spill] sm:$0xff] %v11418_v24  ;;  %v3290_v27 = vpop.xlane.xlu1 %3289  ;;  %v9673_v56 = vpop.eup %9672  ;;  %v11483_v15 = vmul.f32 %v9671_v4, %v11110_v58  ;;  %v3599_v4 = vmul.f32 %v11317_v42, %v11459_v33 }
 0x726   : > { %9682 = vrcp.f32 %v3290_v27  ;;  %v11472_v27 = vmul.f32 %v9669_v31, %v11108_v12  ;;  %v3757_v12 = vmul.f32 %v11410_v37, %v11339_v49  ;;  %v9675_v31 = vpop.eup %9674 }
 0x727   : > { %1452 = vperm.xlu1 %9360, %v11171_v36   ;;  %v4145_v36 = vmul.f32 %v11415_v54, %v11329_v10  ;;  %v11515_v54 = vmul.f32 %v9673_v56, %v11117_v13  ;;  %v3613_v51 = vmul.f32 %v11310_v47, %v11483_v15  ;;  %v11524_v24 = vmul.f32 %v9675_v31, %v11124_v39 }
 0x728   : > { %v11474_v17 = vpop.permute.xlu0 %4168  ;;  %v9677_v25 = vpop.eup %9676  ;;  %v3780_v8 = vadd.f32 %v3773_v18, %v3757_v12  ;;  %v3789_v18 = vmul.f32 %v11422_v46, %v11360_v52  ;;  %v11512_v12 = vstv %s11436_s27  ;;  %v4149_v56 = vadd.f32 %v4142_v40, %v4133_v2  ;;  %v16587_v52 = vld [vmem:[#allocation30_spill] sm:$0xff] }
 0x729   : > { %v3431_v57 = vpop.xlane.xlu1 %3430  ;;  %16582 = vst [vmem:[#allocation39_spill] sm:$0xff] %v11474_v17  ;;  %v3805_v17 = vmul.f32 %v11434_v28, %v11387_v43  ;;  %v11527_v35 = vmul.f32 %v9677_v25, %v16583_v45  ;;  %v16586_v43 = vld [vmem:[#allocation28_spill] sm:$0xff]  ;;  %v4152_v39 = vadd.f32 %v4145_v36, %v16587_v52  ;;  %v11540_v31 = vstv %s11469_s5  ;;  %s17719_s5 = smul.u32 56, %s17729_s26 }
 0x72a   : > { %9684 = vrcp.f32 %v3431_v57  ;;  %v11489_v57 = vadd.f32 %v3772_v63, %v3756_v34  ;;  %v3788_v63 = vmul.f32 %v11422_v46, %v11322_v9  ;;  %v3615_v34 = vmul.f32 %v11310_v47, %v11472_v27 }
 0x72b   : > { %9361 = vset.pattern.permute.xlu1 %v16550_v20  ;;  %v4151_v59 = vadd.f32 %v4144_v30, %v16586_v43  ;;  %v16588_v45 = vmov 1   ;;  %v11544_v2 = vadd.f32 %v11512_v12, %v4149_v56  ;;  %v3629_v43 = vmul.f32 %v11319_v29, %v11515_v54 }
 0x72c   : > { %v9679_v41 = vpop.eup %9678  ;;  %970 = vperm.xlu1 %9361, %v11215_v7   ;;  %v11529_v13 = vpop.permute.xlu0 %4172  ;;  %v3622_v25 = vadd.f32 %v3615_v34, %v3599_v4  ;;  %v11558_v52 = vstv %s11485_s13  ;;  %v3647_v40 = vmul.f32 %v11350_v48, %v11524_v24  ;;  %v3620_v34 = vadd.f32 %v3613_v51, %v3597_v16 }
 0x72d   : > { %v3837_v58 = vpop.permute.xlu1 %3836  ;;  %v9681_v20 = vpop.eup %9680  ;;  %v11532_v61 = vmul.f32 %v9679_v41, %v16584_v55  ;;  %v3645_v56 = vmul.f32 %v11350_v48, %v11527_v35 }
 0x72e   : > { %9209 = vmatprep.subr.bf16.mxu1 %v3837_v58 }
 0x72f   : > { %9210 = vmatpush3.bf16.msra.mxu1 %v3837_v58  ;;  %v4150_v58 = vadd.f32 %v4143_v26, %v4134_v38  ;;  %v16589_v38 = vld [vmem:[#allocation12_spill] sm:$0xff]  ;;  %v3598_v41 = vmul.f32 %v11317_v42, %v11532_v61 }
 0x730   : > { %v9683_v1 = vpop.eup %9682  ;;  %9362 = vset.pattern.permute.xlu1 %v16588_v45 }
 0x731   : > { %v11535_v9 = vmul.f32 %v9683_v1, %v16585_v60  ;;  %v3839_v22 = vpop.permute.xlu1 %3838  ;;  %v11547_v55 = vadd.f32 %v11512_v12, %v4150_v58  ;;  %v11550_v1 = vmul.f32 %v9681_v20, %v16589_v38  ;;  %1033 = vperm.xlu1 %9362, %v11215_v7   ;;  %v11567_v7 = vadd.f32 %v11512_v12, %v4151_v59  ;;  %v16592_v58 = vld [vmem:[#allocation14_spill] sm:$0xff] }
 0x732   : > { %9211 = vmatprep.subr.bf16.mxu1 %v3839_v22  ;;  %v3638_v20 = vadd.f32 %v3631_v21, %v3622_v25  ;;  %v3795_v21 = vadd.f32 %v3788_v63, %v11489_v57 }
 0x733   : > { %9212 = vmatpush3.bf16.msra.mxu1 %v3839_v22  ;;  %v3614_v60 = vmul.f32 %v11310_v47, %v11535_v9  ;;  %v11570_v22 = vadd.f32 %v11512_v12, %v4152_v39  ;;  %v16591_v47 = vld [vmem:[#allocation17_spill] sm:$0xff]  ;;  %v16593_v39 = vld [vmem:[#allocation18_spill] sm:$0xff]  ;;  %v3777_v51 = vmul.f32 %v11412_v14, %v11535_v9  ;;  %v3646_v42 = vmul.f32 %v11350_v48, %v11550_v1 }
 0x734   : > { %v9685_v30 = vpop.eup %9684  ;;  %v11560_v36 = vpop.permute.xlu0 %1021  ;;  %v16595_v48 = vld [vmem:[#allocation26_spill] sm:$0xff] }
 0x735   : > { %16590 = vst [vmem:[#allocation13_spill] sm:$0xff] %v11560_v36  ;;  %v11573_v26 = vmul.f32 %v9685_v30, %v16591_v47  ;;  %v3841_v4 = vpop.permute.xlu1 %3840  ;;  %v3796_v36 = vadd.f32 %v3789_v18, %v3780_v8  ;;  %1037 = vperm.xlu1 %9362, %v16593_v39   ;;  %v3621_v45 = vadd.f32 %v3614_v60, %v3598_v41 }
 0x736   : > { %v3858_v38 = vand.u32 %v3841_v4, %v16592_v58  ;;  %v3636_v47 = vadd.f32 %v3629_v43, %v3620_v34  ;;  %v3654_v8 = vadd.f32 %v3647_v40, %v3638_v20  ;;  %v3781_v41 = vadd.f32 %v11431_v0, %v11427_v5  ;;  %v16597_v40 = vld [vmem:[#allocation19_spill] sm:$0xff] }
 0x737   : > { %v3630_v30 = vmul.f32 %v11319_v29, %v11573_v26  ;;  %v3812_v18 = vadd.f32 %v3805_v17, %v3796_v36  ;;  %v3761_v29 = vmul.f32 %v11410_v37, %v11532_v61  ;;  %v3793_v43 = vmul.f32 %v11422_v46, %v11573_v26  ;;  %v16596_v17 = vld [vmem:[#allocation29_spill] sm:$0xff] }
 0x738   : > { %v11587_v16 = vpop.permute.xlu0 %1025  ;;  %9213 = vmatprep.subr.bf16.mxu1 %v3858_v38  ;;  %v3652_v4 = vadd.f32 %v3645_v56, %v3636_v47  ;;  %v3790_v57 = vmul.f32 %v11422_v46, %v16595_v48  ;;  %v3791_v63 = vmul.f32 %v11422_v46, %v16596_v17  ;;  %v3782_v36 = vadd.f32 %v11444_v23, %v11440_v19 }
 0x739   : > { %16594 = vst [vmem:[#allocation15_spill] sm:$0xff] %v11587_v16  ;;  %v11592_v25 = vpop.permute.xlu1 %4003  ;;  %9214 = vmatpush3.bf16.msra.mxu1 %v3858_v38  ;;  %v3637_v60 = vadd.f32 %v3630_v30, %v3621_v45  ;;  %v3811_v45 = vadd.f32 %v11502_v62, %v3795_v21  ;;  %1041 = vperm.xlu1 %9362, %v16597_v40   ;;  %v16610_v16 = vld [vmem:[#allocation24_spill] sm:$0xff] }
 0x73a   : > { %9223 = vmatprep.subr.bf16.mxu1 %v11407_v50  ;;  %v3776_v0 = vmul.f32 %v11412_v14, %v11483_v15  ;;  %v3784_v20 = vadd.f32 %v3777_v51, %v3761_v29  ;;  %v3807_v34 = vmul.f32 %v11434_v28, %v11329_v10  ;;  %v3662_v56 = vadd.f32 %v11397_v11, %v3654_v8 }
 0x73b   : > { %v3653_v5 = vadd.f32 %v3646_v42, %v3637_v60  ;;  %v3820_v38 = vadd.f32 %v11558_v52, %v3812_v18  ;;  %v3760_v62 = vmul.f32 %v11410_v37, %v11480_v6  ;;  %v3660_v23 = vadd.f32 %v11397_v11, %v3652_v4 }
 0x73c   : > { %v3792_v51 = vmul.f32 %v11422_v46, %v11515_v54  ;;  %v3800_v42 = vadd.f32 %v3793_v43, %v3784_v20  ;;  %v3806_v8 = vmul.f32 %v11434_v28, %v11353_v44  ;;  %v3798_v21 = vadd.f32 %v3791_v63, %v3782_v36 }
 0x73d   : > { %v11621_v30 = vpop.permute.xlu1 %4007  ;;  %v11623_v19 = vpop.permute.xlu0 %950  ;;  %v3661_v47 = vadd.f32 %v11397_v11, %v3653_v5  ;;  %v3819_v18 = vadd.f32 %v11558_v52, %v3811_v45  ;;  %v3778_v60 = vmul.f32 %v11412_v14, %v11472_v27  ;;  %v16599_v29 = vmov 2  }
 0x73e   : > { %16598 = vst [vmem:[#allocation16_spill] sm:$0xff] %v11623_v19  ;;  %9365 = vset.pattern.permute.xlu1 %v16599_v29  ;;  %v3783_v4 = vadd.f32 %v3776_v0, %v3760_v62  ;;  %v3808_v11 = vmul.f32 %v11434_v28, %v11527_v35  ;;  %v3809_v43 = vmul.f32 %v11434_v28, %v11550_v1  ;;  %v16611_v19 = vmov 3  }
 0x73f   : > { %v3669_v59 = vpack.c.bf16 %v3661_v47, %v3660_v23  ;;  %v3797_v5 = vadd.f32 %v3790_v57, %v3781_v41  ;;  %1098 = vperm.xlu1 %9365, %v16593_v39   ;;  %v3670_v63 = vpack.c.bf16 %v3662_v56, %v3662_v56  ;;  %v3814_v45 = vadd.f32 %v3807_v34, %v3798_v21 }
 0x740   : > { %v3762_v14 = vmul.f32 %v11410_v37, %v11459_v33  ;;  %v3826_v0 = vpack.c.bf16 %v3820_v38, %v3819_v18  ;;  %v3799_v62 = vadd.f32 %v3792_v51, %v3783_v4  ;;  %v3816_v23 = vadd.f32 %v3809_v43, %v3800_v42  ;;  %v16604_v43 = vld [vmem:[#allocation32_spill] sm:$0xff] }
 0x741   : > { %v11642_v36 = vpop.permute.xlu1 %4170  ;;  %v11644_v20 = vpop.permute.xlu0 %975  ;;  %9203 = vmatprep.mubr.msk.bf16.mxu1 %vm3088_vm2, %v3669_v59  ;;  %v3944_v47 = vmul.f32 %v11540_v31, %v11332_v32  ;;  %v11650_v41 = vstv %s11600_s30  ;;  %v11653_v57 = vstv %s11604_s0  ;;  %v3813_v34 = vadd.f32 %v3806_v8, %v3797_v5  ;;  %v16601_v32 = vld [vmem:[#allocation34_spill] sm:$0xff]  ;;  %s16635_s30 = sld [smem:[#allocation259_spill]]  ;;  %s16093_s0 = scalar_lea.vmem %s16147_s24, %s17719_s5 }
 0x742   : > { %16600 = vst [vmem:[#allocation28_spill] sm:$0xff] %v11644_v20  ;;  %9204 = vmatmul.mubr.msk.bf16.gmra.mrb[52].mxu1 %vm3088_vm2, %v3670_v63  ;;  %v3785_v37 = vadd.f32 %v3778_v60, %v3762_v14  ;;  %v3815_v56 = vadd.f32 %v3808_v11, %v3799_v62  ;;  %v3928_v59 = vmul.f32 %v11420_v3, %v11339_v49  ;;  %v16602_v8 = vld [vmem:[#allocation38_spill] sm:$0xff]  ;;  %v16603_v60 = vld [vmem:[#allocation31_spill] sm:$0xff]  ;;  %v16609_v20 = vld [vmem:[#allocation33_spill] sm:$0xff] }
 0x743   : > { %9215 = vmatprep.mubr.msk.bf16.mxu1 %vm3088_vm2, %v3826_v0  ;;  %v3943_v38 = vmul.f32 %v11540_v31, %v11304_v53  ;;  %v3960_v51 = vmul.f32 %v11650_v41, %v16601_v32  ;;  %1102 = vperm.xlu1 %9365, %v16597_v40   ;;  %v3822_v42 = vadd.f32 %v11558_v52, %v3814_v45  ;;  %v16605_v63 = vld [vmem:[#allocation35_spill] sm:$0xff] }
 0x744   : > { %v3794_v21 = vmul.f32 %v11422_v46, %v16602_v8  ;;  %v3810_v18 = vmul.f32 %v11434_v28, %v11524_v24  ;;  %v3927_v4 = vmul.f32 %v11420_v3, %v16603_v60  ;;  %v3824_v53 = vadd.f32 %v11558_v52, %v3816_v23  ;;  %v16606_v14 = vld [vmem:[#allocation23_spill] sm:$0xff] }
 0x745   : > { %v11673_v49 = vpop.permute.xlu1 %4174  ;;  %v3951_v11 = vadd.f32 %v3944_v47, %v3928_v59  ;;  %v3959_v5 = vmul.f32 %v11650_v41, %v16604_v43  ;;  %v3976_v45 = vmul.f32 %v11653_v57, %v16605_v63  ;;  %v3945_v46 = vmul.f32 %v11540_v31, %v16606_v14  ;;  %v16607_v0 = vld [vmem:[#allocation27_spill] sm:$0xff]  ;;  %v11684_v62 = vpop.permute.xlu0 %980 }
 0x746   : > { %v3946_v28 = vmul.f32 %v11540_v31, %v16607_v0  ;;  %16608 = vst [vmem:[#allocation30_spill] sm:$0xff] %v11684_v62  ;;  %v3821_v32 = vadd.f32 %v11558_v52, %v3813_v34  ;;  %v3801_v60 = vadd.f32 %v3794_v21, %v3785_v37  ;;  %v3823_v23 = vadd.f32 %v11558_v52, %v3815_v56 }
 0x747   : > { %v3950_v47 = vadd.f32 %v3943_v38, %v3927_v4  ;;  %v3967_v59 = vadd.f32 %v3960_v51, %v3951_v11  ;;  %v3975_v43 = vmul.f32 %v11653_v57, %v16609_v20  ;;  %v3930_v63 = vmul.f32 %v11420_v3, %v16610_v16  ;;  %9366 = vset.pattern.permute.xlu1 %v16611_v19  ;;  %v16612_v51 = vld [vmem:[#allocation20_spill] sm:$0xff] }
 0x748   : > { %v3827_v14 = vpack.c.bf16 %v3822_v42, %v3821_v32  ;;  %v3817_v29 = vadd.f32 %v3810_v18, %v3801_v60  ;;  %v3948_v0 = vmul.f32 %v11540_v31, %v11535_v9  ;;  %v3962_v34 = vmul.f32 %v11650_v41, %v16596_v17  ;;  %1159 = vperm.xlu1 %9366, %v16593_v39  }
 0x749   : > { %v11698_v37 = vpop.permute.xlu1 %955  ;;  %v3828_v56 = vpack.c.bf16 %v3824_v53, %v3823_v23  ;;  %v3966_v20 = vadd.f32 %v3959_v5, %v3950_v47  ;;  %v3983_v38 = vadd.f32 %v3976_v45, %v3967_v59  ;;  %v3929_v16 = vmul.f32 %v11420_v3, %v16612_v51 }
 0x74a   : > { %v3961_v42 = vmul.f32 %v11650_v41, %v16595_v48  ;;  %9216 = vmatmul.mubr.msk.bf16.vlgmr.msra.gmra.mrb[56].mxu1 %vm3088_vm2, %v3827_v14  ;;  %v3932_v21 = vmul.f32 %v11420_v3, %v11532_v61  ;;  %v3964_v17 = vmul.f32 %v11650_v41, %v11573_v26  ;;  %v3953_v18 = vadd.f32 %v3946_v28, %v3930_v63  ;;  %v11716_v5 = vpop.permute.xlu0 %1078  ;;  %v16613_v14 = vld [vmem:[#allocation37_spill] sm:$0xff] }
 0x74b   : > { %v3978_v4 = vmul.f32 %v11653_v57, %v11329_v10  ;;  %9224 = vmatpush3.bf16.msra.mxu1 %v11407_v50  ;;  %9219 = vmatprep.mubr.msk.bf16.mxu1 %vm3088_vm2, %v3828_v56  ;;  %v3982_v53 = vadd.f32 %v3975_v43, %v3966_v20  ;;  %v11714_v11 = vstv %s11657_s7  ;;  %v3952_v48 = vadd.f32 %v3945_v46, %v3929_v16 }
 0x74c   : > { %9225 = vmatprep.subr.bf16.mxu1 %v11592_v25  ;;  %v3825_v45 = vadd.f32 %v11558_v52, %v3817_v29  ;;  %v3947_v28 = vmul.f32 %v11540_v31, %v11483_v15  ;;  %v3955_v32 = vadd.f32 %v3948_v0, %v3932_v21  ;;  %v3977_v10 = vmul.f32 %v11653_v57, %v11353_v44 }
 0x74d   : > { %v3969_v50 = vadd.f32 %v3962_v34, %v3953_v18  ;;  %1163 = vperm.xlu1 %9366, %v16597_v40   ;;  %v11725_v60 = vpop.permute.xlu1 %1017  ;;  %v3991_v46 = vadd.f32 %v11714_v11, %v3983_v38  ;;  %v3949_v23 = vmul.f32 %v11540_v31, %v11472_v27  ;;  %v3931_v52 = vmul.f32 %v11420_v3, %v11480_v6 }
 0x74e   : > { %v3963_v29 = vmul.f32 %v11650_v41, %v11515_v54  ;;  %v3971_v47 = vadd.f32 %v3964_v17, %v3955_v32  ;;  %v3968_v59 = vadd.f32 %v3961_v42, %v3952_v48  ;;  %v3990_v44 = vadd.f32 %v11714_v11, %v3982_v53  ;;  %v11746_v42 = vpop.permute.xlu0 %1090 }
 0x74f   : > { %9226 = vmatpush3.bf16.msra.mxu1 %v11592_v25  ;;  %v3985_v43 = vadd.f32 %v3978_v4, %v3969_v50  ;;  %v3933_v63 = vmul.f32 %v11420_v3, %v11459_v33  ;;  %v3829_v0 = vpack.c.bf16 %v3825_v45, %v3825_v45  ;;  %v3954_v31 = vadd.f32 %v3947_v28, %v3931_v52 }
 0x750   : > { %9227 = vmatprep.subr.bf16.mxu1 %v16613_v14  ;;  %v3979_v34 = vmul.f32 %v11653_v57, %v11527_v35  ;;  %v3980_v56 = vmul.f32 %v11653_v57, %v11550_v1  ;;  %v16614_v20 = vmov 4   ;;  %v3997_v38 = vpack.c.bf16 %v3991_v46, %v3990_v44 }
 0x751   : > { %9368 = vset.pattern.permute.xlu1 %v16614_v20  ;;  %v3984_v25 = vadd.f32 %v3977_v10, %v3968_v59  ;;  %v3956_v51 = vadd.f32 %v3949_v23, %v3933_v63  ;;  %v4025_v16 = vand.u32 %v11621_v30, %v16592_v58  ;;  %v3970_v21 = vadd.f32 %v3963_v29, %v3954_v31  ;;  %v16615_v10 = vld [vmem:[#allocation22_spill] sm:$0xff]  ;;  %v16616_v23 = vld [vmem:[#allocation39_spill] sm:$0xff] }
 0x752   : > { %1220 = vperm.xlu1 %9368, %v16593_v39   ;;  %v11749_v3 = vpop.permute.xlu1 %960  ;;  %9220 = vmatmul.mubr.msk.bf16.gmra.mrb[60].mxu1 %vm3088_vm2, %v3829_v0  ;;  %v3987_v17 = vadd.f32 %v3980_v56, %v3971_v47  ;;  %v3993_v18 = vadd.f32 %v11714_v11, %v3985_v43  ;;  %v3965_v30 = vmul.f32 %v11650_v41, %v16602_v8  ;;  %v11766_v46 = vpop.permute.xlu0 %1094  ;;  %v16618_v47 = vld [vmem:[#allocation25_spill] sm:$0xff]  ;;  %v16619_v44 = vmov 5   ;;  %v16620_v56 = vld [vmem:[#allocation36_spill] sm:$0xff] }
 0x753   : > { %9228 = vmatpush3.bf16.msra.mxu1 %v16613_v14  ;;  %9231 = vmatprep.mubr.msk.bf16.mxu1 %vm3088_vm2, %v3997_v38  ;;  %v3986_v4 = vadd.f32 %v3979_v34, %v3970_v21  ;;  %v3981_v53 = vmul.f32 %v11653_v57, %v11524_v24  ;;  %v3992_v45 = vadd.f32 %v11714_v11, %v3984_v25 }
 0x754   : > { %9229 = vmatprep.subr.bf16.mxu1 %v4025_v16  ;;  %v3995_v28 = vadd.f32 %v11714_v11, %v3987_v17  ;;  %v3972_v32 = vadd.f32 %v3965_v30, %v3956_v51  ;;  %v4115_v50 = vmul.f32 %v16615_v10, %v11535_v9  ;;  %v4131_v59 = vmul.f32 %v16618_v47, %v11573_v26 }
 0x755   : > { %v3998_v41 = vpack.c.bf16 %v3993_v18, %v3992_v45  ;;  %v3994_v57 = vadd.f32 %v11714_v11, %v3986_v4  ;;  %v4114_v63 = vmul.f32 %v16615_v10, %v11483_v15  ;;  %v4116_v34 = vmul.f32 %v16615_v10, %v11472_v27  ;;  %v9686_v15 = vld [vmem:[%s16132_s9 + $0x30] sm:$0x1]  ;;  %v9687_v18 = vld [vmem:[%s16132_s9 + $0x28] sm:$0xff] }
 0x756   : > { %1224 = vperm.xlu1 %9368, %v16597_v40   ;;  %v11760_v48 = vpop.permute.xlu1 %965  ;;  %v3988_v52 = vadd.f32 %v3981_v53, %v3972_v32  ;;  %v16617_v40 = vld [vmem:[#allocation21_spill] sm:$0xff] }
 0x757   : > { %9230 = vmatpush3.bf16.msra.mxu1 %v4025_v16  ;;  %v4099_v29 = vmul.f32 %v16617_v40, %v11532_v61  ;;  %v3999_v43 = vpack.c.bf16 %v3995_v28, %v3994_v57  ;;  %v4098_v26 = vmul.f32 %v16617_v40, %v11480_v6  ;;  %v11789_v31 = vpop.permute.xlu0 %1200  ;;  %v4146_v6 = vmul.f32 %v16620_v56, %v11527_v35 }
 0x758   : > { %9239 = vmatprep.subr.bf16.mxu1 %v16616_v23  ;;  %v3996_v61 = vadd.f32 %v11714_v11, %v3988_v52  ;;  %v4100_v27 = vmul.f32 %v16617_v40, %v11459_v33  ;;  %v16621_v35 = vmov 6  }
 0x759   : > { %v4122_v14 = vadd.f32 %v4115_v50, %v4099_v29  ;;  %v4121_v11 = vadd.f32 %v4114_v63, %v4098_v26  ;;  %v16627_v29 = vmov 1  }
 0x75a   : > { %9370 = vset.pattern.permute.xlu1 %v16619_v44  ;;  %9232 = vmatmul.mubr.msk.bf16.vlgmr.msra.gmra.mrb[64].mxu1 %vm3088_vm2, %v3998_v41  ;;  %v4000_v25 = vpack.c.bf16 %v3996_v61, %v3996_v61  ;;  %v4123_v21 = vadd.f32 %v4116_v34, %v4100_v27 }
 0x75b   : > { %1281 = vperm.xlu1 %9370, %v16593_v39   ;;  %9240 = vmatpush3.bf16.msra.mxu1 %v16616_v23  ;;  %v11778_v9 = vpop.permute.xlu1 %1029  ;;  %v4130_v39 = vmul.f32 %v16618_v47, %v11515_v54  ;;  %v4138_v0 = vadd.f32 %v4131_v59, %v4122_v14  ;;  %v4147_v54 = vmul.f32 %v16620_v56, %v11550_v1  ;;  %v11811_v17 = vpop.permute.xlu0 %1212 }
 0x75c   : > { %9235 = vmatprep.mubr.msk.bf16.mxu1 %vm3088_vm2, %v3999_v43  ;;  %9241 = vmatprep.subr.bf16.mxu1 %v11642_v36 }
 0x75d   : > { %v4137_v51 = vadd.f32 %v4130_v39, %v4121_v11  ;;  %v4154_v16 = vadd.f32 %v4147_v54, %v4138_v0 }
 0x75f   : > { %1285 = vperm.xlu1 %9370, %v9686_v15   ;;  %9242 = vmatpush3.bf16.msra.mxu1 %v11642_v36  ;;  %v4192_v36 = vand.u32 %v11673_v49, %v16592_v58  ;;  %v4153_v1 = vadd.f32 %v4146_v6, %v4137_v51  ;;  %v4132_v58 = vmul.f32 %v16618_v47, %v16602_v8  ;;  %v1217_v8 = vpop.permute.xlu0 %1216 }
 0x760   : > { %9243 = vmatprep.subr.bf16.mxu1 %v11529_v13  ;;  %v11802_v38 = vpop.permute.xlu1 %1082  ;;  %v4148_v49 = vmul.f32 %v16620_v56, %v11524_v24  ;;  %v4162_v4 = vadd.f32 %v11512_v12, %v4154_v16  ;;  %v16623_v24 = vpack.c.bf16 %v11570_v22, %v11567_v7  ;;  %v16625_v7 = vmov 0  }
 0x761   : > { %v4139_v30 = vadd.f32 %v4132_v58, %v4123_v21  ;;  %v4161_v53 = vadd.f32 %v11512_v12, %v4153_v1  ;;  %v16626_v22 = vmov 8   ;;  %v11898_v1 = vld [vmem:[%s16635_s30 + $0x1] ss:$0 sm:$0xff] }
 0x762   : > { %9236 = vmatmul.mubr.msk.bf16.gmra.mrb[68].mxu1 %vm3088_vm2, %v4000_v25  ;;  %16636 = vst [vmem:[#allocation34_spill] sm:$0xff] %v11898_v1 }
 0x763   : > { %9372 = vset.pattern.permute.xlu1 %v16621_v35  ;;  %9244 = vmatpush3.bf16.msra.mxu1 %v11529_v13  ;;  %v16622_v13 = vpack.c.bf16 %v11547_v55, %v11544_v2  ;;  %v4155_v45 = vadd.f32 %v4148_v49, %v4139_v30  ;;  %v4166_v32 = vpack.c.bf16 %v4162_v4, %v4161_v53  ;;  %v16624_v2 = vmov 7   ;;  %v11911_v30 = vld [vmem:[%s16635_s30 + $0x3] ss:$0 sm:$0xff] }
 0x764   : > { %1342 = vperm.xlu1 %9372, %v9687_v18   ;;  %9245 = vmatprep.subr.bf16.mxu1 %v4192_v36  ;;  %v11816_v33 = vpop.permute.xlu1 %1086  ;;  %v11839_v50 = vpop.permute.xlu0 %1265  ;;  %v11913_v53 = vld [vmem:[#allocation2 + $0x21] sm:$0xff] }
 0x765   : > { %9247 = vmatprep.mubr.msk.bf16.mxu1 %vm3088_vm2, %v16622_v13  ;;  %v4163_v55 = vadd.f32 %v11512_v12, %v4155_v45  ;;  %v11915_v45 = vld [vmem:[#allocation2 + $0x20] sm:$0xff] }
 0x766   : > { %16637 = vst [vmem:[#allocation38_spill] sm:$0xff] %v11915_v45 }
 0x767   : > { %9246 = vmatpush3.bf16.msra.mxu1 %v4192_v36  ;;  %v4167_v23 = vpack.c.bf16 %v4163_v55, %v4163_v55  ;;  %v11892_v36 = vld [vmem:[%s16635_s30] ss:$0 sm:$0xff] }
 0x768   : > { %1346 = vperm.xlu1 %9372, %v9686_v15   ;;  %v1278_v57 = vpop.permute.xlu0 %1277 }
 0x769   : > { %v11828_v28 = vpop.permute.xlu1 %1139 }
 0x76a   : > { %9248 = vmatmul.mubr.msk.bf16.vlgmr.msra.gmra.mrb[72].mxu1 %vm3088_vm2, %v16623_v24 }
 0x76b   : > { %9251 = vmatprep.mubr.msk.bf16.mxu1 %vm3088_vm2, %v4166_v32 }
 0x76c   : > { %9374 = vset.pattern.permute.xlu1 %v16624_v2 }
 0x76d   : > { %1403 = vperm.xlu1 %9374, %v9687_v18   ;;  %v11837_v10 = vpop.permute.xlu1 %1147  ;;  %v11850_v40 = vpop.permute.xlu0 %1322 }
 0x771   : > { %1407 = vperm.xlu1 %9374, %v9686_v15   ;;  %v11841_v41 = vpop.permute.xlu1 %1151  ;;  %v11855_v59 = vpop.permute.xlu0 %1334 }
 0x772   : > { %9252 = vmatmul.mubr.msk.bf16.gmra.mrb[76].mxu1 %vm3088_vm2, %v4167_v23  ;;  %v1073_v23 = vld [vmem:[#allocation2 + $0x22] sm:$0xff] }
 0x773   : > { %4790 = vmatprep.mubr.bf16.mxu1 %v16625_v7 }
 0x775   : > { %9376 = vset.pattern.permute.xlu1 %v16626_v22  ;;  %v11859_v63 = vpop.permute.xlu0 %1338 }
 0x776   : > { %1464 = vperm.xlu1 %9376, %v9687_v18   ;;  %v11846_v52 = vpop.permute.xlu1 %1204  ;;  %16628 = vst [vmem:[#allocation12_spill] sm:$0xff] %v11859_v63  ;;  %v11903_v18 = vld [vmem:[%s16635_s30 + $0x2] ss:$0 sm:$0xff] }
 0x777   : > { %v1113_v13 = vmul.f32 %v11903_v18, %v11766_v46  ;;  %v11923_v46 = vld [vmem:[%s16635_s30 + $0x4] ss:$0 sm:$0xff] }
 0x77a   : > { %1468 = vperm.xlu1 %9376, %v9686_v15   ;;  %v11848_v12 = vpop.permute.xlu1 %1208  ;;  %v11863_v61 = vpop.permute.xlu0 %1387 }
 0x77e   : > { %9377 = vset.pattern.permute.xlu1 %v16627_v29  ;;  %v11869_v0 = vpop.permute.xlu0 %1399 }
 0x77f   : > { %v11853_v47 = vpop.permute.xlu1 %1261  ;;  %16629 = vst [vmem:[#allocation17_spill] sm:$0xff] %v11869_v0 }
 0x783   : > { %v11857_v43 = vpop.permute.xlu1 %1269  ;;  %v11873_v15 = vpop.permute.xlu0 %1444 }
 0x784   : > { %16630 = vst [vmem:[#allocation14_spill] sm:$0xff] %v11873_v15  ;;  %v12138_v15 = vld [vmem:[#allocation2 + $0x10] sm:$0xff] }
 0x787   : > { %v11861_v14 = vpop.permute.xlu1 %1273  ;;  %v11879_v6 = vpop.permute.xlu0 %1456 }
 0x788   : > { %16631 = vst [vmem:[#allocation18_spill] sm:$0xff] %v11879_v6 }
 0x78b   : > { %v11883_v25 = vpop.permute.xlu0 %1460 }
 0x78c   : > { %v11865_v26 = vpop.permute.xlu1 %1326  ;;  %16633 = vst [vmem:[#allocation29_spill] sm:$0xff] %v11883_v25  ;;  %v11929_v25 = vld [vmem:[%s16635_s30 + $0x5] ss:$0 sm:$0xff] }
 0x790   : > { %v11867_v39 = vpop.permute.xlu1 %1330  ;;  %v11887_v51 = vpop.permute.xlu0 %1143 }
 0x794   : > { %v1156_v58 = vpop.permute.xlu0 %1155 }
 0x795   : > { %v11871_v34 = vpop.permute.xlu1 %1383  ;;  %v1174_v32 = vmul.f32 %v11911_v30, %v1156_v58  ;;  %v11931_v58 = vld [vmem:[#allocation2 + $0x27] sm:$0xff] }
 0x799   : > { %v11875_v11 = vpop.permute.xlu1 %1391 }
 0x79d   : > { %v11877_v56 = vpop.permute.xlu1 %1395 }
 0x7a2   : > { %v11881_v54 = vpop.permute.xlu1 %1448 }
 0x7a3   : > { %16632 = vst [vmem:[#allocation26_spill] sm:$0xff] %v11881_v54 }
 0x7a6   : > { %v11885_v27 = vpop.permute.xlu1 %1452 }
 0x7a7   : > { %16634 = vst [vmem:[#allocation19_spill] sm:$0xff] %v11885_v27  ;;  %v11935_v27 = vld [vmem:[#allocation2 + $0x29] sm:$0xff] }
 0x7a8   : > { %16638 = vst [vmem:[#allocation31_spill] sm:$0xff] %v11935_v27 }
 0x7ab   : > { %v971_v16 = vpop.permute.xlu1 %970 }
 0x7ac   : > { %v991_v21 = vmul.f32 %v11892_v36, %v971_v16  ;;  %v1120_v16 = vmul.f32 %v1113_v13, %v1073_v23 }
 0x7ae   : > { %v998_v24 = vmul.f32 %v11915_v45, %v991_v21  ;;  %v1296_v21 = vmul.f32 %v11929_v25, %v1278_v57  ;;  %v9688_v45 = vld [vmem:[#allocation2 + $0x28] sm:$0xff] }
 0x7b0   : > { %v1034_v49 = vpop.permute.xlu1 %1033 }
 0x7b1   : > { %v1052_v4 = vmul.f32 %v11898_v1, %v1034_v49  ;;  %v1235_v49 = vmul.f32 %v11923_v46, %v1217_v8  ;;  %v1303_v8 = vmul.f32 %v1296_v21, %v11935_v27 }
 0x7b3   : > { %v1059_v55 = vmul.f32 %v11913_v53, %v1052_v4  ;;  %v1181_v4 = vmul.f32 %v1174_v32, %v11931_v58  ;;  %v1242_v63 = vmul.f32 %v9688_v45, %v1235_v49 }
 0x7b5   : > { %v1066_v22 = vadd.f32 %v1059_v55, %v998_v24 }
 0x7b7   : > { %v1127_v0 = vadd.f32 %v1120_v16, %v1066_v22 }
 0x7b9   : > { %v1188_v62 = vadd.f32 %v1181_v4, %v1127_v0  ;;  %v9487_v4 = vld [vmem:[%s16137_s14 + $0x8] sm:$0xff]  }
 0x7bb   : > { %v1249_v13 = vadd.f32 %v1242_v63, %v1188_v62  ;;  %v9486_v62 = vld [vmem:[%s16137_s14] sm:$0xff]  }
 0x7bc   : > { %9255 = vmatprep.subr.bf16.mxu0 %v9486_v62 }
 0x7bd   : > { %v11938_v24 = vadd.f32 %v1303_v8, %v1249_v13  ;;  %9256 = vmatpush3.bf16.msra.mxu0 %v9486_v62  ;;  %v9488_v13 = vld [vmem:[%s16137_s14 + $0x10] sm:$0xff]   ;;  %v9489_v62 = vld [vmem:[%s16137_s14 + $0x18] sm:$0xff]  }
 0x7be   : > { %9257 = vmatprep.subr.bf16.mxu0 %v9487_v4 }
 0x7bf   : > { %16639 = vst [vmem:[#allocation32_spill] sm:$0xff] %v11938_v24  ;;  %v1048_v24 = vmul.f32 %v11898_v1, %v11725_v60 }
 0x7c1   : > { %9258 = vmatpush3.bf16.msra.mxu0 %v9487_v4 }
 0x7c2   : > { %9259 = vmatprep.subr.bf16.mxu0 %v9488_v13 }
 0x7c5   : > { %9260 = vmatpush3.bf16.msra.mxu0 %v9488_v13  ;;  %v9491_v13 = vld [vmem:[%s16137_s14 + $0x28] sm:$0xff]  }
 0x7c6   : > { %9261 = vmatprep.subr.bf16.mxu0 %v9489_v62 }
 0x7c9   : > { %9262 = vmatpush3.bf16.msra.mxu0 %v9489_v62 }
 0x7f6   : > { %v11940_v55 = vpop.f32.mrb[48].mxu1 }
 0x7f7   : > { %16640 = vst [vmem:[#allocation35_spill] sm:$0xff] %v11940_v55  ;;  %v11942_v23 = vpop.f32.mrb[49].mxu1 }
 0x7f8   : > { %16641 = vst [vmem:[#allocation23_spill] sm:$0xff] %v11942_v23  ;;  %v11944_v6 = vpop.f32.mrb[50].mxu1 }
 0x7f9   : > { %16642 = vst [vmem:[#allocation27_spill] sm:$0xff] %v11944_v6  ;;  %v11946_v57 = vpop.f32.mrb[51].mxu1  ;;  %v11987_v6 = vpop.permute.xlu1 %1037 }
 0x7fa   : > { %16643 = vst [vmem:[#allocation33_spill] sm:$0xff] %v11946_v57  ;;  %16647 = vst [vmem:[#allocation22_spill] sm:$0xff] %v11987_v6  ;;  %v1072_v6 = vld [vmem:[#allocation2 + $0x1a] sm:$0xff] }
 0x815   : > { %v11948_v32 = vpop.f32.mrb[52].mxu1 }
 0x816   : > { %16644 = vst [vmem:[#allocation24_spill] sm:$0xff] %v11948_v32  ;;  %v11950_v22 = vpop.f32.mrb[53].mxu1 }
 0x817   : > { %16645 = vst [vmem:[#allocation20_spill] sm:$0xff] %v11950_v22  ;;  %v9206_v0 = vpop.f32.mrb[54].mxu1 }
 0x818   : > { %v11952_v45 = vpop.f32.mrb[55].mxu1 }
 0x819   : > { %16646 = vst [vmem:[#allocation37_spill] sm:$0xff] %v11952_v45 }
 0x81d   : > { %v9217_v63 = vpop.f32.mrb[56].mxu1 }
 0x81e   : > { %4269 = vrot.lane.b32.xlu0 %v9217_v63, %s9781_s25  ;;  %v3894_v16 = vpop.f32.mrb[57].mxu1 }
 0x81f   : > { %4265 = vrot.lane.b32.xlu1 %v3894_v16, %s9781_s25  ;;  %v9218_v49 = vpop.f32.mrb[58].mxu1 }
 0x820   : > { %v3897_v21 = vpop.f32.mrb[59].mxu1 }
 0x822   : > { %4267 = vrot.lane.b32.xlu0 %v3897_v21, %s9781_s25 }
 0x823   : > { %4271 = vrot.lane.b32.xlu1 %v9218_v49, %s9781_s25  ;;  %v9490_v49 = vld [vmem:[%s16137_s14 + $0x20] sm:$0xff]  }
 0x824   : > { %9263 = vmatprep.subr.bf16.mxu0 %v9490_v49 }
 0x825   : > { %v9221_v8 = vpop.f32.mrb[60].mxu1  ;;  %9264 = vmatpush3.bf16.msra.mxu0 %v9490_v49 }
 0x826   : > { %v3910_v0 = vpop.f32.mrb[61].mxu1  ;;  %9265 = vmatprep.subr.bf16.mxu0 %v9491_v13 }
 0x827   : > { %v9222_v63 = vpop.f32.mrb[62].mxu1 }
 0x828   : > { %v3913_v16 = vpop.f32.mrb[63].mxu1 }
 0x829   : > { %9266 = vmatpush3.bf16.msra.mxu0 %v9491_v13 }
 0x82d   : > { %v9233_v21 = vpop.f32.mrb[64].mxu1 }
 0x82e   : > { %4297 = vrot.lane.b32.xlu1 %v9233_v21, %s9780_s2  ;;  %v4061_v4 = vpop.f32.mrb[65].mxu1 }
 0x82f   : > { %4293 = vrot.lane.b32.xlu0 %v4061_v4, %s9780_s2  ;;  %v9234_v32 = vpop.f32.mrb[66].mxu1  ;;  %v9492_v4 = vld [vmem:[%s16137_s14 + $0x30] sm:$0xff]  }
 0x830   : > { %v4064_v45 = vpop.f32.mrb[67].mxu1  ;;  %9267 = vmatprep.subr.bf16.mxu0 %v9492_v4 }
 0x831   : > { %9268 = vmatpush3.bf16.msra.mxu0 %v9492_v4  ;;  %v11992_v4 = vpop.permute.xlu1 %1041 }
 0x832   : > { %4295 = vrot.lane.b32.xlu1 %v4064_v45, %s9780_s2  ;;  %16648 = vst [vmem:[#allocation39_spill] sm:$0xff] %v11992_v4 }
 0x833   : > { %4299 = vrot.lane.b32.xlu0 %v9234_v32, %s9780_s2  ;;  %v9493_v32 = vld [vmem:[%s16137_s14 + $0x38] sm:$0xff]  }
 0x834   : > { %9269 = vmatprep.subr.bf16.mxu0 %v9493_v32 }
 0x835   : > { %v9237_v63 = vpop.f32.mrb[68].mxu1  ;;  %9270 = vmatpush3.bf16.msra.mxu0 %v9493_v32 }
 0x836   : > { %v4077_v62 = vpop.f32.mrb[69].mxu1 }
 0x837   : > { %v9238_v22 = vpop.f32.mrb[70].mxu1 }
 0x838   : > { %v4080_v21 = vpop.f32.mrb[71].mxu1 }
 0x83d   : > { %v9249_v45 = vpop.f32.mrb[72].mxu1 }
 0x83e   : > { %4325 = vrot.lane.b32.xlu0 %v9249_v45, %s9779_s4  ;;  %v4228_v49 = vpop.f32.mrb[73].mxu1 }
 0x83f   : > { %4321 = vrot.lane.b32.xlu1 %v4228_v49, %s9779_s4  ;;  %v9250_v22 = vpop.f32.mrb[74].mxu1  ;;  %v11997_v49 = vpop.permute.xlu1 %1098 }
 0x840   : > { %v4231_v13 = vpop.f32.mrb[75].mxu1  ;;  %16649 = vst [vmem:[#allocation21_spill] sm:$0xff] %v11997_v49 }
 0x842   : > { %4323 = vrot.lane.b32.xlu0 %v4231_v13, %s9779_s4 }
 0x843   : > { %4327 = vrot.lane.b32.xlu1 %v9250_v22, %s9779_s4  ;;  %v12002_v32 = vpop.permute.xlu1 %1102 }
 0x844   : > { %16650 = vst [vmem:[#allocation25_spill] sm:$0xff] %v12002_v32  ;;  %v12106_v32 = vld [vmem:[#allocation2 + $0x19] sm:$0xff] }
 0x845   : > { %v9253_v57 = vpop.f32.mrb[76].mxu1 }
 0x846   : > { %4273 = vrot.lane.b32.xlu0 %v3910_v0, %s9781_s25  ;;  %v4244_v23 = vpop.f32.mrb[77].mxu1  ;;  %v12009_v0 = vld [vmem:[%s16132_s9] sm:$0xff] }
 0x847   : > { %4275 = vrot.lane.b32.xlu1 %v3913_v16, %s9781_s25  ;;  %v9254_v45 = vpop.f32.mrb[78].mxu1  ;;  %v12018_v16 = vld [vmem:[%s16132_s9 + $0x8] sm:$0xff] }
 0x848   : > { %v4247_v55 = vpop.f32.mrb[79].mxu1  ;;  %v12060_v45 = vld [vmem:[%s16132_s9 + $0x18] sm:$0xff] }
 0x84a   : > { %4277 = vrot.lane.b32.xlu0 %v9221_v8, %s9781_s25  ;;  %v12012_v8 = vpop.permute.xlu1 %1159 }
 0x84b   : > { %4301 = vrot.lane.b32.xlu1 %v4077_v62, %s9780_s2  ;;  %16651 = vst [vmem:[#allocation36_spill] sm:$0xff] %v12012_v8  ;;  %v9689_v8 = vld [vmem:[#allocation2] sm:$0xff] }
 0x84e   : > { %4303 = vrot.lane.b32.xlu0 %v4080_v21, %s9780_s2  ;;  %v12045_v21 = vld [vmem:[%s16132_s9 + $0x30] sm:$0x1] }
 0x84f   : > { %4305 = vrot.lane.b32.xlu1 %v9237_v63, %s9780_s2  ;;  %v16653_v63 = vmov 2  }
 0x852   : > { %4329 = vrot.lane.b32.xlu0 %v4244_v23, %s9779_s4  ;;  %v12030_v23 = vld [vmem:[%s16132_s9 + $0x20] sm:$0xff] }
 0x853   : > { %4331 = vrot.lane.b32.xlu1 %v4247_v55, %s9779_s4  ;;  %v12023_v55 = vld [vmem:[%s16132_s9 + $0x10] sm:$0xff] }
 0x856   : > { %4333 = vrot.lane.b32.xlu0 %v9253_v57, %s9779_s4  ;;  %v12032_v57 = vpop.permute.xlu1 %1163 }
 0x857   : > { %5155 = vperm.xlu1 %9377, %v12009_v0   ;;  %16652 = vst [vmem:[#allocation40_spill] sm:$0xff] %v12032_v57 }
 0x85a   : > { %5880 = vperm.xlu0 %9375, %v12018_v16   ;;  %v12038_v62 = vpop.permute.xlu1 %1220 }
 0x85b   : > { %5163 = vperm.xlu1 %9377, %v12023_v55   ;;  %16654 = vst [vmem:[#allocation41_spill] sm:$0xff] %v12038_v62  ;;  %v988_v62 = vmul.f32 %v11892_v36, %v11698_v37  ;;  %v1110_v37 = vmul.f32 %v11903_v18, %v11802_v38  ;;  %v989_v38 = vmul.f32 %v11892_v36, %v11749_v3 }
 0x85e   : > { %5892 = vperm.xlu0 %9375, %v12030_v23   ;;  %v12049_v22 = vpop.permute.xlu1 %1224 }
 0x85f   : > { %9378 = vset.pattern.permute.xlu1 %v16653_v63  ;;  %16655 = vst [vmem:[#allocation42_spill] sm:$0xff] %v12049_v22  ;;  %v12068_v22 = vld [vmem:[%s16132_s9 + $0x28] sm:$0xff] }
 0x860   : > { %5515 = vperm.xlu1 %9378, %v12009_v0   ;;  %16657 = vst [vmem:[#allocation44_spill] sm:$0xff] %v12068_v22 }
 0x862   : > { %9386 = vset.pattern.permute.xlu0 %v16627_v29  ;;  %v12055_v13 = vpop.permute.xlu1 %1281 }
 0x863   : > { %5159 = vperm.xlu0 %9386, %v12018_v16   ;;  %16656 = vst [vmem:[#allocation43_spill] sm:$0xff] %v12055_v13 }
 0x864   : > { %5523 = vperm.xlu1 %9378, %v12023_v55  }
 0x866   : > { %v12071_v57 = vpop.permute.xlu1 %1285 }
 0x867   : > { %5179 = vperm.xlu0 %9386, %v12045_v21   ;;  %16658 = vst [vmem:[#allocation45_spill] sm:$0xff] %v12071_v57 }
 0x868   : > { %9379 = vset.pattern.permute.xlu1 %v16611_v19 }
 0x869   : > { %5876 = vperm.xlu1 %9379, %v12009_v0  }
 0x86a   : > { %v12077_v13 = vpop.permute.xlu1 %1342 }
 0x86b   : > { %9391 = vset.pattern.permute.xlu0 %v16653_v63  ;;  %16659 = vst [vmem:[#allocation46_spill] sm:$0xff] %v12077_v13  ;;  %v16662_v13 = vld [vmem:[#allocation16_spill] sm:$0xff] }
 0x86c   : > { %5519 = vperm.xlu0 %9391, %v12018_v16  }
 0x86d   : > { %5884 = vperm.xlu1 %9379, %v12023_v55  }
 0x870   : > { %5527 = vperm.xlu0 %9391, %v12060_v45  }
 0x871   : > { %9380 = vset.pattern.permute.xlu1 %v16625_v7 }
 0x872   : > { %5006 = vperm.xlu1 %9380, %v12009_v0  }
 0x874   : > { %5535 = vperm.xlu0 %9391, %v12068_v22   ;;  %v12083_v22 = vpop.permute.xlu1 %1346 }
 0x875   : > { %16660 = vst [vmem:[#allocation47_spill] sm:$0xff] %v12083_v22  ;;  %v1051_v22 = vmul.f32 %v11898_v1, %v11778_v9  ;;  %v941_v9 = vld [vmem:[#allocation2 + $0x8] sm:$0xff] }
 0x876   : > { %9381 = vset.pattern.permute.xlu1 %v16627_v29  ;;  %v987_v29 = vmul.f32 %v11892_v36, %v16662_v13 }
 0x877   : > { %5167 = vperm.xlu1 %9381, %v12060_v45   ;;  %v1058_v4 = vmul.f32 %v1051_v22, %v12106_v32  ;;  %v1009_v22 = vld [vmem:[#allocation2 + $0x9] sm:$0xff] }
 0x878   : > { %9393 = vset.pattern.permute.xlu0 %v16621_v35  ;;  %v12089_v57 = vpop.permute.xlu1 %1403  ;;  %v994_v27 = vmul.f32 %v9689_v8, %v987_v29  ;;  %v1112_v8 = vmul.f32 %v11903_v18, %v11746_v42  ;;  %v1173_v42 = vmul.f32 %v11911_v30, %v11841_v41 }
 0x879   : > { %6761 = vperm.xlu0 %9393, %v12018_v16   ;;  %16661 = vst [vmem:[#allocation48_spill] sm:$0xff] %v12089_v57  ;;  %v16663_v57 = vld [vmem:[#allocation13_spill] sm:$0xff] }
 0x87a   : > { %v1049_v13 = vmul.f32 %v11898_v1, %v16663_v57  ;;  %v12122_v57 = vld [vmem:[#allocation2 + $0x18] sm:$0xff] }
 0x87b   : > { %5171 = vperm.xlu1 %9381, %v12030_v23   ;;  %16666 = vst [vmem:[#allocation13_spill] sm:$0xff] %v12122_v57 }
 0x87c   : > { %v12108_v49 = vpop.permute.xlu1 %1407 }
 0x87d   : > { %6773 = vperm.xlu0 %9393, %v12030_v23   ;;  %16664 = vst [vmem:[#allocation16_spill] sm:$0xff] %v12108_v49  ;;  %v1070_v49 = vld [vmem:[#allocation2 + $0xa] sm:$0xff] }
 0x87e   : > { %v1117_v3 = vmul.f32 %v1110_v37, %v1070_v49  ;;  %v1231_v37 = vmul.f32 %v11923_v46, %v11789_v31  ;;  %v1172_v31 = vmul.f32 %v11911_v30, %v11837_v10  ;;  %v9690_v10 = vld [vmem:[#allocation2 + $0x8] sm:$0xff] }
 0x87f   : > { %9382 = vset.pattern.permute.xlu1 %v16619_v44 }
 0x880   : > { %6402 = vperm.xlu1 %9382, %v12018_v16   ;;  %v12144_v41 = vpop.permute.xlu1 %1464 }
 0x881   : > { %9396 = vset.pattern.permute.xlu0 %v16625_v7  ;;  %v1008_v7 = vld [vmem:[#allocation2 + $0x1] sm:$0xff] }
 0x882   : > { %5011 = vperm.xlu0 %9396, %v12018_v16   ;;  %v1055_v60 = vmul.f32 %v1048_v24, %v1008_v7  ;;  %v995_v7 = vmul.f32 %v988_v62, %v941_v9  ;;  %v1109_v24 = vmul.f32 %v11903_v18, %v11716_v5  ;;  %v1171_v62 = vmul.f32 %v11911_v30, %v11887_v51  ;;  %v1130_v51 = vld [vmem:[#allocation2 + $0x7] sm:$0xff] }
 0x883   : > { %v1056_v5 = vmul.f32 %v1049_v13, %v1009_v22  ;;  %v12142_v13 = vld [vmem:[#allocation2 + $0xf] sm:$0xff] }
 0x884   : > { %6406 = vperm.xlu1 %9382, %v12023_v55   ;;  %v1062_v9 = vadd.f32 %v1055_v60, %v994_v27  ;;  %v1111_v27 = vmul.f32 %v11903_v18, %v11816_v33  ;;  %v12148_v60 = vld [vmem:[#allocation2 + $0x1f] sm:$0xff]  ;;  %v1234_v33 = vmul.f32 %v11923_v46, %v11811_v17 }
 0x885   : > { %v12166_v17 = vld [vmem:[%s16635_s30 + $0x6] ss:$0 sm:$0xff] }
 0x886   : > { %5016 = vperm.xlu0 %9396, %v12023_v55  }
 0x888   : > { %9383 = vset.pattern.permute.xlu1 %v16653_v63  ;;  %v990_v63 = vmul.f32 %v11892_v36, %v11760_v48  ;;  %v16665_v48 = vld [vmem:[#allocation15_spill] sm:$0xff] }
 0x889   : > { %5531 = vperm.xlu1 %9383, %v12030_v23   ;;  %v1050_v29 = vmul.f32 %v11898_v1, %v16665_v48  ;;  %v1170_v48 = vmul.f32 %v11911_v30, %v11828_v28  ;;  %v1069_v1 = vld [vmem:[#allocation2 + $0x2] sm:$0xff]  ;;  %v1063_v28 = vadd.f32 %v1056_v5, %v995_v7  ;;  %16667 = vst [vmem:[#allocation15_spill] sm:$0xff] %v12144_v41  ;;  %v1071_v5 = vld [vmem:[#allocation2 + $0x12] sm:$0xff] }
 0x88a   : > { %5026 = vperm.xlu0 %9396, %v12030_v23   ;;  %v1180_v7 = vmul.f32 %v1173_v42, %v12148_v60  ;;  %v9691_v42 = vld [vmem:[#allocation2 + $0x20] sm:$0xff] }
 0x88b   : > { %v1177_v49 = vmul.f32 %v1170_v48, %v1130_v51  ;;  %v1293_v51 = vmul.f32 %v11929_v25, %v11839_v50 }
 0x88d   : > { %9384 = vset.pattern.permute.xlu1 %v16621_v35  ;;  %v997_v35 = vmul.f32 %v990_v63, %v12122_v57  ;;  %v1116_v57 = vmul.f32 %v1109_v24, %v1069_v1  ;;  %v1178_v1 = vmul.f32 %v1171_v62, %v12142_v13  ;;  %v1124_v24 = vadd.f32 %v1117_v3, %v1063_v28 }
 0x88e   : > { %6757 = vperm.xlu1 %9384, %v12009_v0   ;;  %9401 = vset.pattern.permute.xlu0 %v16619_v44  ;;  %v12134_v44 = vld [vmem:[#allocation2 + $0x11] sm:$0xff]  ;;  %v1241_v3 = vmul.f32 %v9691_v42, %v1234_v33 }
 0x88f   : > { %6398 = vperm.xlu0 %9401, %v12009_v0   ;;  %v1065_v54 = vadd.f32 %v1058_v4, %v997_v35  ;;  %v1057_v63 = vmul.f32 %v1050_v29, %v12134_v44  ;;  %v1119_v35 = vmul.f32 %v1112_v8, %v1072_v6  ;;  %v996_v4 = vmul.f32 %v989_v38, %v12138_v15 }
 0x890   : > { %v1123_v29 = vadd.f32 %v1116_v57, %v1062_v9  ;;  %v1232_v6 = vmul.f32 %v11923_v46, %v11846_v52  ;;  %v1292_v8 = vmul.f32 %v11929_v25, %v11853_v47  ;;  %v1118_v38 = vmul.f32 %v1111_v27, %v1071_v5  ;;  %v16668_v52 = vld [vmem:[#allocation28_spill] sm:$0xff]  ;;  %v12179_v27 = vpop.permute.xlu1 %1468 }
 0x891   : > { %v1126_v41 = vadd.f32 %v1119_v35, %v1065_v54  ;;  %v1295_v54 = vmul.f32 %v11929_v25, %v11861_v14  ;;  %v12174_v47 = vmul.f32 %v11892_v36, %v16668_v52  ;;  %v1064_v57 = vadd.f32 %v1057_v63, %v996_v4  ;;  %v12183_v35 = vld [vmem:[#allocation2 + $0x17] sm:$0xff] }
 0x892   : > { %6765 = vperm.xlu1 %9384, %v12023_v55   ;;  %v1184_v48 = vadd.f32 %v1177_v49, %v1123_v29  ;;  %v1185_v62 = vadd.f32 %v1178_v1, %v1124_v24  ;;  %v1238_v9 = vmul.f32 %v9690_v10, %v1231_v37  ;;  %v1233_v14 = vmul.f32 %v11923_v46, %v11848_v12  ;;  %v9692_v4 = vld [vmem:[#allocation2 + $0x10] sm:$0xff]  ;;  %v12193_v12 = vld [vmem:[%s16635_s30 + $0x7] ss:$0 sm:$0xff]  ;;  %v9693_v24 = vld [vmem:[#allocation2 + $0x18] sm:$0xff] }
 0x893   : > { %6422 = vperm.xlu0 %9401, %v12045_v21   ;;  %v1187_v28 = vadd.f32 %v1180_v7, %v1126_v41  ;;  %v1353_v63 = vmul.f32 %v12166_v17, %v11850_v40  ;;  %v1239_v49 = vmul.f32 %v9692_v4, %v1232_v6  ;;  %v1299_v1 = vmul.f32 %v1292_v8, %v1009_v22  ;;  %v12199_v7 = vpop.permute.xlu0 %4269 }
 0x894   : > { %v1125_v37 = vadd.f32 %v1118_v38, %v1064_v57  ;;  %v1179_v33 = vmul.f32 %v1172_v31, %v12183_v35  ;;  %v1356_v41 = vmul.f32 %v12166_v17, %v11855_v59  ;;  %v1302_v50 = vmul.f32 %v1295_v54, %v11913_v53  ;;  %v1313_v59 = vld [vmem:[#allocation2 + $0xe] sm:$0xff]  ;;  %v12207_v38 = vpop.permute.xlu1 %4265  ;;  %v1316_v54 = vld [vmem:[#allocation2 + $0x26] sm:$0xff] }
 0x895   : > { %v1245_v29 = vadd.f32 %v1238_v9, %v1184_v48  ;;  %v1246_v40 = vadd.f32 %v1239_v49, %v1185_v62  ;;  %v1414_v22 = vmul.f32 %v12193_v12, %v11871_v34  ;;  %v1240_v5 = vmul.f32 %v9693_v24, %v1233_v14  ;;  %v16670_v49 = vld [vmem:[#allocation26_spill] sm:$0xff] }
 0x896   : > { %9385 = vset.pattern.permute.xlu1 %v16611_v19  ;;  %v1294_v6 = vmul.f32 %v11929_v25, %v11857_v43  ;;  %v1248_v53 = vadd.f32 %v1241_v3, %v1187_v28  ;;  %v1417_v8 = vmul.f32 %v12193_v12, %v11877_v56  ;;  %v1300_v34 = vmul.f32 %v1293_v51, %v12134_v44  ;;  %v12215_v43 = vld [vmem:[%s16635_s30 + $0x8] ss:$0 sm:$0xff]  ;;  %v1314_v28 = vld [vmem:[#allocation2 + $0x16] sm:$0xff] }
 0x897   : > { %5888 = vperm.xlu1 %9385, %v12060_v45   ;;  %9404 = vset.pattern.permute.xlu0 %v16614_v20  ;;  %v1360_v31 = vmul.f32 %v1353_v63, %v1313_v59  ;;  %v1306_v52 = vadd.f32 %v1299_v1, %v1245_v29  ;;  %v1354_v57 = vmul.f32 %v12166_v17, %v11865_v26  ;;  %v16674_v59 = vld [vmem:[#allocation12_spill] sm:$0xff] }
 0x898   : > { %6263 = vperm.xlu0 %9404, %v12023_v55   ;;  %v1186_v48 = vadd.f32 %v1179_v33, %v1125_v37  ;;  %v1363_v62 = vmul.f32 %v1356_v41, %v1316_v54  ;;  %v1309_v10 = vadd.f32 %v1302_v50, %v1248_v53  ;;  %v1355_v56 = vmul.f32 %v12166_v17, %v11867_v39  ;;  %v16669_v39 = vld [vmem:[#allocation14_spill] sm:$0xff]  ;;  %v12233_v37 = vpop.permute.xlu0 %4267  ;;  %v16672_v50 = vld [vmem:[#allocation19_spill] sm:$0xff]  ;;  %v12239_v29 = vpop.permute.xlu1 %4271 }
 0x899   : > { %v1415_v44 = vmul.f32 %v12193_v12, %v11863_v61  ;;  %v1307_v9 = vadd.f32 %v1300_v34, %v1246_v40  ;;  %v1421_v42 = vmul.f32 %v1414_v22, %v12142_v13  ;;  %v1301_v3 = vmul.f32 %v1294_v6, %v12106_v32  ;;  %v1315_v13 = vld [vmem:[#allocation2 + $0x1e] sm:$0xff] }
 0x89a   : > { %v1247_v26 = vadd.f32 %v1240_v5, %v1186_v48  ;;  %v1416_v14 = vmul.f32 %v12193_v12, %v11875_v11  ;;  %v1424_v51 = vmul.f32 %v1417_v8, %v11931_v58  ;;  %v1475_v61 = vmul.f32 %v12215_v43, %v16669_v39  ;;  %v16671_v32 = vld [vmem:[#allocation18_spill] sm:$0xff] }
 0x89b   : > { %9387 = vset.pattern.permute.xlu1 %v16614_v20  ;;  %v1361_v63 = vmul.f32 %v1354_v57, %v1314_v28  ;;  %v1367_v4 = vadd.f32 %v1360_v31, %v1306_v52  ;;  %v1476_v1 = vmul.f32 %v12215_v43, %v16670_v49  ;;  %v1478_v33 = vmul.f32 %v12215_v43, %v16671_v32  ;;  %v16673_v40 = vld [vmem:[#allocation30_spill] sm:$0xff]  ;;  %v945_v31 = vld [vmem:[#allocation2 + $0x28] sm:$0xff]  ;;  %v16675_v52 = vld [vmem:[#allocation13_spill] sm:$0xff] }
 0x89c   : > { %6255 = vperm.xlu1 %9387, %v12009_v0   ;;  %6271 = vperm.xlu0 %9404, %v12030_v23   ;;  %v1362_v41 = vmul.f32 %v1355_v56, %v1315_v13  ;;  %v1370_v11 = vadd.f32 %v1363_v62, %v1309_v10  ;;  %v1477_v58 = vmul.f32 %v12215_v43, %v16672_v50  ;;  %v16676_v48 = vld [vmem:[#allocation22_spill] sm:$0xff] }
 0x89d   : > { %v993_v22 = vmul.f32 %v11892_v36, %v16673_v40  ;;  %v1357_v24 = vmul.f32 %v12166_v17, %v16674_v59  ;;  %v1428_v5 = vadd.f32 %v1421_v42, %v1367_v4  ;;  %v1368_v6 = vadd.f32 %v1361_v63, %v1307_v9  ;;  %v16677_v62 = vld [vmem:[#allocation34_spill] sm:$0xff]  ;;  %v946_v63 = vld [vmem:[#allocation2 + $0x30] sm:$0x1]  ;;  %v12270_v40 = vld [vmem:[%s16684_s11] ss:$0 sm:$0xff] }
 0x89e   : > { %v1308_v53 = vadd.f32 %v1301_v3, %v1247_v26  ;;  %v1423_v8 = vmul.f32 %v1416_v14, %v12148_v60  ;;  %v1431_v34 = vadd.f32 %v1424_v51, %v1370_v11  ;;  %v1422_v54 = vmul.f32 %v1415_v44, %v12183_v35  ;;  %v16678_v26 = vld [vmem:[#allocation38_spill] sm:$0xff]  ;;  %v16679_v3 = vld [vmem:[#allocation39_spill] sm:$0xff]  ;;  %v16680_v51 = vld [vmem:[#allocation17_spill] sm:$0xff] }
 0x89f   : > { %v1482_v36 = vmul.f32 %v1475_v61, %v12138_v15  ;;  %v1483_v57 = vmul.f32 %v1476_v1, %v16675_v52  ;;  %v1053_v10 = vmul.f32 %v16677_v62, %v16676_v48  ;;  %v1485_v9 = vmul.f32 %v1478_v33, %v945_v31  ;;  %v16681_v44 = vld [vmem:[#allocation21_spill] sm:$0xff]  ;;  %v16683_v11 = vld [vmem:[#allocation31_spill] sm:$0xff] }
 0x8a0   : > { %6259 = vperm.xlu1 %9387, %v12018_v16   ;;  %9406 = vset.pattern.permute.xlu0 %v16624_v2  ;;  %v1369_v42 = vadd.f32 %v1362_v41, %v1308_v53  ;;  %v1484_v60 = vmul.f32 %v1477_v58, %v16678_v26  ;;  %v1054_v28 = vmul.f32 %v16677_v62, %v16679_v3  ;;  %v4298_v14 = vpop.permute.xlu1 %4297  ;;  %v16682_v4 = vld [vmem:[#allocation25_spill] sm:$0xff] }
 0x8a1   : > { %7116 = vperm.xlu0 %9406, %v12009_v0   ;;  %v4294_v56 = vpop.permute.xlu0 %4293  ;;  %v1418_v39 = vmul.f32 %v12193_v12, %v16680_v51  ;;  %v1429_v35 = vadd.f32 %v1422_v54, %v1368_v6  ;;  %v1114_v15 = vmul.f32 %v11903_v18, %v16681_v44  ;;  %v1489_v61 = vadd.f32 %v1482_v36, %v1428_v5  ;;  %v1317_v33 = vld [vmem:[#allocation2 + $0x2e] sm:$0xff] }
 0x8a2   : > { %v1430_v13 = vadd.f32 %v1423_v8, %v1369_v42  ;;  %v1115_v49 = vmul.f32 %v11903_v18, %v16682_v4  ;;  %v1492_v1 = vadd.f32 %v1485_v9, %v1431_v34  ;;  %v999_v32 = vmul.f32 %v12174_v47, %v945_v31  ;;  %v1014_v58 = vld [vmem:[#allocation2 + $0x31] sm:$0x1]  ;;  %v1075_v54 = vld [vmem:[#allocation2 + $0x32] sm:$0x1]  ;;  %v16686_v36 = vld [vmem:[#allocation36_spill] sm:$0xff] }
 0x8a3   : > { %v1490_v41 = vadd.f32 %v1483_v57, %v1429_v35  ;;  %v1060_v50 = vmul.f32 %v16683_v11, %v1053_v10  ;;  %v1000_v59 = vmul.f32 %v993_v22, %v946_v63  ;;  %v1364_v5 = vmul.f32 %v1357_v24, %v1317_v33  ;;  %v1378_v18 = vld [vmem:[#allocation2 + $0x2f] sm:$0xff]  ;;  %v16691_v63 = vld [vmem:[#allocation23_spill] sm:$0xff] }
 0x8a4   : > { %9388 = vset.pattern.permute.xlu1 %v16624_v2  ;;  %v1491_v6 = vadd.f32 %v1484_v60, %v1430_v13  ;;  %v1074_v53 = vld [vmem:[#allocation2 + $0x2a] sm:$0xff]  ;;  %v12272_v8 = vmul.f32 %v1418_v39, %v1378_v18  ;;  %v1175_v52 = vmul.f32 %v11911_v30, %v16686_v36  ;;  %v1122_v48 = vmul.f32 %v1115_v49, %v1075_v54  ;;  %v4296_v22 = vpop.permute.xlu1 %4295  ;;  %v16699_v54 = vld [vmem:[#allocation27_spill] sm:$0xff] }
 0x8a5   : > { %7120 = vperm.xlu1 %9388, %v12018_v16   ;;  %7132 = vperm.xlu0 %9406, %v12030_v23   ;;  %v16685_v34 = vld [vmem:[#allocation29_spill] sm:$0xff]  ;;  %v1121_v31 = vmul.f32 %v1114_v15, %v1074_v53  ;;  %v4300_v57 = vpop.permute.xlu0 %4299  ;;  %v16687_v24 = vmov 0   ;;  %v1503_v62 = vadd.f32 %v12270_v40, %v1489_v61  ;;  %v1506_v10 = vadd.f32 %v12270_v40, %v1492_v1  ;;  %v16689_v51 = vld [vmem:[#allocation32_spill] sm:$0xff]  ;;  %v16690_v15 = vld [vmem:[#allocation35_spill] sm:$0xff] }
 0x8a6   : > { %v12276_v47 = vmul.f32 %v12215_v43, %v16685_v34  ;;  %v1067_v9 = vadd.f32 %v1060_v50, %v999_v32  ;;  %v16688_v42 = vld [vmem:[#allocation41_spill] sm:$0xff]  ;;  %v1504_v60 = vadd.f32 %v12270_v40, %v1490_v41  ;;  %v12291_v39 = vadd.f32 %v1364_v5, %v16689_v51  ;;  %v16692_v1 = vld [vmem:[#allocation40_spill] sm:$0xff]  ;;  %v16698_v34 = vld [vmem:[#allocation42_spill] sm:$0xff] }
 0x8a7   : > { %v1236_v26 = vmul.f32 %v11923_v46, %v16688_v42  ;;  %v1182_v44 = vmul.f32 %v1378_v18, %v1175_v52  ;;  %v4345_v61 = vsel %vm4342_vm4, %v16690_v15, %v12199_v7  ;;  %v4343_v13 = vsel %vm4342_vm4, %v16691_v63, %v12207_v38  ;;  %v9694_v50 = vld [vmem:[#allocation2 + $0x30] sm:$0xff]  ;;  %v16695_v38 = vld [vmem:[#allocation43_spill] sm:$0xff]  ;;  %v16700_v42 = vld [vmem:[#allocation46_spill] sm:$0xff] }
 0x8a8   : > { %v1128_v35 = vadd.f32 %v1121_v31, %v1067_v9  ;;  %v1176_v32 = vmul.f32 %v11911_v30, %v16692_v1  ;;  %v4353_v33 = vsel %vm4350_vm5, %v4345_v61, %v4298_v14  ;;  %v4351_v41 = vsel %vm4350_vm5, %v4343_v13, %v4294_v56  ;;  %v16696_v30 = vld [vmem:[#allocation33_spill] sm:$0xff]  ;;  %v16697_v56 = vld [vmem:[#allocation44_spill] sm:$0xff]  ;;  %v1258_v13 = vld [vmem:[#allocation2 + $0x39] sm:$0x1] }
 0x8a9   : > { %7124 = vperm.xlu1 %9388, %v12023_v55   ;;  %7140 = vperm.xlu0 %9406, %v12045_v21   ;;  %v1061_v55 = vmul.f32 %v1054_v28, %v1014_v58  ;;  %v1505_v28 = vadd.f32 %v12270_v40, %v1491_v6  ;;  %v1243_v58 = vmul.f32 %v9694_v50, %v1236_v26  ;;  %v16693_v5 = vmov 1   ;;  %v1136_v9 = vld [vmem:[#allocation2 + $0x37] sm:$0x1] }
 0x8aa   : > { %v16694_v18 = vmov 8   ;;  %v1297_v6 = vmul.f32 %v11929_v25, %v16695_v38  ;;  %v4344_v14 = vsel %vm4342_vm4, %v16696_v30, %v12233_v37  ;;  %v1189_v53 = vadd.f32 %v1182_v44, %v1128_v35  ;;  %v1257_v44 = vld [vmem:[#allocation2 + $0x31] sm:$0xff] }
 0x8ab   : > { %v1068_v3 = vadd.f32 %v1061_v55, %v1000_v59  ;;  %v1237_v31 = vmul.f32 %v11923_v46, %v16698_v34  ;;  %v4346_v36 = vsel %vm4342_vm4, %v16699_v54, %v12239_v29  ;;  %v4352_v52 = vsel %vm4350_vm5, %v4344_v14, %v4296_v22  ;;  %v16701_v46 = vld [vmem:[#allocation45_spill] sm:$0xff] }
 0x8ac   : > { %v1358_v37 = vmul.f32 %v12166_v17, %v16700_v42  ;;  %v1183_v35 = vmul.f32 %v1176_v32, %v1136_v9  ;;  %v1298_v15 = vmul.f32 %v11929_v25, %v16701_v46  ;;  %v1250_v22 = vadd.f32 %v1243_v58, %v1189_v53  ;;  %v16704_v32 = vld [vmem:[#allocation47_spill] sm:$0xff]  ;;  %v1379_v34 = vld [vmem:[#allocation2 + $0x37] sm:$0xff] }
 0x8ad   : > { %9389 = vset.pattern.permute.xlu1 %v16687_v24  ;;  %9410 = vset.pattern.permute.xlu0 %v16687_v24  ;;  %v1129_v49 = vadd.f32 %v1122_v48, %v1068_v3  ;;  %v1304_v63 = vmul.f32 %v1297_v6, %v1257_v44  ;;  %v1359_v50 = vmul.f32 %v12166_v17, %v16704_v32 }
 0x8ae   : > { %5021 = vperm.xlu1 %9389, %v12060_v45   ;;  %5036 = vperm.xlu0 %9410, %v12045_v21   ;;  %v1305_v53 = vmul.f32 %v1298_v15, %v1258_v13  ;;  %v1432_v9 = vadd.f32 %v12272_v8, %v12291_v39 }
 0x8af   : > { %v1190_v14 = vadd.f32 %v1183_v35, %v1129_v49  ;;  %v1441_v35 = vld [vmem:[#allocation2 + $0x40] sm:$0x1] }
 0x8b0   : > { %v4326_v4 = vpop.permute.xlu0 %4325 }
 0x8b1   : > { %v4322_v11 = vpop.permute.xlu1 %4321  ;;  %v4361_v59 = vsel %vm4358_vm6, %v4353_v33, %v4326_v4  ;;  %v16702_v4 = vld [vmem:[#allocation48_spill] sm:$0xff] }
 0x8b2   : > { %v4359_v7 = vsel %vm4358_vm6, %v4351_v41, %v4322_v11  ;;  %9390 = vset.pattern.permute.xlu1 %v16693_v5  ;;  %9413 = vset.pattern.permute.xlu0 %v16694_v18  ;;  %v4368_v26 = vadd.f32 %v4361_v59, %v1505_v28  ;;  %v1419_v1 = vmul.f32 %v12193_v12, %v16702_v4  ;;  %v9695_v28 = vld [vmem:[#allocation2 + $0x38] sm:$0x1]  ;;  %v16705_v5 = vld [vmem:[#allocation15_spill] sm:$0xff]  ;;  %v16708_v4 = vld [vmem:[#allocation20_spill] sm:$0xff] }
 0x8b3   : > { %v4366_v55 = vadd.f32 %v4359_v7, %v1503_v62  ;;  %5175 = vperm.xlu1 %9390, %v16697_v56   ;;  %7515 = vperm.xlu0 %9413, %v16697_v56   ;;  %v4354_v62 = vsel %vm4350_vm5, %v4346_v36, %v4300_v57  ;;  %v16703_v57 = vmov 5   ;;  %v1244_v41 = vmul.f32 %v9695_v28, %v1237_v31  ;;  %v1318_v11 = vld [vmem:[#allocation2 + $0x36] sm:$0xff]  ;;  %v1319_v7 = vld [vmem:[#allocation2 + $0x3e] sm:$0x1]  ;;  %v16706_v31 = vld [vmem:[#allocation16_spill] sm:$0xff] }
 0x8b4   : > { %v4324_v48 = vpop.permute.xlu0 %4323  ;;  %v1365_v58 = vmul.f32 %v1358_v37, %v1318_v11  ;;  %v1480_v38 = vmul.f32 %v12215_v43, %v16705_v5  ;;  %v4375_v6 = vmax.f32 %v4368_v26, 0.0  ;;  %v1420_v54 = vmul.f32 %v12193_v12, %v16706_v31  ;;  %v16709_v28 = vld [vmem:[#allocation37_spill] sm:$0xff] }
 0x8b5   : > { %v4360_v3 = vsel %vm4358_vm6, %v4352_v52, %v4324_v48  ;;  %v4328_v51 = vpop.permute.xlu1 %4327  ;;  %v4373_v59 = vmax.f32 %v4366_v55, 0.0  ;;  %v1311_v55 = vadd.f32 %v1304_v63, %v1250_v22  ;;  %v1426_v36 = vmul.f32 %v1419_v1, %v1379_v34  ;;  %v1380_v52 = vld [vmem:[#allocation2 + $0x3f] sm:$0x1] }
 0x8b6   : > { %v4367_v61 = vadd.f32 %v4360_v3, %v1504_v60  ;;  %v4362_v29 = vsel %vm4358_vm6, %v4354_v62, %v4328_v51  ;;  %v1251_v42 = vadd.f32 %v1244_v41, %v1190_v14  ;;  %v1366_v37 = vmul.f32 %v1359_v50, %v1319_v7  ;;  %v1440_v62 = vld [vmem:[#allocation2 + $0x38] sm:$0xff]  ;;  %v1439_v3 = vld [vmem:[#allocation2 + $0x30] sm:$0xff] }
 0x8b7   : > { %v4369_v33 = vadd.f32 %v4362_v29, %v1506_v10  ;;  %9392 = vset.pattern.permute.xlu1 %v16703_v57  ;;  %v1481_v26 = vmul.f32 %v12215_v43, %v12179_v27  ;;  %v1372_v12 = vadd.f32 %v1365_v58, %v1311_v55  ;;  %v1487_v51 = vmul.f32 %v1480_v38, %v1440_v62  ;;  %v16711_v38 = vld [vmem:[#allocation24_spill] sm:$0xff]  ;;  %v9500_v62 = vld [vmem:[%s16140_s17 + $0x20] ss:$16 sps:$4 sm:$0xff]  }
 0x8b8   : > { %v4374_v25 = vmax.f32 %v4367_v61, 0.0  ;;  %v4274_v60 = vpop.permute.xlu0 %4273  ;;  %6410 = vperm.xlu1 %9392, %v12060_v45   ;;  %v1486_v46 = vmul.f32 %v12276_v47, %v1439_v3  ;;  %v1312_v15 = vadd.f32 %v1305_v53, %v1251_v42  ;;  %v1427_v8 = vmul.f32 %v1420_v54, %v1380_v52  ;;  %v9502_v42 = vld [vmem:[%s16140_s17 + $0x24] ss:$16 sps:$4 sm:$0xff]   ;;  %v9511_v3 = vld [vmem:[%s16140_s17 + $0x4c] ss:$16 sps:$4 sm:$0xff]  }
 0x8b9   : > { %v4376_v10 = vmax.f32 %v4369_v33, 0.0  ;;  %v4276_v30 = vpop.permute.xlu1 %4275  ;;  %v1433_v39 = vadd.f32 %v1426_v36, %v1372_v12  ;;  %v1488_v29 = vmul.f32 %v1481_v26, %v1441_v35  ;;  %v16707_v63 = vmov 2   ;;  %v9503_v26 = vld [vmem:[%s16140_s17 + $0x28] ss:$16 sps:$4 sm:$0xff]   ;;  %v9506_v35 = vld [vmem:[%s16140_s17 + $0x40] ss:$16 sps:$4 sm:$0xff]  }
 0x8ba   : > { %v4396_v17 = vpack.c.bf16 %v4374_v25, %v4373_v59  ;;  %v1373_v61 = vadd.f32 %v1366_v37, %v1312_v15  ;;  %v1493_v27 = vadd.f32 %v1486_v46, %v1432_v9  ;;  %v4347_v1 = vsel %vm4342_vm4, %v16708_v4, %v4274_v60  ;;  %v9497_v9 = vld [vmem:[%s16140_s17 + $0x8] ss:$16 sps:$4 sm:$0xff]   ;;  %v9505_v37 = vld [vmem:[%s16140_s17 + $0x2c] ss:$16 sps:$4 sm:$0xff]   ;;  %v9514_v46 = vld [vmem:[%s16140_s17 + $0x64] ss:$16 sps:$4 sm:$0xff]  }
 0x8bb   : > { %v4397_v48 = vpack.c.bf16 %v4376_v10, %v4375_v6  ;;  %v1494_v43 = vadd.f32 %v1487_v51, %v1433_v39  ;;  %v4348_v47 = vsel %vm4342_vm4, %v16709_v28, %v4276_v30  ;;  %v16710_v25 = vmov 6   ;;  %v9517_v15 = vld [vmem:[%s16140_s17 + $0x6c] ss:$16 sps:$4 sm:$0xff]   ;;  %v12440_v4 = vld [vmem:[%s16142_s19 + $0x3] ss:$8 sm:$0xf] }
 0x8bc   : > { %v4278_v49 = vpop.permute.xlu0 %4277  ;;  %6414 = vperm.xlu1 %9392, %v12030_v23   ;;  %9271 = vmatprep.mubr.bf16.mxu0 %v4396_v17  ;;  %v1434_v13 = vadd.f32 %v1427_v8, %v1373_v61  ;;  %v1507_v11 = vadd.f32 %v12270_v40, %v1493_v27  ;;  %v4578_v12 = vlaneseq  ;;  %v9512_v61 = vld [vmem:[%s16140_s17 + $0x60] ss:$16 sps:$4 sm:$0xff]  }
 0x8bd   : > { %v4302_v44 = vpop.permute.xlu1 %4301  ;;  %9272 = vmatmul.mubr.bf16.vlgmr.msra.gmra.mrb[56].mxu0 %v4397_v48  ;;  %v1508_v58 = vadd.f32 %v12270_v40, %v1494_v43  ;;  %v4349_v6 = vsel %vm4342_vm4, %v16711_v38, %v4278_v49  ;;  %v9494_v48 = vld [vmem:[%s16140_s17] ss:$16 sps:$4 sm:$0xff]   ;;  %v9508_v49 = vld [vmem:[%s16140_s17 + $0x44] ss:$16 sps:$4 sm:$0xff]  }
 0x8be   : > { %v1495_v33 = vadd.f32 %v1488_v29, %v1434_v13  ;;  %v4355_v41 = vsel %vm4350_vm5, %v4347_v1, %v4302_v44  ;;  %v9509_v44 = vld [vmem:[%s16140_s17 + $0x48] ss:$16 sps:$4 sm:$0xff]   ;;  %v4579_v8 = vshrl.u32 %v4578_v12, 7 }
 0x8bf   : > { %v9515_v29 = vld [vmem:[%s16140_s17 + $0x68] ss:$16 sps:$4 sm:$0xff]  }
 0x8c0   : > { %v4304_v22 = vpop.permute.xlu0 %4303  ;;  %9394 = vset.pattern.permute.xlu1 %v16707_v63  ;;  %v1509_v53 = vadd.f32 %v12270_v40, %v1495_v33  ;;  %v9496_v40 = vld [vmem:[%s16140_s17 + $0x4] ss:$16 sps:$4 sm:$0xff]   ;;  %v9523_v63 = vld [vmem:[%s16140_s17 + $0x8c] ss:$16 sps:$4 sm:$0xff]   ;;  %v12428_v27 = vsub.s32 0, %v4579_v8  ;;  %v12430_v43 = vsub.s32 2, %v4579_v8 }
 0x8c1   : > { %v4306_v23 = vpop.permute.xlu1 %4305  ;;  %5539 = vperm.xlu1 %9394, %v12045_v21   ;;  %v4356_v50 = vsel %vm4350_vm5, %v4348_v47, %v4304_v22  ;;  %4758 = vmatprep.subr.bf16.mxu1 %v9496_v40  ;;  %v9520_v22 = vld [vmem:[%s16140_s17 + $0x84] ss:$16 sps:$4 sm:$0xff]   ;;  %v12435_v13 = vsub.s32 3, %v4579_v8  ;;  %v9521_v33 = vld [vmem:[%s16140_s17 + $0x88] ss:$16 sps:$4 sm:$0xff]  }
 0x8c2   : > { %v4357_v30 = vsel %vm4350_vm5, %v4349_v6, %v4306_v23  ;;  %4759 = vmatpush1.bf16.msra.mxu1 %v9494_v48  ;;  %16714 = vst [vmem:[#allocation26_spill] sm:$0xff] %v12428_v27  ;;  %16715 = vst [vmem:[#allocation18_spill] sm:$0xff] %v12430_v43  ;;  %v9518_v23 = vld [vmem:[%s16140_s17 + $0x80] ss:$16 sps:$4 sm:$0xff]   ;;  %v12450_v28 = vrot.slane %v12440_v4, %v12428_v27  ;;  %v12454_v47 = vrot.slane %v12440_v4, %v12430_v43 }
 0x8c3   : > { %4760 = vmatprep.subr.bf16.mxu1 %v9502_v42  ;;  %16716 = vst [vmem:[#allocation19_spill] sm:$0xff] %v12435_v13 }
 0x8c4   : > { %v4330_v32 = vpop.permute.xlu0 %4329 }
 0x8c5   : > { %v4363_v59 = vsel %vm4358_vm6, %v4355_v41, %v4330_v32  ;;  %9395 = vset.pattern.permute.xlu1 %v16710_v25  ;;  %v4332_v7 = vpop.permute.xlu1 %4331  ;;  %v12458_v41 = vrot.slane %v12440_v4, %v12435_v13 }
 0x8c6   : > { %v4370_v5 = vadd.f32 %v4363_v59, %v1507_v11  ;;  %v4364_v60 = vsel %vm4358_vm6, %v4356_v50, %v4332_v7  ;;  %6769 = vperm.xlu1 %9395, %v12060_v45   ;;  %4761 = vmatpush1.bf16.msra.mxu1 %v9500_v62 }
 0x8c7   : > { %v4371_v10 = vadd.f32 %v4364_v60, %v1508_v58  ;;  %4762 = vmatprep.subr.bf16.mxu1 %v9508_v49 }
 0x8c8   : > { %v4377_v14 = vmax.f32 %v4370_v5, 0.0  ;;  %v4334_v34 = vpop.permute.xlu0 %4333 }
 0x8c9   : > { %v4378_v31 = vmax.f32 %v4371_v10, 0.0  ;;  %v4365_v54 = vsel %vm4358_vm6, %v4357_v30, %v4334_v34 }
 0x8ca   : > { %v4372_v17 = vadd.f32 %v4365_v54, %v1509_v53  ;;  %9397 = vset.pattern.permute.xlu1 %v16611_v19  ;;  %v9499_v19 = vld [vmem:[%s16140_s17 + $0xc] ss:$16 sps:$4 sm:$0xff]   ;;  %4763 = vmatpush1.bf16.msra.mxu1 %v9506_v35  ;;  %v8554_v53 = vld [vmem:[%s16142_s19 + $0x1] ss:$8 sm:$0xf] }
 0x8cb   : > { %5896 = vperm.xlu1 %9397, %v16697_v56   ;;  %v4398_v55 = vpack.c.bf16 %v4378_v31, %v4377_v14  ;;  %4829 = vmatprep.subr.bf16.mxu0 %v9499_v19  ;;  %v12561_v35 = vrot.slane %v8554_v53, %v12430_v43 }
 0x8cc   : > { %v4379_v36 = vmax.f32 %v4372_v17, 0.0  ;;  %4830 = vmatpush1.bf16.msra.mxu0 %v9497_v9  ;;  %4764 = vmatprep.subr.bf16.mxu1 %v9514_v46 }
 0x8cd   : > { %9275 = vmatprep.mubr.bf16.mxu0 %v4398_v55  ;;  %4831 = vmatprep.subr.bf16.mxu0 %v9505_v37  ;;  %v12512_v55 = vrot.slane %v8554_v53, %v12435_v13  ;;  %v12533_v37 = vsub.s32 1, %v4579_v8  ;;  %16735 = vst [vmem:[#allocation43_spill] sm:$0xff] %v12561_v35  ;;  %v8558_v8 = vld [vmem:[%s16142_s19 + $0x5] ss:$8 sm:$0xf] }
 0x8ce   : > { %v4399_v52 = vpack.c.bf16 %v4379_v36, %v4379_v36  ;;  %4765 = vmatpush1.bf16.msra.mxu1 %v9512_v61 }
 0x8cf   : > { %5900 = vperm.xlu1 %9397, %v12045_v21   ;;  %4766 = vmatprep.subr.bf16.mxu1 %v9520_v22  ;;  %16726 = vst [vmem:[#allocation25_spill] sm:$0xff] %v12512_v55  ;;  %16728 = vst [vmem:[#allocation29_spill] sm:$0xff] %v12533_v37  ;;  %v12558_v12 = vrot.slane %v8554_v53, %v12533_v37 }
 0x8d0   : > { %9276 = vmatmul.mubr.bf16.gmra.mrb[60].mxu0 %v4399_v52 }
 0x8d1   : > { %4861 = vmatprep.mubr.bf16.mxu0 %v16687_v24  ;;  %4832 = vmatpush1.bf16.msra.mxu0 %v9503_v26  ;;  %16734 = vst [vmem:[#allocation40_spill] sm:$0xff] %v12558_v12 }
 0x8d2   : > { %4833 = vmatprep.subr.bf16.mxu0 %v9511_v3  ;;  %4767 = vmatpush1.bf16.msra.mxu1 %v9518_v23  ;;  %v12555_v3 = vrot.slane %v8554_v53, %v12428_v27 }
 0x8d3   : > { %9398 = vset.pattern.permute.xlu1 %v16614_v20 }
 0x8d4   : > { %6267 = vperm.xlu1 %9398, %v12060_v45   ;;  %16733 = vst [vmem:[#allocation23_spill] sm:$0xff] %v12555_v3 }
 0x8d5   : > { %4834 = vmatpush1.bf16.msra.mxu0 %v9509_v44 }
 0x8d6   : > { %v12398_v51 = vpop.permute.xlu1 %5155  ;;  %4835 = vmatprep.subr.bf16.mxu0 %v9517_v15 }
 0x8d7   : > { %16712 = vst [vmem:[#allocation28_spill] sm:$0xff] %v12398_v51 }
 0x8d8   : > { %9399 = vset.pattern.permute.xlu1 %v16624_v2 }
 0x8d9   : > { %7128 = vperm.xlu1 %9399, %v12060_v45   ;;  %4836 = vmatpush1.bf16.msra.mxu0 %v9515_v29  ;;  %v12460_v11 = vpop.permute.xlu0 %5880 }
 0x8da   : > { %v12413_v39 = vpop.permute.xlu1 %5163  ;;  %4837 = vmatprep.subr.bf16.mxu0 %v9523_v63  ;;  %16718 = vst [vmem:[#allocation12_spill] sm:$0xff] %v12460_v11  ;;  %v5928_v50 = vmul.f32 %v12450_v28, %v12460_v11  ;;  %v5930_v59 = vmul.f32 %v12454_v47, %v12460_v11  ;;  %v5931_v58 = vmul.f32 %v12458_v41, %v12460_v11 }
 0x8db   : > { %16713 = vst [vmem:[#allocation14_spill] sm:$0xff] %v12413_v39  ;;  %v12537_v62 = vmul.f32 %v12512_v55, %v12413_v39 }
 0x8dc   : > { %v5984_v38 = vrot.slane %v5928_v50, 1  ;;  %v5988_v6 = vrot.slane %v5930_v59, 1  ;;  %v5990_v10 = vrot.slane %v5931_v58, 1  ;;  %v12589_v50 = vrot.slane %v8558_v8, %v12533_v37 }
 0x8dd   : > { %9400 = vset.pattern.permute.xlu1 %v16694_v18  ;;  %4838 = vmatpush1.bf16.msra.mxu0 %v9521_v33  ;;  %16729 = vst [vmem:[#allocation36_spill] sm:$0xff] %v12537_v62  ;;  %v16231_v46 = vrot.slane %v12537_v62, 7  ;;  %v12586_v33 = vrot.slane %v8558_v8, %v12428_v27  ;;  %v12592_v59 = vrot.slane %v8558_v8, %v12430_v43 }
 0x8de   : > { %7495 = vperm.xlu1 %9400, %v12009_v0  }
 0x8df   : > { %v12442_v1 = vpop.permute.xlu1 %5515  ;;  %16740 = vst [vmem:[#allocation46_spill] sm:$0xff] %v12592_v59 }
 0x8e0   : > { %16717 = vst [vmem:[#allocation30_spill] sm:$0xff] %v12442_v1 }
 0x8e2   : > { %7499 = vperm.xlu1 %9400, %v12018_v16  }
 0x8e3   : > { %v12462_v32 = vpop.permute.xlu1 %5523 }
 0x8e6   : > { %9402 = vset.pattern.permute.xlu1 %v16687_v24 }
 0x8e7   : > { %5031 = vperm.xlu1 %9402, %v16697_v56  }
 0x8e8   : > { %v12472_v7 = vpop.permute.xlu1 %5876 }
 0x8e9   : > { %16719 = vst [vmem:[#allocation13_spill] sm:$0xff] %v12472_v7  ;;  %v12476_v5 = vmul.f32 %v12450_v28, %v12472_v7  ;;  %v12480_v0 = vmul.f32 %v12454_v47, %v12472_v7  ;;  %v12484_v60 = vmul.f32 %v12458_v41, %v12472_v7 }
 0x8eb   : > { %16720 = vst [vmem:[#allocation22_spill] sm:$0xff] %v12476_v5  ;;  %16721 = vst [vmem:[#allocation34_spill] sm:$0xff] %v12480_v0  ;;  %v16234_v16 = vrot.slane %v12476_v5, 1  ;;  %v16233_v30 = vrot.slane %v12480_v0, 1  ;;  %v16232_v14 = vrot.slane %v12484_v60, 1  ;;  %9403 = vset.pattern.permute.xlu1 %v16703_v57 }
 0x8ec   : > { %16722 = vst [vmem:[#allocation38_spill] sm:$0xff] %v12484_v60  ;;  %v12493_v34 = vpop.permute.xlu1 %5884  ;;  %6418 = vperm.xlu1 %9403, %v16697_v56  }
 0x8ed   : > { %v12499_v31 = vsel %vm5395_vm7, %v16234_v16, %v5984_v38  ;;  %v12504_v54 = vsel %vm5395_vm7, %v16233_v30, %v5988_v6  ;;  %v12509_v17 = vsel %vm5395_vm7, %v16232_v14, %v5990_v10  ;;  %v12516_v36 = vmul.f32 %v12450_v28, %v12493_v34 }
 0x8ee   : > { %16723 = vst [vmem:[#allocation39_spill] sm:$0xff] %v12499_v31  ;;  %16724 = vst [vmem:[#allocation17_spill] sm:$0xff] %v12504_v54  ;;  %v12520_v52 = vmul.f32 %v12454_v47, %v12493_v34  ;;  %v12524_v48 = vmul.f32 %v12458_v41, %v12493_v34 }
 0x8ef   : > { %16725 = vst [vmem:[#allocation21_spill] sm:$0xff] %v12509_v17  ;;  %v16237_v40 = vrot.slane %v12516_v36, 1 }
 0x8f0   : > { %v16236_v9 = vrot.slane %v12520_v52, 1  ;;  %v16235_v19 = vrot.slane %v12524_v48, 1  ;;  %9405 = vset.pattern.permute.xlu1 %v16710_v25 }
 0x8f1   : > { %v12530_v42 = vpop.permute.xlu1 %5006  ;;  %v12542_v57 = vsel %vm5395_vm7, %v5984_v38, %v16237_v40  ;;  %6777 = vperm.xlu1 %9405, %v16697_v56  }
 0x8f2   : > { %16727 = vst [vmem:[#allocation31_spill] sm:$0xff] %v12530_v42  ;;  %16730 = vst [vmem:[#allocation41_spill] sm:$0xff] %v12542_v57  ;;  %v12547_v26 = vsel %vm5395_vm7, %v5988_v6, %v16236_v9  ;;  %v12552_v49 = vsel %vm5395_vm7, %v5990_v10, %v16235_v19 }
 0x8f3   : > { %16731 = vst [vmem:[#allocation32_spill] sm:$0xff] %v12547_v26  ;;  %16732 = vst [vmem:[#allocation35_spill] sm:$0xff] %v12552_v49 }
 0x8f5   : > { %6781 = vperm.xlu1 %9405, %v12045_v21  }
 0x8f6   : > { %v5168_v44 = vpop.permute.xlu1 %5167 }
 0x8f7   : > { %v5218_v15 = vmul.f32 %v12512_v55, %v5168_v44  ;;  %v12571_v61 = vmul.f32 %v12555_v3, %v5168_v44  ;;  %v12574_v29 = vmul.f32 %v12558_v12, %v5168_v44  ;;  %v12577_v22 = vmul.f32 %v12561_v35, %v5168_v44 }
 0x8f9   : > { %16736 = vst [vmem:[#allocation33_spill] sm:$0xff] %v12571_v61  ;;  %16737 = vst [vmem:[#allocation44_spill] sm:$0xff] %v12574_v29  ;;  %v5285_v25 = vrot.slane %v5218_v15, 7  ;;  %v16238_v10 = vrot.slane %v12571_v61, 7  ;;  %v16240_v53 = vrot.slane %v12574_v29, 7  ;;  %v16242_v44 = vrot.slane %v12577_v22, 7  ;;  %9407 = vset.pattern.permute.xlu1 %v16614_v20 }
 0x8fa   : > { %16738 = vst [vmem:[#allocation42_spill] sm:$0xff] %v12577_v22  ;;  %v5172_v63 = vpop.permute.xlu1 %5171  ;;  %v12610_v15 = vrot.slane %v8558_v8, %v12435_v13  ;;  %6275 = vperm.xlu1 %9407, %v16697_v56  }
 0x8fb   : > { %v12583_v23 = vsel %vm3683_vm1, %v16231_v46, %v5285_v25  ;;  %v12595_v58 = vmul.f32 %v12555_v3, %v5172_v63  ;;  %v12598_v38 = vmul.f32 %v12558_v12, %v5172_v63  ;;  %v12601_v21 = vmul.f32 %v12561_v35, %v5172_v63 }
 0x8fc   : > { %16739 = vst [vmem:[#allocation27_spill] sm:$0xff] %v12583_v23  ;;  %v12604_v6 = vmul.f32 %v12512_v55, %v5172_v63  ;;  %16741 = vst [vmem:[#allocation45_spill] sm:$0xff] %v12610_v15 }
 0x8fd   : > { %v16239_v46 = vrot.slane %v12595_v58, 7  ;;  %v16241_v14 = vrot.slane %v12598_v38, 7  ;;  %v16243_v30 = vrot.slane %v12601_v21, 7  ;;  %v16790_v42 = vrot.slane %v12601_v21, 7 }
 0x8fe   : > { %v16244_v16 = vrot.slane %v12604_v6, 7  ;;  %9408 = vset.pattern.permute.xlu1 %v16624_v2 }
 0x8ff   : > { %v6403_v63 = vpop.permute.xlu1 %6402  ;;  %v12623_v8 = vsel %vm3683_vm1, %v16238_v10, %v16239_v46  ;;  %v12630_v19 = vsel %vm3683_vm1, %v16240_v53, %v16241_v14  ;;  %v12637_v9 = vsel %vm3683_vm1, %v16242_v44, %v16243_v30  ;;  %7136 = vperm.xlu1 %9408, %v16697_v56  }
 0x900   : > { %16742 = vst [vmem:[#allocation48_spill] sm:$0xff] %v12623_v8  ;;  %16743 = vst [vmem:[#allocation47_spill] sm:$0xff] %v12630_v19  ;;  %v12642_v40 = vsel %vm3683_vm1, %v5285_v25, %v16244_v16  ;;  %v12645_v10 = vmul.f32 %v12586_v33, %v6403_v63  ;;  %v12648_v46 = vmul.f32 %v12589_v50, %v6403_v63 }
 0x901   : > { %16744 = vst [vmem:[#allocation15_spill] sm:$0xff] %v12637_v9  ;;  %16745 = vst [vmem:[#allocation16_spill] sm:$0xff] %v12642_v40  ;;  %v12651_v53 = vmul.f32 %v12592_v59, %v6403_v63  ;;  %v12654_v14 = vmul.f32 %v12610_v15, %v6403_v63 }
 0x902   : > { %16746 = vst [vmem:[#allocation20_spill] sm:$0xff] %v12645_v10  ;;  %16747 = vst [vmem:[#allocation37_spill] sm:$0xff] %v12648_v46  ;;  %v16750_v23 = vrot.slane %v12645_v10, 7 }
 0x903   : > { %16748 = vst [vmem:[#allocation24_spill] sm:$0xff] %v12651_v53  ;;  %16749 = vst [vmem:[#allocation49_spill] sm:$0xff] %v12654_v14  ;;  %v6407_v16 = vpop.permute.xlu1 %6406  ;;  %v16754_v26 = vrot.slane %v12651_v53, 7  ;;  %v16757_v49 = vrot.slane %v12654_v14, 7  ;;  %9409 = vset.pattern.permute.xlu1 %v16694_v18  ;;  %v9698_v53 = vld [vmem:[%s16132_s9 + $0x20] sm:$0xff]  ;;  %v16768_v14 = vrot.slane %v12520_v52, 1 }
 0x904   : > { %v12662_v8 = vmul.f32 %v12586_v33, %v6407_v16  ;;  %v12665_v40 = vmul.f32 %v12589_v50, %v6407_v16  ;;  %v12668_v63 = vmul.f32 %v12592_v59, %v6407_v16  ;;  %v12671_v44 = vmul.f32 %v12610_v15, %v6407_v16  ;;  %v9538_v52 = vld [vmem:[%s16140_s17 + $0xe4] ss:$16 sps:$4 sm:$0xff]  }
 0x905   : > { %v16752_v16 = vrot.slane %v12648_v46, 7 }
 0x906   : > { %v16245_v9 = vrot.slane %v12662_v8, 7  ;;  %v16246_v25 = vrot.slane %v12665_v40, 7  ;;  %v16247_v2 = vrot.slane %v12668_v63, 7  ;;  %v16756_v54 = vrot.slane %v12671_v44, 7 }
 0x907   : > { %v16798_v7 = vrot.slane %v12662_v8, 7  ;;  %v16804_v0 = vrot.slane %v12671_v44, 7 }
 0x908   : > { %v12683_v19 = vsel %vm3683_vm1, %v16750_v23, %v16245_v9  ;;  %v12690_v56 = vsel %vm3683_vm1, %v16752_v16, %v16246_v25  ;;  %v12697_v30 = vsel %vm3683_vm1, %v16754_v26, %v16247_v2  ;;  %v12704_v23 = vsel %vm3683_vm1, %v16757_v49, %v16756_v54  ;;  %v12706_v9 = vpop.permute.xlu1 %5531  ;;  %v9696_v16 = vld [vmem:[%s16132_s9 + $0x10] sm:$0xff] }
 0x909   : > { %16751 = vst [vmem:[#allocation50_spill] sm:$0xff] %v12683_v19  ;;  %16753 = vst [vmem:[#allocation51_spill] sm:$0xff] %v12690_v56  ;;  %7503 = vperm.xlu1 %9409, %v9696_v16   ;;  %v12720_v54 = vrot.slane %v12440_v4, %v12533_v37  ;;  %v9697_v49 = vld [vmem:[%s16132_s9 + $0x30] sm:$0x1]  ;;  %v9527_v4 = vld [vmem:[%s16140_s17 + $0xa8] ss:$16 sps:$4 sm:$0xff]  }
 0x90a   : > { %16755 = vst [vmem:[#allocation52_spill] sm:$0xff] %v12697_v30  ;;  %16758 = vst [vmem:[#allocation53_spill] sm:$0xff] %v12704_v23  ;;  %v9529_v30 = vld [vmem:[%s16140_s17 + $0xac] ss:$16 sps:$4 sm:$0xff]  }
 0x90b   : > { %v12727_v16 = vmul.f32 %v12720_v54, %v12493_v34  ;;  %4839 = vmatprep.subr.bf16.mxu0 %v9529_v30  ;;  %v9532_v30 = vld [vmem:[%s16140_s17 + $0xc4] ss:$16 sps:$4 sm:$0xff]  }
 0x90c   : > { %4840 = vmatpush1.bf16.msra.mxu0 %v9527_v4 }
 0x90d   : > { %v12712_v25 = vpop.permute.xlu1 %6757  ;;  %7507 = vperm.xlu1 %9409, %v12060_v45   ;;  %16760 = vst [vmem:[#allocation55_spill] sm:$0xff] %v12727_v16  ;;  %v9524_v45 = vld [vmem:[%s16140_s17 + $0xa0] ss:$16 sps:$4 sm:$0xff]   ;;  %v16255_v56 = vrot.slane %v12727_v16, 1 }
 0x90e   : > { %16759 = vst [vmem:[#allocation54_spill] sm:$0xff] %v12712_v25 }
 0x911   : > { %v12715_v26 = vpop.permute.xlu1 %6765  ;;  %9411 = vset.pattern.permute.xlu1 %v16614_v20  ;;  %v9526_v20 = vld [vmem:[%s16140_s17 + $0xa4] ss:$16 sps:$4 sm:$0xff]  }
 0x912   : > { %6279 = vperm.xlu1 %9411, %v9697_v49   ;;  %4768 = vmatprep.subr.bf16.mxu1 %v9526_v20  ;;  %v16765_v20 = vrot.slane %v12516_v36, 1  ;;  %v16771_v36 = vrot.slane %v12524_v48, 1  ;;  %v9536_v48 = vld [vmem:[%s16140_s17 + $0xe0] ss:$16 sps:$4 sm:$0xff]  }
 0x913   : > { %4769 = vmatpush1.bf16.msra.mxu1 %v9524_v45  ;;  %v9533_v45 = vld [vmem:[%s16140_s17 + $0xc8] ss:$16 sps:$4 sm:$0xff]  }
 0x914   : > { %4770 = vmatprep.subr.bf16.mxu1 %v9532_v30 }
 0x916   : > { %v5889_v2 = vpop.permute.xlu1 %5888  ;;  %9412 = vset.pattern.permute.xlu1 %v16694_v18 }
 0x917   : > { %v12743_v34 = vmul.f32 %v12450_v28, %v5889_v2  ;;  %v12746_v19 = vmul.f32 %v12720_v54, %v5889_v2  ;;  %v12749_v23 = vmul.f32 %v12454_v47, %v5889_v2  ;;  %v12752_v17 = vmul.f32 %v12458_v41, %v5889_v2  ;;  %7511 = vperm.xlu1 %9412, %v9698_v53   ;;  %v9530_v2 = vld [vmem:[%s16140_s17 + $0xc0] ss:$16 sps:$4 sm:$0xff]  }
 0x918   : > { %4771 = vmatpush1.bf16.msra.mxu1 %v9530_v2  ;;  %v8555_v2 = vld [vmem:[%s16142_s19 + $0x2] ss:$8 sm:$0xf] }
 0x919   : > { %16761 = vst [vmem:[#allocation56_spill] sm:$0xff] %v12743_v34  ;;  %16762 = vst [vmem:[#allocation57_spill] sm:$0xff] %v12746_v19  ;;  %v16252_v57 = vrot.slane %v12743_v34, 1  ;;  %v16253_v18 = vrot.slane %v12746_v19, 1  ;;  %v16254_v31 = vrot.slane %v12749_v23, 1  ;;  %v16770_v10 = vrot.slane %v12752_v17, 1  ;;  %4772 = vmatprep.subr.bf16.mxu1 %v9538_v52 }
 0x91a   : > { %16763 = vst [vmem:[#allocation58_spill] sm:$0xff] %v12749_v23  ;;  %16764 = vst [vmem:[#allocation59_spill] sm:$0xff] %v12752_v17  ;;  %v8559_v52 = vld [vmem:[%s16142_s19 + $0x6] ss:$8 sm:$0xf]  ;;  %v16784_v23 = vrot.slane %v12595_v58, 7 }
 0x91b   : > { %v12776_v4 = vsel %vm5395_vm7, %v16765_v20, %v16252_v57  ;;  %v12783_v53 = vsel %vm5395_vm7, %v16255_v56, %v16253_v18  ;;  %v12790_v46 = vsel %vm5395_vm7, %v16768_v14, %v16254_v31  ;;  %v12797_v20 = vsel %vm5395_vm7, %v16771_v36, %v16770_v10  ;;  %v12799_v57 = vpop.permute.xlu1 %6255  ;;  %v9535_v18 = vld [vmem:[%s16140_s17 + $0xcc] ss:$16 sps:$4 sm:$0xff]   ;;  %v9539_v10 = vld [vmem:[%s16140_s17 + $0xe8] ss:$16 sps:$4 sm:$0xff]   ;;  %7519 = vperm.xlu1 %9412, %v9697_v49  }
 0x91c   : > { %16766 = vst [vmem:[#allocation60_spill] sm:$0xff] %v12776_v4  ;;  %16767 = vst [vmem:[#allocation61_spill] sm:$0xff] %v12783_v53  ;;  %v9541_v14 = vld [vmem:[%s16140_s17 + $0xec] ss:$16 sps:$4 sm:$0xff]   ;;  %4841 = vmatprep.subr.bf16.mxu0 %v9535_v18  ;;  %4773 = vmatpush1.bf16.msra.mxu1 %v9536_v48  ;;  %v12828_v31 = vrot.slane %v8555_v2, %v12428_v27  ;;  %v12835_v49 = vmul.f32 %v12555_v3, %v12398_v51  ;;  %v16787_v34 = vrot.slane %v12598_v38, 7 }
 0x91d   : > { %16769 = vst [vmem:[#allocation62_spill] sm:$0xff] %v12790_v46  ;;  %16772 = vst [vmem:[#allocation63_spill] sm:$0xff] %v12797_v20  ;;  %4842 = vmatpush1.bf16.msra.mxu0 %v9533_v45  ;;  %v12841_v48 = vrot.slane %v8555_v2, %v12430_v43  ;;  %v12846_v46 = vpop.permute.xlu0 %5892  ;;  %v12884_v22 = vrot.slane %v8559_v52, %v12430_v43  ;;  %v12887_v29 = vrot.slane %v8559_v52, %v12435_v13 }
 0x91e   : > { %16773 = vst [vmem:[#allocation64_spill] sm:$0xff] %v12799_v57  ;;  %4843 = vmatprep.subr.bf16.mxu0 %v9541_v14  ;;  %16777 = vst [vmem:[#allocation68_spill] sm:$0xff] %v12835_v49  ;;  %v12838_v14 = vrot.slane %v8555_v2, %v12533_v37  ;;  %v12872_v57 = vrot.slane %v8559_v52, %v12533_v37  ;;  %v16793_v58 = vrot.slane %v12604_v6, 7  ;;  %v16806_v44 = vrot.slane %v12835_v49, 7 }
 0x91f   : > { %v12816_v36 = vpop.permute.xlu1 %6259  ;;  %16778 = vst [vmem:[#allocation69_spill] sm:$0xff] %v12846_v46  ;;  %16783 = vst [vmem:[#allocation74_spill] sm:$0xff] %v12884_v22 }
 0x920   : > { %16774 = vst [vmem:[#allocation65_spill] sm:$0xff] %v12816_v36  ;;  %v12869_v36 = vrot.slane %v8559_v52, %v12428_v27 }
 0x921   : > { %4844 = vmatpush1.bf16.msra.mxu0 %v9539_v10  ;;  %v12844_v10 = vrot.slane %v8555_v2, %v12435_v13  ;;  %v12866_v2 = vmul.f32 %v12828_v31, %v12442_v1 }
 0x922   : > { %16781 = vst [vmem:[#allocation72_spill] sm:$0xff] %v12869_v36 }
 0x923   : > { %16780 = vst [vmem:[#allocation71_spill] sm:$0xff] %v12866_v2 }
 0x924   : > { %v12818_v30 = vpop.permute.xlu1 %7120 }
 0x925   : > { %16775 = vst [vmem:[#allocation66_spill] sm:$0xff] %v12818_v30  ;;  %v12881_v30 = vmul.f32 %v12841_v48, %v12442_v1 }
 0x927   : > { %16782 = vst [vmem:[#allocation73_spill] sm:$0xff] %v12881_v30 }
 0x928   : > { %v12820_v18 = vpop.permute.xlu1 %7124 }
 0x92d   : > { %v12825_v45 = vpop.permute.xlu1 %5021 }
 0x92e   : > { %16776 = vst [vmem:[#allocation67_spill] sm:$0xff] %v12825_v45  ;;  %v12862_v45 = vmul.f32 %v12561_v35, %v12398_v51 }
 0x930   : > { %16779 = vst [vmem:[#allocation70_spill] sm:$0xff] %v12862_v45 }
 0x932   : > { %v5176_v56 = vpop.permute.xlu1 %5175 }
 0x933   : > { %v12849_v4 = vmul.f32 %v12555_v3, %v5176_v56  ;;  %v12852_v20 = vmul.f32 %v12558_v12, %v5176_v56  ;;  %v12855_v53 = vmul.f32 %v12561_v35, %v5176_v56  ;;  %v12858_v62 = vmul.f32 %v12512_v55, %v5176_v56 }
 0x935   : > { %v16271_v17 = vrot.slane %v12849_v4, 7  ;;  %v16786_v19 = vrot.slane %v12852_v20, 7  ;;  %v16789_v16 = vrot.slane %v12855_v53, 7  ;;  %v16792_v60 = vrot.slane %v12858_v62, 7 }
 0x937   : > { %v12894_v56 = vsel %vm3683_vm1, %v16784_v23, %v16271_v17  ;;  %v12901_v61 = vsel %vm3683_vm1, %v16787_v34, %v16786_v19  ;;  %v12908_v52 = vsel %vm3683_vm1, %v16790_v42, %v16789_v16  ;;  %v12915_v23 = vsel %vm3683_vm1, %v16793_v58, %v16792_v60  ;;  %v6411_v17 = vpop.permute.xlu1 %6410 }
 0x938   : > { %16785 = vst [vmem:[#allocation75_spill] sm:$0xff] %v12894_v56  ;;  %16788 = vst [vmem:[#allocation76_spill] sm:$0xff] %v12901_v61  ;;  %v12917_v56 = vpop.permute.xlu0 %5159  ;;  %v6458_v19 = vmul.f32 %v12586_v33, %v6411_v17  ;;  %v6459_v38 = vmul.f32 %v12589_v50, %v6411_v17  ;;  %v6460_v34 = vmul.f32 %v12592_v59, %v6411_v17 }
 0x939   : > { %16791 = vst [vmem:[#allocation77_spill] sm:$0xff] %v12908_v52  ;;  %16794 = vst [vmem:[#allocation78_spill] sm:$0xff] %v12915_v23  ;;  %v6461_v21 = vmul.f32 %v12610_v15, %v6411_v17  ;;  %v12927_v6 = vmul.f32 %v12555_v3, %v12917_v56  ;;  %v12931_v60 = vmul.f32 %v12561_v35, %v12917_v56 }
 0x93a   : > { %16795 = vst [vmem:[#allocation79_spill] sm:$0xff] %v12917_v56  ;;  %v6522_v58 = vrot.slane %v6458_v19, 7  ;;  %v6524_v23 = vrot.slane %v6459_v38, 7  ;;  %v6526_v52 = vrot.slane %v6460_v34, 7  ;;  %v12936_v17 = vmul.f32 %v12828_v31, %v12462_v32 }
 0x93b   : > { %16796 = vst [vmem:[#allocation80_spill] sm:$0xff] %v12927_v6  ;;  %16797 = vst [vmem:[#allocation81_spill] sm:$0xff] %v12931_v60  ;;  %v6528_v61 = vrot.slane %v6461_v21, 7  ;;  %v6415_v42 = vpop.permute.xlu1 %6414  ;;  %v16281_v16 = vrot.slane %v12927_v6, 7  ;;  %v16800_v19 = vrot.slane %v12665_v40, 7  ;;  %v16802_v34 = vrot.slane %v12668_v63, 7 }
 0x93c   : > { %v5180_v46 = vpop.permute.xlu0 %5179  ;;  %v12943_v56 = vsel %vm3683_vm1, %v16798_v7, %v6522_v58  ;;  %v12961_v8 = vmul.f32 %v12586_v33, %v6415_v42  ;;  %v12964_v7 = vmul.f32 %v12589_v50, %v6415_v42  ;;  %v12967_v40 = vmul.f32 %v12592_v59, %v6415_v42 }
 0x93d   : > { %16799 = vst [vmem:[#allocation82_spill] sm:$0xff] %v12943_v56  ;;  %v12948_v38 = vsel %vm3683_vm1, %v16800_v19, %v6524_v23  ;;  %v12953_v21 = vsel %vm3683_vm1, %v16802_v34, %v6526_v52  ;;  %v12958_v5 = vsel %vm3683_vm1, %v16804_v0, %v6528_v61  ;;  %v12970_v19 = vmul.f32 %v12610_v15, %v6415_v42 }
 0x93e   : > { %16801 = vst [vmem:[#allocation83_spill] sm:$0xff] %v12948_v38  ;;  %16803 = vst [vmem:[#allocation84_spill] sm:$0xff] %v12953_v21  ;;  %v12974_v63 = vmul.f32 %v12838_v14, %v12462_v32  ;;  %v12978_v0 = vmul.f32 %v12841_v48, %v12462_v32  ;;  %v12985_v34 = vsel %vm3683_vm1, %v16806_v44, %v16281_v16  ;;  %v16808_v21 = vrot.slane %v12931_v60, 7 }
 0x93f   : > { %16805 = vst [vmem:[#allocation85_spill] sm:$0xff] %v12958_v5  ;;  %16807 = vst [vmem:[#allocation86_spill] sm:$0xff] %v12985_v34  ;;  %v16809_v42 = vrot.slane %v12862_v45, 7  ;;  %v16285_v5 = vrot.slane %v12961_v8, 7  ;;  %v16286_v38 = vrot.slane %v12964_v7, 7  ;;  %v13000_v44 = vmul.f32 %v12869_v36, %v12715_v26 }
 0x940   : > { %v13004_v16 = vmul.f32 %v12872_v57, %v12715_v26  ;;  %v5540_v39 = vpop.permute.xlu1 %5539  ;;  %v16815_v34 = vrot.slane %v12967_v40, 7  ;;  %v16817_v45 = vrot.slane %v12970_v19, 7  ;;  %v13034_v49 = vpop.permute.xlu0 %5519  ;;  %v16848_v51 = vrot.slane %v12936_v17, 6 }
 0x941   : > { %v12992_v56 = vsel %vm3683_vm1, %v16809_v42, %v16808_v21  ;;  %v13008_v21 = vmul.f32 %v12884_v22, %v12715_v26  ;;  %v13012_v42 = vmul.f32 %v12887_v29, %v12715_v26  ;;  %v13017_v6 = vsel %vm3683_vm1, %v6522_v58, %v16285_v5  ;;  %16819 = vst [vmem:[#allocation94_spill] sm:$0xff] %v13034_v49 }
 0x942   : > { %16810 = vst [vmem:[#allocation87_spill] sm:$0xff] %v12992_v56  ;;  %16811 = vst [vmem:[#allocation88_spill] sm:$0xff] %v13004_v16  ;;  %v13022_v56 = vsel %vm3683_vm1, %v6524_v23, %v16286_v38  ;;  %v13027_v60 = vsel %vm3683_vm1, %v6526_v52, %v16815_v34  ;;  %v13032_v26 = vsel %vm3683_vm1, %v6528_v61, %v16817_v45  ;;  %v16821_v5 = vrot.slane %v12849_v4, 7 }
 0x943   : > { %16812 = vst [vmem:[#allocation89_spill] sm:$0xff] %v13012_v42  ;;  %16813 = vst [vmem:[#allocation90_spill] sm:$0xff] %v13017_v6  ;;  %v13038_v58 = vmul.f32 %v12844_v10, %v12462_v32  ;;  %v13044_v38 = vmul.f32 %v12828_v31, %v12706_v9  ;;  %v5227_v52 = vmul.f32 %v12555_v3, %v5180_v46 }
 0x944   : > { %16814 = vst [vmem:[#allocation91_spill] sm:$0xff] %v13022_v56  ;;  %16816 = vst [vmem:[#allocation92_spill] sm:$0xff] %v13027_v60  ;;  %v5228_v34 = vmul.f32 %v12558_v12, %v5180_v46  ;;  %v5229_v61 = vmul.f32 %v12561_v35, %v5180_v46  ;;  %v5230_v45 = vmul.f32 %v12512_v55, %v5180_v46  ;;  %v16827_v60 = vrot.slane %v12858_v62, 7  ;;  %v5528_v43 = vpop.permute.xlu0 %5527 }
 0x945   : > { %16818 = vst [vmem:[#allocation93_spill] sm:$0xff] %v13032_v26  ;;  %16820 = vst [vmem:[#allocation95_spill] sm:$0xff] %v13038_v58  ;;  %v6770_v6 = vpop.permute.xlu1 %6769  ;;  %v5303_v26 = vrot.slane %v5227_v52, 7  ;;  %v16823_v52 = vrot.slane %v12852_v20, 7  ;;  %v5569_v62 = vmul.f32 %v12841_v48, %v13034_v49 }
 0x946   : > { %v5305_v56 = vrot.slane %v5228_v34, 7  ;;  %v5307_v1 = vrot.slane %v5229_v61, 7  ;;  %v5309_v11 = vrot.slane %v5230_v45, 7  ;;  %v13055_v3 = vmul.f32 %v12869_v36, %v6770_v6 }
 0x947   : > { %v13058_v35 = vmul.f32 %v12872_v57, %v6770_v6  ;;  %v13061_v46 = vmul.f32 %v12884_v22, %v6770_v6  ;;  %v13064_v32 = vmul.f32 %v12887_v29, %v6770_v6  ;;  %v13069_v23 = vsel %vm3683_vm1, %v16821_v5, %v5303_v26 }
 0x948   : > { %16822 = vst [vmem:[#allocation96_spill] sm:$0xff] %v13069_v23  ;;  %v13074_v34 = vsel %vm3683_vm1, %v16823_v52, %v5305_v56  ;;  %v16825_v61 = vrot.slane %v12855_v53, 7  ;;  %v13084_v6 = vsel %vm3683_vm1, %v16827_v60, %v5309_v11  ;;  %v16294_v4 = vrot.slane %v13055_v3, 2 }
 0x949   : > { %16824 = vst [vmem:[#allocation97_spill] sm:$0xff] %v13074_v34  ;;  %16828 = vst [vmem:[#allocation99_spill] sm:$0xff] %v13084_v6  ;;  %v16295_v5 = vrot.slane %v13058_v35, 2  ;;  %v16296_v20 = vrot.slane %v13061_v46, 2  ;;  %v13092_v53 = vmul.f32 %v12838_v14, %v12706_v9  ;;  %v5567_v11 = vmul.f32 %v12828_v31, %v13034_v49 }
 0x94a   : > { %v13079_v45 = vsel %vm3683_vm1, %v16825_v61, %v5307_v1  ;;  %v13096_v1 = vmul.f32 %v12841_v48, %v12706_v9  ;;  %v16829_v60 = vrot.slane %v13000_v44, 2  ;;  %v16831_v52 = vrot.slane %v13004_v16, 2 }
 0x94b   : > { %16826 = vst [vmem:[#allocation98_spill] sm:$0xff] %v13079_v45  ;;  %v16833_v56 = vrot.slane %v13008_v21, 2  ;;  %v16835_v45 = vrot.slane %v13064_v32, 2  ;;  %v16836_v34 = vrot.slane %v13012_v42, 2  ;;  %v5650_v23 = vrot.slane %v13092_v53, 6 }
 0x94c   : > { %v13107_v26 = vsel %vm5756_vm8, %v16829_v60, %v16294_v4  ;;  %v13114_v61 = vsel %vm5756_vm8, %v16831_v52, %v16295_v5  ;;  %v13132_v4 = vmul.f32 %v12844_v10, %v12706_v9  ;;  %v13136_v52 = vmul.f32 %v12869_v36, %v12712_v25 }
 0x94d   : > { %16830 = vst [vmem:[#allocation100_spill] sm:$0xff] %v13107_v26  ;;  %16832 = vst [vmem:[#allocation101_spill] sm:$0xff] %v13114_v61  ;;  %v13121_v6 = vsel %vm5756_vm8, %v16833_v56, %v16296_v20  ;;  %v13128_v60 = vsel %vm5756_vm8, %v16836_v34, %v16835_v45  ;;  %v5587_v5 = vmul.f32 %v12828_v31, %v5540_v39  ;;  %v5536_v56 = vpop.permute.xlu0 %5535  ;;  %v5624_v26 = vrot.slane %v5567_v11, 6 }
 0x94e   : > { %16834 = vst [vmem:[#allocation102_spill] sm:$0xff] %v13121_v6  ;;  %16837 = vst [vmem:[#allocation103_spill] sm:$0xff] %v13128_v60  ;;  %v5588_v20 = vmul.f32 %v12838_v14, %v5540_v39  ;;  %v5589_v6 = vmul.f32 %v12841_v48, %v5540_v39  ;;  %v5628_v61 = vrot.slane %v5569_v62, 6  ;;  %v5648_v9 = vrot.slane %v13044_v38, 6 }
 0x94f   : > { %16838 = vst [vmem:[#allocation104_spill] sm:$0xff] %v13136_v52  ;;  %v5590_v60 = vmul.f32 %v12844_v10, %v5540_v39  ;;  %v5652_v42 = vrot.slane %v13096_v1, 6  ;;  %v16839_v16 = vrot.slane %v12866_v2, 6  ;;  %v16841_v11 = vrot.slane %v12881_v30, 6  ;;  %v13163_v1 = vpop.permute.xlu1 %5896 }
 0x950   : > { %v5654_v45 = vrot.slane %v13132_v4, 6  ;;  %v13160_v38 = vmul.f32 %v12884_v22, %v12712_v25  ;;  %v5664_v53 = vrot.slane %v5587_v5, 6  ;;  %v5666_v34 = vrot.slane %v5588_v20, 6 }
 0x951   : > { %v13150_v49 = vsel %vm5619_vm9, %v16839_v16, %v5624_v26  ;;  %v13155_v62 = vsel %vm5619_vm9, %v16841_v11, %v5628_v61  ;;  %v5668_v2 = vrot.slane %v5589_v6, 6  ;;  %v16844_v16 = vrot.slane %v12936_v17, 6  ;;  %v13178_v30 = vpop.permute.xlu0 %6761 }
 0x952   : > { %16840 = vst [vmem:[#allocation105_spill] sm:$0xff] %v13150_v49  ;;  %16842 = vst [vmem:[#allocation106_spill] sm:$0xff] %v13155_v62  ;;  %v16846_v11 = vrot.slane %v12978_v0, 6  ;;  %v5670_v62 = vrot.slane %v5590_v60, 6  ;;  %v5575_v25 = vmul.f32 %v12828_v31, %v5528_v43  ;;  %v5576_v39 = vmul.f32 %v12838_v14, %v5528_v43 }
 0x953   : > { %16843 = vst [vmem:[#allocation107_spill] sm:$0xff] %v13160_v38  ;;  %v13168_v49 = vsel %vm5619_vm9, %v5624_v26, %v16844_v16  ;;  %v5577_v5 = vmul.f32 %v12841_v48, %v5528_v43  ;;  %v5578_v6 = vmul.f32 %v12844_v10, %v5528_v43  ;;  %v5583_v20 = vmul.f32 %v12828_v31, %v5536_v56 }
 0x954   : > { %16845 = vst [vmem:[#allocation108_spill] sm:$0xff] %v13168_v49  ;;  %v13173_v4 = vsel %vm5619_vm9, %v5628_v61, %v16846_v11  ;;  %v5584_v26 = vmul.f32 %v12838_v14, %v5536_v56  ;;  %v5585_v16 = vmul.f32 %v12841_v48, %v5536_v56  ;;  %v5640_v49 = vrot.slane %v5575_v25, 6 }
 0x955   : > { %16847 = vst [vmem:[#allocation109_spill] sm:$0xff] %v13173_v4  ;;  %v5642_v61 = vrot.slane %v5576_v39, 6  ;;  %v5644_v11 = vrot.slane %v5577_v5, 6  ;;  %v5586_v60 = vmul.f32 %v12844_v10, %v5536_v56  ;;  %v13185_v4 = vpop.permute.xlu1 %5900  ;;  %v5646_v37 = vrot.slane %v5578_v6, 6 }
 0x956   : > { %v5656_v27 = vrot.slane %v5583_v20, 6  ;;  %v5658_v55 = vrot.slane %v5584_v26, 6  ;;  %v5660_v12 = vrot.slane %v5585_v16, 6  ;;  %v13190_v43 = vsel %vm5619_vm9, %v16848_v51, %v5640_v49 }
 0x957   : > { %16849 = vst [vmem:[#allocation110_spill] sm:$0xff] %v13190_v43  ;;  %v16850_v31 = vrot.slane %v12974_v63, 6  ;;  %v16852_v25 = vrot.slane %v12978_v0, 6  ;;  %v13203_v39 = vsel %vm5619_vm9, %v5640_v49, %v5648_v9  ;;  %v16855_v5 = vrot.slane %v13038_v58, 6 }
 0x958   : > { %16854 = vst [vmem:[#allocation113_spill] sm:$0xff] %v13203_v39  ;;  %v13211_v51 = vsel %vm5619_vm9, %v5642_v61, %v5650_v23  ;;  %v13214_v6 = vsel %vm5619_vm9, %v5644_v11, %v5652_v42  ;;  %v13217_v20 = vsel %vm5619_vm9, %v5646_v37, %v5654_v45  ;;  %v13220_v0 = vsel %vm5619_vm9, %v5648_v9, %v5656_v27 }
 0x959   : > { %v13195_v48 = vsel %vm5619_vm9, %v16850_v31, %v5642_v61  ;;  %v13200_v56 = vsel %vm5619_vm9, %v16852_v25, %v5644_v11  ;;  %v13208_v17 = vsel %vm5619_vm9, %v16855_v5, %v5646_v37  ;;  %16857 = vst [vmem:[#allocation115_spill] sm:$0xff] %v13211_v51  ;;  %16858 = vst [vmem:[#allocation116_spill] sm:$0xff] %v13214_v6  ;;  %v5662_v16 = vrot.slane %v5586_v60, 6  ;;  %v6774_v31 = vpop.permute.xlu0 %6773 }
 0x95a   : > { %16851 = vst [vmem:[#allocation111_spill] sm:$0xff] %v13195_v48  ;;  %16853 = vst [vmem:[#allocation112_spill] sm:$0xff] %v13200_v56  ;;  %v13223_v49 = vsel %vm5619_vm9, %v5650_v23, %v5658_v55  ;;  %v13226_v26 = vsel %vm5619_vm9, %v5652_v42, %v5660_v12  ;;  %v13229_v61 = vsel %vm5619_vm9, %v5656_v27, %v5664_v53  ;;  %v13248_v53 = vpop.permute.xlu1 %6267 }
 0x95b   : > { %16856 = vst [vmem:[#allocation114_spill] sm:$0xff] %v13208_v17  ;;  %16859 = vst [vmem:[#allocation117_spill] sm:$0xff] %v13217_v20  ;;  %v13232_v11 = vsel %vm5619_vm9, %v5658_v55, %v5666_v34  ;;  %v13235_v37 = vsel %vm5619_vm9, %v5660_v12, %v5668_v2  ;;  %v6809_v9 = vmul.f32 %v12869_v36, %v13178_v30 }
 0x95c   : > { %16860 = vst [vmem:[#allocation118_spill] sm:$0xff] %v13220_v0  ;;  %16861 = vst [vmem:[#allocation119_spill] sm:$0xff] %v13223_v49  ;;  %v13241_v25 = vsel %vm5619_vm9, %v5654_v45, %v5662_v16  ;;  %v13244_v42 = vsel %vm5619_vm9, %v5662_v16, %v5670_v62  ;;  %v6811_v27 = vmul.f32 %v12884_v22, %v13178_v30  ;;  %v16873_v62 = vrot.slane %v13136_v52, 2 }
 0x95d   : > { %16862 = vst [vmem:[#allocation120_spill] sm:$0xff] %v13226_v26  ;;  %16863 = vst [vmem:[#allocation121_spill] sm:$0xff] %v13229_v61  ;;  %v6865_v55 = vrot.slane %v6809_v9, 2  ;;  %v13251_v12 = vmul.f32 %v12869_v36, %v6774_v31  ;;  %v13254_v2 = vmul.f32 %v12872_v57, %v6774_v31  ;;  %v13257_v60 = vmul.f32 %v12884_v22, %v6774_v31  ;;  %v13283_v39 = vpop.permute.xlu0 %5011 }
 0x95e   : > { %16864 = vst [vmem:[#allocation122_spill] sm:$0xff] %v13232_v11  ;;  %16865 = vst [vmem:[#allocation123_spill] sm:$0xff] %v13235_v37  ;;  %v6869_v34 = vrot.slane %v6811_v27, 2  ;;  %v13260_v45 = vmul.f32 %v12887_v29, %v6774_v31  ;;  %v16875_v16 = vrot.slane %v13000_v44, 2  ;;  %v16877_v27 = vrot.slane %v13160_v38, 2  ;;  %v13295_v43 = vpop.permute.xlu1 %7128 }
 0x95f   : > { %16866 = vst [vmem:[#allocation124_spill] sm:$0xff] %v13241_v25  ;;  %16867 = vst [vmem:[#allocation125_spill] sm:$0xff] %v13244_v42  ;;  %v13265_v5 = vsel %vm5756_vm8, %v16873_v62, %v6865_v55  ;;  %v16315_v23 = vrot.slane %v13251_v12, 2  ;;  %v16879_v31 = vrot.slane %v13008_v21, 2  ;;  %v16882_v44 = vrot.slane %v13055_v3, 2 }
 0x960   : > { %16868 = vst [vmem:[#allocation126_spill] sm:$0xff] %v13248_v53  ;;  %16869 = vst [vmem:[#allocation127_spill] sm:$0xff] %v13251_v12  ;;  %v13270_v9 = vsel %vm5756_vm8, %v6865_v55, %v16875_v16  ;;  %v13276_v6 = vsel %vm5756_vm8, %v16877_v27, %v6869_v34  ;;  %v16316_v62 = vrot.slane %v13254_v2, 2  ;;  %v16318_v16 = vrot.slane %v13257_v60, 2  ;;  %v5507_v53 = vld [vmem:[#allocation3 + $0x18] sm:$0xfc] }
 0x961   : > { %16870 = vst [vmem:[#allocation128_spill] sm:$0xff] %v13254_v2  ;;  %16871 = vst [vmem:[#allocation129_spill] sm:$0xff] %v13257_v60  ;;  %v13281_v56 = vsel %vm5756_vm8, %v6869_v34, %v16879_v31  ;;  %v13290_v55 = vsel %vm5756_vm8, %v16882_v44, %v16315_v23  ;;  %v16317_v27 = vrot.slane %v13260_v45, 2  ;;  %v16885_v21 = vrot.slane %v13058_v35, 2 }
 0x962   : > { %16872 = vst [vmem:[#allocation130_spill] sm:$0xff] %v13260_v45  ;;  %16874 = vst [vmem:[#allocation131_spill] sm:$0xff] %v13265_v5  ;;  %v16887_v3 = vrot.slane %v13061_v46, 2  ;;  %v16889_v44 = vrot.slane %v13064_v32, 2  ;;  %v13337_v32 = vmul.f32 %v12720_v54, %v13163_v1  ;;  %v5951_v51 = vmul.f32 %v12458_v41, %v13185_v4 }
 0x963   : > { %16876 = vst [vmem:[#allocation132_spill] sm:$0xff] %v13270_v9  ;;  %16878 = vst [vmem:[#allocation133_spill] sm:$0xff] %v13276_v6  ;;  %v13302_v34 = vsel %vm5756_vm8, %v16885_v21, %v16316_v62  ;;  %v13321_v35 = vld [vmem:[%s16142_s19 + $0x7] ss:$8 sm:$0xf]  ;;  %v13323_v21 = vpop.permute.xlu0 %5016  ;;  %v13325_v62 = vpop.permute.xlu1 %7495  ;;  %v16902_v0 = vrot.slane %v12961_v8, 7 }
 0x964   : > { %16880 = vst [vmem:[#allocation134_spill] sm:$0xff] %v13281_v56  ;;  %16881 = vst [vmem:[#allocation135_spill] sm:$0xff] %v13283_v39  ;;  %v13309_v31 = vsel %vm5756_vm8, %v16887_v3, %v16318_v16  ;;  %v13316_v23 = vsel %vm5756_vm8, %v16889_v44, %v16317_v27  ;;  %v13329_v46 = vrot.slane %v13321_v35, %v12435_v13  ;;  %v6030_v5 = vrot.slane %v5951_v51, 1 }
 0x965   : > { %16883 = vst [vmem:[#allocation136_spill] sm:$0xff] %v13290_v55  ;;  %16884 = vst [vmem:[#allocation137_spill] sm:$0xff] %v13295_v43  ;;  %v13333_v3 = vmul.f32 %v12450_v28, %v13163_v1  ;;  %v13341_v44 = vmul.f32 %v12454_v47, %v13163_v1  ;;  %v13345_v27 = vmul.f32 %v12458_v41, %v13163_v1 }
 0x966   : > { %16886 = vst [vmem:[#allocation138_spill] sm:$0xff] %v13302_v34  ;;  %16888 = vst [vmem:[#allocation139_spill] sm:$0xff] %v13309_v31  ;;  %v5948_v31 = vmul.f32 %v12450_v28, %v13185_v4  ;;  %v5949_v55 = vmul.f32 %v12720_v54, %v13185_v4  ;;  %v13359_v17 = vmul.f32 %v13329_v46, %v12820_v18  ;;  %v16321_v34 = vrot.slane %v13337_v32, 1 }
 0x967   : > { %16890 = vst [vmem:[#allocation140_spill] sm:$0xff] %v13316_v23  ;;  %16891 = vst [vmem:[#allocation141_spill] sm:$0xff] %v13323_v21  ;;  %v13347_v16 = vpop.permute.xlu0 %5026  ;;  %v5950_v23 = vmul.f32 %v12454_v47, %v13185_v4  ;;  %v13355_v20 = vpop.permute.xlu1 %7499  ;;  %v16324_v1 = vrot.slane %v13333_v3, 1  ;;  %v16323_v48 = vrot.slane %v13341_v44, 1  ;;  %v16322_v9 = vrot.slane %v13345_v27, 1 }
 0x968   : > { %16892 = vst [vmem:[#allocation142_spill] sm:$0xff] %v13325_v62  ;;  %16893 = vst [vmem:[#allocation143_spill] sm:$0xff] %v13347_v16  ;;  %v6024_v56 = vrot.slane %v5948_v31, 1  ;;  %v6026_v6 = vrot.slane %v5949_v55, 1  ;;  %v16326_v51 = vrot.slane %v13359_v17, 1 }
 0x969   : > { %16894 = vst [vmem:[#allocation144_spill] sm:$0xff] %v13355_v20  ;;  %v6028_v38 = vrot.slane %v5950_v23, 1  ;;  %v13385_v23 = vsel %vm5395_vm7, %v16322_v9, %v6030_v5 }
 0x96a   : > { %v13370_v52 = vsel %vm5395_vm7, %v16324_v1, %v6024_v56  ;;  %v13375_v42 = vsel %vm5395_vm7, %v16321_v34, %v6026_v6  ;;  %16898 = vst [vmem:[#allocation148_spill] sm:$0xff] %v13385_v23  ;;  %v13392_v56 = vmul.f32 %v13329_v46, %v13295_v43 }
 0x96b   : > { %16895 = vst [vmem:[#allocation145_spill] sm:$0xff] %v13370_v52  ;;  %16896 = vst [vmem:[#allocation146_spill] sm:$0xff] %v13375_v42  ;;  %v13380_v4 = vsel %vm5395_vm7, %v16323_v48, %v6028_v38  ;;  %v13388_v55 = vpop.permute.xlu0 %6398  ;;  %v13394_v6 = vpop.permute.xlu1 %5031 }
 0x96c   : > { %16897 = vst [vmem:[#allocation147_spill] sm:$0xff] %v13380_v4  ;;  %16899 = vst [vmem:[#allocation149_spill] sm:$0xff] %v13392_v56  ;;  %v16325_v31 = vrot.slane %v13392_v56, 1 }
 0x96d   : > { %16900 = vst [vmem:[#allocation150_spill] sm:$0xff] %v13394_v6  ;;  %v16934_v6 = vld [vmem:[#allocation70_spill] sm:$0xff] }
 0x96e   : > { %v13402_v38 = vsel %vm5395_vm7, %v16326_v51, %v16325_v31  ;;  %v16935_v20 = vrot.slane %v16934_v6, 7  ;;  %v16941_v6 = vld [vmem:[#allocation43_spill] sm:$0xff] }
 0x96f   : > { %v6423_v34 = vpop.permute.xlu0 %6422  ;;  %16901 = vst [vmem:[#allocation151_spill] sm:$0xff] %v13402_v38  ;;  %v6419_v37 = vpop.permute.xlu1 %6418 }
 0x970   : > { %v6470_v5 = vmul.f32 %v12586_v33, %v6423_v34  ;;  %v6471_v9 = vmul.f32 %v12589_v50, %v6423_v34  ;;  %v6472_v48 = vmul.f32 %v12592_v59, %v6423_v34  ;;  %v6473_v1 = vmul.f32 %v12610_v15, %v6423_v34 }
 0x971   : > { %v6466_v61 = vmul.f32 %v12586_v33, %v6419_v37  ;;  %v6467_v23 = vmul.f32 %v12589_v50, %v6419_v37  ;;  %v6468_v4 = vmul.f32 %v12592_v59, %v6419_v37  ;;  %v6469_v51 = vmul.f32 %v12610_v15, %v6419_v37 }
 0x972   : > { %v6546_v11 = vrot.slane %v6470_v5, 7  ;;  %v6548_v42 = vrot.slane %v6471_v9, 7  ;;  %v6550_v52 = vrot.slane %v6472_v48, 7  ;;  %v6552_v31 = vrot.slane %v6473_v1, 7 }
 0x973   : > { %v6538_v38 = vrot.slane %v6466_v61, 7  ;;  %v6540_v25 = vrot.slane %v6467_v23, 7  ;;  %v6542_v26 = vrot.slane %v6468_v4, 7  ;;  %v6544_v49 = vrot.slane %v6469_v51, 7 }
 0x974   : > { %v16904_v5 = vrot.slane %v12964_v7, 7  ;;  %v16906_v9 = vrot.slane %v12967_v40, 7  ;;  %v16909_v37 = vrot.slane %v12970_v19, 7  ;;  %v8521_v19 = vld [vmem:[%s16139_s16] ss:$0 sm:$0xff] }
 0x975   : > { %v13415_v34 = vsel %vm3683_vm1, %v16902_v0, %v6538_v38  ;;  %v13428_v61 = vsel %vm3683_vm1, %v6538_v38, %v6546_v11  ;;  %v13436_v0 = vsel %vm3683_vm1, %v6540_v25, %v6548_v42  ;;  %v13439_v7 = vsel %vm3683_vm1, %v6542_v26, %v6550_v52  ;;  %v8512_v11 = vld [vmem:[%s16138_s15] ss:$0 sm:$0xff] }
 0x976   : > { %16903 = vst [vmem:[#allocation152_spill] sm:$0xff] %v13415_v34  ;;  %v13420_v56 = vsel %vm3683_vm1, %v16904_v5, %v6540_v25  ;;  %v13425_v48 = vsel %vm3683_vm1, %v16906_v9, %v6542_v26  ;;  %16908 = vst [vmem:[#allocation155_spill] sm:$0xff] %v13428_v61  ;;  %v13433_v8 = vsel %vm3683_vm1, %v16909_v37, %v6544_v49  ;;  %v9699_v38 = vld [vmem:[%s9999_s6] sm:$0xff]  ;;  %v9700_v9 = vld [vmem:[%s9999_s6 + $0x8] sm:$0xff] }
 0x977   : > { %16905 = vst [vmem:[#allocation153_spill] sm:$0xff] %v13420_v56  ;;  %16907 = vst [vmem:[#allocation154_spill] sm:$0xff] %v13425_v48  ;;  %v13442_v40 = vsel %vm3683_vm1, %v6544_v49, %v6552_v31  ;;  %v16928_v61 = vld [vmem:[#allocation30_spill] sm:$0xff]  ;;  %v16929_v34 = vld [vmem:[#allocation68_spill] sm:$0xff] }
 0x978   : > { %16910 = vst [vmem:[#allocation156_spill] sm:$0xff] %v13433_v8  ;;  %16911 = vst [vmem:[#allocation157_spill] sm:$0xff] %v13436_v0  ;;  %v13600_v8 = vmul.f32 %v12838_v14, %v16928_v61 }
 0x979   : > { %16912 = vst [vmem:[#allocation158_spill] sm:$0xff] %v13439_v7  ;;  %16913 = vst [vmem:[#allocation159_spill] sm:$0xff] %v13442_v40 }
 0x990   : > { %v9273_v1 = vpop.f32.mrb[56].mxu0 }
 0x991   : > { %v4489_v4 = vpop.f32.mrb[57].mxu0  ;;  %v4498_v31 = vadd.f32 %v9273_v1, %v8512_v11  ;;  %v9702_v1 = vld [vmem:[%s9999_s6 + $0x10] sm:$0xff] }
 0x992   : > { %v4490_v23 = vadd.f32 %v8512_v11, %v4489_v4  ;;  %v9274_v25 = vpop.f32.mrb[58].mxu0 }
 0x993   : > { %v4492_v42 = vpop.f32.mrb[59].mxu0  ;;  %v4501_v26 = vadd.f32 %v9274_v25, %v8512_v11  ;;  %v4528_v4 = vmul.f32 %v8521_v19, %v4498_v31 }
 0x994   : > { %v4526_v51 = vmul.f32 %v8521_v19, %v4490_v23  ;;  %v4493_v52 = vadd.f32 %v8512_v11, %v4492_v42  ;;  %v9701_v23 = vld [vmem:[%s9999_s6 + $0x18] sm:$0xff] }
 0x995   : > { %v4529_v40 = vmul.f32 %v8521_v19, %v4501_v26  ;;  %v13464_v42 = vadd.f32 %v9702_v1, %v4528_v4 }
 0x996   : > { %v4527_v49 = vmul.f32 %v8521_v19, %v4493_v52  ;;  %v13451_v5 = vadd.f32 %v9699_v38, %v4526_v51 }
 0x997   : > { %v13461_v25 = vadd.f32 %v9701_v23, %v4529_v40  ;;  %16917 = vst [vmem:[#allocation163_spill] sm:$0xff] %v13464_v42  ;;  %v9703_v23 = vld [vmem:[%s9999_s6 + $0x20] sm:$0xff] }
 0x998   : > { %16914 = vst [vmem:[#allocation160_spill] sm:$0xff] %v13451_v5  ;;  %v13454_v37 = vadd.f32 %v9700_v9, %v4527_v49 }
 0x999   : > { %16916 = vst [vmem:[#allocation162_spill] sm:$0xff] %v13461_v25  ;;  %v4573_v51 = vpack.c.bf16 %v13461_v25, %v13464_v42  ;;  %v9704_v25 = vld [vmem:[%s9999_s6 + $0x28] sm:$0xff] }
 0x99a   : > { %16915 = vst [vmem:[#allocation161_spill] sm:$0xff] %v13454_v37  ;;  %v4572_v7 = vpack.c.bf16 %v13454_v37, %v13451_v5  ;;  %v16925_v5 = vld [vmem:[#allocation29_spill] sm:$0xff] }
 0x99c   : > { %4791 = vmatmul.mubr.bf16.vlgmr.msra.gmra.mrb[80].mxu1 %v4572_v7  ;;  %4862 = vmatmul.mubr.bf16.vlgmr.msra.gmra.mrb[64].mxu0 %v4572_v7 }
 0x99d   : > { %4800 = vmatprep.mubr.bf16.mxu1 %v16687_v24  ;;  %4871 = vmatprep.mubr.bf16.mxu0 %v16687_v24 }
 0x9a3   : > { %v9277_v52 = vpop.f32.mrb[60].mxu0 }
 0x9a4   : > { %v4505_v26 = vpop.f32.mrb[61].mxu0  ;;  %4801 = vmatmul.mubr.bf16.gmra.mrb[84].mxu1 %v4573_v51  ;;  %4872 = vmatmul.mubr.bf16.gmra.mrb[68].mxu0 %v4573_v51  ;;  %v4514_v9 = vadd.f32 %v9277_v52, %v8512_v11  ;;  %v9546_v52 = vld [vmem:[%s16144_s21 + $0x48] sm:$0xff]  }
 0x9a5   : > { %v4506_v7 = vadd.f32 %v8512_v11, %v4505_v26  ;;  %v9278_v49 = vpop.f32.mrb[62].mxu0  ;;  %4810 = vmatprep.mubr.bf16.mxu1 %v16687_v24  ;;  %4881 = vmatprep.mubr.bf16.mxu0 %v16687_v24  ;;  %v9705_v26 = vld [vmem:[%s9999_s6 + $0x30] sm:$0x1] }
 0x9a6   : > { %v4508_v40 = vpop.f32.mrb[63].mxu0  ;;  %v4532_v37 = vmul.f32 %v8521_v19, %v4514_v9  ;;  %v9547_v49 = vld [vmem:[%s16144_s21 + $0xc8] sm:$0xff]   ;;  %v9551_v9 = vld [vmem:[%s16144_s21 + $0xd0] sm:$0xff]  }
 0x9a7   : > { %v4530_v31 = vmul.f32 %v8521_v19, %v4506_v7  ;;  %v4509_v38 = vadd.f32 %v8512_v11, %v4508_v40  ;;  %v9548_v40 = vld [vmem:[%s16144_s21 + $0x8] sm:$0xff]  }
 0x9a8   : > { %v13481_v7 = vadd.f32 %v9705_v26, %v4532_v37  ;;  %v9545_v37 = vld [vmem:[%s16144_s21 + $0x80] sm:$0xff]   ;;  %v9555_v26 = vld [vmem:[%s16144_s21 + $0xd8] sm:$0xff]  }
 0x9a9   : > { %v4531_v4 = vmul.f32 %v8521_v19, %v4509_v38  ;;  %v13471_v1 = vadd.f32 %v9703_v23, %v4530_v31  ;;  %v9542_v19 = vld [vmem:[%s16144_s21 + $0x40] sm:$0xff]   ;;  %v9549_v31 = vld [vmem:[%s16144_s21 + $0x88] sm:$0xff]   ;;  %v9550_v38 = vld [vmem:[%s16144_s21 + $0x50] sm:$0xff]  }
 0x9aa   : > { %16920 = vst [vmem:[#allocation166_spill] sm:$0xff] %v13481_v7  ;;  %v4575_v11 = vpack.c.bf16 %v13481_v7, %v13481_v7  ;;  %8831 = vmatprep.subr.bf16.mxu1 %v9542_v19  ;;  %v9553_v23 = vld [vmem:[%s16144_s21 + $0x90] sm:$0xff]   ;;  %v9557_v19 = vld [vmem:[%s16144_s21 + $0x98] sm:$0xff]  }
 0x9ab   : > { %16918 = vst [vmem:[#allocation164_spill] sm:$0xff] %v13471_v1  ;;  %v13474_v42 = vadd.f32 %v9704_v25, %v4531_v4  ;;  %v9543_v25 = vld [vmem:[%s16144_s21 + $0xc0] sm:$0xff]   ;;  %v9552_v4 = vld [vmem:[%s16144_s21 + $0x10] sm:$0xff]  }
 0x9ac   : > { %8871 = vmatprep.subr.bf16.mxu0 %v9543_v25  ;;  %v9558_v25 = vld [vmem:[%s16144_s21 + $0x60] sm:$0xff]   ;;  %v5145_v7 = vld [vmem:[#allocation3 + $0x8] sm:$0xfe] }
 0x9ad   : > { %16919 = vst [vmem:[#allocation165_spill] sm:$0xff] %v13474_v42  ;;  %v4574_v51 = vpack.c.bf16 %v13474_v42, %v13471_v1  ;;  %8872 = vmatpush3.bf16.msra.mxu0 %v9545_v37  ;;  %v9560_v37 = vld [vmem:[%s16144_s21 + $0x20] sm:$0xff]   ;;  %v5146_v42 = vld [vmem:[#allocation3 + $0x10] sm:$0xfe] }
 0x9ae   : > { %8873 = vmatprep.subr.bf16.mxu0 %v9547_v49  ;;  %v9562_v49 = vld [vmem:[%s16144_s21 + $0x68] sm:$0xff]   ;;  %v5147_v1 = vld [vmem:[#allocation3 + $0x18] sm:$0xfe]  ;;  %v13625_v22 = vmul.f32 %v16935_v20, %v5146_v42 }
 0x9af   : > { %4811 = vmatmul.mubr.bf16.gmra.mrb[88].mxu1 %v4574_v51  ;;  %4882 = vmatmul.mubr.bf16.gmra.mrb[72].mxu0 %v4574_v51  ;;  %v9554_v51 = vld [vmem:[%s16144_s21 + $0x58] sm:$0xff]   ;;  %v5504_v42 = vld [vmem:[#allocation3] sm:$0xfc] }
 0x9b0   : > { %4820 = vmatprep.mubr.bf16.mxu1 %v16687_v24  ;;  %4891 = vmatprep.mubr.bf16.mxu0 %v16687_v24  ;;  %v9544_v24 = vld [vmem:[%s16144_s21] sm:$0xff]  }
 0x9b1   : > { %8832 = vmatpush3.bf16.msra.mxu1 %v9544_v24  ;;  %8874 = vmatpush3.bf16.msra.mxu0 %v9549_v31  ;;  %v9559_v24 = vld [vmem:[%s16144_s21 + $0xe0] sm:$0xff]   ;;  %v9564_v31 = vld [vmem:[%s16144_s21 + $0x28] sm:$0xff]  }
 0x9b2   : > { %8833 = vmatprep.subr.bf16.mxu1 %v9546_v52  ;;  %8875 = vmatprep.subr.bf16.mxu0 %v9551_v9  ;;  %v9561_v52 = vld [vmem:[%s16144_s21 + $0xa0] sm:$0xff]   ;;  %v16922_v9 = vld [vmem:[#allocation40_spill] sm:$0xff] }
 0x9b5   : > { %8834 = vmatpush3.bf16.msra.mxu1 %v9548_v40  ;;  %8876 = vmatpush3.bf16.msra.mxu0 %v9553_v23  ;;  %v9563_v40 = vld [vmem:[%s16144_s21 + $0xe8] sm:$0xff]  }
 0x9b6   : > { %8835 = vmatprep.subr.bf16.mxu1 %v9550_v38  ;;  %8877 = vmatprep.subr.bf16.mxu0 %v9555_v26  ;;  %v16921_v38 = vld [vmem:[#allocation28_spill] sm:$0xff]  ;;  %v9567_v26 = vld [vmem:[%s16144_s21 + $0xf0] sm:$0xff]  }
 0x9b7   : > { %4821 = vmatmul.mubr.bf16.gmra.mrb[92].mxu1 %v4575_v11  ;;  %4892 = vmatmul.mubr.bf16.gmra.mrb[76].mxu0 %v4575_v11  ;;  %v9556_v11 = vld [vmem:[%s16144_s21 + $0x18] sm:$0xff]   ;;  %v9565_v23 = vld [vmem:[%s16144_s21 + $0xa8] sm:$0xff]  }
 0x9b9   : > { %8836 = vmatpush3.bf16.msra.mxu1 %v9552_v4  ;;  %8878 = vmatpush3.bf16.msra.mxu0 %v9557_v19  ;;  %v13556_v4 = vmul.f32 %v16922_v9, %v16921_v38 }
 0x9ba   : > { %8837 = vmatprep.subr.bf16.mxu1 %v9554_v51  ;;  %8879 = vmatprep.subr.bf16.mxu0 %v9559_v24  ;;  %v9566_v51 = vld [vmem:[%s16144_s21 + $0x70] sm:$0xff]  }
 0x9bb   : > { %v8557_v24 = vld [vmem:[%s16142_s19 + $0x4] ss:$8 sm:$0xf]  ;;  %v16932_v60 = vrot.slane %v13556_v4, 7 }
 0x9bc   : > { %v13603_v48 = vrot.slane %v8557_v24, %v16925_v5  ;;  %v13621_v12 = vrot.slane %v8557_v24, %v12435_v13 }
 0x9bd   : > { %8838 = vmatpush3.bf16.msra.mxu1 %v9556_v11  ;;  %8880 = vmatpush3.bf16.msra.mxu0 %v9561_v52  ;;  %v16923_v11 = vld [vmem:[#allocation25_spill] sm:$0xff]  ;;  %v5144_v52 = vld [vmem:[#allocation3] sm:$0xfe]  ;;  %v13614_v2 = vmul.f32 %v16932_v60, %v5145_v7  ;;  %v13637_v60 = vrot.slane %v13321_v35, %v16925_v5  ;;  %v16940_v7 = vld [vmem:[#allocation23_spill] sm:$0xff] }
 0x9be   : > { %8839 = vmatprep.subr.bf16.mxu1 %v9558_v25  ;;  %v13569_v19 = vmul.f32 %v16923_v11, %v16921_v38  ;;  %8881 = vmatprep.subr.bf16.mxu0 %v9563_v40  ;;  %v5003_v25 = vld [vmem:[%s16142_s19] ss:$8 sm:$0xf]  ;;  %16936 = vst [vmem:[#allocation25_spill] sm:$0xff] %v13625_v22 }
 0x9bf   : > { %16933 = vst [vmem:[#allocation40_spill] sm:$0xff] %v13614_v2  ;;  %v16944_v22 = vld [vmem:[#allocation71_spill] sm:$0xff] }
 0x9c0   : > { %v16937_v62 = vrot.slane %v13569_v19, 7  ;;  %v16964_v2 = vld [vmem:[#allocation31_spill] sm:$0xff] }
 0x9c1   : > { %8840 = vmatpush3.bf16.msra.mxu1 %v9560_v37  ;;  %8882 = vmatpush3.bf16.msra.mxu0 %v9565_v23  ;;  %v16926_v23 = vld [vmem:[#allocation18_spill] sm:$0xff]  ;;  %v16927_v37 = vld [vmem:[#allocation12_spill] sm:$0xff] }
 0x9c2   : > { %8841 = vmatprep.subr.bf16.mxu1 %v9562_v49  ;;  %8883 = vmatprep.subr.bf16.mxu0 %v9567_v26  ;;  %v16924_v49 = vld [vmem:[#allocation26_spill] sm:$0xff]  ;;  %v13586_v0 = vrot.slane %v5003_v25, %v16926_v23  ;;  %v13596_v38 = vmul.f32 %v12720_v54, %v16927_v37  ;;  %v13606_v56 = vrot.slane %v8557_v24, %v16926_v23 }
 0x9c3   : > { %v13580_v40 = vrot.slane %v5003_v25, %v16924_v49  ;;  %v13592_v26 = vrot.slane %v8557_v24, %v16924_v49  ;;  %v13618_v37 = vmul.f32 %v12844_v10, %v16928_v61  ;;  %v16939_v61 = vld [vmem:[#allocation14_spill] sm:$0xff]  ;;  %v13661_v16 = vrot.slane %v13321_v35, %v16926_v23 }
 0x9c4   : > { %v13641_v24 = vmul.f32 %v16940_v7, %v16939_v61  ;;  %v13645_v20 = vmul.f32 %v16922_v9, %v16939_v61  ;;  %v5986_v36 = vrot.slane %v13596_v38, 1  ;;  %v5506_v7 = vld [vmem:[#allocation3 + $0x10] sm:$0xfc]  ;;  %v16947_v23 = vrot.slane %v13600_v8, 6 }
 0x9c5   : > { %8842 = vmatpush3.bf16.msra.mxu1 %v9564_v31  ;;  %v13583_v31 = vrot.slane %v5003_v25, %v16925_v5  ;;  %v16943_v5 = vld [vmem:[#allocation69_spill] sm:$0xff]  ;;  %v16952_v38 = vrot.slane %v13618_v37, 6 }
 0x9c6   : > { %8843 = vmatprep.subr.bf16.mxu1 %v9566_v51  ;;  %v13589_v51 = vrot.slane %v5003_v25, %v12435_v13  ;;  %v16930_v25 = vrot.slane %v16929_v34, 7  ;;  %v13629_v34 = vmul.f32 %v16937_v62, %v5147_v1  ;;  %v13649_v62 = vmul.f32 %v16941_v6, %v16939_v61  ;;  %v5505_v1 = vld [vmem:[#allocation3 + $0x8] sm:$0xfc]  ;;  %v5867_v61 = vld [vmem:[#allocation3 + $0x10] sm:$0x80] }
 0x9c7   : > { %v13674_v43 = vmul.f32 %v12454_v47, %v16943_v5  ;;  %v5866_v6 = vld [vmem:[#allocation3 + $0x8] sm:$0x80] }
 0x9c8   : > { %v13610_v45 = vmul.f32 %v16930_v25, %v5144_v52  ;;  %16938 = vst [vmem:[#allocation12_spill] sm:$0xff] %v13629_v34  ;;  %v13633_v52 = vrot.slane %v13321_v35, %v16924_v49  ;;  %v16942_v25 = vld [vmem:[#allocation13_spill] sm:$0xff]  ;;  %v13656_v49 = vmul.f32 %v12450_v28, %v16943_v5  ;;  %v5865_v28 = vld [vmem:[#allocation3] sm:$0x80]  ;;  %v13678_v35 = vmul.f32 %v12458_v41, %v16943_v5 }
 0x9c9   : > { %v5925_v13 = vmul.f32 %v12720_v54, %v16942_v25  ;;  %v13667_v25 = vmul.f32 %v12720_v54, %v16943_v5  ;;  %v16945_v34 = vrot.slane %v16944_v22, 6  ;;  %v13690_v41 = vmul.f32 %v16947_v23, %v5505_v1  ;;  %v16949_v5 = vld [vmem:[#allocation73_spill] sm:$0xff]  ;;  %v16958_v23 = vld [vmem:[#allocation34_spill] sm:$0xff] }
 0x9ca   : > { %16931 = vst [vmem:[#allocation28_spill] sm:$0xff] %v13610_v45  ;;  %v5868_v45 = vld [vmem:[#allocation3 + $0x18] sm:$0x80]  ;;  %v16950_v58 = vrot.slane %v16949_v5, 6  ;;  %v13699_v54 = vmul.f32 %v16952_v38, %v5507_v53  ;;  %v5060_v53 = vmul.f32 %v13580_v40, %v16964_v2  ;;  %v16975_v38 = vld [vmem:[#allocation33_spill] sm:$0xff] }
 0x9cb   : > { %v5981_v21 = vrot.slane %v5925_v13, 1  ;;  %v13686_v47 = vmul.f32 %v16945_v34, %v5504_v42  ;;  %16948 = vst [vmem:[#allocation68_spill] sm:$0xff] %v13690_v41  ;;  %v16954_v13 = vld [vmem:[#allocation22_spill] sm:$0xff]  ;;  %v16959_v42 = vrot.slane %v16958_v23, 1  ;;  %v16976_v34 = vrot.slane %v16975_v38, 7 }
 0x9cc   : > { %v13694_v15 = vmul.f32 %v16950_v58, %v5506_v7  ;;  %16953 = vst [vmem:[#allocation14_spill] sm:$0xff] %v13699_v54  ;;  %v16955_v39 = vrot.slane %v16954_v13, 1  ;;  %v16961_v58 = vld [vmem:[#allocation38_spill] sm:$0xff]  ;;  %v16968_v13 = vld [vmem:[#allocation55_spill] sm:$0xff] }
 0x9cd   : > { %16946 = vst [vmem:[#allocation30_spill] sm:$0xff] %v13686_v47  ;;  %v13705_v22 = vmul.f32 %v5981_v21, %v5866_v6  ;;  %v13710_v1 = vmul.f32 %v16959_v42, %v5867_v61  ;;  %v16962_v7 = vrot.slane %v16961_v58, 1  ;;  %v5062_v6 = vmul.f32 %v13586_v0, %v16964_v2  ;;  %v16965_v23 = vld [vmem:[#allocation54_spill] sm:$0xff] }
 0x9ce   : > { %16951 = vst [vmem:[#allocation70_spill] sm:$0xff] %v13694_v15  ;;  %v13703_v59 = vmul.f32 %v16955_v39, %v5865_v28  ;;  %v5061_v39 = vmul.f32 %v13583_v31, %v16964_v2  ;;  %v5063_v28 = vmul.f32 %v13589_v51, %v16964_v2  ;;  %v13730_v42 = vmul.f32 %v12872_v57, %v16965_v23  ;;  %v9706_v15 = vld [vmem:[#allocation2] sm:$0xff] }
 0x9cf   : > { %16957 = vst [vmem:[#allocation43_spill] sm:$0xff] %v13705_v22  ;;  %16960 = vst [vmem:[#allocation13_spill] sm:$0xff] %v13710_v1  ;;  %v13714_v5 = vmul.f32 %v16962_v7, %v5868_v45  ;;  %v13734_v7 = vsel %vm5395_vm7, %v5981_v21, %v5986_v36  ;;  %v16969_v41 = vrot.slane %v16968_v13, 1  ;;  %v13745_v47 = vmul.f32 %v9706_v15, %v5060_v53  ;;  %v16979_v13 = vld [vmem:[#allocation44_spill] sm:$0xff]  ;;  %v16983_v53 = vld [vmem:[#allocation42_spill] sm:$0xff] }
 0x9d0   : > { %16956 = vst [vmem:[#allocation23_spill] sm:$0xff] %v13703_v59  ;;  %16966 = vst [vmem:[#allocation71_spill] sm:$0xff] %v13730_v42  ;;  %v13747_v58 = vmul.f32 %v9706_v15, %v5061_v39  ;;  %v13749_v21 = vmul.f32 %v9706_v15, %v5062_v6  ;;  %v13751_v54 = vmul.f32 %v9706_v15, %v5063_v28  ;;  %v16977_v2 = vrot.slane %v13641_v24, 7  ;;  %v16988_v28 = vld [vmem:[#allocation66_spill] sm:$0xff] }
 0x9d1   : > { %16963 = vst [vmem:[#allocation69_spill] sm:$0xff] %v13714_v5  ;;  %16967 = vst [vmem:[#allocation73_spill] sm:$0xff] %v13734_v7  ;;  %v13743_v45 = vsel %vm5395_vm7, %v5986_v36, %v16969_v41  ;;  %v16980_v1 = vrot.slane %v16979_v13, 7  ;;  %v16981_v36 = vrot.slane %v13645_v20, 7  ;;  %v16984_v39 = vrot.slane %v16983_v53, 7  ;;  %v16990_v53 = vld [vmem:[#allocation56_spill] sm:$0xff] }
 0x9d2   : > { %16970 = vst [vmem:[#allocation22_spill] sm:$0xff] %v13743_v45  ;;  %16971 = vst [vmem:[#allocation34_spill] sm:$0xff] %v13745_v47  ;;  %v13758_v61 = vsel %vm3683_vm1, %v16977_v2, %v16976_v34  ;;  %v16985_v6 = vrot.slane %v13649_v62, 7  ;;  %v13776_v38 = vmul.f32 %v12887_v29, %v16965_v23  ;;  %v13781_v2 = vmul.f32 %v13633_v52, %v16988_v28  ;;  %v16998_v59 = vld [vmem:[#allocation58_spill] sm:$0xff]  ;;  %v17002_v45 = vld [vmem:[#allocation59_spill] sm:$0xff] }
 0x9d3   : > { %16972 = vst [vmem:[#allocation38_spill] sm:$0xff] %v13747_v58  ;;  %16973 = vst [vmem:[#allocation31_spill] sm:$0xff] %v13749_v21  ;;  %v13765_v41 = vsel %vm3683_vm1, %v16981_v36, %v16980_v1  ;;  %v13785_v1 = vmul.f32 %v13637_v60, %v16988_v28  ;;  %v13789_v13 = vmul.f32 %v13661_v16, %v16988_v28  ;;  %v16989_v23 = vrot.slane %v13656_v49, 1  ;;  %v17005_v47 = vld [vmem:[#allocation64_spill] sm:$0xff] }
 0x9d4   : > { %16974 = vst [vmem:[#allocation54_spill] sm:$0xff] %v13751_v54  ;;  %16978 = vst [vmem:[#allocation55_spill] sm:$0xff] %v13758_v61  ;;  %v13772_v15 = vsel %vm3683_vm1, %v16985_v6, %v16984_v39  ;;  %v13793_v36 = vmul.f32 %v13633_v52, %v12820_v18  ;;  %v16991_v39 = vrot.slane %v16990_v53, 1  ;;  %v13804_v34 = vmul.f32 %v13329_v46, %v16988_v28  ;;  %v9570_v28 = vld [vmem:[%s16144_s21 + $0x78] sm:$0xff]  }
 0x9d5   : > { %16982 = vst [vmem:[#allocation33_spill] sm:$0xff] %v13765_v41  ;;  %16986 = vst [vmem:[#allocation44_spill] sm:$0xff] %v13772_v15  ;;  %v13808_v15 = vmul.f32 %v13637_v60, %v12820_v18  ;;  %v13812_v61 = vmul.f32 %v13661_v16, %v12820_v18  ;;  %v9568_v41 = vld [vmem:[%s16144_s21 + $0x30] sm:$0xff]   ;;  %v16993_v53 = vrot.slane %v13667_v25, 1  ;;  %v16997_v18 = vrot.slane %v13674_v43, 1 }
 0x9d6   : > { %16987 = vst [vmem:[#allocation42_spill] sm:$0xff] %v13776_v38  ;;  %v13800_v6 = vsel %vm5395_vm7, %v16991_v39, %v16989_v23  ;;  %v9569_v23 = vld [vmem:[%s16144_s21 + $0xb0] sm:$0xff]   ;;  %v16999_v5 = vrot.slane %v16998_v59, 1  ;;  %v17001_v22 = vrot.slane %v13678_v35, 1  ;;  %v17003_v58 = vrot.slane %v17002_v45, 1  ;;  %8844 = vmatpush3.bf16.msra.mxu1 %v9568_v41 }
 0x9d7   : > { %16992 = vst [vmem:[#allocation66_spill] sm:$0xff] %v13800_v6  ;;  %v16994_v39 = vld [vmem:[#allocation57_spill] sm:$0xff]  ;;  %8884 = vmatpush3.bf16.msra.mxu0 %v9569_v23  ;;  %8845 = vmatprep.subr.bf16.mxu1 %v9570_v28  ;;  %v13877_v59 = vmul.f32 %v13606_v56, %v17005_v47 }
 0x9d8   : > { %v16995_v6 = vrot.slane %v16994_v39, 1  ;;  %v13835_v54 = vsel %vm5395_vm7, %v16999_v5, %v16997_v18  ;;  %v13842_v7 = vsel %vm5395_vm7, %v17003_v58, %v17001_v22  ;;  %v13846_v39 = vmul.f32 %v13592_v26, %v17005_v47  ;;  %v9572_v58 = vld [vmem:[%s16144_s21 + $0x38] sm:$0xff]  }
 0x9d9   : > { %17000 = vst [vmem:[#allocation57_spill] sm:$0xff] %v13835_v54  ;;  %17004 = vst [vmem:[#allocation58_spill] sm:$0xff] %v13842_v7  ;;  %v13854_v5 = vmul.f32 %v13603_v48, %v17005_v47  ;;  %v9573_v18 = vld [vmem:[%s16144_s21 + $0xb8] sm:$0xff]   ;;  %v13881_v7 = vmul.f32 %v13621_v12, %v17005_v47  ;;  %v17011_v54 = vld [vmem:[#allocation65_spill] sm:$0xff] }
 0x9da   : > { %v13828_v21 = vsel %vm5395_vm7, %v16995_v6, %v16993_v53  ;;  %17006 = vst [vmem:[#allocation59_spill] sm:$0xff] %v13846_v39  ;;  %v9571_v6 = vld [vmem:[%s16144_s21 + $0xf8] sm:$0xff]   ;;  %v17007_v53 = vld [vmem:[#allocation79_spill] sm:$0xff]  ;;  %17009 = vst [vmem:[#allocation64_spill] sm:$0xff] %v13877_v59  ;;  %v13885_v28 = vmul.f32 %v13592_v26, %v17011_v54  ;;  %8846 = vmatpush3.bf16.msra.mxu1 %v9572_v58  ;;  %v13901_v47 = vmul.f32 %v13621_v12, %v17011_v54 }
 0x9db   : > { %16996 = vst [vmem:[#allocation56_spill] sm:$0xff] %v13828_v21  ;;  %v5208_v45 = vmul.f32 %v16922_v9, %v17007_v53  ;;  %v5210_v22 = vmul.f32 %v16923_v11, %v17007_v53  ;;  %8885 = vmatprep.subr.bf16.mxu0 %v9571_v6  ;;  %v17008_v53 = vld [vmem:[#allocation94_spill] sm:$0xff]  ;;  %17010 = vst [vmem:[#allocation79_spill] sm:$0xff] %v13881_v7  ;;  %v13889_v6 = vmul.f32 %v13603_v48, %v17011_v54  ;;  %v13897_v9 = vpop.permute.xlu0 %6263 }
 0x9dc   : > { %v5568_v21 = vmul.f32 %v12838_v14, %v17008_v53  ;;  %17012 = vst [vmem:[#allocation94_spill] sm:$0xff] %v13885_v28  ;;  %v13893_v11 = vmul.f32 %v13606_v56, %v17011_v54  ;;  %v5570_v41 = vmul.f32 %v12844_v10, %v17008_v53  ;;  %8886 = vmatpush3.bf16.msra.mxu0 %v9573_v18  ;;  %17015 = vst [vmem:[#allocation168_spill] sm:$0xff] %v13901_v47  ;;  %v17028_v47 = vld [vmem:[#allocation67_spill] sm:$0xff] }
 0x9dd   : > { %17013 = vst [vmem:[#allocation65_spill] sm:$0xff] %v13889_v6  ;;  %v5265_v14 = vrot.slane %v5208_v45, 7  ;;  %v5269_v23 = vrot.slane %v5210_v22, 7  ;;  %v17016_v59 = vrot.slane %v13793_v36, 1  ;;  %v17017_v28 = vrot.slane %v13781_v2, 1 }
 0x9de   : > { %17014 = vst [vmem:[#allocation167_spill] sm:$0xff] %v13893_v11  ;;  %v6810_v45 = vmul.f32 %v12872_v57, %v13178_v30  ;;  %v6812_v10 = vmul.f32 %v12887_v29, %v13178_v30  ;;  %v17019_v22 = vrot.slane %v13808_v15, 1  ;;  %v17020_v58 = vrot.slane %v13785_v1, 1 }
 0x9df   : > { %v13908_v39 = vsel %vm5395_vm7, %v17017_v28, %v17016_v59  ;;  %v17022_v18 = vrot.slane %v13812_v61, 1  ;;  %v17023_v53 = vrot.slane %v13789_v13, 1  ;;  %v17025_v28 = vrot.slane %v13359_v17, 1 }
 0x9e0   : > { %17018 = vst [vmem:[#allocation169_spill] sm:$0xff] %v13908_v39  ;;  %v13919_v54 = vsel %vm5395_vm7, %v17020_v58, %v17019_v22  ;;  %v17026_v11 = vrot.slane %v13804_v34, 1  ;;  %v5626_v39 = vrot.slane %v5568_v21, 6  ;;  %v13937_v7 = vmul.f32 %v13580_v40, %v17028_v47 }
 0x9e1   : > { %17021 = vst [vmem:[#allocation170_spill] sm:$0xff] %v13919_v54  ;;  %v13926_v59 = vsel %vm5395_vm7, %v17023_v53, %v17022_v18  ;;  %v13941_v22 = vmul.f32 %v13583_v31, %v17028_v47  ;;  %v13945_v58 = vmul.f32 %v13586_v0, %v17028_v47  ;;  %v13949_v17 = vmul.f32 %v13589_v51, %v17028_v47  ;;  %v17137_v54 = vld [vmem:[#allocation72_spill] sm:$0xff] }
 0x9e2   : > { %17024 = vst [vmem:[#allocation171_spill] sm:$0xff] %v13926_v59  ;;  %v13933_v30 = vsel %vm5395_vm7, %v17026_v11, %v17025_v28  ;;  %17029 = vst [vmem:[#allocation67_spill] sm:$0xff] %v13937_v7  ;;  %v17033_v11 = vrot.slane %v13556_v4, 7  ;;  %v17034_v18 = vrot.slane %v13569_v19, 7  ;;  %v17036_v28 = vrot.slane %v13641_v24, 7  ;;  %v17037_v7 = vld [vmem:[#allocation80_spill] sm:$0xff] }
 0x9e3   : > { %17027 = vst [vmem:[#allocation172_spill] sm:$0xff] %v13933_v30  ;;  %17030 = vst [vmem:[#allocation173_spill] sm:$0xff] %v13941_v22  ;;  %v17038_v22 = vrot.slane %v17037_v7, 7  ;;  %v5630_v59 = vrot.slane %v5570_v41, 6  ;;  %v17039_v47 = vrot.slane %v13645_v20, 7  ;;  %v6867_v30 = vrot.slane %v6810_v45, 2 }
 0x9e4   : > { %17031 = vst [vmem:[#allocation174_spill] sm:$0xff] %v13945_v58  ;;  %17032 = vst [vmem:[#allocation175_spill] sm:$0xff] %v13949_v17  ;;  %v13954_v21 = vsel %vm3683_vm1, %v17033_v11, %v5265_v14  ;;  %v13959_v53 = vsel %vm3683_vm1, %v17034_v18, %v5269_v23  ;;  %v17040_v11 = vrot.slane %v13649_v62, 7  ;;  %v17041_v17 = vld [vmem:[#allocation81_spill] sm:$0xff]  ;;  %v6871_v24 = vrot.slane %v6812_v10, 2  ;;  %v17044_v7 = vld [vmem:[#allocation36_spill] sm:$0xff]  ;;  %v14000_v10 = vpop.permute.xlu0 %6271 }
 0x9e5   : > { %17035 = vst [vmem:[#allocation176_spill] sm:$0xff] %v13959_v53  ;;  %v13966_v58 = vsel %vm3683_vm1, %v17038_v22, %v17036_v28  ;;  %v13971_v4 = vsel %vm3683_vm1, %v5265_v14, %v17039_v47  ;;  %v17042_v19 = vrot.slane %v17041_v17, 7  ;;  %v13980_v53 = vpop.permute.xlu1 %6777  ;;  %v17045_v22 = vrot.slane %v17044_v7, 7 }
 0x9e6   : > { %v17047_v20 = vrot.slane %v13600_v8, 6  ;;  %v13994_v62 = vmul.f32 %v12586_v33, %v13388_v55  ;;  %v13998_v45 = vmul.f32 %v12589_v50, %v13388_v55  ;;  %v17050_v17 = vrot.slane %v13333_v3, 1 }
 0x9e7   : > { %v13978_v18 = vsel %vm3683_vm1, %v17042_v19, %v17040_v11  ;;  %v13985_v41 = vsel %vm3683_vm1, %v5269_v23, %v17045_v22  ;;  %v17051_v23 = vrot.slane %v13656_v49, 1  ;;  %v17053_v8 = vrot.slane %v13337_v32, 1 }
 0x9e8   : > { %17043 = vst [vmem:[#allocation80_spill] sm:$0xff] %v13978_v18  ;;  %17046 = vst [vmem:[#allocation81_spill] sm:$0xff] %v13985_v41  ;;  %v13990_v14 = vsel %vm5619_vm9, %v17047_v20, %v5626_v39  ;;  %v17054_v47 = vrot.slane %v13667_v25, 1  ;;  %v17056_v11 = vrot.slane %v13341_v44, 1  ;;  %v17057_v50 = vrot.slane %v13674_v43, 1  ;;  %v17065_v43 = vld [vmem:[#allocation46_spill] sm:$0xff] }
 0x9e9   : > { %17048 = vst [vmem:[#allocation36_spill] sm:$0xff] %v13994_v62  ;;  %17049 = vst [vmem:[#allocation177_spill] sm:$0xff] %v13998_v45  ;;  %v14007_v28 = vsel %vm5395_vm7, %v17051_v23, %v17050_v17  ;;  %v17059_v3 = vrot.slane %v13345_v27, 1  ;;  %v17060_v49 = vrot.slane %v13678_v35, 1  ;;  %v17062_v32 = vrot.slane %v13618_v37, 6  ;;  %v17067_v27 = vld [vmem:[#allocation45_spill] sm:$0xff] }
 0x9ea   : > { %17052 = vst [vmem:[#allocation178_spill] sm:$0xff] %v14007_v28  ;;  %v14014_v33 = vsel %vm5395_vm7, %v17054_v47, %v17053_v8  ;;  %v14021_v19 = vsel %vm5395_vm7, %v17057_v50, %v17056_v11  ;;  %v17064_v22 = vrot.slane %v12974_v63, 6  ;;  %v14042_v20 = vmul.f32 %v17065_v43, %v13388_v55  ;;  %v17069_v17 = vld [vmem:[#allocation95_spill] sm:$0xff]  ;;  %v17076_v11 = vld [vmem:[#allocation88_spill] sm:$0xff] }
 0x9eb   : > { %17055 = vst [vmem:[#allocation179_spill] sm:$0xff] %v14014_v33  ;;  %17058 = vst [vmem:[#allocation180_spill] sm:$0xff] %v14021_v19  ;;  %v14028_v7 = vsel %vm5395_vm7, %v17060_v49, %v17059_v3  ;;  %v14033_v25 = vsel %vm5619_vm9, %v17062_v32, %v5630_v59  ;;  %v14046_v35 = vmul.f32 %v17067_v27, %v13388_v55  ;;  %v17070_v23 = vrot.slane %v17069_v17, 6  ;;  %v14068_v3 = vpop.permute.xlu1 %6781  ;;  %v17079_v49 = vld [vmem:[#allocation89_spill] sm:$0xff]  ;;  %v7117_v17 = vpop.permute.xlu0 %7116  ;;  %v17089_v27 = vld [vmem:[#allocation143_spill] sm:$0xff] }
 0x9ec   : > { %17061 = vst [vmem:[#allocation181_spill] sm:$0xff] %v14028_v7  ;;  %17063 = vst [vmem:[#allocation182_spill] sm:$0xff] %v14033_v25  ;;  %v14038_v44 = vsel %vm5619_vm9, %v5626_v39, %v17064_v22  ;;  %v17072_v8 = vrot.slane %v13730_v42, 2  ;;  %v17074_v39 = vrot.slane %v13776_v38, 2  ;;  %v17077_v50 = vrot.slane %v17076_v11, 2  ;;  %v17082_v22 = vld [vmem:[#allocation135_spill] sm:$0xff] }
 0x9ed   : > { %17066 = vst [vmem:[#allocation46_spill] sm:$0xff] %v14042_v20  ;;  %17068 = vst [vmem:[#allocation45_spill] sm:$0xff] %v14046_v35  ;;  %v14051_v37 = vsel %vm5619_vm9, %v5630_v59, %v17070_v23  ;;  %v17080_v59 = vrot.slane %v17079_v49, 2  ;;  %v14077_v43 = vmul.f32 %v13580_v40, %v17082_v22  ;;  %v14083_v23 = vmul.f32 %v13583_v31, %v17082_v22  ;;  %v17094_v49 = vld [vmem:[#allocation20_spill] sm:$0xff]  ;;  %v17102_v38 = vld [vmem:[#allocation137_spill] sm:$0xff] }
 0x9ee   : > { %17071 = vst [vmem:[#allocation95_spill] sm:$0xff] %v14051_v37  ;;  %v14056_v63 = vsel %vm5756_vm8, %v17072_v8, %v6867_v30  ;;  %v14061_v47 = vsel %vm5756_vm8, %v17074_v39, %v6871_v24  ;;  %v14066_v55 = vsel %vm5756_vm8, %v6867_v30, %v17077_v50  ;;  %v14087_v30 = vmul.f32 %v13586_v0, %v17082_v22  ;;  %v17084_v8 = vld [vmem:[#allocation141_spill] sm:$0xff] }
 0x9ef   : > { %17073 = vst [vmem:[#allocation183_spill] sm:$0xff] %v14056_v63  ;;  %17075 = vst [vmem:[#allocation184_spill] sm:$0xff] %v14061_v47  ;;  %v14073_v32 = vsel %vm5756_vm8, %v6871_v24, %v17080_v59  ;;  %v14091_v24 = vmul.f32 %v13589_v51, %v17082_v22  ;;  %v14095_v39 = vmul.f32 %v13580_v40, %v17084_v8  ;;  %v17095_v18 = vrot.slane %v17094_v49, 7 }
 0x9f0   : > { %17078 = vst [vmem:[#allocation88_spill] sm:$0xff] %v14066_v55  ;;  %17081 = vst [vmem:[#allocation89_spill] sm:$0xff] %v14073_v32  ;;  %v14099_v11 = vmul.f32 %v13583_v31, %v17084_v8  ;;  %v14103_v50 = vmul.f32 %v13586_v0, %v17084_v8  ;;  %v14109_v22 = vmul.f32 %v13589_v51, %v17084_v8  ;;  %v17096_v8 = vrot.slane %v13994_v62, 7  ;;  %v17109_v62 = vld [vmem:[#allocation49_spill] sm:$0xff] }
 0x9f1   : > { %17083 = vst [vmem:[#allocation135_spill] sm:$0xff] %v14091_v24  ;;  %17085 = vst [vmem:[#allocation141_spill] sm:$0xff] %v14095_v39  ;;  %v14113_v39 = vmul.f32 %v13580_v40, %v17089_v27  ;;  %v14125_v59 = vmul.f32 %v13589_v51, %v17089_v27  ;;  %v17100_v47 = vrot.slane %v13998_v45, 7  ;;  %v14149_v49 = vmul.f32 %v13637_v60, %v7117_v17 }
 0x9f2   : > { %17086 = vst [vmem:[#allocation185_spill] sm:$0xff] %v14099_v11  ;;  %17087 = vst [vmem:[#allocation186_spill] sm:$0xff] %v14103_v50  ;;  %v14117_v11 = vmul.f32 %v13583_v31, %v17089_v27  ;;  %v14121_v50 = vmul.f32 %v13586_v0, %v17089_v27  ;;  %v14146_v27 = vmul.f32 %v13633_v52, %v7117_v17  ;;  %v17110_v37 = vrot.slane %v17109_v62, 7 }
 0x9f3   : > { %17088 = vst [vmem:[#allocation187_spill] sm:$0xff] %v14109_v22  ;;  %17090 = vst [vmem:[#allocation143_spill] sm:$0xff] %v14113_v39  ;;  %v14132_v22 = vsel %vm3683_vm1, %v17096_v8, %v17095_v18  ;;  %v17098_v39 = vld [vmem:[#allocation37_spill] sm:$0xff]  ;;  %v14153_v18 = vmul.f32 %v13637_v60, %v17102_v38  ;;  %v17111_v25 = vrot.slane %v14046_v35, 7  ;;  %v14176_v24 = vmul.f32 %v13661_v16, %v7117_v17  ;;  %v17135_v35 = vld [vmem:[#allocation18_spill] sm:$0xff] }
 0x9f4   : > { %17091 = vst [vmem:[#allocation188_spill] sm:$0xff] %v14117_v11  ;;  %17092 = vst [vmem:[#allocation189_spill] sm:$0xff] %v14121_v50  ;;  %v17099_v32 = vrot.slane %v17098_v39, 7  ;;  %v14143_v50 = vmul.f32 %v13633_v52, %v17102_v38  ;;  %v14157_v39 = vmul.f32 %v13661_v16, %v17102_v38  ;;  %v14179_v38 = vmul.f32 %v13329_v46, %v7117_v17 }
 0x9f5   : > { %17093 = vst [vmem:[#allocation190_spill] sm:$0xff] %v14125_v59  ;;  %17097 = vst [vmem:[#allocation20_spill] sm:$0xff] %v14132_v22  ;;  %v17107_v59 = vrot.slane %v14042_v20, 7  ;;  %v14173_v41 = vsel %vm3683_vm1, %v17111_v25, %v17110_v37  ;;  %v14191_v62 = vmul.f32 %v13606_v56, %v13897_v9  ;;  %v14195_v25 = vmul.f32 %v13621_v12, %v13897_v9  ;;  %v17119_v37 = vld [vmem:[#allocation126_spill] sm:$0xff] }
 0x9f6   : > { %v14139_v11 = vsel %vm3683_vm1, %v17100_v47, %v17099_v32  ;;  %17103 = vst [vmem:[#allocation137_spill] sm:$0xff] %v14146_v27  ;;  %17104 = vst [vmem:[#allocation191_spill] sm:$0xff] %v14149_v49  ;;  %v14159_v47 = vpop.permute.xlu1 %6275  ;;  %v17105_v32 = vld [vmem:[#allocation24_spill] sm:$0xff]  ;;  %v14199_v17 = vmul.f32 %v13592_v26, %v17119_v37  ;;  %v17132_v20 = vrot.slane %v14143_v50, 1  ;;  %v14257_v55 = vmul.f32 %v17137_v54, %v13980_v53 }
 0x9f7   : > { %17101 = vst [vmem:[#allocation37_spill] sm:$0xff] %v14139_v11  ;;  %v17106_v8 = vrot.slane %v17105_v32, 7  ;;  %17112 = vst [vmem:[#allocation49_spill] sm:$0xff] %v14173_v41  ;;  %v14183_v32 = vmul.f32 %v13592_v26, %v13897_v9  ;;  %v17138_v63 = vrot.slane %v13781_v2, 1  ;;  %v17139_v42 = vrot.slane %v14146_v27, 1 }
 0x9f8   : > { %17113 = vst [vmem:[#allocation192_spill] sm:$0xff] %v14176_v24  ;;  %17114 = vst [vmem:[#allocation193_spill] sm:$0xff] %v14179_v38  ;;  %v17147_v2 = vrot.slane %v14157_v39, 1  ;;  %v17148_v27 = vrot.slane %v13812_v61, 1  ;;  %v6829_v19 = vmul.f32 %v17137_v54, %v14068_v3  ;;  %v17183_v54 = vld [vmem:[#allocation130_spill] sm:$0xff] }
 0x9f9   : > { %v14166_v22 = vsel %vm3683_vm1, %v17107_v59, %v17106_v8  ;;  %17115 = vst [vmem:[#allocation194_spill] sm:$0xff] %v14183_v32  ;;  %v14187_v59 = vmul.f32 %v13603_v48, %v13897_v9  ;;  %17117 = vst [vmem:[#allocation196_spill] sm:$0xff] %v14191_v62  ;;  %v14203_v8 = vmul.f32 %v13603_v48, %v17119_v37  ;;  %v8561_v62 = vld [vmem:[%s16142_s19 + $0x20] ss:$8 sm:$0xf] }
 0x9fa   : > { %17108 = vst [vmem:[#allocation24_spill] sm:$0xff] %v14166_v22  ;;  %17118 = vst [vmem:[#allocation197_spill] sm:$0xff] %v14195_v25  ;;  %v14207_v32 = vmul.f32 %v13606_v56, %v17119_v37  ;;  %v14229_v9 = vmul.f32 %v13603_v48, %v14000_v10  ;;  %v17127_v22 = vld [vmem:[#allocation26_spill] sm:$0xff] }
 0x9fb   : > { %17116 = vst [vmem:[#allocation195_spill] sm:$0xff] %v14187_v59  ;;  %17120 = vst [vmem:[#allocation126_spill] sm:$0xff] %v14199_v17  ;;  %v14233_v17 = vmul.f32 %v13606_v56, %v14000_v10  ;;  %v14236_v25 = vrot.slane %v8561_v62, %v17127_v22  ;;  %v14243_v59 = vmul.f32 %v13621_v12, %v14000_v10 }
 0x9fc   : > { %17121 = vst [vmem:[#allocation198_spill] sm:$0xff] %v14203_v8  ;;  %17122 = vst [vmem:[#allocation199_spill] sm:$0xff] %v14207_v32  ;;  %v14219_v8 = vmul.f32 %v13592_v26, %v14000_v10  ;;  %v14223_v32 = vmul.f32 %v13621_v12, %v17119_v37  ;;  %v7137_v37 = vpop.permute.xlu1 %7136  ;;  %v14264_v10 = vsel %vm5395_vm7, %v17139_v42, %v17138_v63  ;;  %v17150_v63 = vrot.slane %v13789_v13, 1  ;;  %v17158_v13 = vld [vmem:[#allocation142_spill] sm:$0xff] }
 0x9fd   : > { %17125 = vst [vmem:[#allocation202_spill] sm:$0xff] %v14229_v9  ;;  %17126 = vst [vmem:[#allocation203_spill] sm:$0xff] %v14233_v17  ;;  %v14253_v17 = vrot.slane %v8561_v62, %v17135_v35  ;;  %v14285_v42 = vsel %vm5395_vm7, %v17148_v27, %v17147_v2  ;;  %v14306_v27 = vmul.f32 %v12872_v57, %v13980_v53 }
 0x9fe   : > { %17123 = vst [vmem:[#allocation200_spill] sm:$0xff] %v14219_v8  ;;  %17124 = vst [vmem:[#allocation201_spill] sm:$0xff] %v14223_v32  ;;  %v17129_v8 = vld [vmem:[#allocation29_spill] sm:$0xff]  ;;  %v17133_v32 = vrot.slane %v13793_v36, 1  ;;  %v17142_v36 = vrot.slane %v14149_v49, 1  ;;  %v14310_v2 = vmul.f32 %v14236_v25, %v17158_v13 }
 0x9ff   : > { %17128 = vst [vmem:[#allocation26_spill] sm:$0xff] %v14236_v25  ;;  %v14239_v41 = vrot.slane %v8561_v62, %v17129_v8  ;;  %17131 = vst [vmem:[#allocation204_spill] sm:$0xff] %v14243_v59  ;;  %v17141_v59 = vrot.slane %v13785_v1, 1  ;;  %v7133_v1 = vpop.permute.xlu0 %7132 }
 0xa00   : > { %v14250_v9 = vsel %vm5395_vm7, %v17133_v32, %v17132_v20  ;;  %17136 = vst [vmem:[#allocation206_spill] sm:$0xff] %v14253_v17  ;;  %17140 = vst [vmem:[#allocation72_spill] sm:$0xff] %v14264_v10  ;;  %v17144_v32 = vrot.slane %v14153_v18, 1  ;;  %v14345_v10 = vmul.f32 %v13637_v60, %v7133_v1 }
 0xa01   : > { %17130 = vst [vmem:[#allocation29_spill] sm:$0xff] %v14239_v41  ;;  %17134 = vst [vmem:[#allocation205_spill] sm:$0xff] %v14250_v9  ;;  %v14271_v20 = vsel %vm5395_vm7, %v17142_v36, %v17141_v59  ;;  %v17145_v9 = vrot.slane %v13808_v15, 1  ;;  %v17151_v59 = vrot.slane %v14176_v24, 1  ;;  %v17153_v15 = vrot.slane %v13804_v34, 1  ;;  %v17161_v34 = vld [vmem:[#allocation74_spill] sm:$0xff] }
 0xa02   : > { %17143 = vst [vmem:[#allocation207_spill] sm:$0xff] %v14271_v20  ;;  %17149 = vst [vmem:[#allocation209_spill] sm:$0xff] %v14285_v42  ;;  %v14334_v24 = vmul.f32 %v13633_v52, %v7133_v1  ;;  %v7250_v7 = vrot.slane %v14345_v10, 1  ;;  %v6831_v10 = vmul.f32 %v17161_v34, %v14068_v3 }
 0xa03   : > { %v14278_v11 = vsel %vm5395_vm7, %v17145_v9, %v17144_v32  ;;  %v14292_v36 = vsel %vm5395_vm7, %v17151_v59, %v17150_v63  ;;  %v17154_v9 = vrot.slane %v14179_v38, 1  ;;  %17159 = vst [vmem:[#allocation142_spill] sm:$0xff] %v14310_v2  ;;  %v14314_v63 = vmul.f32 %v14239_v41, %v17158_v13 }
 0xa04   : > { %17146 = vst [vmem:[#allocation208_spill] sm:$0xff] %v14278_v11  ;;  %17152 = vst [vmem:[#allocation210_spill] sm:$0xff] %v14292_v36  ;;  %v17156_v11 = vld [vmem:[#allocation19_spill] sm:$0xff]  ;;  %v14318_v59 = vmul.f32 %v17161_v34, %v13980_v53  ;;  %v6897_v36 = vrot.slane %v14257_v55, 2  ;;  %v17186_v34 = vrot.slane %v14143_v50, 1  ;;  %v6905_v50 = vrot.slane %v6829_v19, 2 }
 0xa05   : > { %v14299_v32 = vsel %vm5395_vm7, %v17154_v9, %v17153_v15  ;;  %v14302_v61 = vrot.slane %v8561_v62, %v17156_v11  ;;  %17160 = vst [vmem:[#allocation212_spill] sm:$0xff] %v14314_v63  ;;  %v14322_v62 = vmul.f32 %v12887_v29, %v13980_v53  ;;  %v14326_v15 = vmul.f32 %v14253_v17, %v17158_v13  ;;  %v17163_v9 = vld [vmem:[#allocation144_spill] sm:$0xff] }
 0xa06   : > { %17155 = vst [vmem:[#allocation211_spill] sm:$0xff] %v14299_v32  ;;  %v14330_v42 = vmul.f32 %v14236_v25, %v17163_v9  ;;  %v14338_v2 = vmul.f32 %v14239_v41, %v17163_v9  ;;  %v14342_v53 = vmul.f32 %v14253_v17, %v17163_v9  ;;  %v17168_v32 = vld [vmem:[#allocation150_spill] sm:$0xff]  ;;  %v6901_v49 = vrot.slane %v14318_v59, 2 }
 0xa07   : > { %17157 = vst [vmem:[#allocation19_spill] sm:$0xff] %v14302_v61  ;;  %17162 = vst [vmem:[#allocation74_spill] sm:$0xff] %v14326_v15  ;;  %v14348_v15 = vmul.f32 %v13661_v16, %v7133_v1  ;;  %v14354_v55 = vmul.f32 %v14302_v61, %v17158_v13  ;;  %v14358_v38 = vmul.f32 %v13580_v40, %v17168_v32  ;;  %v6903_v13 = vrot.slane %v14322_v62, 2  ;;  %v4576_v62 = vld [vmem:[%s16141_s18] sm:$0xf] }
 0xa08   : > { %17164 = vst [vmem:[#allocation144_spill] sm:$0xff] %v14330_v42  ;;  %17165 = vst [vmem:[#allocation213_spill] sm:$0xff] %v14338_v2  ;;  %v14350_v42 = vpop.permute.xlu1 %7503  ;;  %v6899_v2 = vrot.slane %v14306_v27, 2  ;;  %v14364_v63 = vmul.f32 %v14302_v61, %v17163_v9  ;;  %v14368_v20 = vmul.f32 %v13583_v31, %v17168_v32  ;;  %v14378_v27 = vmul.f32 %v13589_v51, %v17168_v32 }
 0xa09   : > { %17166 = vst [vmem:[#allocation214_spill] sm:$0xff] %v14342_v53  ;;  %17167 = vst [vmem:[#allocation215_spill] sm:$0xff] %v14354_v55  ;;  %v7183_v53 = vmul.f32 %v13329_v46, %v7133_v1  ;;  %v14374_v55 = vmul.f32 %v13586_v0, %v17168_v32  ;;  %v17174_v1 = vld [vmem:[#allocation127_spill] sm:$0xff]  ;;  %v7252_v59 = vrot.slane %v14348_v15, 1  ;;  %v6830_v32 = vmul.f32 %v12872_v57, %v14068_v3 }
 0xa0a   : > { %17169 = vst [vmem:[#allocation150_spill] sm:$0xff] %v14358_v38  ;;  %17170 = vst [vmem:[#allocation216_spill] sm:$0xff] %v14364_v63  ;;  %v17175_v45 = vrot.slane %v17174_v1, 2  ;;  %v7248_v63 = vrot.slane %v14334_v24, 1  ;;  %v17177_v1 = vld [vmem:[#allocation128_spill] sm:$0xff]  ;;  %v6832_v15 = vmul.f32 %v12887_v29, %v14068_v3  ;;  %v14422_v29 = vrot.slane %v4576_v62, %v17127_v22 }
 0xa0b   : > { %17171 = vst [vmem:[#allocation217_spill] sm:$0xff] %v14368_v20  ;;  %17172 = vst [vmem:[#allocation218_spill] sm:$0xff] %v14374_v55  ;;  %v17178_v33 = vrot.slane %v17177_v1, 2  ;;  %v7254_v24 = vrot.slane %v7183_v53, 1  ;;  %v17184_v55 = vrot.slane %v17183_v54, 2  ;;  %v7185_v53 = vmul.f32 %v13637_v60, %v7137_v37 }
 0xa0c   : > { %17173 = vst [vmem:[#allocation219_spill] sm:$0xff] %v14378_v27  ;;  %v14383_v9 = vsel %vm5756_vm8, %v17175_v45, %v6897_v36  ;;  %v7508_v1 = vpop.permute.xlu1 %7507  ;;  %v7187_v3 = vmul.f32 %v13329_v46, %v7137_v37  ;;  %v17190_v54 = vrot.slane %v14157_v39, 1  ;;  %v6911_v6 = vrot.slane %v6832_v15, 2 }
 0xa0d   : > { %17176 = vst [vmem:[#allocation127_spill] sm:$0xff] %v14383_v9  ;;  %v14398_v45 = vsel %vm5756_vm8, %v17178_v33, %v6899_v2  ;;  %v17180_v9 = vld [vmem:[#allocation129_spill] sm:$0xff]  ;;  %v14412_v57 = vsel %vm5756_vm8, %v17184_v55, %v6903_v13  ;;  %v7184_v33 = vmul.f32 %v13633_v52, %v7137_v37  ;;  %v17188_v55 = vrot.slane %v14153_v18, 1 }
 0xa0e   : > { %17179 = vst [vmem:[#allocation128_spill] sm:$0xff] %v14398_v45  ;;  %v17181_v28 = vrot.slane %v17180_v9, 2  ;;  %17185 = vst [vmem:[#allocation130_spill] sm:$0xff] %v14412_v57  ;;  %v14419_v45 = vsel %vm5395_vm7, %v17186_v34, %v7248_v63  ;;  %v14434_v57 = vsel %vm5395_vm7, %v17190_v54, %v7252_v59  ;;  %v6907_v34 = vrot.slane %v6830_v32, 2 }
 0xa0f   : > { %17187 = vst [vmem:[#allocation220_spill] sm:$0xff] %v14419_v45  ;;  %v14429_v9 = vsel %vm5395_vm7, %v17188_v55, %v7250_v7  ;;  %17191 = vst [vmem:[#allocation222_spill] sm:$0xff] %v14434_v57  ;;  %v7141_v45 = vpop.permute.xlu0 %7140  ;;  %v6909_v18 = vrot.slane %v6831_v10, 2  ;;  %v14445_v55 = vrot.slane %v4576_v62, %v17129_v8  ;;  %v14448_v39 = vrot.slane %v4576_v62, %v17156_v11 }
 0xa10   : > { %v14407_v27 = vsel %vm5756_vm8, %v17181_v28, %v6901_v49  ;;  %v7186_v28 = vmul.f32 %v13661_v16, %v7137_v37  ;;  %17189 = vst [vmem:[#allocation221_spill] sm:$0xff] %v14429_v9  ;;  %v14442_v37 = vrot.slane %v4576_v62, %v17135_v35  ;;  %v7256_v54 = vrot.slane %v7184_v33, 1  ;;  %v6280_v62 = vpop.permute.xlu1 %6279 }
 0xa11   : > { %17182 = vst [vmem:[#allocation129_spill] sm:$0xff] %v14407_v27  ;;  %v17192_v27 = vld [vmem:[#allocation149_spill] sm:$0xff]  ;;  %v7258_v19 = vrot.slane %v7185_v53, 1  ;;  %v7262_v57 = vrot.slane %v7187_v3, 1  ;;  %v14456_v10 = vsel %vm5756_vm8, %v6899_v2, %v6907_v34  ;;  %v7190_v15 = vmul.f32 %v13661_v16, %v7141_v45 }
 0xa12   : > { %v17193_v20 = vrot.slane %v17192_v27, 1  ;;  %v7260_v32 = vrot.slane %v7186_v28, 1  ;;  %v7188_v27 = vmul.f32 %v13633_v52, %v7141_v45  ;;  %v7191_v9 = vmul.f32 %v13329_v46, %v7141_v45 }
 0xa13   : > { %v14461_v33 = vsel %vm5756_vm8, %v6901_v49, %v6909_v18  ;;  %v14464_v53 = vsel %vm5756_vm8, %v6903_v13, %v6911_v6  ;;  %v14468_v52 = vmul.f32 %v13592_v26, %v14159_v47  ;;  %v14476_v16 = vmul.f32 %v13606_v56, %v14159_v47 }
 0xa14   : > { %v14439_v38 = vsel %vm5395_vm7, %v17193_v20, %v7254_v24  ;;  %v7189_v20 = vmul.f32 %v13637_v60, %v7141_v45  ;;  %v14472_v60 = vmul.f32 %v13603_v48, %v14159_v47  ;;  %v14480_v46 = vmul.f32 %v13621_v12, %v14159_v47 }
 0xa15   : > { %17194 = vst [vmem:[#allocation149_spill] sm:$0xff] %v14439_v38  ;;  %v14453_v38 = vsel %vm5756_vm8, %v6897_v36, %v6905_v50  ;;  %v14483_v49 = vsel %vm5395_vm7, %v7248_v63, %v7256_v54  ;;  %v14486_v6 = vsel %vm5395_vm7, %v7250_v7, %v7258_v19  ;;  %v14489_v36 = vsel %vm5395_vm7, %v7252_v59, %v7260_v32  ;;  %v5037_v7 = vpop.permute.xlu0 %5036 }
 0xa16   : > { %17195 = vst [vmem:[#allocation223_spill] sm:$0xff] %v14489_v36  ;;  %v14492_v2 = vsel %vm5395_vm7, %v7254_v24, %v7262_v57  ;;  %v7264_v13 = vrot.slane %v7188_v27, 1  ;;  %v7266_v45 = vrot.slane %v7189_v20, 1  ;;  %v14496_v28 = vmul.f32 %v14236_v25, %v14350_v42 }
 0xa17   : > { %17196 = vst [vmem:[#allocation224_spill] sm:$0xff] %v14492_v2  ;;  %v14500_v47 = vmul.f32 %v14239_v41, %v14350_v42  ;;  %v7268_v63 = vrot.slane %v7190_v15, 1  ;;  %v7270_v3 = vrot.slane %v7191_v9, 1  ;;  %v14504_v59 = vmul.f32 %v14253_v17, %v14350_v42 }
 0xa18   : > { %v14508_v24 = vmul.f32 %v14302_v61, %v14350_v42  ;;  %v14511_v50 = vmul.f32 %v14236_v25, %v7508_v1  ;;  %v14514_v34 = vmul.f32 %v14239_v41, %v7508_v1  ;;  %v14517_v18 = vmul.f32 %v14253_v17, %v7508_v1  ;;  %v7512_v42 = vpop.permute.xlu1 %7511 }
 0xa19   : > { %v14520_v9 = vmul.f32 %v14302_v61, %v7508_v1  ;;  %v14523_v27 = vmul.f32 %v13592_v26, %v6280_v62  ;;  %v14526_v20 = vmul.f32 %v13603_v48, %v6280_v62  ;;  %v14529_v15 = vsel %vm5395_vm7, %v7256_v54, %v7264_v13 }
 0xa1a   : > { %v14532_v35 = vsel %vm5395_vm7, %v7258_v19, %v7266_v45  ;;  %v14535_v2 = vmul.f32 %v13606_v56, %v6280_v62  ;;  %v14538_v36 = vmul.f32 %v13621_v12, %v6280_v62  ;;  %v14541_v1 = vsel %vm5395_vm7, %v7260_v32, %v7268_v63  ;;  %v7516_v19 = vpop.permute.xlu0 %7515 }
 0xa1b   : > { %17197 = vst [vmem:[#allocation225_spill] sm:$0xff] %v14520_v9  ;;  %17198 = vst [vmem:[#allocation226_spill] sm:$0xff] %v14523_v27  ;;  %v14544_v26 = vsel %vm5395_vm7, %v7262_v57, %v7270_v3  ;;  %v14547_v48 = vmul.f32 %v13580_v40, %v5037_v7  ;;  %v14550_v54 = vmul.f32 %v13583_v31, %v5037_v7 }
 0xa1c   : > { %17199 = vst [vmem:[#allocation227_spill] sm:$0xff] %v14526_v20  ;;  %17200 = vst [vmem:[#allocation228_spill] sm:$0xff] %v14535_v2  ;;  %v14553_v56 = vmul.f32 %v13586_v0, %v5037_v7  ;;  %v14556_v12 = vmul.f32 %v13589_v51, %v5037_v7  ;;  %v14559_v32 = vmul.f32 %v14236_v25, %v7512_v42 }
 0xa1d   : > { %17201 = vst [vmem:[#allocation229_spill] sm:$0xff] %v14538_v36  ;;  %17202 = vst [vmem:[#allocation230_spill] sm:$0xff] %v14544_v26  ;;  %v14562_v57 = vmul.f32 %v14239_v41, %v7512_v42  ;;  %v14567_v3 = vmul.f32 %v14253_v17, %v7512_v42  ;;  %v14570_v0 = vmul.f32 %v14302_v61, %v7512_v42  ;;  %v17297_v26 = vld [vmem:[#allocation121_spill] sm:$0xff] }
 0xa1e   : > { %17203 = vst [vmem:[#allocation231_spill] sm:$0xff] %v14559_v32  ;;  %v14575_v36 = vmul.f32 %v14236_v25, %v7516_v19 }
 0xa1f   : > { %17204 = vst [vmem:[#allocation232_spill] sm:$0xff] %v14562_v57  ;;  %17205 = vst [vmem:[#allocation233_spill] sm:$0xff] %v14567_v3 }
 0xa20   : > { %17206 = vst [vmem:[#allocation234_spill] sm:$0xff] %v14570_v0  ;;  %17207 = vst [vmem:[#allocation235_spill] sm:$0xff] %v14575_v36 }
 0xa6f   : > { %v4792_v13 = vpop.f32.mrb[80].mxu1  ;;  %v4863_v45 = vpop.f32.mrb[64].mxu0 }
 0xa70   : > { %v4793_v40 = vadd.f32 %v4792_v13, %v14422_v29  ;;  %v4864_v31 = vadd.f32 %v4863_v45, %v14442_v37  ;;  %v4794_v62 = vpop.f32.mrb[81].mxu1  ;;  %v4865_v63 = vpop.f32.mrb[65].mxu0  ;;  %v14578_v13 = vmul.f32 %v14239_v41, %v7516_v19 }
 0xa71   : > { %v4795_v51 = vadd.f32 %v4794_v62, %v14445_v55  ;;  %v4866_v7 = vadd.f32 %v4865_v63, %v14448_v39  ;;  %v4796_v2 = vpop.f32.mrb[82].mxu1  ;;  %v4867_v27 = vpop.f32.mrb[66].mxu0 }
 0xa72   : > { %17208 = vst [vmem:[#allocation236_spill] sm:$0xff] %v14578_v13  ;;  %v4900_v45 = vmax.f32 %v4793_v40, 0.0  ;;  %v14580_v20 = vmax.f32 %v4864_v31, 0.0  ;;  %v4797_v3 = vadd.f32 %v4796_v2, %v14422_v29  ;;  %v4868_v42 = vadd.f32 %v4867_v27, %v14442_v37  ;;  %v4798_v0 = vpop.f32.mrb[83].mxu1  ;;  %v4869_v57 = vpop.f32.mrb[67].mxu0  ;;  %v17210_v27 = vld [vmem:[#allocation86_spill] sm:$0xff] }
 0xa73   : > { %v4901_v62 = vmax.f32 %v4795_v51, 0.0  ;;  %v4903_v32 = vmax.f32 %v4866_v7, 0.0  ;;  %v4799_v63 = vadd.f32 %v4798_v0, %v14445_v55  ;;  %v4870_v9 = vadd.f32 %v4869_v57, %v14448_v39  ;;  %v7627_v2 = vld [vmem:[%s16143_s20] sm:$0xf]  ;;  %v17211_v57 = vld [vmem:[#allocation105_spill] sm:$0xff] }
 0xa74   : > { %4940 = vst [vmem:[#allocation3 + $0x20] sm:$0xff] %v4900_v45  ;;  %4942 = vst [vmem:[#allocation3 + $0x30] sm:$0xff] %v14580_v20  ;;  %v4904_v41 = vmax.f32 %v4797_v3, 0.0  ;;  %v4906_v25 = vmax.f32 %v4868_v42, 0.0  ;;  %v14588_v40 = vmul.f32 %v14253_v17, %v7516_v19  ;;  %v14594_v31 = vmul.f32 %v17210_v27, %v4900_v45  ;;  %v17213_v13 = vld [vmem:[#allocation39_spill] sm:$0xff] }
 0xa75   : > { %4941 = vst [vmem:[#allocation3 + $0x28] sm:$0xff] %v4901_v62  ;;  %4943 = vst [vmem:[#allocation3 + $0x38] sm:$0xff] %v4903_v32  ;;  %v4905_v0 = vmax.f32 %v4799_v63, 0.0  ;;  %v4907_v51 = vmax.f32 %v4870_v9, 0.0  ;;  %v14597_v7 = vmul.f32 %v17211_v57, %v4900_v45  ;;  %v14600_v3 = vmul.f32 %v17213_v13, %v4900_v45 }
 0xa76   : > { %17209 = vst [vmem:[#allocation237_spill] sm:$0xff] %v14588_v40  ;;  %4944 = vst [vmem:[#allocation3 + $0x40] sm:$0xff] %v4904_v41  ;;  %v14603_v42 = vmul.f32 %v14302_v61, %v7516_v19  ;;  %v14606_v17 = vrot.slane %v7627_v2, %v17129_v8  ;;  %v14609_v27 = vmul.f32 %v13966_v58, %v4904_v41  ;;  %v5397_v32 = vrot.slane %v14594_v31, 1 }
 0xa77   : > { %17212 = vst [vmem:[#allocation86_spill] sm:$0xff] %v14597_v7  ;;  %17214 = vst [vmem:[#allocation105_spill] sm:$0xff] %v14600_v3  ;;  %v4802_v9 = vpop.f32.mrb[84].mxu1  ;;  %v4873_v62 = vpop.f32.mrb[68].mxu0  ;;  %v14613_v13 = vrot.slane %v7627_v2, %v17156_v11  ;;  %v14620_v8 = vrot.slane %v7627_v2, %v17127_v22  ;;  %v17223_v22 = vld [vmem:[#allocation34_spill] sm:$0xff] }
 0xa78   : > { %4946 = vst [vmem:[#allocation3 + $0x50] sm:$0xff] %v4906_v25  ;;  %17215 = vst [vmem:[#allocation39_spill] sm:$0xff] %v14603_v42  ;;  %v14616_v25 = vmul.f32 %v14077_v43, %v4900_v45  ;;  %v4803_v58 = vadd.f32 %v4802_v9, %v14422_v29  ;;  %v4874_v63 = vadd.f32 %v4873_v62, %v14442_v37  ;;  %v4804_v31 = vpop.f32.mrb[85].mxu1  ;;  %v17224_v9 = vrot.slane %v14597_v7, 2 }
 0xa79   : > { %17216 = vst [vmem:[#allocation238_spill] sm:$0xff] %v14606_v17  ;;  %17217 = vst [vmem:[#allocation239_spill] sm:$0xff] %v14609_v27  ;;  %v4805_v43 = vadd.f32 %v4804_v31, %v14445_v55  ;;  %v4806_v19 = vpop.f32.mrb[86].mxu1 }
 0xa7a   : > { %4945 = vst [vmem:[#allocation3 + $0x48] sm:$0xff] %v4905_v0  ;;  %4947 = vst [vmem:[#allocation3 + $0x58] sm:$0xff] %v4907_v51  ;;  %v4875_v0 = vpop.f32.mrb[69].mxu0  ;;  %v17221_v51 = vld [vmem:[#allocation28_spill] sm:$0xff]  ;;  %v4808_v17 = vpop.f32.mrb[87].mxu1 }
 0xa7b   : > { %17218 = vst [vmem:[#allocation240_spill] sm:$0xff] %v14613_v13  ;;  %17219 = vst [vmem:[#allocation241_spill] sm:$0xff] %v14616_v25  ;;  %v17222_v57 = vrot.slane %v17221_v51, 1  ;;  %v4876_v45 = vadd.f32 %v4875_v0, %v14448_v39  ;;  %v4877_v42 = vpop.f32.mrb[70].mxu0  ;;  %v4908_v25 = vmax.f32 %v4803_v58, 0.0  ;;  %v4910_v51 = vmax.f32 %v4874_v63, 0.0 }
 0xa7c   : > { %17220 = vst [vmem:[#allocation242_spill] sm:$0xff] %v14620_v8  ;;  %v17225_v8 = vld [vmem:[#allocation30_spill] sm:$0xff]  ;;  %v4878_v11 = vadd.f32 %v4877_v42, %v14442_v37  ;;  %v4879_v31 = vpop.f32.mrb[71].mxu0  ;;  %v4909_v40 = vmax.f32 %v4805_v43, 0.0  ;;  %v4809_v36 = vadd.f32 %v4808_v17, %v14445_v55  ;;  %v4980_v7 = vld [vmem:[#allocation3 + $0x28] sm:$0xff] }
 0xa7d   : > { %v5398_v61 = vsel %vm5395_vm7, %v17222_v57, %v5397_v32  ;;  %v17226_v62 = vrot.slane %v17225_v8, 2  ;;  %v4807_v57 = vadd.f32 %v4806_v19, %v14422_v29  ;;  %v4911_v0 = vmax.f32 %v4876_v45, 0.0  ;;  %4948 = vst [vmem:[#allocation3 + $0x60] sm:$0xff] %v4908_v25  ;;  %4950 = vst [vmem:[#allocation3 + $0x70] sm:$0xff] %v4910_v51  ;;  %v17230_v45 = vld [vmem:[#allocation41_spill] sm:$0xff] }
 0xa7e   : > { %v5476_v2 = vadd.f32 %v5398_v61, %v17223_v22  ;;  %v4880_v61 = vadd.f32 %v4879_v31, %v14448_v39  ;;  %v4914_v8 = vmax.f32 %v4878_v11, 0.0  ;;  %4949 = vst [vmem:[#allocation3 + $0x68] sm:$0xff] %v4909_v40  ;;  %v4913_v42 = vmax.f32 %v4809_v36, 0.0 }
 0xa7f   : > { %v5759_v13 = vsel %vm5756_vm8, %v17226_v62, %v17224_v9  ;;  %v4912_v22 = vmax.f32 %v4807_v57, 0.0  ;;  %v17227_v9 = vld [vmem:[#allocation108_spill] sm:$0xff]  ;;  %4951 = vst [vmem:[#allocation3 + $0x78] sm:$0xff] %v4911_v0  ;;  %v5344_v43 = vmul.f32 %v13954_v21, %v4980_v7  ;;  %v14647_v17 = vmul.f32 %v17230_v45, %v4904_v41  ;;  %v17233_v62 = vld [vmem:[#allocation73_spill] sm:$0xff] }
 0xa80   : > { %v14641_v58 = vmul.f32 %v17227_v9, %v4904_v41  ;;  %v14643_v63 = vadd.f32 %v5759_v13, %v5476_v2  ;;  %v4915_v19 = vmax.f32 %v4880_v61, 0.0  ;;  %4954 = vst [vmem:[#allocation3 + $0x90] sm:$0xff] %v4914_v8  ;;  %v14652_v11 = vmul.f32 %v13990_v14, %v4980_v7  ;;  %4953 = vst [vmem:[#allocation3 + $0x88] sm:$0xff] %v4913_v42  ;;  %v17239_v2 = vld [vmem:[#allocation87_spill] sm:$0xff]  ;;  %v17245_v9 = vld [vmem:[#allocation40_spill] sm:$0xff] }
 0xa81   : > { %17231 = vst [vmem:[#allocation30_spill] sm:$0xff] %v14647_v17  ;;  %4952 = vst [vmem:[#allocation3 + $0x80] sm:$0xff] %v4912_v22  ;;  %v14649_v25 = vld [vmem:[#allocation3 + $0x48] sm:$0xff]  ;;  %v14655_v51 = vmul.f32 %v17233_v62, %v4980_v7  ;;  %v14660_v36 = vmul.f32 %v14087_v30, %v14580_v20  ;;  %v5400_v41 = vrot.slane %v5344_v43, 1  ;;  %v17237_v13 = vrot.slane %v14609_v27, 1 }
 0xa82   : > { %17228 = vst [vmem:[#allocation28_spill] sm:$0xff] %v14641_v58  ;;  %17229 = vst [vmem:[#allocation34_spill] sm:$0xff] %v14643_v63  ;;  %v14664_v21 = vmul.f32 %v13971_v4, %v14649_v25  ;;  %v14673_v57 = vmul.f32 %v17239_v2, %v14580_v20  ;;  %v14676_v31 = vmul.f32 %v14496_v28, %v4912_v22  ;;  %v16392_v4 = vrot.slane %v14652_v11, 2  ;;  %v4812_v22 = vpop.f32.mrb[88].mxu1  ;;  %v4883_v45 = vpop.f32.mrb[72].mxu0 }
 0xa83   : > { %17232 = vst [vmem:[#allocation108_spill] sm:$0xff] %v14649_v25  ;;  %17234 = vst [vmem:[#allocation41_spill] sm:$0xff] %v14655_v51  ;;  %v14669_v14 = vsel %vm5395_vm7, %v5397_v32, %v17237_v13  ;;  %v14679_v30 = vmul.f32 %v14504_v59, %v4914_v8  ;;  %v5093_v0 = vmul.f32 %v14083_v23, %v4980_v7  ;;  %v17246_v43 = vrot.slane %v17245_v9, 1  ;;  %v17247_v59 = vld [vmem:[#allocation38_spill] sm:$0xff]  ;;  %v4814_v13 = vpop.f32.mrb[89].mxu1  ;;  %v4885_v2 = vpop.f32.mrb[73].mxu0 }
 0xa84   : > { %17235 = vst [vmem:[#allocation73_spill] sm:$0xff] %v14660_v36  ;;  %4955 = vst [vmem:[#allocation3 + $0x98] sm:$0xff] %v4915_v19  ;;  %v14684_v61 = vmul.f32 %v14500_v47, %v4913_v42  ;;  %v14687_v32 = vmul.f32 %v14508_v24, %v4915_v19  ;;  %v16391_v28 = vrot.slane %v14664_v21, 1  ;;  %v14698_v23 = vmul.f32 %v14038_v44, %v14649_v25  ;;  %v17250_v47 = vld [vmem:[#allocation22_spill] sm:$0xff]  ;;  %v4887_v40 = vpop.f32.mrb[74].mxu0 }
 0xa85   : > { %17236 = vst [vmem:[#allocation243_spill] sm:$0xff] %v14664_v21  ;;  %17238 = vst [vmem:[#allocation244_spill] sm:$0xff] %v14669_v14  ;;  %v5401_v20 = vsel %vm5395_vm7, %v17246_v43, %v5400_v41  ;;  %v14702_v42 = vmul.f32 %v17250_v47, %v14649_v25  ;;  %v4813_v19 = vadd.f32 %v4812_v22, %v14422_v29  ;;  %v17253_v43 = vld [vmem:[#allocation65_spill] sm:$0xff]  ;;  %v4816_v47 = vpop.f32.mrb[90].mxu1 }
 0xa86   : > { %17240 = vst [vmem:[#allocation87_spill] sm:$0xff] %v14673_v57  ;;  %17241 = vst [vmem:[#allocation245_spill] sm:$0xff] %v14676_v31  ;;  %v14694_v8 = vadd.f32 %v5401_v20, %v17247_v59  ;;  %v4884_v62 = vadd.f32 %v4883_v45, %v14442_v37  ;;  %v14708_v9 = vmul.f32 %v13854_v5, %v4980_v7  ;;  %v17255_v45 = vld [vmem:[#allocation68_spill] sm:$0xff]  ;;  %v4889_v31 = vpop.f32.mrb[75].mxu0 }
 0xa87   : > { %17242 = vst [vmem:[#allocation246_spill] sm:$0xff] %v14679_v30  ;;  %17243 = vst [vmem:[#allocation247_spill] sm:$0xff] %v14684_v61  ;;  %v14712_v20 = vmul.f32 %v17253_v43, %v14649_v25  ;;  %v4815_v44 = vadd.f32 %v4814_v13, %v14445_v55  ;;  %v4886_v59 = vadd.f32 %v4885_v2, %v14448_v39  ;;  %v17256_v24 = vrot.slane %v17255_v45, 2  ;;  %v4818_v30 = vpop.f32.mrb[91].mxu1 }
 0xa88   : > { %17244 = vst [vmem:[#allocation248_spill] sm:$0xff] %v14687_v32  ;;  %17248 = vst [vmem:[#allocation40_spill] sm:$0xff] %v14694_v8  ;;  %v5411_v22 = vsel %vm5395_vm7, %v5400_v41, %v16391_v28  ;;  %v14726_v7 = vmax.f32 %v4813_v19, 0.0  ;;  %v14728_v43 = vmax.f32 %v4884_v62, 0.0  ;;  %v4817_v13 = vadd.f32 %v4816_v47, %v14422_v29 }
 0xa89   : > { %17249 = vst [vmem:[#allocation38_spill] sm:$0xff] %v14698_v23  ;;  %17251 = vst [vmem:[#allocation22_spill] sm:$0xff] %v14702_v42  ;;  %v14724_v5 = vsel %vm5756_vm8, %v17256_v24, %v16392_v4  ;;  %v4888_v2 = vadd.f32 %v4887_v40, %v14442_v37  ;;  %v14732_v32 = vmax.f32 %v4815_v44, 0.0  ;;  %v14734_v41 = vmax.f32 %v4886_v59, 0.0  ;;  %v17259_v44 = vld [vmem:[#allocation43_spill] sm:$0xff] }
 0xa8a   : > { %17252 = vst [vmem:[#allocation249_spill] sm:$0xff] %v14708_v9  ;;  %17254 = vst [vmem:[#allocation65_spill] sm:$0xff] %v14712_v20  ;;  %v4819_v28 = vadd.f32 %v4818_v30, %v14445_v55  ;;  %v4890_v45 = vadd.f32 %v4889_v31, %v14448_v39  ;;  %v14740_v24 = vmax.f32 %v4817_v13, 0.0  ;;  %v17258_v62 = vrot.slane %v14655_v51, 7  ;;  %v4893_v40 = vpop.f32.mrb[76].mxu0 }
 0xa8b   : > { %17257 = vst [vmem:[#allocation68_spill] sm:$0xff] %v14724_v5  ;;  %4956 = vst [vmem:[#allocation3 + $0xa0] sm:$0xff] %v14726_v7  ;;  %v14742_v19 = vmax.f32 %v4888_v2, 0.0  ;;  %v17260_v47 = vrot.slane %v17259_v44, 7  ;;  %v14758_v13 = vadd.f32 %v5411_v22, %v5093_v0  ;;  %v17263_v44 = vld [vmem:[#allocation150_spill] sm:$0xff]  ;;  %v17266_v0 = vld [vmem:[#allocation219_spill] sm:$0xff]  ;;  %v4894_v63 = vadd.f32 %v4893_v40, %v14442_v37 }
 0xa8c   : > { %4958 = vst [vmem:[#allocation3 + $0xb0] sm:$0xff] %v14728_v43  ;;  %4957 = vst [vmem:[#allocation3 + $0xa8] sm:$0xff] %v14732_v32  ;;  %v14754_v31 = vmax.f32 %v4819_v28, 0.0  ;;  %v14756_v30 = vmax.f32 %v4890_v45, 0.0  ;;  %v17265_v28 = vld [vmem:[#allocation218_spill] sm:$0xff]  ;;  %v14777_v22 = vmul.f32 %v17266_v0, %v14734_v41  ;;  %v4822_v2 = vpop.f32.mrb[92].mxu1 }
 0xa8d   : > { %v14750_v59 = vsel %vm3683_vm1, %v17260_v47, %v17258_v62  ;;  %4959 = vst [vmem:[#allocation3 + $0xb8] sm:$0xff] %v14734_v41  ;;  %17262 = vst [vmem:[#allocation250_spill] sm:$0xff] %v14758_v13  ;;  %v14765_v62 = vmul.f32 %v17263_v44, %v14726_v7  ;;  %v17264_v47 = vld [vmem:[#allocation217_spill] sm:$0xff]  ;;  %v14773_v45 = vmul.f32 %v17265_v28, %v14728_v43  ;;  %v17267_v44 = vld [vmem:[#allocation75_spill] sm:$0xff]  ;;  %v4824_v17 = vpop.f32.mrb[93].mxu1  ;;  %v4895_v3 = vpop.f32.mrb[77].mxu0 }
 0xa8e   : > { %17261 = vst [vmem:[#allocation43_spill] sm:$0xff] %v14750_v59  ;;  %4960 = vst [vmem:[#allocation3 + $0xc0] sm:$0xff] %v14740_v24  ;;  %v14769_v4 = vmul.f32 %v17264_v47, %v14732_v32  ;;  %v14783_v27 = vmul.f32 %v17267_v44, %v14726_v7  ;;  %v17269_v47 = vld [vmem:[#allocation76_spill] sm:$0xff]  ;;  %v17271_v28 = vld [vmem:[#allocation77_spill] sm:$0xff]  ;;  %v4823_v57 = vadd.f32 %v4822_v2, %v14422_v29  ;;  %v4897_v9 = vpop.f32.mrb[78].mxu0  ;;  %v4926_v2 = vmax.f32 %v4894_v63, 0.0 }
 0xa8f   : > { %4962 = vst [vmem:[#allocation3 + $0xd0] sm:$0xff] %v14742_v19  ;;  %4961 = vst [vmem:[#allocation3 + $0xc8] sm:$0xff] %v14754_v31  ;;  %v14787_v61 = vmul.f32 %v17269_v47, %v14732_v32  ;;  %v14791_v21 = vmul.f32 %v17271_v28, %v14728_v43  ;;  %v17273_v0 = vld [vmem:[#allocation78_spill] sm:$0xff]  ;;  %v17277_v47 = vld [vmem:[#allocation119_spill] sm:$0xff]  ;;  %v4825_v28 = vadd.f32 %v4824_v17, %v14445_v55  ;;  %v4898_v59 = vpop.f32.mrb[79].mxu0  ;;  %v17289_v63 = vrot.slane %v14652_v11, 2 }
 0xa90   : > { %4963 = vst [vmem:[#allocation3 + $0xd8] sm:$0xff] %v14756_v30  ;;  %17268 = vst [vmem:[#allocation150_spill] sm:$0xff] %v14783_v27  ;;  %v14795_v36 = vmul.f32 %v17273_v0, %v14734_v41  ;;  %v17275_v44 = vld [vmem:[#allocation118_spill] sm:$0xff]  ;;  %v14805_v14 = vmul.f32 %v17277_v47, %v14732_v32  ;;  %v4896_v20 = vadd.f32 %v4895_v3, %v14448_v39  ;;  %v4826_v0 = vpop.f32.mrb[94].mxu1  ;;  %v4924_v40 = vmax.f32 %v4823_v57, 0.0  ;;  %v17279_v55 = vld [vmem:[#allocation120_spill] sm:$0xff] }
 0xa91   : > { %17270 = vst [vmem:[#allocation217_spill] sm:$0xff] %v14787_v61  ;;  %17272 = vst [vmem:[#allocation218_spill] sm:$0xff] %v14791_v21  ;;  %v14801_v58 = vmul.f32 %v17275_v44, %v14726_v7  ;;  %v4827_v25 = vpop.f32.mrb[95].mxu1  ;;  %v4925_v47 = vmax.f32 %v4825_v28, 0.0  ;;  %v14815_v17 = vmul.f32 %v17279_v55, %v14728_v43  ;;  %v17281_v39 = vld [vmem:[#allocation124_spill] sm:$0xff]  ;;  %v17283_v57 = vld [vmem:[#allocation145_spill] sm:$0xff]  ;;  %v14833_v28 = vmul.f32 %v14511_v50, %v14726_v7 }
 0xa92   : > { %17274 = vst [vmem:[#allocation219_spill] sm:$0xff] %v14795_v36  ;;  %17278 = vst [vmem:[#allocation76_spill] sm:$0xff] %v14805_v14  ;;  %v4927_v42 = vmax.f32 %v4896_v20, 0.0  ;;  %v14819_v3 = vmul.f32 %v17281_v39, %v14734_v41  ;;  %v14825_v9 = vmul.f32 %v17283_v57, %v14740_v24  ;;  %v17284_v20 = vld [vmem:[#allocation146_spill] sm:$0xff]  ;;  %v17286_v55 = vld [vmem:[#allocation147_spill] sm:$0xff] }
 0xa93   : > { %17276 = vst [vmem:[#allocation75_spill] sm:$0xff] %v14801_v58  ;;  %17280 = vst [vmem:[#allocation77_spill] sm:$0xff] %v14815_v17  ;;  %v14829_v59 = vmul.f32 %v17284_v20, %v14754_v31  ;;  %v14837_v39 = vmul.f32 %v17286_v55, %v14742_v19  ;;  %v17287_v57 = vld [vmem:[#allocation148_spill] sm:$0xff]  ;;  %v17288_v20 = vrot.slane %v14698_v23, 2  ;;  %v17296_v13 = vld [vmem:[#allocation99_spill] sm:$0xff] }
 0xa94   : > { %17282 = vst [vmem:[#allocation78_spill] sm:$0xff] %v14819_v3  ;;  %4964 = vst [vmem:[#allocation3 + $0xe0] sm:$0x1] %v4924_v40  ;;  %v14841_v25 = vmul.f32 %v17287_v57, %v14756_v30  ;;  %v17293_v37 = vld [vmem:[#allocation96_spill] sm:$0xff] }
 0xa95   : > { %4966 = vst [vmem:[#allocation3 + $0xf0] sm:$0x1] %v4926_v2  ;;  %17285 = vst [vmem:[#allocation118_spill] sm:$0xff] %v14833_v28  ;;  %v4999_v0 = vld [vmem:[#allocation3 + $0xc0] sm:$0x1]  ;;  %v14848_v50 = vsel %vm5756_vm8, %v17289_v63, %v17288_v20 }
 0xa96   : > { %4965 = vst [vmem:[#allocation3 + $0xe8] sm:$0x1] %v4925_v47  ;;  %4967 = vst [vmem:[#allocation3 + $0xf8] sm:$0x1] %v4927_v42  ;;  %v5001_v40 = vld [vmem:[#allocation3 + $0xd0] sm:$0x1]  ;;  %v14852_v42 = vmul.f32 %v14514_v34, %v14732_v32  ;;  %v14856_v47 = vmul.f32 %v14517_v18, %v14728_v43  ;;  %v5112_v57 = vmul.f32 %v14547_v48, %v4999_v0 }
 0xa97   : > { %v5148_v2 = vld [vmem:[#allocation3 + $0xc0] sm:$0x3]  ;;  %17290 = vst [vmem:[#allocation119_spill] sm:$0xff] %v14848_v50  ;;  %v5000_v55 = vld [vmem:[#allocation3 + $0xc8] sm:$0x1]  ;;  %v5114_v63 = vmul.f32 %v14553_v56, %v5001_v40  ;;  %v17295_v18 = vld [vmem:[#allocation98_spill] sm:$0xff] }
 0xa98   : > { %17291 = vst [vmem:[#allocation120_spill] sm:$0xff] %v14852_v42  ;;  %17292 = vst [vmem:[#allocation124_spill] sm:$0xff] %v14856_v47  ;;  %v5002_v51 = vld [vmem:[#allocation3 + $0xd8] sm:$0x1]  ;;  %v5149_v44 = vld [vmem:[#allocation3 + $0xc8] sm:$0x3]  ;;  %v5363_v29 = vmul.f32 %v17293_v37, %v5148_v2  ;;  %v5113_v11 = vmul.f32 %v14550_v54, %v5000_v55 }
 0xa99   : > { %v5115_v20 = vmul.f32 %v14556_v12, %v5002_v51  ;;  %v5150_v28 = vld [vmem:[#allocation3 + $0xd0] sm:$0x3]  ;;  %v5151_v34 = vld [vmem:[#allocation3 + $0xd8] sm:$0x3]  ;;  %v17294_v42 = vld [vmem:[#allocation97_spill] sm:$0xff]  ;;  %v16405_v51 = vrot.slane %v14815_v17, 2 }
 0xa9a   : > { %v5364_v23 = vmul.f32 %v17294_v42, %v5149_v44  ;;  %v5508_v50 = vld [vmem:[#allocation3 + $0xc0] sm:$0x7]  ;;  %v5365_v47 = vmul.f32 %v17295_v18, %v5150_v28  ;;  %v5366_v5 = vmul.f32 %v17296_v13, %v5151_v34  ;;  %v5440_v8 = vrot.slane %v5363_v29, 1  ;;  %v5509_v48 = vld [vmem:[#allocation3 + $0xc8] sm:$0x7]  ;;  %v17298_v55 = vld [vmem:[#allocation122_spill] sm:$0xff] }
 0xa9b   : > { %v5510_v0 = vld [vmem:[#allocation3 + $0xd0] sm:$0x7]  ;;  %v5724_v37 = vmul.f32 %v17297_v26, %v5508_v50  ;;  %v5511_v54 = vld [vmem:[#allocation3 + $0xd8] sm:$0x7]  ;;  %v5725_v56 = vmul.f32 %v17298_v55, %v5509_v48  ;;  %v17300_v44 = vrot.slane %v14783_v27, 1  ;;  %v17301_v29 = vrot.slane %v14787_v61, 1 }
 0xa9c   : > { %v5442_v2 = vrot.slane %v5364_v23, 1  ;;  %v17299_v40 = vld [vmem:[#allocation123_spill] sm:$0xff]  ;;  %v5444_v28 = vrot.slane %v5365_v47, 1  ;;  %v5446_v18 = vrot.slane %v5366_v5, 1  ;;  %v5500_v13 = vadd.f32 %v5440_v8, %v5112_v57  ;;  %v17302_v50 = vld [vmem:[#allocation125_spill] sm:$0xff]  ;;  %v17442_v27 = vld [vmem:[#allocation86_spill] sm:$0xff] }
 0xa9d   : > { %v5726_v12 = vmul.f32 %v17299_v40, %v5510_v0  ;;  %v5441_v42 = vsel %vm5395_vm7, %v17300_v44, %v5440_v8  ;;  %v5727_v48 = vmul.f32 %v17302_v50, %v5511_v54  ;;  %v17303_v0 = vrot.slane %v14791_v21, 1 }
 0xa9e   : > { %v5443_v34 = vsel %vm5395_vm7, %v17301_v29, %v5442_v2  ;;  %v5496_v26 = vadd.f32 %v5441_v42, %v14765_v62  ;;  %v5501_v23 = vadd.f32 %v5442_v2, %v5113_v11  ;;  %v17304_v40 = vrot.slane %v14795_v36, 1 }
 0xa9f   : > { %v5445_v55 = vsel %vm5395_vm7, %v17303_v0, %v5444_v28  ;;  %v5497_v5 = vadd.f32 %v5443_v34, %v14769_v4  ;;  %v5502_v8 = vadd.f32 %v5444_v28, %v5114_v63  ;;  %v5503_v29 = vadd.f32 %v5446_v18, %v5115_v20 }
 0xaa0   : > { %v5447_v44 = vsel %vm5395_vm7, %v17304_v40, %v5446_v18  ;;  %v5498_v47 = vadd.f32 %v5445_v55, %v14773_v45  ;;  %v16409_v62 = vrot.slane %v14819_v3, 2  ;;  %v5801_v11 = vrot.slane %v5724_v37, 2  ;;  %v17452_v3 = vld [vmem:[#allocation240_spill] sm:$0xff] }
 0xaa1   : > { %v5499_v57 = vadd.f32 %v5447_v44, %v14777_v22  ;;  %v5803_v2 = vrot.slane %v5725_v56, 2  ;;  %v5805_v54 = vrot.slane %v5726_v12, 2  ;;  %v5807_v42 = vrot.slane %v5727_v48, 2  ;;  %v17307_v48 = vld [vmem:[#allocation178_spill] sm:$0xff]  ;;  %v17309_v44 = vld [vmem:[#allocation179_spill] sm:$0xff] }
 0xaa2   : > { %v6160_v50 = vrot.slane %v14825_v9, 7  ;;  %v6162_v0 = vrot.slane %v14829_v59, 7  ;;  %v6164_v40 = vrot.slane %v14837_v39, 7  ;;  %v6166_v4 = vrot.slane %v14841_v25, 7 }
 0xaa3   : > { %v17305_v63 = vrot.slane %v14801_v58, 2  ;;  %v17306_v22 = vrot.slane %v14805_v14, 2  ;;  %v5806_v37 = vsel %vm5756_vm8, %v16405_v51, %v5805_v54  ;;  %v5808_v9 = vsel %vm5756_vm8, %v16409_v62, %v5807_v42 }
 0xaa4   : > { %v5859_v56 = vadd.f32 %v5806_v37, %v5498_v47  ;;  %v5860_v25 = vadd.f32 %v5808_v9, %v5499_v57  ;;  %v5861_v12 = vadd.f32 %v5801_v11, %v5500_v13  ;;  %v5862_v28 = vadd.f32 %v5803_v2, %v5501_v23 }
 0xaa5   : > { %v5802_v45 = vsel %vm5756_vm8, %v17305_v63, %v5801_v11  ;;  %v5804_v20 = vsel %vm5756_vm8, %v17306_v22, %v5803_v2  ;;  %v5863_v18 = vadd.f32 %v5805_v54, %v5502_v8  ;;  %v5864_v34 = vadd.f32 %v5807_v42, %v5503_v29  ;;  %v17311_v22 = vld [vmem:[#allocation180_spill] sm:$0xff] }
 0xaa6   : > { %v5857_v59 = vadd.f32 %v5802_v45, %v5496_v26  ;;  %v5858_v39 = vadd.f32 %v5804_v20, %v5497_v5  ;;  %v14906_v55 = vmul.f32 %v17307_v48, %v14726_v7  ;;  %v14910_v63 = vmul.f32 %v17309_v44, %v14732_v32  ;;  %v17313_v26 = vld [vmem:[#allocation181_spill] sm:$0xff] }
 0xaa7   : > { %v14914_v51 = vmul.f32 %v17311_v22, %v14728_v43  ;;  %v14918_v5 = vmul.f32 %v17313_v26, %v14734_v41  ;;  %v14920_v13 = vadd.f32 %v6160_v50, %v5861_v12  ;;  %v14922_v23 = vadd.f32 %v6162_v0, %v5862_v28  ;;  %v6392_v12 = vld [vmem:[#allocation3 + $0xe8] sm:$0x3]  ;;  %v6393_v28 = vld [vmem:[#allocation3 + $0xf0] sm:$0x3]  ;;  %v17327_v26 = vld [vmem:[#allocation155_spill] sm:$0xff] }
 0xaa8   : > { %17308 = vst [vmem:[#allocation145_spill] sm:$0xff] %v14906_v55  ;;  %17310 = vst [vmem:[#allocation146_spill] sm:$0xff] %v14910_v63  ;;  %v14924_v8 = vadd.f32 %v6164_v40, %v5863_v18  ;;  %v14926_v7 = vadd.f32 %v6166_v4, %v5864_v34  ;;  %v16407_v47 = vrot.slane %v14906_v55, 7  ;;  %v16412_v32 = vrot.slane %v14910_v63, 7  ;;  %v17319_v18 = vld [vmem:[#allocation152_spill] sm:$0xff] }
 0xaa9   : > { %17312 = vst [vmem:[#allocation147_spill] sm:$0xff] %v14914_v51  ;;  %17314 = vst [vmem:[#allocation148_spill] sm:$0xff] %v14918_v5  ;;  %v16406_v57 = vrot.slane %v14914_v51, 7  ;;  %v16408_v43 = vrot.slane %v14918_v5, 7  ;;  %v6351_v29 = vmul.f32 %v14468_v52, %v14740_v24  ;;  %v6352_v11 = vmul.f32 %v14472_v60, %v14754_v31  ;;  %v17416_v51 = vld [vmem:[#allocation168_spill] sm:$0xff] }
 0xaaa   : > { %17315 = vst [vmem:[#allocation96_spill] sm:$0xff] %v14920_v13  ;;  %17316 = vst [vmem:[#allocation97_spill] sm:$0xff] %v14922_v23  ;;  %v6353_v2 = vmul.f32 %v14476_v16, %v14742_v19  ;;  %v6354_v54 = vmul.f32 %v14480_v46, %v14756_v30  ;;  %v6161_v42 = vsel %vm3683_vm1, %v16407_v47, %v6160_v50  ;;  %v6391_v16 = vld [vmem:[#allocation3 + $0xe0] sm:$0x3]  ;;  %v6394_v50 = vld [vmem:[#allocation3 + $0xf8] sm:$0x3] }
 0xaab   : > { %17317 = vst [vmem:[#allocation98_spill] sm:$0xff] %v14924_v8  ;;  %17318 = vst [vmem:[#allocation99_spill] sm:$0xff] %v14926_v7  ;;  %v6163_v45 = vsel %vm3683_vm1, %v16412_v32, %v6162_v0  ;;  %v6165_v52 = vsel %vm3683_vm1, %v16406_v57, %v6164_v40  ;;  %v6167_v60 = vsel %vm3683_vm1, %v16408_v43, %v6166_v4  ;;  %v17321_v0 = vld [vmem:[#allocation153_spill] sm:$0xff]  ;;  %v17323_v40 = vld [vmem:[#allocation154_spill] sm:$0xff] }
 0xaac   : > { %v6216_v20 = vadd.f32 %v6161_v42, %v5857_v59  ;;  %v6217_v37 = vadd.f32 %v6163_v45, %v5858_v39  ;;  %v6218_v46 = vadd.f32 %v6165_v52, %v5859_v56  ;;  %v6219_v9 = vadd.f32 %v6167_v60, %v5860_v25  ;;  %v17325_v4 = vld [vmem:[#allocation156_spill] sm:$0xff]  ;;  %v17329_v45 = vld [vmem:[#allocation157_spill] sm:$0xff]  ;;  %v17331_v60 = vld [vmem:[#allocation158_spill] sm:$0xff] }
 0xaad   : > { %v14954_v34 = vmul.f32 %v17319_v18, %v14740_v24  ;;  %v14958_v48 = vmul.f32 %v17321_v0, %v14754_v31  ;;  %v14962_v44 = vmul.f32 %v17323_v40, %v14742_v19  ;;  %v14966_v59 = vmul.f32 %v17325_v4, %v14756_v30  ;;  %v17333_v0 = vld [vmem:[#allocation159_spill] sm:$0xff]  ;;  %v17341_v47 = vld [vmem:[#allocation130_spill] sm:$0xff]  ;;  %v6746_v55 = vld [vmem:[#allocation3 + $0x20] sm:$0xc0] }
 0xaae   : > { %v6379_v39 = vadd.f32 %v6351_v29, %v6216_v20  ;;  %v6380_v56 = vadd.f32 %v6352_v11, %v6217_v37  ;;  %v6381_v25 = vadd.f32 %v6353_v2, %v6218_v46  ;;  %v6382_v22 = vadd.f32 %v6354_v54, %v6219_v9  ;;  %v6750_v37 = vld [vmem:[#allocation3 + $0xe0] sm:$0x7f]  ;;  %v6751_v46 = vld [vmem:[#allocation3 + $0xe8] sm:$0x7f]  ;;  %v6752_v9 = vld [vmem:[#allocation3 + $0xf0] sm:$0x7f] }
 0xaaf   : > { %17320 = vst [vmem:[#allocation121_spill] sm:$0xff] %v14954_v34  ;;  %17322 = vst [vmem:[#allocation122_spill] sm:$0xff] %v14958_v48  ;;  %v14969_v42 = vmul.f32 %v17327_v26, %v6391_v16  ;;  %v14972_v52 = vmul.f32 %v17329_v45, %v6392_v12  ;;  %v14975_v18 = vmul.f32 %v17331_v60, %v6393_v28  ;;  %v16411_v57 = vrot.slane %v14954_v34, 1  ;;  %v6753_v12 = vld [vmem:[#allocation3 + $0xf8] sm:$0x7f]  ;;  %v17337_v26 = vld [vmem:[#allocation128_spill] sm:$0xff] }
 0xab0   : > { %17324 = vst [vmem:[#allocation123_spill] sm:$0xff] %v14962_v44  ;;  %17326 = vst [vmem:[#allocation125_spill] sm:$0xff] %v14966_v59  ;;  %v14978_v40 = vmul.f32 %v17333_v0, %v6394_v50  ;;  %v16414_v4 = vrot.slane %v14958_v48, 1  ;;  %v16416_v29 = vrot.slane %v14962_v44, 1  ;;  %v16418_v11 = vrot.slane %v14966_v59, 1  ;;  %v17335_v28 = vld [vmem:[#allocation127_spill] sm:$0xff] }
 0xab1   : > { %17328 = vst [vmem:[#allocation178_spill] sm:$0xff] %v14969_v42  ;;  %17330 = vst [vmem:[#allocation179_spill] sm:$0xff] %v14972_v52  ;;  %v16410_v2 = vrot.slane %v14969_v42, 1  ;;  %v16413_v54 = vrot.slane %v14972_v52, 1  ;;  %v16415_v16 = vrot.slane %v14975_v18, 1  ;;  %v14990_v50 = vmul.f32 %v17335_v28, %v14740_v24  ;;  %v17339_v60 = vld [vmem:[#allocation129_spill] sm:$0xff] }
 0xab2   : > { %17332 = vst [vmem:[#allocation180_spill] sm:$0xff] %v14975_v18  ;;  %17334 = vst [vmem:[#allocation181_spill] sm:$0xff] %v14978_v40  ;;  %v16417_v20 = vrot.slane %v14978_v40, 1  ;;  %v14994_v45 = vmul.f32 %v17337_v26, %v14754_v31  ;;  %v14998_v0 = vmul.f32 %v17339_v60, %v14742_v19  ;;  %v15002_v43 = vmul.f32 %v17341_v47, %v14756_v30  ;;  %v17388_v42 = vld [vmem:[#allocation183_spill] sm:$0xff]  ;;  %v15317_v34 = vld [vmem:[#allocation3 + $0x60] sm:$0xff] }
 0xab3   : > { %17336 = vst [vmem:[#allocation152_spill] sm:$0xff] %v14990_v50  ;;  %v6683_v62 = vsel %vm5395_vm7, %v16411_v57, %v16410_v2  ;;  %v6685_v28 = vsel %vm5395_vm7, %v16414_v4, %v16413_v54  ;;  %v6687_v26 = vsel %vm5395_vm7, %v16416_v29, %v16415_v16  ;;  %v15025_v8 = vmul.f32 %v14453_v38, %v6750_v37  ;;  %v15044_v37 = vld [vmem:[#allocation3 + $0xf8] sm:$0xff] }
 0xab4   : > { %17338 = vst [vmem:[#allocation153_spill] sm:$0xff] %v14994_v45  ;;  %17340 = vst [vmem:[#allocation154_spill] sm:$0xff] %v14998_v0  ;;  %v6689_v47 = vsel %vm5395_vm7, %v16418_v11, %v16417_v20  ;;  %v6738_v60 = vadd.f32 %v6683_v62, %v6379_v39  ;;  %v6739_v2 = vadd.f32 %v6685_v28, %v6380_v56  ;;  %v16420_v29 = vrot.slane %v14990_v50, 6 }
 0xab5   : > { %17342 = vst [vmem:[#allocation156_spill] sm:$0xff] %v15002_v43  ;;  %v6740_v57 = vadd.f32 %v6687_v26, %v6381_v25  ;;  %v6741_v32 = vadd.f32 %v6689_v47, %v6382_v22  ;;  %17343 = vst [vmem:[#allocation155_spill] sm:$0xff] %v15025_v8  ;;  %v15028_v54 = vmul.f32 %v14456_v10, %v6751_v46  ;;  %v16424_v20 = vrot.slane %v14994_v45, 6  ;;  %v7109_v25 = vld [vmem:[#allocation3 + $0xe0] sm:$0xff]  ;;  %v7110_v22 = vld [vmem:[#allocation3 + $0xe8] sm:$0xff] }
 0xab6   : > { %v15031_v4 = vmul.f32 %v14461_v33, %v6752_v9  ;;  %v15034_v16 = vmul.f32 %v14464_v53, %v6753_v12  ;;  %v16426_v62 = vrot.slane %v14998_v0, 6  ;;  %v16429_v39 = vrot.slane %v15002_v43, 6  ;;  %v7111_v53 = vld [vmem:[#allocation3 + $0xf0] sm:$0xff]  ;;  %v17349_v12 = vld [vmem:[#allocation223_spill] sm:$0xff]  ;;  %v17351_v26 = vld [vmem:[#allocation224_spill] sm:$0xff] }
 0xab7   : > { %17344 = vst [vmem:[#allocation157_spill] sm:$0xff] %v15028_v54  ;;  %v16419_v38 = vrot.slane %v15025_v8, 6  ;;  %v16423_v56 = vrot.slane %v15028_v54, 6  ;;  %v15048_v46 = vmul.f32 %v14483_v49, %v14740_v24  ;;  %v15052_v9 = vmul.f32 %v14486_v6, %v14754_v31  ;;  %v17448_v43 = vld [vmem:[#allocation20_spill] sm:$0xff] }
 0xab8   : > { %17345 = vst [vmem:[#allocation158_spill] sm:$0xff] %v15031_v4  ;;  %17346 = vst [vmem:[#allocation159_spill] sm:$0xff] %v15034_v16  ;;  %v16425_v10 = vrot.slane %v15031_v4, 6  ;;  %v16428_v33 = vrot.slane %v15034_v16, 6  ;;  %v15056_v28 = vmul.f32 %v17349_v12, %v14742_v19  ;;  %v15060_v47 = vmul.f32 %v17351_v26, %v14756_v30 }
 0xab9   : > { %17347 = vst [vmem:[#allocation127_spill] sm:$0xff] %v15048_v46  ;;  %17348 = vst [vmem:[#allocation128_spill] sm:$0xff] %v15052_v9  ;;  %v7042_v11 = vsel %vm5619_vm9, %v16420_v29, %v16419_v38  ;;  %v7044_v49 = vsel %vm5619_vm9, %v16424_v20, %v16423_v56  ;;  %v15083_v8 = vmul.f32 %v14529_v15, %v7109_v25  ;;  %v16431_v4 = vrot.slane %v15048_v46, 7 }
 0xaba   : > { %17350 = vst [vmem:[#allocation129_spill] sm:$0xff] %v15056_v28  ;;  %17352 = vst [vmem:[#allocation130_spill] sm:$0xff] %v15060_v47  ;;  %v7046_v6 = vsel %vm5619_vm9, %v16426_v62, %v16425_v10  ;;  %v7048_v12 = vsel %vm5619_vm9, %v16429_v39, %v16428_v33  ;;  %v7097_v26 = vadd.f32 %v7042_v11, %v6738_v60  ;;  %v17356_v10 = vld [vmem:[#allocation230_spill] sm:$0xff]  ;;  %v16433_v11 = vrot.slane %v15052_v9, 7  ;;  %v17358_v60 = vld [vmem:[#allocation225_spill] sm:$0xff] }
 0xabb   : > { %v7098_v38 = vadd.f32 %v7044_v49, %v6739_v2  ;;  %v7099_v29 = vadd.f32 %v7046_v6, %v6740_v57  ;;  %v7100_v18 = vadd.f32 %v7048_v12, %v6741_v32  ;;  %17353 = vst [vmem:[#allocation223_spill] sm:$0xff] %v15083_v8  ;;  %v15086_v56 = vmul.f32 %v14532_v35, %v7110_v22  ;;  %v17359_v49 = vld [vmem:[#allocation231_spill] sm:$0xff]  ;;  %v17361_v12 = vld [vmem:[#allocation232_spill] sm:$0xff]  ;;  %v17363_v39 = vld [vmem:[#allocation233_spill] sm:$0xff] }
 0xabc   : > { %v15089_v20 = vmul.f32 %v14541_v1, %v7111_v53  ;;  %v15093_v62 = vmul.f32 %v17356_v10, %v15044_v37  ;;  %v16430_v15 = vrot.slane %v15083_v8, 7  ;;  %v15105_v10 = vmul.f32 %v17358_v60, %v14734_v41  ;;  %v6388_v57 = vld [vmem:[#allocation3 + $0x28] sm:$0xfe]  ;;  %v17371_v8 = vld [vmem:[#allocation250_spill] sm:$0xff] }
 0xabd   : > { %17354 = vst [vmem:[#allocation224_spill] sm:$0xff] %v15086_v56  ;;  %v16432_v35 = vrot.slane %v15086_v56, 7  ;;  %v15109_v6 = vmul.f32 %v17359_v49, %v14740_v24  ;;  %v15113_v33 = vmul.f32 %v17361_v12, %v14754_v31  ;;  %v15117_v32 = vmul.f32 %v17363_v39, %v14742_v19  ;;  %v17470_v9 = vld [vmem:[#allocation73_spill] sm:$0xff] }
 0xabe   : > { %17355 = vst [vmem:[#allocation251_spill] sm:$0xff] %v15089_v20  ;;  %17357 = vst [vmem:[#allocation230_spill] sm:$0xff] %v15093_v62  ;;  %v16435_v2 = vrot.slane %v15089_v20, 7  ;;  %v16438_v1 = vrot.slane %v15093_v62, 7  ;;  %v7401_v41 = vsel %vm3683_vm1, %v16431_v4, %v16430_v15  ;;  %v17365_v31 = vrot.slane %v15056_v28, 7  ;;  %v17372_v62 = vld [vmem:[#allocation119_spill] sm:$0xff] }
 0xabf   : > { %17360 = vst [vmem:[#allocation225_spill] sm:$0xff] %v15109_v6  ;;  %17362 = vst [vmem:[#allocation231_spill] sm:$0xff] %v15113_v33  ;;  %v7403_v24 = vsel %vm3683_vm1, %v16433_v11, %v16432_v35  ;;  %v17366_v39 = vrot.slane %v15060_v47, 7  ;;  %v15139_v49 = vadd.f32 %v7401_v41, %v7097_v26  ;;  %v15147_v35 = vld [vmem:[#allocation3 + $0x68] sm:$0xff]  ;;  %v17367_v11 = vld [vmem:[#allocation234_spill] sm:$0xff] }
 0xac0   : > { %17364 = vst [vmem:[#allocation232_spill] sm:$0xff] %v15117_v32  ;;  %v7405_v19 = vsel %vm3683_vm1, %v17365_v31, %v16435_v2  ;;  %v15141_v12 = vadd.f32 %v7403_v24, %v7098_v38  ;;  %v15151_v20 = vmul.f32 %v17367_v11, %v14756_v30  ;;  %v17369_v31 = vld [vmem:[#allocation40_spill] sm:$0xff]  ;;  %v17373_v26 = vld [vmem:[#allocation177_spill] sm:$0xff]  ;;  %v17378_v30 = vld [vmem:[#allocation22_spill] sm:$0xff] }
 0xac1   : > { %v7407_v60 = vsel %vm3683_vm1, %v17366_v39, %v16438_v1  ;;  %v15143_v15 = vadd.f32 %v7405_v19, %v7099_v29  ;;  %v17370_v2 = vld [vmem:[#allocation68_spill] sm:$0xff]  ;;  %v5842_v39 = vadd.f32 %v17372_v62, %v17371_v8  ;;  %v17374_v41 = vrot.slane %v17373_v26, 7  ;;  %v6747_v24 = vld [vmem:[#allocation3 + $0x28] sm:$0xc0]  ;;  %v17375_v29 = vld [vmem:[#allocation235_spill] sm:$0xff] }
 0xac2   : > { %v15145_v4 = vadd.f32 %v7407_v60, %v7100_v18  ;;  %17368 = vst [vmem:[#allocation233_spill] sm:$0xff] %v15151_v20  ;;  %v5838_v32 = vadd.f32 %v17370_v2, %v17369_v31  ;;  %v15160_v19 = vmul.f32 %v17375_v29, %v7109_v25  ;;  %v17376_v18 = vld [vmem:[#allocation236_spill] sm:$0xff]  ;;  %v17377_v1 = vld [vmem:[#allocation237_spill] sm:$0xff]  ;;  %v17379_v11 = vrot.slane %v17378_v30, 7  ;;  %v17382_v8 = vld [vmem:[#allocation43_spill] sm:$0xff] }
 0xac3   : > { %v6583_v38 = vmul.f32 %v17374_v41, %v6388_v57  ;;  %v15163_v60 = vmul.f32 %v17376_v18, %v7110_v22  ;;  %v15166_v56 = vmul.f32 %v17377_v1, %v7111_v53  ;;  %v17380_v6 = vld [vmem:[#allocation41_spill] sm:$0xff]  ;;  %v17383_v57 = vld [vmem:[#allocation108_spill] sm:$0xff]  ;;  %v17385_v25 = vld [vmem:[#allocation51_spill] sm:$0xff] }
 0xac4   : > { %v17381_v2 = vrot.slane %v17380_v6, 7  ;;  %v6197_v62 = vadd.f32 %v17382_v8, %v5838_v32  ;;  %v17384_v41 = vld [vmem:[#allocation37_spill] sm:$0xff]  ;;  %v15178_v29 = vmul.f32 %v17385_v25, %v15147_v35  ;;  %v17386_v53 = vld [vmem:[#allocation71_spill] sm:$0xff]  ;;  %v6946_v6 = vmul.f32 %v17388_v42, %v17383_v57 }
 0xac5   : > { %v6587_v16 = vmul.f32 %v17384_v41, %v17383_v57  ;;  %v7106_v22 = vld [vmem:[#allocation3 + $0x28] sm:$0x80]  ;;  %v6641_v18 = vrot.slane %v6583_v38, 1  ;;  %v17387_v1 = vrot.slane %v17386_v53, 2  ;;  %v17392_v53 = vld [vmem:[#allocation191_spill] sm:$0xff] }
 0xac6   : > { %v6131_v31 = vsel %vm3683_vm1, %v17381_v2, %v17379_v11  ;;  %v17389_v11 = vld [vmem:[#allocation88_spill] sm:$0xff]  ;;  %v17390_v32 = vld [vmem:[#allocation249_spill] sm:$0xff]  ;;  %v16445_v25 = vrot.slane %v15178_v29, 1  ;;  %v7001_v52 = vrot.slane %v6946_v6, 6 }
 0xac7   : > { %v6201_v26 = vadd.f32 %v6131_v31, %v5842_v39  ;;  %v6942_v54 = vmul.f32 %v17387_v1, %v6747_v24  ;;  %v15186_v2 = vmul.f32 %v17389_v11, %v15147_v35  ;;  %v6360_v39 = vadd.f32 %v17390_v32, %v6197_v62  ;;  %v17391_v31 = vld [vmem:[#allocation65_spill] sm:$0xff]  ;;  %v17394_v62 = vld [vmem:[#allocation207_spill] sm:$0xff] }
 0xac8   : > { %v6642_v41 = vrot.slane %v6587_v16, 1  ;;  %v17393_v24 = vrot.slane %v17392_v53, 1  ;;  %v7305_v32 = vmul.f32 %v17394_v62, %v17383_v57  ;;  %v17395_v16 = vld [vmem:[#allocation170_spill] sm:$0xff]  ;;  %v15208_v53 = vld [vmem:[#allocation3 + $0x58] sm:$0xff]  ;;  %v17397_v62 = vld [vmem:[#allocation212_spill] sm:$0xff] }
 0xac9   : > { %v6364_v8 = vadd.f32 %v17391_v31, %v6201_v26  ;;  %v7000_v40 = vrot.slane %v6942_v54, 6  ;;  %v15202_v26 = vmul.f32 %v17395_v16, %v15147_v35  ;;  %v4982_v54 = vld [vmem:[#allocation3 + $0x38] sm:$0xff]  ;;  %v7572_v13 = vmul.f32 %v17397_v62, %v17383_v57 }
 0xaca   : > { %v7301_v1 = vmul.f32 %v17393_v24, %v7106_v22  ;;  %v6643_v42 = vsel %vm5395_vm7, %v6641_v18, %v6642_v41  ;;  %v6653_v11 = vsel %vm5395_vm7, %v6642_v41, %v16445_v25  ;;  %v17396_v22 = vrot.slane %v15186_v2, 6 }
 0xacb   : > { %v6719_v6 = vadd.f32 %v6643_v42, %v6360_v39  ;;  %v6723_v31 = vadd.f32 %v6653_v11, %v6364_v8  ;;  %v7002_v38 = vsel %vm5619_vm9, %v7000_v40, %v7001_v52  ;;  %v7360_v41 = vrot.slane %v7305_v32, 7  ;;  %v17398_v39 = vld [vmem:[#allocation213_spill] sm:$0xff]  ;;  %v17399_v42 = vld [vmem:[#allocation135_spill] sm:$0xff] }
 0xacc   : > { %v7012_v18 = vsel %vm5619_vm9, %v7001_v52, %v17396_v22  ;;  %v7359_v24 = vrot.slane %v7301_v1, 7  ;;  %v16446_v25 = vrot.slane %v15202_v26, 7  ;;  %v7576_v8 = vmul.f32 %v17398_v39, %v15147_v35  ;;  %v17400_v1 = vld [vmem:[#allocation176_spill] sm:$0xff]  ;;  %v17401_v22 = vld [vmem:[#allocation81_spill] sm:$0xff] }
 0xacd   : > { %v7078_v16 = vadd.f32 %v7002_v38, %v6719_v6  ;;  %v7082_v7 = vadd.f32 %v7012_v18, %v6723_v31  ;;  %v5095_v40 = vmul.f32 %v17399_v42, %v4982_v54  ;;  %v5346_v32 = vmul.f32 %v17400_v1, %v4982_v54  ;;  %v17402_v6 = vld [vmem:[#allocation182_spill] sm:$0xff]  ;;  %v17403_v18 = vld [vmem:[#allocation95_spill] sm:$0xff]  ;;  %v17404_v42 = vld [vmem:[#allocation21_spill] sm:$0xff] }
 0xace   : > { %v7361_v11 = vsel %vm3683_vm1, %v7359_v24, %v7360_v41  ;;  %v7371_v52 = vsel %vm3683_vm1, %v7360_v41, %v16446_v25  ;;  %v15223_v23 = vmul.f32 %v17401_v22, %v15208_v53  ;;  %v5707_v31 = vmul.f32 %v17402_v6, %v4982_v54  ;;  %v17405_v41 = vld [vmem:[#allocation35_spill] sm:$0xff] }
 0xacf   : > { %v7437_v57 = vadd.f32 %v7361_v11, %v7078_v16  ;;  %v7441_v38 = vadd.f32 %v7371_v52, %v7082_v7  ;;  %v15228_v62 = vmul.f32 %v17403_v18, %v15208_v53  ;;  %v5406_v39 = vrot.slane %v5346_v32, 1  ;;  %v17406_v16 = vld [vmem:[#allocation12_spill] sm:$0xff] }
 0xad0   : > { %v16450_v24 = vrot.slane %v15223_v23, 1  ;;  %v6067_v20 = vmul.f32 %v17404_v42, %v4982_v54  ;;  %v15234_v1 = vmul.f32 %v17405_v41, %v15208_v53  ;;  %v5767_v28 = vrot.slane %v5707_v31, 2  ;;  %v17408_v42 = vld [vmem:[#allocation238_spill] sm:$0xff] }
 0xad1   : > { %v7600_v25 = vadd.f32 %v7572_v13, %v7437_v57  ;;  %v7604_v22 = vadd.f32 %v7576_v8, %v7441_v38  ;;  %v17407_v11 = vrot.slane %v17406_v16, 1  ;;  %v17409_v13 = vld [vmem:[#allocation54_spill] sm:$0xff]  ;;  %v6390_v38 = vld [vmem:[#allocation3 + $0x38] sm:$0xfe] }
 0xad2   : > { %v5415_v32 = vsel %vm5395_vm7, %v5406_v39, %v16450_v24  ;;  %v6126_v6 = vrot.slane %v6067_v20, 7  ;;  %v16455_v18 = vrot.slane %v15234_v1, 7  ;;  %v17410_v31 = vld [vmem:[#allocation14_spill] sm:$0xff] }
 0xad3   : > { %v5407_v52 = vsel %vm5395_vm7, %v17407_v11, %v5406_v39  ;;  %v7650_v0 = vadd.f32 %v17408_v42, %v7600_v25  ;;  %v7654_v41 = vadd.f32 %v17408_v42, %v7604_v22  ;;  %v5483_v57 = vadd.f32 %v5415_v32, %v5095_v40  ;;  %v17413_v39 = vld [vmem:[#allocation69_spill] sm:$0xff]  ;;  %v15259_v22 = vld [vmem:[#allocation3 + $0x78] sm:$0xff] }
 0xad4   : > { %v5479_v8 = vadd.f32 %v5407_v52, %v17409_v13  ;;  %v17411_v7 = vrot.slane %v17410_v31, 2  ;;  %v17412_v11 = vrot.slane %v15228_v62, 2  ;;  %v17414_v20 = vrot.slane %v17413_v39, 7  ;;  %v6749_v31 = vld [vmem:[#allocation3 + $0x38] sm:$0xc0] }
 0xad5   : > { %v6135_v25 = vsel %vm3683_vm1, %v6126_v6, %v16455_v18  ;;  %v7678_v40 = vmax.f32 %v7650_v0, 0.0  ;;  %v7682_v52 = vmax.f32 %v7654_v41, 0.0  ;;  %v17420_v0 = vld [vmem:[#allocation53_spill] sm:$0xff] }
 0xad6   : > { %v5768_v16 = vsel %vm5756_vm8, %v17411_v7, %v5767_v28  ;;  %v5776_v44 = vsel %vm5756_vm8, %v5767_v28, %v17412_v11  ;;  %v6127_v24 = vsel %vm3683_vm1, %v17414_v20, %v6126_v6  ;;  %v17415_v7 = vld [vmem:[#allocation79_spill] sm:$0xff]  ;;  %v6338_v28 = vmul.f32 %v17416_v51, %v15208_v53  ;;  %v17417_v11 = vld [vmem:[#allocation45_spill] sm:$0xff]  ;;  %v17423_v51 = vld [vmem:[#allocation184_spill] sm:$0xff] }
 0xad7   : > { %v5840_v32 = vadd.f32 %v5768_v16, %v5479_v8  ;;  %v5844_v13 = vadd.f32 %v5776_v44, %v5483_v57  ;;  %v6334_v33 = vmul.f32 %v17415_v7, %v4982_v54  ;;  %v17418_v39 = vrot.slane %v17417_v11, 7  ;;  %v17419_v20 = vld [vmem:[#allocation49_spill] sm:$0xff]  ;;  %v7108_v44 = vld [vmem:[#allocation3 + $0x38] sm:$0x80]  ;;  %v17421_v54 = vld [vmem:[#allocation42_spill] sm:$0xff] }
 0xad8   : > { %v6589_v21 = vmul.f32 %v17419_v20, %v15208_v53  ;;  %v7770_v46 = vpack.c.bf16 %v7682_v52, %v7678_v40  ;;  %v15270_v41 = vmul.f32 %v17420_v0, %v15259_v22  ;;  %v17422_v16 = vrot.slane %v17421_v54, 2 }
 0xad9   : > { %v6585_v17 = vmul.f32 %v17418_v39, %v6390_v38  ;;  %v6199_v6 = vadd.f32 %v6127_v24, %v5840_v32  ;;  %v6203_v18 = vadd.f32 %v6135_v25, %v5844_v13  ;;  %v6948_v11 = vmul.f32 %v17423_v51, %v15208_v53  ;;  %v17424_v24 = vld [vmem:[#allocation89_spill] sm:$0xff]  ;;  %v17429_v51 = vld [vmem:[#allocation215_spill] sm:$0xff] }
 0xada   : > { %v6648_v57 = vrot.slane %v6589_v21, 1  ;;  %v6944_v7 = vmul.f32 %v17422_v16, %v6749_v31  ;;  %8016 = vmatprep.mubr.bf16.mxu1 %v7770_v46  ;;  %v16457_v40 = vrot.slane %v15270_v41, 1  ;;  %v15279_v25 = vmul.f32 %v17424_v24, %v15259_v22  ;;  %v17425_v21 = vld [vmem:[#allocation193_spill] sm:$0xff] }
 0xadb   : > { %v6647_v8 = vrot.slane %v6585_v17, 1  ;;  %v6362_v38 = vadd.f32 %v6334_v33, %v6199_v6  ;;  %v6366_v39 = vadd.f32 %v6338_v28, %v6203_v18  ;;  %v7007_v17 = vrot.slane %v6948_v11, 6  ;;  %v17427_v18 = vld [vmem:[#allocation211_spill] sm:$0xff] }
 0xadc   : > { %v7006_v32 = vrot.slane %v6944_v7, 6  ;;  %v17426_v13 = vrot.slane %v17425_v21, 1  ;;  %v6657_v31 = vsel %vm5395_vm7, %v6648_v57, %v16457_v40  ;;  %v16456_v33 = vrot.slane %v15279_v25, 6  ;;  %v17431_v21 = vld [vmem:[#allocation241_spill] sm:$0xff]  ;;  %v6387_v40 = vld [vmem:[#allocation3 + $0x20] sm:$0xfe] }
 0xadd   : > { %v6649_v52 = vsel %vm5395_vm7, %v6647_v8, %v6648_v57  ;;  %v7307_v28 = vmul.f32 %v17427_v18, %v15208_v53  ;;  %v6725_v6 = vadd.f32 %v6657_v31, %v6366_v39  ;;  %v17428_v8 = vld [vmem:[#allocation172_spill] sm:$0xff]  ;;  %v7574_v11 = vmul.f32 %v17429_v51, %v15208_v53 }
 0xade   : > { %v7303_v20 = vmul.f32 %v17426_v13, %v7108_v44  ;;  %v6721_v46 = vadd.f32 %v6649_v52, %v6362_v38  ;;  %v7008_v0 = vsel %vm5619_vm9, %v7006_v32, %v7007_v17  ;;  %v15293_v54 = vmul.f32 %v17428_v8, %v15259_v22  ;;  %v6224_v38 = vld [vmem:[#allocation3 + $0x20] sm:$0xff] }
 0xadf   : > { %v7016_v44 = vsel %vm5619_vm9, %v7007_v17, %v16456_v33  ;;  %v7366_v57 = vrot.slane %v7307_v28, 7  ;;  %v17430_v52 = vld [vmem:[#allocation216_spill] sm:$0xff] }
 0xae0   : > { %v7365_v16 = vrot.slane %v7303_v20, 7  ;;  %v7080_v7 = vadd.f32 %v7008_v0, %v6721_v46  ;;  %v7084_v24 = vadd.f32 %v7016_v44, %v6725_v6  ;;  %v16464_v39 = vrot.slane %v15293_v54, 7  ;;  %v17432_v13 = vld [vmem:[#allocation244_spill] sm:$0xff]  ;;  %v17434_v46 = vld [vmem:[#allocation105_spill] sm:$0xff]  ;;  %v17436_v0 = vld [vmem:[#allocation23_spill] sm:$0xff] }
 0xae1   : > { %v7578_v32 = vmul.f32 %v17430_v52, %v15259_v22  ;;  %v5480_v31 = vadd.f32 %v17432_v13, %v17431_v21  ;;  %v6228_v20 = vld [vmem:[#allocation3 + $0x40] sm:$0xff]  ;;  %v17435_v28 = vrot.slane %v17434_v46, 7  ;;  %v17437_v33 = vrot.slane %v17436_v0, 7  ;;  %v17438_v6 = vld [vmem:[#allocation30_spill] sm:$0xff] }
 0xae2   : > { %v7367_v18 = vsel %vm3683_vm1, %v7365_v16, %v7366_v57  ;;  %v17433_v8 = vld [vmem:[#allocation28_spill] sm:$0xff]  ;;  %v16469_v44 = vrot.slane %v17438_v6, 7  ;;  %v7375_v52 = vsel %vm3683_vm1, %v7366_v57, %v16464_v39  ;;  %v17439_v21 = vld [vmem:[#allocation34_spill] sm:$0xff]  ;;  %v17440_v16 = vld [vmem:[#allocation59_spill] sm:$0xff]  ;;  %v17444_v47 = vrot.slane %v17434_v46, 7 }
 0xae3   : > { %v6118_v51 = vsel %vm3683_vm1, %v17437_v33, %v17435_v28  ;;  %v7439_v50 = vadd.f32 %v7367_v18, %v7080_v7  ;;  %v6331_v17 = vmul.f32 %v17440_v16, %v6224_v38  ;;  %v7443_v58 = vadd.f32 %v7375_v52, %v7084_v24  ;;  %v17445_v57 = vld [vmem:[#allocation94_spill] sm:$0xff]  ;;  %v17446_v38 = vld [vmem:[#allocation36_spill] sm:$0xff] }
 0xae4   : > { %v6196_v13 = vadd.f32 %v6118_v51, %v17439_v21  ;;  %v17441_v0 = vrot.slane %v17433_v8, 2  ;;  %v17443_v33 = vrot.slane %v17442_v27, 2  ;;  %v6129_v7 = vsel %vm3683_vm1, %v17444_v47, %v16469_v44  ;;  %v17449_v27 = vld [vmem:[#allocation50_spill] sm:$0xff] }
 0xae5   : > { %v6335_v18 = vmul.f32 %v17445_v57, %v6228_v20  ;;  %v7602_v51 = vadd.f32 %v7574_v11, %v7439_v50  ;;  %v17447_v16 = vrot.slane %v17446_v38, 7  ;;  %v7606_v52 = vadd.f32 %v7578_v32, %v7443_v58  ;;  %v17453_v50 = vld [vmem:[#allocation131_spill] sm:$0xff]  ;;  %v7105_v32 = vld [vmem:[#allocation3 + $0x20] sm:$0x80] }
 0xae6   : > { %v5770_v28 = vsel %vm5756_vm8, %v17443_v33, %v17441_v0  ;;  %v6359_v39 = vadd.f32 %v6331_v17, %v6196_v13  ;;  %v6586_v59 = vmul.f32 %v17448_v43, %v6228_v20  ;;  %v15336_v0 = vmul.f32 %v17449_v27, %v15317_v34  ;;  %v17450_v33 = vld [vmem:[#allocation104_spill] sm:$0xff] }
 0xae7   : > { %v5841_v21 = vadd.f32 %v5770_v28, %v5480_v31  ;;  %v6582_v24 = vmul.f32 %v17447_v16, %v6387_v40  ;;  %v17451_v5 = vrot.slane %v17450_v33, 2  ;;  %v7652_v47 = vadd.f32 %v17452_v3, %v7602_v51  ;;  %v17454_v43 = vld [vmem:[#allocation132_spill] sm:$0xff] }
 0xae8   : > { %v6945_v11 = vmul.f32 %v17453_v50, %v6228_v20  ;;  %v7656_v31 = vadd.f32 %v17452_v3, %v7606_v52  ;;  %v6639_v17 = vrot.slane %v6586_v59, 1  ;;  %v16472_v58 = vrot.slane %v15336_v0, 1  ;;  %v17455_v52 = vld [vmem:[#allocation137_spill] sm:$0xff] }
 0xae9   : > { %v6941_v46 = vmul.f32 %v17451_v5, %v6746_v55  ;;  %v6200_v44 = vadd.f32 %v6129_v7, %v5841_v21  ;;  %v6638_v57 = vrot.slane %v6582_v24, 1  ;;  %v15346_v40 = vmul.f32 %v17454_v43, %v15317_v34 }
 0xaea   : > { %v7680_v13 = vmax.f32 %v7652_v47, 0.0  ;;  %v6998_v55 = vrot.slane %v6945_v11, 6  ;;  %v7684_v5 = vmax.f32 %v7656_v31, 0.0  ;;  %v6651_v51 = vsel %vm5395_vm7, %v6639_v17, %v16472_v58  ;;  %v6226_v58 = vld [vmem:[#allocation3 + $0x30] sm:$0xff] }
 0xaeb   : > { %v6363_v28 = vadd.f32 %v6335_v18, %v6200_v44  ;;  %v6997_v38 = vrot.slane %v6941_v46, 6  ;;  %v6640_v7 = vsel %vm5395_vm7, %v6638_v57, %v6639_v17  ;;  %v16470_v59 = vrot.slane %v15346_v40, 6  ;;  %v17457_v18 = vld [vmem:[#allocation72_spill] sm:$0xff]  ;;  %v17458_v57 = vld [vmem:[#allocation169_spill] sm:$0xff]  ;;  %v17459_v17 = vld [vmem:[#allocation142_spill] sm:$0xff] }
 0xaec   : > { %v6718_v21 = vadd.f32 %v6640_v7, %v6359_v39  ;;  %v17456_v27 = vrot.slane %v17455_v52, 1  ;;  %v7772_v47 = vpack.c.bf16 %v7684_v5, %v7680_v13  ;;  %v7304_v46 = vmul.f32 %v17457_v18, %v6228_v20  ;;  %v17460_v13 = vld [vmem:[#allocation144_spill] sm:$0xff]  ;;  %v15368_v5 = vld [vmem:[#allocation3 + $0x50] sm:$0xff] }
 0xaed   : > { %v6722_v16 = vadd.f32 %v6651_v51, %v6363_v28  ;;  %v6999_v24 = vsel %vm5619_vm9, %v6997_v38, %v6998_v55  ;;  %v7010_v44 = vsel %vm5619_vm9, %v6998_v55, %v16470_v59  ;;  %v15362_v50 = vmul.f32 %v17458_v57, %v15317_v34  ;;  %v17461_v55 = vld [vmem:[#allocation80_spill] sm:$0xff]  ;;  %v17462_v51 = vld [vmem:[#allocation87_spill] sm:$0xff] }
 0xaee   : > { %v7300_v33 = vmul.f32 %v17456_v27, %v7105_v32  ;;  %v7077_v11 = vadd.f32 %v6999_v24, %v6718_v21  ;;  %v7571_v43 = vmul.f32 %v17459_v17, %v6228_v20  ;;  %8080 = vmatprep.mubr.bf16.mxu0 %v7772_v47  ;;  %v7357_v28 = vrot.slane %v7304_v46, 7  ;;  %v9708_v21 = vld [vmem:[#allocation3 + $0x30] sm:$0xff]  ;;  %v17464_v27 = vld [vmem:[#allocation109_spill] sm:$0xff]  ;;  %v17466_v57 = vld [vmem:[#allocation32_spill] sm:$0xff] }
 0xaef   : > { %v7081_v31 = vadd.f32 %v7010_v44, %v6722_v16  ;;  %v16471_v32 = vrot.slane %v15362_v50, 7  ;;  %v7575_v38 = vmul.f32 %v17460_v13, %v15317_v34  ;;  %v15372_v7 = vmul.f32 %v15368_v5, %v17461_v55  ;;  %v17463_v16 = vld [vmem:[#allocation106_spill] sm:$0xff] }
 0xaf0   : > { %v7356_v39 = vrot.slane %v7300_v33, 7  ;;  %v5403_v52 = vrot.slane %v17462_v51, 1  ;;  %v5706_v24 = vmul.f32 %v9708_v21, %v17463_v16  ;;  %v15378_v20 = vmul.f32 %v15368_v5, %v17464_v27  ;;  %v17465_v33 = vld [vmem:[#allocation17_spill] sm:$0xff] }
 0xaf1   : > { %v6066_v47 = vmul.f32 %v9708_v21, %v17465_v33  ;;  %v7369_v18 = vsel %vm3683_vm1, %v7357_v28, %v16471_v32  ;;  %v16475_v46 = vrot.slane %v15372_v7, 1  ;;  %v15388_v17 = vmul.f32 %v15368_v5, %v17466_v57  ;;  %v17467_v51 = vld [vmem:[#allocation25_spill] sm:$0xff]  ;;  %v17469_v21 = vld [vmem:[#allocation31_spill] sm:$0xff] }
 0xaf2   : > { %v7358_v44 = vsel %vm3683_vm1, %v7356_v39, %v7357_v28  ;;  %v7440_v55 = vadd.f32 %v7369_v18, %v7081_v31  ;;  %v17468_v16 = vrot.slane %v17467_v51, 1  ;;  %v5764_v59 = vrot.slane %v5706_v24, 2  ;;  %v17471_v31 = vld [vmem:[#allocation70_spill] sm:$0xff] }
 0xaf3   : > { %v7436_v13 = vadd.f32 %v7358_v44, %v7077_v11  ;;  %v5413_v39 = vsel %vm5395_vm7, %v5403_v52, %v16475_v46  ;;  %v16476_v28 = vrot.slane %v15378_v20, 2  ;;  %v6123_v32 = vrot.slane %v6066_v47, 7  ;;  %v6230_v51 = vld [vmem:[#allocation3 + $0x50] sm:$0xff] }
 0xaf4   : > { %v5404_v27 = vsel %vm5395_vm7, %v17468_v16, %v5403_v52  ;;  %v7603_v57 = vadd.f32 %v7575_v38, %v7440_v55  ;;  %v5482_v11 = vadd.f32 %v5413_v39, %v17470_v9  ;;  %v17472_v44 = vrot.slane %v17471_v31, 2  ;;  %v6389_v24 = vld [vmem:[#allocation3 + $0x30] sm:$0xfe]  ;;  %v17476_v31 = vld [vmem:[#allocation64_spill] sm:$0xff] }
 0xaf5   : > { %v5478_v33 = vadd.f32 %v5404_v27, %v17469_v21  ;;  %v7599_v36 = vadd.f32 %v7571_v43, %v7436_v13  ;;  %v5774_v52 = vsel %vm5756_vm8, %v5764_v59, %v16476_v28  ;;  %v17473_v27 = vld [vmem:[#allocation13_spill] sm:$0xff]  ;;  %v16483_v43 = vrot.slane %v15388_v17, 7  ;;  %v17475_v38 = vld [vmem:[#allocation242_spill] sm:$0xff] }
 0xaf6   : > { %v5765_v18 = vsel %vm5756_vm8, %v17472_v44, %v5764_v59  ;;  %v17474_v21 = vrot.slane %v17473_v27, 7  ;;  %v7653_v9 = vadd.f32 %v17475_v38, %v7603_v57  ;;  %v5843_v55 = vadd.f32 %v5774_v52, %v5482_v11  ;;  %v15411_v39 = vld [vmem:[#allocation3 + $0x70] sm:$0xff]  ;;  %v17480_v57 = vld [vmem:[#allocation24_spill] sm:$0xff] }
 0xaf7   : > { %v5839_v16 = vadd.f32 %v5765_v18, %v5478_v33  ;;  %v7649_v13 = vadd.f32 %v17475_v38, %v7599_v36  ;;  %v6333_v44 = vmul.f32 %v17476_v31, %v6226_v58  ;;  %v6748_v46 = vld [vmem:[#allocation3 + $0x30] sm:$0xc0]  ;;  %v6133_v59 = vsel %vm3683_vm1, %v6123_v32, %v16483_v43  ;;  %v17477_v18 = vld [vmem:[#allocation167_spill] sm:$0xff]  ;;  %v17481_v58 = vld [vmem:[#allocation52_spill] sm:$0xff] }
 0xaf8   : > { %v6124_v47 = vsel %vm3683_vm1, %v17474_v21, %v6123_v32  ;;  %v6337_v27 = vmul.f32 %v17477_v18, %v6230_v51  ;;  %v17478_v21 = vld [vmem:[#allocation46_spill] sm:$0xff]  ;;  %v7681_v36 = vmax.f32 %v7653_v9, 0.0  ;;  %v6202_v63 = vadd.f32 %v6133_v59, %v5843_v55  ;;  %v17482_v38 = vld [vmem:[#allocation107_spill] sm:$0xff] }
 0xaf9   : > { %v6198_v33 = vadd.f32 %v6124_v47, %v5839_v16  ;;  %v17479_v28 = vrot.slane %v17478_v21, 7  ;;  %v7677_v48 = vmax.f32 %v7649_v13, 0.0  ;;  %v6588_v11 = vmul.f32 %v17480_v57, %v6230_v51  ;;  %v7107_v52 = vld [vmem:[#allocation3 + $0x30] sm:$0x80]  ;;  %v17484_v21 = vld [vmem:[#allocation133_spill] sm:$0xff] }
 0xafa   : > { %v15423_v31 = vmul.f32 %v17481_v58, %v15411_v39  ;;  %v17483_v32 = vrot.slane %v17482_v38, 2  ;;  %v6365_v18 = vadd.f32 %v6337_v27, %v6202_v63  ;;  %v17485_v13 = vld [vmem:[#allocation134_spill] sm:$0xff]  ;;  %v17489_v63 = vld [vmem:[#allocation171_spill] sm:$0xff] }
 0xafb   : > { %v6584_v45 = vmul.f32 %v17479_v28, %v6389_v24  ;;  %v6361_v14 = vadd.f32 %v6333_v44, %v6198_v33  ;;  %v7769_v47 = vpack.c.bf16 %v7681_v36, %v7677_v48  ;;  %v6645_v43 = vrot.slane %v6588_v11, 1  ;;  %v17486_v44 = vld [vmem:[#allocation192_spill] sm:$0xff] }
 0xafc   : > { %v6943_v16 = vmul.f32 %v17483_v32, %v6748_v46  ;;  %v6947_v28 = vmul.f32 %v17484_v21, %v6230_v51  ;;  %v16486_v24 = vrot.slane %v15423_v31, 1  ;;  %v15431_v9 = vmul.f32 %v17485_v13, %v15411_v39  ;;  %v17488_v46 = vld [vmem:[#allocation210_spill] sm:$0xff]  ;;  %v15456_v13 = vpop.permute.xlu1 %7519 }
 0xafd   : > { %v6644_v61 = vrot.slane %v6584_v45, 1  ;;  %v17487_v59 = vrot.slane %v17486_v44, 1  ;;  %8017 = vmatmul.mubr.bf16.vlgmr.msra.gmra.mrb[96].mxu1 %v7769_v47  ;;  %v7306_v48 = vmul.f32 %v17488_v46, %v6230_v51  ;;  %v15439_v27 = vmul.f32 %v17489_v63, %v15411_v39  ;;  %v17490_v47 = vld [vmem:[#allocation39_spill] sm:$0xff]  ;;  %v17496_v46 = vld [vmem:[#allocation214_spill] sm:$0xff] }
 0xafe   : > { %v7003_v55 = vrot.slane %v6943_v16, 6  ;;  %v7004_v38 = vrot.slane %v6947_v28, 6  ;;  %v6655_v36 = vsel %vm5395_vm7, %v6645_v43, %v16486_v24  ;;  %v16485_v11 = vrot.slane %v15431_v9, 6  ;;  %v17497_v63 = vld [vmem:[#allocation26_spill] sm:$0xff] }
 0xaff   : > { %v7302_v33 = vmul.f32 %v17487_v59, %v7107_v52  ;;  %v6646_v45 = vsel %vm5395_vm7, %v6644_v61, %v6645_v43  ;;  %v6724_v32 = vadd.f32 %v6655_v36, %v6365_v18  ;;  %v7363_v16 = vrot.slane %v7306_v48, 7  ;;  %v17493_v59 = vld [vmem:[#allocation74_spill] sm:$0xff] }
 0xb00   : > { %v6720_v57 = vadd.f32 %v6646_v45, %v6361_v14  ;;  %v7005_v52 = vsel %vm5619_vm9, %v7003_v55, %v7004_v38  ;;  %v16484_v61 = vrot.slane %v15439_v27, 7  ;;  %v7594_v21 = vmul.f32 %v17490_v47, %v15044_v37  ;;  %v9709_v45 = vld [vmem:[%s16143_s20] sm:$0xf] }
 0xb01   : > { %v7362_v58 = vrot.slane %v7302_v33, 7  ;;  %v15451_v28 = vadd.f32 %v15160_v19, %v15139_v49  ;;  %v7014_v14 = vsel %vm5619_vm9, %v7004_v38, %v16485_v11  ;;  %v15460_v18 = vadd.f32 %v15163_v60, %v15141_v12  ;;  %v17494_v12 = vld [vmem:[#allocation18_spill] sm:$0xff]  ;;  %v15477_v38 = vld [vmem:[#allocation3 + $0x88] sm:$0xff] }
 0xb02   : > { %v7079_v43 = vadd.f32 %v7005_v52, %v6720_v57  ;;  %v15464_v55 = vadd.f32 %v15166_v56, %v15143_v15  ;;  %v7083_v37 = vadd.f32 %v7014_v14, %v6724_v32  ;;  %v7373_v49 = vsel %vm3683_vm1, %v7363_v16, %v16484_v61  ;;  %v17498_v57 = vld [vmem:[#allocation29_spill] sm:$0xff]  ;;  %v17499_v32 = vld [vmem:[#allocation206_spill] sm:$0xff] }
 0xb03   : > { %17491 = vst [vmem:[#allocation234_spill] sm:$0xff] %v15451_v28  ;;  %v7364_v44 = vsel %vm3683_vm1, %v7362_v58, %v7363_v16  ;;  %v7573_v33 = vmul.f32 %v17493_v59, %v6230_v51  ;;  %v15475_v60 = vrot.slane %v9709_v45, %v17494_v12  ;;  %v15480_v56 = vadd.f32 %v7594_v21, %v15145_v4  ;;  %v9710_v16 = vld [vmem:[#allocation3 + $0x48] sm:$0xff]  ;;  %v17506_v12 = vld [vmem:[#allocation115_spill] sm:$0xff] }
 0xb04   : > { %17492 = vst [vmem:[#allocation40_spill] sm:$0xff] %v15464_v55  ;;  %v7438_v19 = vadd.f32 %v7364_v44, %v7079_v43  ;;  %v7442_v15 = vadd.f32 %v7373_v49, %v7083_v37  ;;  %v7577_v48 = vmul.f32 %v17496_v46, %v15411_v39  ;;  %v15486_v36 = vmul.f32 %v17497_v63, %v15456_v13  ;;  %v17501_v4 = vld [vmem:[#allocation185_spill] sm:$0xff]  ;;  %v17504_v49 = vld [vmem:[#allocation47_spill] sm:$0xff] }
 0xb05   : > { %17495 = vst [vmem:[#allocation68_spill] sm:$0xff] %v15480_v56  ;;  %v15490_v58 = vmul.f32 %v17498_v57, %v15456_v13  ;;  %v15494_v52 = vmul.f32 %v17499_v32, %v15456_v13  ;;  %v5097_v47 = vmul.f32 %v9710_v16, %v17501_v4  ;;  %v17502_v14 = vld [vmem:[#allocation173_spill] sm:$0xff]  ;;  %v15510_v46 = vmul.f32 %v17506_v12, %v15477_v38  ;;  %v17508_v16 = vld [vmem:[#allocation56_spill] sm:$0xff]  ;;  %v17509_v12 = vld [vmem:[#allocation243_spill] sm:$0xff] }
 0xb06   : > { %v7601_v51 = vadd.f32 %v7573_v33, %v7438_v19  ;;  %v7605_v21 = vadd.f32 %v7577_v48, %v7442_v15  ;;  %v5101_v43 = vmul.f32 %v15147_v35, %v17502_v14  ;;  %v17503_v37 = vld [vmem:[#allocation33_spill] sm:$0xff]  ;;  %v15503_v19 = vmul.f32 %v17504_v49, %v15477_v38  ;;  %v17505_v33 = vld [vmem:[#allocation111_spill] sm:$0xff] }
 0xb07   : > { %17500 = vst [vmem:[#allocation250_spill] sm:$0xff] %v15494_v52  ;;  %v5352_v44 = vmul.f32 %v15147_v35, %v17503_v37  ;;  %v5713_v45 = vmul.f32 %v15147_v35, %v17505_v33  ;;  %v17507_v15 = vld [vmem:[#allocation61_spill] sm:$0xff]  ;;  %v15518_v4 = vmul.f32 %v17508_v16, %v15477_v38  ;;  %v16487_v37 = vrot.slane %v15510_v46, 2  ;;  %v17511_v16 = vld [vmem:[#allocation38_spill] sm:$0xff] }
 0xb08   : > { %v7651_v59 = vadd.f32 %v15475_v60, %v7601_v51  ;;  %v6073_v48 = vmul.f32 %v15147_v35, %v17507_v15  ;;  %v7655_v63 = vadd.f32 %v15475_v60, %v7605_v21  ;;  %v16489_v32 = vrot.slane %v15503_v19, 1 }
 0xb09   : > { %v5418_v57 = vrot.slane %v5352_v44, 1  ;;  %v5779_v14 = vrot.slane %v5713_v45, 2  ;;  %v17510_v61 = vrot.slane %v17509_v12, 1  ;;  %v16488_v44 = vrot.slane %v15518_v4, 7 }
 0xb0a   : > { %v7679_v51 = vmax.f32 %v7651_v59, 0.0  ;;  %v6138_v49 = vrot.slane %v6073_v48, 7  ;;  %v7683_v33 = vmax.f32 %v7655_v63, 0.0  ;;  %v17512_v52 = vrot.slane %v17511_v16, 2  ;;  %v15534_v48 = vld [vmem:[#allocation3 + $0xa8] sm:$0xff] }
 0xb0b   : > { %v5419_v11 = vsel %vm5395_vm7, %v17510_v61, %v5418_v57  ;;  %v5427_v21 = vsel %vm5395_vm7, %v5418_v57, %v16489_v32  ;;  %v5788_v45 = vsel %vm5756_vm8, %v5779_v14, %v16487_v37  ;;  %v17513_v61 = vrot.slane %v17378_v30, 7  ;;  %v17517_v30 = vld [vmem:[#allocation91_spill] sm:$0xff] }
 0xb0c   : > { %v5485_v15 = vadd.f32 %v5419_v11, %v5097_v47  ;;  %v5489_v24 = vadd.f32 %v5427_v21, %v5101_v43  ;;  %v5780_v59 = vsel %vm5756_vm8, %v17512_v52, %v5779_v14  ;;  %v7771_v63 = vpack.c.bf16 %v7683_v33, %v7679_v51  ;;  %v17514_v47 = vld [vmem:[#allocation195_spill] sm:$0xff]  ;;  %v17515_v21 = vld [vmem:[#allocation198_spill] sm:$0xff]  ;;  %v17518_v33 = vld [vmem:[#allocation101_spill] sm:$0xff] }
 0xb0d   : > { %v6139_v12 = vsel %vm3683_vm1, %v17513_v61, %v6138_v49  ;;  %v6147_v11 = vsel %vm3683_vm1, %v6138_v49, %v16488_v44  ;;  %v6340_v43 = vmul.f32 %v17514_v47, %v15147_v35  ;;  %v6344_v16 = vmul.f32 %v17515_v21, %v15477_v38  ;;  %v17516_v14 = vld [vmem:[#allocation83_spill] sm:$0xff]  ;;  %v17519_v49 = vld [vmem:[#allocation138_spill] sm:$0xff]  ;;  %v17520_v35 = vld [vmem:[#allocation208_spill] sm:$0xff] }
 0xb0e   : > { %v5846_v57 = vadd.f32 %v5780_v59, %v5485_v15  ;;  %v5850_v52 = vadd.f32 %v5788_v45, %v5489_v24  ;;  %v6595_v37 = vmul.f32 %v17516_v14, %v15477_v38  ;;  %8081 = vmatmul.mubr.bf16.vlgmr.msra.gmra.mrb[80].mxu0 %v7771_v63  ;;  %v15550_v51 = vmul.f32 %v17517_v30, %v15534_v48  ;;  %v17521_v47 = vld [vmem:[#allocation221_spill] sm:$0xff] }
 0xb0f   : > { %v6954_v61 = vmul.f32 %v17518_v33, %v15477_v38  ;;  %v15556_v44 = vmul.f32 %v17519_v49, %v15534_v48  ;;  %v7313_v24 = vmul.f32 %v17520_v35, %v15477_v38  ;;  %v15562_v63 = vmul.f32 %v17521_v47, %v15534_v48  ;;  %v17527_v47 = vld [vmem:[#allocation27_spill] sm:$0xff] }
 0xb10   : > { %v6205_v15 = vadd.f32 %v6139_v12, %v5846_v57  ;;  %v6209_v59 = vadd.f32 %v6147_v11, %v5850_v52  ;;  %v6660_v45 = vrot.slane %v6595_v37, 1  ;;  %v16492_v21 = vrot.slane %v15550_v51, 1  ;;  %v15570_v11 = vld [vmem:[#allocation3 + $0x98] sm:$0xff] }
 0xb11   : > { %v7019_v14 = vrot.slane %v6954_v61, 6  ;;  %v16491_v30 = vrot.slane %v15556_v44, 6  ;;  %v7378_v33 = vrot.slane %v7313_v24, 7  ;;  %v17522_v49 = vrot.slane %v15178_v29, 1 }
 0xb12   : > { %v6368_v32 = vadd.f32 %v6340_v43, %v6205_v15  ;;  %v6372_v55 = vadd.f32 %v6344_v16, %v6209_v59  ;;  %v16490_v12 = vrot.slane %v15562_v63, 7  ;;  %v6669_v37 = vsel %vm5395_vm7, %v6660_v45, %v16492_v21  ;;  %v17525_v15 = vld [vmem:[#allocation187_spill] sm:$0xff] }
 0xb13   : > { %v6661_v28 = vsel %vm5395_vm7, %v17522_v49, %v6660_v45  ;;  %v17523_v57 = vrot.slane %v15186_v2, 6  ;;  %v7028_v43 = vsel %vm5619_vm9, %v7019_v14, %v16491_v30  ;;  %v17524_v29 = vrot.slane %v15202_v26, 7  ;;  %v17526_v2 = vld [vmem:[#allocation175_spill] sm:$0xff] }
 0xb14   : > { %v6727_v61 = vadd.f32 %v6661_v28, %v6368_v32  ;;  %v6731_v35 = vadd.f32 %v6669_v37, %v6372_v55  ;;  %v7387_v24 = vsel %vm3683_vm1, %v7378_v33, %v16490_v12  ;;  %v5099_v59 = vmul.f32 %v17525_v15, %v15208_v53  ;;  %v17531_v53 = vld [vmem:[#allocation63_spill] sm:$0xff]  ;;  %v17532_v12 = vld [vmem:[#allocation58_spill] sm:$0xff] }
 0xb15   : > { %v7020_v52 = vsel %vm5619_vm9, %v17523_v57, %v7019_v14  ;;  %v7379_v16 = vsel %vm3683_vm1, %v17524_v29, %v7378_v33  ;;  %v5103_v45 = vmul.f32 %v15259_v22, %v17526_v2  ;;  %v5354_v49 = vmul.f32 %v15259_v22, %v17527_v47  ;;  %v17528_v14 = vld [vmem:[#allocation16_spill] sm:$0xff]  ;;  %v17529_v57 = vld [vmem:[#allocation114_spill] sm:$0xff]  ;;  %v17530_v33 = vld [vmem:[#allocation117_spill] sm:$0xff] }
 0xb16   : > { %v15595_v26 = vmul.f32 %v17528_v14, %v15570_v11  ;;  %v5715_v28 = vmul.f32 %v15259_v22, %v17529_v57  ;;  %v7086_v55 = vadd.f32 %v7020_v52, %v6727_v61  ;;  %v7090_v32 = vadd.f32 %v7028_v43, %v6731_v35 }
 0xb17   : > { %v15601_v37 = vmul.f32 %v17530_v33, %v15570_v11  ;;  %v6075_v29 = vmul.f32 %v15259_v22, %v17531_v53  ;;  %v5422_v15 = vrot.slane %v5354_v49, 1  ;;  %v15608_v14 = vmul.f32 %v17532_v12, %v15570_v11  ;;  %v17535_v33 = vld [vmem:[#allocation247_spill] sm:$0xff] }
 0xb18   : > { %v16495_v2 = vrot.slane %v15595_v26, 1  ;;  %v5783_v47 = vrot.slane %v5715_v28, 2  ;;  %v7445_v30 = vadd.f32 %v7379_v16, %v7086_v55  ;;  %v7449_v21 = vadd.f32 %v7387_v24, %v7090_v32  ;;  %v17536_v24 = vld [vmem:[#allocation120_spill] sm:$0xff] }
 0xb19   : > { %v16494_v52 = vrot.slane %v15601_v37, 2  ;;  %v6142_v43 = vrot.slane %v6075_v29, 7  ;;  %v17533_v61 = vrot.slane %v15223_v23, 1  ;;  %v17534_v57 = vrot.slane %v15228_v62, 2  ;;  %v15623_v29 = vld [vmem:[#allocation3 + $0xb8] sm:$0xff] }
 0xb1a   : > { %v5431_v49 = vsel %vm5395_vm7, %v5422_v15, %v16495_v2  ;;  %v16493_v12 = vrot.slane %v15608_v14, 7  ;;  %v7608_v16 = vadd.f32 %v17535_v33, %v7445_v30  ;;  %v7612_v55 = vadd.f32 %v17536_v24, %v7449_v21  ;;  %17537 = vst [vmem:[#allocation119_spill] sm:$0xff] %v15623_v29  ;;  %v17539_v30 = vld [vmem:[#allocation197_spill] sm:$0xff] }
 0xb1b   : > { %v5423_v35 = vsel %vm5395_vm7, %v17533_v61, %v5422_v15  ;;  %v5784_v28 = vsel %vm5756_vm8, %v17534_v57, %v5783_v47  ;;  %v5491_v53 = vadd.f32 %v5431_v49, %v5103_v45  ;;  %v5792_v23 = vsel %vm5756_vm8, %v5783_v47, %v16494_v52  ;;  %v17540_v49 = vld [vmem:[#allocation201_spill] sm:$0xff] }
 0xb1c   : > { %v5487_v32 = vadd.f32 %v5423_v35, %v5099_v59  ;;  %v17538_v15 = vrot.slane %v15234_v1, 7  ;;  %v6151_v61 = vsel %vm3683_vm1, %v6142_v43, %v16493_v12  ;;  %v6342_v57 = vmul.f32 %v17539_v30, %v15259_v22  ;;  %v17541_v1 = vld [vmem:[#allocation85_spill] sm:$0xff] }
 0xb1d   : > { %v7658_v21 = vadd.f32 %v17408_v42, %v7608_v16  ;;  %v7662_v59 = vadd.f32 %v17408_v42, %v7612_v55  ;;  %v5852_v35 = vadd.f32 %v5792_v23, %v5491_v53  ;;  %v6346_v47 = vmul.f32 %v17540_v49, %v15570_v11  ;;  %v17542_v24 = vld [vmem:[#allocation93_spill] sm:$0xff] }
 0xb1e   : > { %v6143_v62 = vsel %vm3683_vm1, %v17538_v15, %v6142_v43  ;;  %v5848_v45 = vadd.f32 %v5784_v28, %v5487_v32  ;;  %v6597_v33 = vmul.f32 %v17541_v1, %v15570_v11  ;;  %v15644_v15 = vmul.f32 %v17542_v24, %v15623_v29  ;;  %v17543_v43 = vld [vmem:[#allocation103_spill] sm:$0xff]  ;;  %v17544_v32 = vld [vmem:[#allocation140_spill] sm:$0xff] }
 0xb1f   : > { %v6956_v12 = vmul.f32 %v17543_v43, %v15570_v11  ;;  %v7686_v22 = vmax.f32 %v7658_v21, 0.0  ;;  %v7690_v30 = vmax.f32 %v7662_v59, 0.0  ;;  %v6211_v52 = vadd.f32 %v6151_v61, %v5852_v35  ;;  %v17545_v24 = vld [vmem:[#allocation151_spill] sm:$0xff] }
 0xb20   : > { %v6207_v16 = vadd.f32 %v6143_v62, %v5848_v45  ;;  %v6664_v55 = vrot.slane %v6597_v33, 1  ;;  %v16497_v28 = vrot.slane %v15644_v15, 1  ;;  %v15651_v53 = vmul.f32 %v17544_v32, %v15623_v29  ;;  %v17548_v45 = vld [vmem:[#allocation149_spill] sm:$0xff]  ;;  %v17551_v32 = vld [vmem:[#allocation55_spill] sm:$0xff] }
 0xb21   : > { %v7023_v23 = vrot.slane %v6956_v12, 6  ;;  %v7774_v49 = vpack.c.bf16 %v7690_v30, %v7686_v22  ;;  %v6374_v2 = vadd.f32 %v6346_v47, %v6211_v52  ;;  %v7315_v56 = vmul.f32 %v17545_v24, %v15570_v11  ;;  %v15669_v47 = vld [vmem:[#allocation3 + $0x80] sm:$0xff] }
 0xb22   : > { %v6370_v1 = vadd.f32 %v6342_v57, %v6207_v16  ;;  %v17546_v43 = vrot.slane %v15270_v41, 1  ;;  %v6673_v62 = vsel %vm5395_vm7, %v6664_v55, %v16497_v28  ;;  %v17547_v61 = vrot.slane %v15279_v25, 6  ;;  %v9711_v22 = vld [vmem:[#allocation3 + $0x40] sm:$0xff]  ;;  %v17549_v25 = vld [vmem:[#allocation141_spill] sm:$0xff]  ;;  %v17550_v16 = vld [vmem:[#allocation67_spill] sm:$0xff] }
 0xb23   : > { %v16496_v12 = vrot.slane %v15651_v53, 6  ;;  %8024 = vmatprep.mubr.bf16.mxu1 %v7774_v49  ;;  %v6733_v52 = vadd.f32 %v6673_v62, %v6374_v2  ;;  %v15667_v35 = vmul.f32 %v17548_v45, %v15623_v29  ;;  %v7382_v41 = vrot.slane %v7315_v56, 7 }
 0xb24   : > { %v6665_v21 = vsel %vm5395_vm7, %v17546_v43, %v6664_v55  ;;  %v7024_v59 = vsel %vm5619_vm9, %v17547_v61, %v7023_v23  ;;  %v5096_v30 = vmul.f32 %v9711_v22, %v17549_v25  ;;  %v5100_v55 = vmul.f32 %v15317_v34, %v17550_v16  ;;  %v17554_v61 = vld [vmem:[#allocation110_spill] sm:$0xff]  ;;  %v17555_v22 = vld [vmem:[#allocation113_spill] sm:$0xff] }
 0xb25   : > { %v6729_v57 = vadd.f32 %v6665_v21, %v6370_v1  ;;  %v7032_v33 = vsel %vm5619_vm9, %v7023_v23, %v16496_v12  ;;  %v5351_v2 = vmul.f32 %v15317_v34, %v17551_v32  ;;  %v17552_v24 = vrot.slane %v15293_v54, 7  ;;  %v17553_v21 = vld [vmem:[#allocation48_spill] sm:$0xff] }
 0xb26   : > { %v7092_v1 = vadd.f32 %v7032_v33, %v6733_v52  ;;  %v7390_v43 = vrot.slane %v15667_v35, 7  ;;  %v15685_v23 = vmul.f32 %v17553_v21, %v15669_v47  ;;  %v5712_v45 = vmul.f32 %v15317_v34, %v17554_v61  ;;  %v17557_v33 = vld [vmem:[#allocation66_spill] sm:$0xff]  ;;  %v17560_v12 = vld [vmem:[#allocation248_spill] sm:$0xff] }
 0xb27   : > { %v7088_v49 = vadd.f32 %v7024_v59, %v6729_v57  ;;  %v7383_v56 = vsel %vm3683_vm1, %v17552_v24, %v7382_v41  ;;  %v5416_v62 = vrot.slane %v5351_v2, 1  ;;  %v15691_v25 = vmul.f32 %v17555_v22, %v15669_v47  ;;  %v17556_v57 = vld [vmem:[#allocation60_spill] sm:$0xff]  ;;  %v17558_v2 = vld [vmem:[#allocation239_spill] sm:$0xff] }
 0xb28   : > { %v7391_v54 = vsel %vm3683_vm1, %v7382_v41, %v7390_v43  ;;  %v6072_v52 = vmul.f32 %v15317_v34, %v17556_v57  ;;  %v15700_v16 = vmul.f32 %v17557_v33, %v15669_v47  ;;  %v17559_v24 = vrot.slane %v17558_v2, 1 }
 0xb29   : > { %v7447_v59 = vadd.f32 %v7383_v56, %v7088_v49  ;;  %v7451_v32 = vadd.f32 %v7391_v54, %v7092_v1  ;;  %v16507_v61 = vrot.slane %v15685_v23, 1  ;;  %v5777_v22 = vrot.slane %v5712_v45, 2 }
 0xb2a   : > { %v5417_v21 = vsel %vm5395_vm7, %v17559_v24, %v5416_v62  ;;  %v16500_v41 = vrot.slane %v15691_v25, 2  ;;  %v6136_v49 = vrot.slane %v6072_v52, 7  ;;  %v17561_v1 = vrot.slane %v17433_v8, 2 }
 0xb2b   : > { %v7610_v28 = vadd.f32 %v17560_v12, %v7447_v59  ;;  %v5484_v29 = vadd.f32 %v5417_v21, %v5096_v30  ;;  %v7614_v56 = vadd.f32 %v15105_v10, %v7451_v32  ;;  %v5425_v57 = vsel %vm5395_vm7, %v5416_v62, %v16507_v61  ;;  %v15720_v59 = vld [vmem:[#allocation3 + $0xa0] sm:$0xff] }
 0xb2c   : > { %v5778_v54 = vsel %vm5756_vm8, %v17561_v1, %v5777_v22  ;;  %v16499_v33 = vrot.slane %v15700_v16, 7  ;;  %v5488_v2 = vadd.f32 %v5425_v57, %v5100_v55  ;;  %v5786_v12 = vsel %vm5756_vm8, %v5777_v22, %v16500_v41 }
 0xb2d   : > { %v7660_v45 = vadd.f32 %v17452_v3, %v7610_v28  ;;  %v5845_v30 = vadd.f32 %v5778_v54, %v5484_v29  ;;  %v7664_v10 = vadd.f32 %v17452_v3, %v7614_v56  ;;  %v17562_v62 = vrot.slane %v17438_v6, 7  ;;  %v17563_v28 = vld [vmem:[#allocation194_spill] sm:$0xff] }
 0xb2e   : > { %v6145_v52 = vsel %vm3683_vm1, %v6136_v49, %v16499_v33  ;;  %v6339_v55 = vmul.f32 %v17563_v28, %v15317_v34  ;;  %v5849_v24 = vadd.f32 %v5786_v12, %v5488_v2  ;;  %v17564_v29 = vld [vmem:[#allocation126_spill] sm:$0xff]  ;;  %v17568_v34 = vld [vmem:[#allocation136_spill] sm:$0xff]  ;;  %v17569_v2 = vld [vmem:[#allocation205_spill] sm:$0xff] }
 0xb2f   : > { %v6137_v8 = vsel %vm3683_vm1, %v17562_v62, %v6136_v49  ;;  %v7688_v32 = vmax.f32 %v7660_v45, 0.0  ;;  %v6343_v22 = vmul.f32 %v17564_v29, %v15669_v47  ;;  %v7692_v57 = vmax.f32 %v7664_v10, 0.0  ;;  %v17565_v56 = vld [vmem:[#allocation82_spill] sm:$0xff]  ;;  %v17567_v62 = vld [vmem:[#allocation100_spill] sm:$0xff] }
 0xb30   : > { %v6204_v21 = vadd.f32 %v6137_v8, %v5845_v30  ;;  %v6594_v1 = vmul.f32 %v17565_v56, %v15669_v47  ;;  %v17566_v6 = vld [vmem:[#allocation90_spill] sm:$0xff]  ;;  %v6953_v49 = vmul.f32 %v17567_v62, %v15669_v47  ;;  %v6208_v33 = vadd.f32 %v6145_v52, %v5849_v24 }
 0xb31   : > { %v15737_v54 = vmul.f32 %v17566_v6, %v15720_v59  ;;  %v15743_v45 = vmul.f32 %v17568_v34, %v15720_v59  ;;  %v7312_v12 = vmul.f32 %v17569_v2, %v15669_v47  ;;  %v7776_v30 = vpack.c.bf16 %v7692_v57, %v7688_v32  ;;  %v17570_v6 = vld [vmem:[#allocation220_spill] sm:$0xff]  ;;  %v17573_v57 = vld [vmem:[#allocation186_spill] sm:$0xff] }
 0xb32   : > { %v6367_v41 = vadd.f32 %v6339_v55, %v6204_v21  ;;  %v6658_v10 = vrot.slane %v6594_v1, 1  ;;  %v7017_v28 = vrot.slane %v6953_v49, 6  ;;  %v6371_v29 = vadd.f32 %v6343_v22, %v6208_v33  ;;  %v15753_v55 = vld [vmem:[#allocation3 + $0x90] sm:$0xff] }
 0xb33   : > { %v16503_v8 = vrot.slane %v15737_v54, 1  ;;  %v16501_v56 = vrot.slane %v15743_v45, 6  ;;  %v15751_v62 = vmul.f32 %v17570_v6, %v15720_v59  ;;  %v7376_v52 = vrot.slane %v7312_v12, 7  ;;  %8088 = vmatprep.mubr.bf16.mxu0 %v7776_v30  ;;  %v17576_v6 = vld [vmem:[#allocation44_spill] sm:$0xff] }
 0xb34   : > { %v17571_v24 = vrot.slane %v15336_v0, 1  ;;  %v17572_v33 = vrot.slane %v15346_v40, 6  ;;  %v5098_v1 = vmul.f32 %v15368_v5, %v17573_v57  ;;  %v17574_v0 = vrot.slane %v15362_v50, 7  ;;  %v17577_v5 = vld [vmem:[#allocation15_spill] sm:$0xff]  ;;  %v17579_v50 = vld [vmem:[#allocation116_spill] sm:$0xff] }
 0xb35   : > { %v6667_v32 = vsel %vm5395_vm7, %v6658_v10, %v16503_v8  ;;  %v7026_v2 = vsel %vm5619_vm9, %v7017_v28, %v16501_v56  ;;  %v16502_v30 = vrot.slane %v15751_v62, 7  ;;  %v17583_v8 = vld [vmem:[#allocation245_spill] sm:$0xff] }
 0xb36   : > { %v6659_v21 = vsel %vm5395_vm7, %v17571_v24, %v6658_v10  ;;  %v7018_v22 = vsel %vm5619_vm9, %v17572_v33, %v7017_v28  ;;  %v6730_v34 = vadd.f32 %v6667_v32, %v6371_v29  ;;  %v7377_v12 = vsel %vm3683_vm1, %v17574_v0, %v7376_v52  ;;  %v17575_v10 = vld [vmem:[#allocation174_spill] sm:$0xff]  ;;  %v17578_v32 = vld [vmem:[#allocation112_spill] sm:$0xff] }
 0xb37   : > { %v6726_v49 = vadd.f32 %v6659_v21, %v6367_v41  ;;  %v5102_v40 = vmul.f32 %v15411_v39, %v17575_v10  ;;  %v5353_v24 = vmul.f32 %v15411_v39, %v17576_v6  ;;  %v15779_v41 = vmul.f32 %v17577_v5, %v15753_v55  ;;  %v17580_v6 = vld [vmem:[#allocation62_spill] sm:$0xff] }
 0xb38   : > { %v7089_v21 = vadd.f32 %v7026_v2, %v6730_v34  ;;  %v5714_v28 = vmul.f32 %v15411_v39, %v17578_v32  ;;  %v15785_v33 = vmul.f32 %v17579_v50, %v15753_v55  ;;  %v7385_v57 = vsel %vm3683_vm1, %v7376_v52, %v16502_v30  ;;  %v17582_v52 = vld [vmem:[#allocation57_spill] sm:$0xff] }
 0xb39   : > { %v7085_v29 = vadd.f32 %v7018_v22, %v6726_v49  ;;  %v5420_v0 = vrot.slane %v5353_v24, 1  ;;  %v16504_v10 = vrot.slane %v15779_v41, 1  ;;  %v6074_v5 = vmul.f32 %v15411_v39, %v17580_v6 }
 0xb3a   : > { %v7448_v22 = vadd.f32 %v7385_v57, %v7089_v21  ;;  %v5781_v49 = vrot.slane %v5714_v28, 2  ;;  %v16506_v34 = vrot.slane %v15785_v33, 2  ;;  %v17581_v2 = vrot.slane %v15372_v7, 1 }
 0xb3b   : > { %v7444_v56 = vadd.f32 %v7377_v12, %v7085_v29  ;;  %v5429_v50 = vsel %vm5395_vm7, %v5420_v0, %v16504_v10  ;;  %v15802_v24 = vmul.f32 %v17582_v52, %v15753_v55  ;;  %v6140_v30 = vrot.slane %v6074_v5, 7  ;;  %v17584_v12 = vld [vmem:[#allocation118_spill] sm:$0xff] }
 0xb3c   : > { %v5421_v32 = vsel %vm5395_vm7, %v17581_v2, %v5420_v0  ;;  %v7611_v29 = vadd.f32 %v17584_v12, %v7448_v22  ;;  %v5490_v28 = vadd.f32 %v5429_v50, %v5102_v40  ;;  %v17585_v57 = vrot.slane %v15378_v20, 2  ;;  %v17587_v10 = vld [vmem:[#allocation242_spill] sm:$0xff]  ;;  %v17590_v12 = vld [vmem:[#allocation84_spill] sm:$0xff] }
 0xb3d   : > { %v7607_v6 = vadd.f32 %v17583_v8, %v7444_v56  ;;  %v5486_v21 = vadd.f32 %v5421_v32, %v5098_v1  ;;  %v5790_v2 = vsel %vm5756_vm8, %v5781_v49, %v16506_v34  ;;  %v17586_v0 = vrot.slane %v15388_v17, 7  ;;  %v15818_v22 = vld [vmem:[#allocation3 + $0xb0] sm:$0xff]  ;;  %v17589_v17 = vld [vmem:[#allocation199_spill] sm:$0xff] }
 0xb3e   : > { %v5782_v7 = vsel %vm5756_vm8, %v17585_v57, %v5781_v49  ;;  %v16505_v5 = vrot.slane %v15802_v24, 7  ;;  %v7661_v56 = vadd.f32 %v17587_v10, %v7611_v29  ;;  %v5851_v40 = vadd.f32 %v5790_v2, %v5490_v28  ;;  %v17588_v49 = vld [vmem:[#allocation196_spill] sm:$0xff] }
 0xb3f   : > { %v6141_v52 = vsel %vm3683_vm1, %v17586_v0, %v6140_v30  ;;  %v7657_v8 = vadd.f32 %v17587_v10, %v7607_v6  ;;  %v5847_v1 = vadd.f32 %v5782_v7, %v5486_v21  ;;  %v6341_v32 = vmul.f32 %v17588_v49, %v15411_v39  ;;  %v17591_v28 = vld [vmem:[#allocation92_spill] sm:$0xff]  ;;  %v17593_v39 = vld [vmem:[#allocation139_spill] sm:$0xff] }
 0xb40   : > { %v6149_v20 = vsel %vm3683_vm1, %v6140_v30, %v16505_v5  ;;  %v6345_v50 = vmul.f32 %v17589_v17, %v15753_v55  ;;  %v6596_v57 = vmul.f32 %v17590_v12, %v15753_v55  ;;  %v7689_v0 = vmax.f32 %v7661_v56, 0.0  ;;  %v17592_v30 = vld [vmem:[#allocation102_spill] sm:$0xff] }
 0xb41   : > { %v7685_v6 = vmax.f32 %v7657_v8, 0.0  ;;  %v6206_v29 = vadd.f32 %v6141_v52, %v5847_v1  ;;  %v6210_v21 = vadd.f32 %v6149_v20, %v5851_v40  ;;  %v15831_v7 = vmul.f32 %v17591_v28, %v15818_v22  ;;  %v17594_v8 = vld [vmem:[#allocation209_spill] sm:$0xff]  ;;  %v17596_v28 = vld [vmem:[#allocation222_spill] sm:$0xff] }
 0xb42   : > { %v6662_v2 = vrot.slane %v6596_v57, 1  ;;  %v6955_v5 = vmul.f32 %v17592_v30, %v15753_v55  ;;  %v15837_v49 = vmul.f32 %v17593_v39, %v15818_v22  ;;  %v7314_v56 = vmul.f32 %v17594_v8, %v15753_v55 }
 0xb43   : > { %v7773_v17 = vpack.c.bf16 %v7689_v0, %v7685_v6  ;;  %v6369_v34 = vadd.f32 %v6341_v32, %v6206_v29  ;;  %v6373_v61 = vadd.f32 %v6345_v50, %v6210_v21  ;;  %v17595_v52 = vrot.slane %v15423_v31, 1  ;;  %v17597_v50 = vld [vmem:[#allocation188_spill] sm:$0xff]  ;;  %v17599_v29 = vld [vmem:[#allocation217_spill] sm:$0xff] }
 0xb44   : > { %v6670_v40 = vrot.slane %v15831_v7, 1  ;;  %v7021_v20 = vrot.slane %v6955_v5, 6  ;;  %v7029_v12 = vrot.slane %v15837_v49, 6  ;;  %v15848_v30 = vmul.f32 %v17596_v28, %v15818_v22 }
 0xb45   : > { %v6663_v1 = vsel %vm5395_vm7, %v17595_v52, %v6662_v2  ;;  %8025 = vmatmul.mubr.bf16.gmra.mrb[100].mxu1 %v7773_v17  ;;  %v7380_v32 = vrot.slane %v7314_v56, 7  ;;  %v5105_v6 = vmul.f32 %v17597_v50, %v15477_v38  ;;  %v17598_v0 = vrot.slane %v15431_v9, 6  ;;  %v17603_v52 = vld [vmem:[#allocation19_spill] sm:$0xff] }
 0xb46   : > { %v6728_v57 = vadd.f32 %v6663_v1, %v6369_v34  ;;  %v6671_v31 = vsel %vm5395_vm7, %v6662_v2, %v6670_v40  ;;  %v7030_v34 = vsel %vm5619_vm9, %v7021_v20, %v7029_v12  ;;  %v17600_v21 = vrot.slane %v17599_v29, 1  ;;  %v17607_v29 = vld [vmem:[#allocation146_spill] sm:$0xff] }
 0xb47   : > { %v7022_v5 = vsel %vm5619_vm9, %v17598_v0, %v7021_v20  ;;  %v17601_v39 = vrot.slane %v15503_v19, 1  ;;  %v6732_v8 = vadd.f32 %v6671_v31, %v6373_v61  ;;  %v17602_v56 = vrot.slane %v15439_v27, 7  ;;  %v17604_v20 = vld [vmem:[#allocation76_spill] sm:$0xff] }
 0xb48   : > { %v7087_v38 = vadd.f32 %v7022_v5, %v6728_v57  ;;  %v7388_v9 = vrot.slane %v15848_v30, 7  ;;  %v15872_v1 = vmul.f32 %v17603_v52, %v15456_v13  ;;  %v17605_v50 = vrot.slane %v17604_v20, 2  ;;  %v7488_v31 = vld [vmem:[#allocation3 + $0x100] sm:$0x1]  ;;  %v7489_v52 = vld [vmem:[#allocation3 + $0x108] sm:$0x1] }
 0xb49   : > { %v5435_v17 = vsel %vm5395_vm7, %v17601_v39, %v17600_v21  ;;  %v7381_v2 = vsel %vm3683_vm1, %v17602_v56, %v7380_v32  ;;  %v17606_v0 = vrot.slane %v15510_v46, 2  ;;  %v17608_v61 = vrot.slane %v17607_v29, 7  ;;  %v17610_v39 = vld [vmem:[#allocation202_spill] sm:$0xff] }
 0xb4a   : > { %v5493_v28 = vadd.f32 %v5435_v17, %v5105_v6  ;;  %v17609_v57 = vrot.slane %v15518_v4, 7  ;;  %v7091_v5 = vadd.f32 %v7030_v34, %v6732_v8  ;;  %v7446_v21 = vadd.f32 %v7381_v2, %v7087_v38  ;;  %v17611_v56 = vld [vmem:[#allocation122_spill] sm:$0xff]  ;;  %v17617_v38 = vld [vmem:[#allocation128_spill] sm:$0xff] }
 0xb4b   : > { %v5796_v19 = vsel %vm5756_vm8, %v17606_v0, %v17605_v50  ;;  %v6348_v13 = vmul.f32 %v17610_v39, %v15534_v48  ;;  %v17612_v6 = vrot.slane %v17611_v56, 1  ;;  %v17613_v17 = vrot.slane %v15550_v51, 1  ;;  %v17614_v50 = vld [vmem:[#allocation153_spill] sm:$0xff]  ;;  %v17621_v39 = vld [vmem:[#allocation190_spill] sm:$0xff] }
 0xb4c   : > { %v6155_v27 = vsel %vm3683_vm1, %v17609_v57, %v17608_v61  ;;  %v7389_v20 = vsel %vm3683_vm1, %v7380_v32, %v7388_v9  ;;  %v5854_v4 = vadd.f32 %v5796_v19, %v5493_v28  ;;  %v17615_v0 = vrot.slane %v17614_v50, 6  ;;  %v17620_v61 = vld [vmem:[#allocation246_spill] sm:$0xff]  ;;  %v17622_v32 = vld [vmem:[#allocation219_spill] sm:$0xff] }
 0xb4d   : > { %v6677_v46 = vsel %vm5395_vm7, %v17613_v17, %v17612_v6  ;;  %v17616_v34 = vrot.slane %v15556_v44, 6  ;;  %v17618_v48 = vrot.slane %v17617_v38, 7  ;;  %v17619_v2 = vrot.slane %v15562_v63, 7  ;;  %v17625_v50 = vld [vmem:[#allocation78_spill] sm:$0xff]  ;;  %v17631_v38 = vld [vmem:[#allocation124_spill] sm:$0xff] }
 0xb4e   : > { %v7450_v29 = vadd.f32 %v7389_v20, %v7091_v5  ;;  %v7609_v57 = vadd.f32 %v17620_v61, %v7446_v21  ;;  %v5107_v56 = vmul.f32 %v17621_v39, %v15570_v11  ;;  %v17623_v28 = vrot.slane %v17622_v32, 1  ;;  %v17628_v21 = vld [vmem:[#allocation148_spill] sm:$0xff] }
 0xb4f   : > { %v7036_v8 = vsel %vm5619_vm9, %v17616_v34, %v17615_v0  ;;  %v7395_v51 = vsel %vm3683_vm1, %v17619_v2, %v17618_v48  ;;  %v17624_v19 = vrot.slane %v15595_v26, 1  ;;  %v15913_v6 = vmul.f32 %v15486_v36, %v7488_v31  ;;  %v17635_v39 = vld [vmem:[#allocation156_spill] sm:$0xff] }
 0xb50   : > { %v6213_v17 = vadd.f32 %v6155_v27, %v5854_v4  ;;  %v17626_v63 = vrot.slane %v17625_v50, 2  ;;  %v17627_v0 = vrot.slane %v15601_v37, 2  ;;  %v17629_v20 = vrot.slane %v17628_v21, 7  ;;  %v17632_v4 = vld [vmem:[#allocation125_spill] sm:$0xff] }
 0xb51   : > { %v5439_v44 = vsel %vm5395_vm7, %v17624_v19, %v17623_v28  ;;  %v17630_v11 = vrot.slane %v15608_v14, 7  ;;  %v15926_v26 = vmul.f32 %v15490_v58, %v7489_v52  ;;  %v7613_v48 = vadd.f32 %v17631_v38, %v7450_v29  ;;  %v17638_v58 = vld [vmem:[#allocation130_spill] sm:$0xff]  ;;  %v17641_v19 = vld [vmem:[#allocation204_spill] sm:$0xff] }
 0xb52   : > { %v5800_v5 = vsel %vm5756_vm8, %v17627_v0, %v17626_v63  ;;  %v7659_v36 = vadd.f32 %v15475_v60, %v7609_v57  ;;  %v5495_v27 = vadd.f32 %v5439_v44, %v5107_v56  ;;  %v6376_v31 = vadd.f32 %v6348_v13, %v6213_v17  ;;  %v17640_v56 = vld [vmem:[#allocation119_spill] sm:$0xff]  ;;  %v17643_v63 = vld [vmem:[#allocation150_spill] sm:$0xff] }
 0xb53   : > { %v6159_v34 = vsel %vm3683_vm1, %v17630_v11, %v17629_v20  ;;  %v17633_v2 = vrot.slane %v17632_v4, 1  ;;  %v17634_v37 = vrot.slane %v15644_v15, 1  ;;  %v17636_v32 = vrot.slane %v17635_v39, 6  ;;  %v17653_v39 = vld [vmem:[#allocation121_spill] sm:$0xff] }
 0xb54   : > { %v17637_v14 = vrot.slane %v15651_v53, 6  ;;  %v17639_v52 = vrot.slane %v17638_v58, 7  ;;  %v7663_v13 = vadd.f32 %v15475_v60, %v7613_v48  ;;  %v7670_v57 = vadd.f32 %v17408_v42, %v15460_v18  ;;  %v17642_v53 = vld [vmem:[#allocation143_spill] sm:$0xff]  ;;  %v17656_v58 = vld [vmem:[#allocation152_spill] sm:$0xff] }
 0xb55   : > { %v6681_v61 = vsel %vm5395_vm7, %v17634_v37, %v17633_v2  ;;  %v5856_v15 = vadd.f32 %v5800_v5, %v5495_v27  ;;  %v6350_v44 = vmul.f32 %v17641_v19, %v17640_v56  ;;  %v6735_v17 = vadd.f32 %v6677_v46, %v6376_v31  ;;  %v17649_v27 = vld [vmem:[#allocation145_spill] sm:$0xff]  ;;  %v17652_v2 = vld [vmem:[#allocation68_spill] sm:$0xff] }
 0xb56   : > { %v7040_v28 = vsel %vm5619_vm9, %v17637_v14, %v17636_v32  ;;  %v7399_v29 = vsel %vm3683_vm1, %v7390_v43, %v17639_v52  ;;  %v5104_v50 = vmul.f32 %v17642_v53, %v15669_v47  ;;  %v17644_v0 = vrot.slane %v17643_v63, 1  ;;  %v17646_v43 = vld [vmem:[#allocation75_spill] sm:$0xff]  ;;  %v17663_v63 = vld [vmem:[#allocation189_spill] sm:$0xff] }
 0xb57   : > { %v17645_v21 = vrot.slane %v15685_v23, 1  ;;  %v17647_v20 = vrot.slane %v17646_v43, 2  ;;  %v17648_v11 = vrot.slane %v15691_v25, 2  ;;  %v7687_v5 = vmax.f32 %v7659_v36, 0.0 }
 0xb58   : > { %v7691_v38 = vmax.f32 %v7663_v13, 0.0  ;;  %v6215_v48 = vadd.f32 %v6159_v34, %v5856_v15  ;;  %v17650_v46 = vrot.slane %v17649_v27, 7  ;;  %v17651_v31 = vrot.slane %v15700_v16, 7 }
 0xb59   : > { %v5433_v35 = vsel %vm5395_vm7, %v17645_v21, %v17644_v0  ;;  %v5794_v18 = vsel %vm5756_vm8, %v17648_v11, %v17647_v20  ;;  %v7094_v4 = vadd.f32 %v7036_v8, %v6735_v17  ;;  %v15969_v23 = vadd.f32 %v17452_v3, %v17652_v2  ;;  %v17659_v8 = vld [vmem:[#allocation127_spill] sm:$0xff]  ;;  %v17664_v21 = vld [vmem:[#allocation218_spill] sm:$0xff]  ;;  %v17667_v20 = vld [vmem:[#allocation77_spill] sm:$0xff] }
 0xb5a   : > { %v6153_v47 = vsel %vm3683_vm1, %v17651_v31, %v17650_v46  ;;  %v5492_v37 = vadd.f32 %v5433_v35, %v5104_v50  ;;  %v17654_v32 = vrot.slane %v17653_v39, 1  ;;  %v17655_v25 = vrot.slane %v15737_v54, 1  ;;  %v17662_v54 = vld [vmem:[#allocation200_spill] sm:$0xff]  ;;  %v6251_v31 = vld [vmem:[#allocation3 + $0xf8] sm:$0x1] }
 0xb5b   : > { %v7775_v14 = vpack.c.bf16 %v7691_v38, %v7687_v5  ;;  %v6378_v34 = vadd.f32 %v6350_v44, %v6215_v48  ;;  %v17657_v52 = vrot.slane %v17656_v58, 6  ;;  %v17658_v16 = vrot.slane %v15743_v45, 6  ;;  %v17673_v38 = vld [vmem:[#allocation231_spill] sm:$0xff]  ;;  %v17679_v58 = vld [vmem:[#allocation129_spill] sm:$0xff] }
 0xb5c   : > { %v6675_v36 = vsel %vm5395_vm7, %v17655_v25, %v17654_v32  ;;  %v17660_v15 = vrot.slane %v17659_v8, 7  ;;  %v17661_v56 = vrot.slane %v15751_v62, 7  ;;  %v7453_v17 = vadd.f32 %v7395_v51, %v7094_v4  ;;  %v17674_v2 = vld [vmem:[#allocation203_spill] sm:$0xff] }
 0xb5d   : > { %v7034_v13 = vsel %vm5619_vm9, %v17658_v16, %v17657_v52  ;;  %v5853_v53 = vadd.f32 %v5794_v18, %v5492_v37  ;;  %v6347_v50 = vmul.f32 %v17662_v54, %v15720_v59  ;;  %v5106_v44 = vmul.f32 %v17663_v63, %v15753_v55  ;;  %8089 = vmatmul.mubr.bf16.gmra.mrb[84].mxu0 %v7775_v14  ;;  %v17670_v18 = vld [vmem:[#allocation147_spill] sm:$0xff] }
 0xb5e   : > { %v7393_v19 = vsel %vm3683_vm1, %v17661_v56, %v17660_v15  ;;  %v6737_v0 = vadd.f32 %v6681_v61, %v6378_v34  ;;  %v17665_v45 = vrot.slane %v17664_v21, 1  ;;  %v17666_v35 = vrot.slane %v15779_v41, 1  ;;  %v6249_v41 = vld [vmem:[#allocation3 + $0xe8] sm:$0x1]  ;;  %v17681_v16 = vld [vmem:[#allocation227_spill] sm:$0xff]  ;;  %v17685_v21 = vld [vmem:[#allocation234_spill] sm:$0xff] }
 0xb5f   : > { %v17668_v62 = vrot.slane %v17667_v20, 2  ;;  %v17669_v11 = vrot.slane %v15785_v33, 2  ;;  %v17671_v5 = vrot.slane %v17670_v18, 7  ;;  %v17672_v59 = vrot.slane %v15802_v24, 7  ;;  %v17675_v33 = vld [vmem:[#allocation123_spill] sm:$0xff]  ;;  %v17677_v24 = vld [vmem:[#allocation154_spill] sm:$0xff] }
 0xb60   : > { %v5437_v43 = vsel %vm5395_vm7, %v17666_v35, %v17665_v45  ;;  %v7616_v61 = vadd.f32 %v17673_v38, %v7453_v17  ;;  %v7698_v48 = vmax.f32 %v7670_v57, 0.0  ;;  %v6212_v27 = vadd.f32 %v6153_v47, %v5853_v53  ;;  %v6248_v47 = vld [vmem:[#allocation3 + $0xe0] sm:$0x1]  ;;  %v17682_v15 = vld [vmem:[#allocation229_spill] sm:$0xff]  ;;  %v17683_v53 = vld [vmem:[#allocation226_spill] sm:$0xff] }
 0xb61   : > { %v5798_v51 = vsel %vm5756_vm8, %v17669_v11, %v17668_v62  ;;  %v6157_v55 = vsel %vm3683_vm1, %v17672_v59, %v17671_v5  ;;  %v5494_v46 = vadd.f32 %v5437_v43, %v5106_v44  ;;  %v7096_v4 = vadd.f32 %v7040_v28, %v6737_v0  ;;  %v7491_v63 = vld [vmem:[#allocation3 + $0x118] sm:$0x1]  ;;  %v17684_v44 = vld [vmem:[#allocation233_spill] sm:$0xff]  ;;  %v17688_v62 = vld [vmem:[#allocation96_spill] sm:$0xff] }
 0xb62   : > { %v6349_v37 = vmul.f32 %v17674_v2, %v15818_v22  ;;  %v17676_v39 = vrot.slane %v17675_v33, 1  ;;  %v17678_v25 = vrot.slane %v17677_v24, 6  ;;  %v7666_v14 = vadd.f32 %v17408_v42, %v7616_v61  ;;  %v17687_v45 = vld [vmem:[#allocation99_spill] sm:$0xff]  ;;  %v17691_v59 = vld [vmem:[#allocation181_spill] sm:$0xff]  ;;  %v17693_v61 = vld [vmem:[#allocation228_spill] sm:$0xff] }
 0xb63   : > { %v6375_v34 = vadd.f32 %v6347_v50, %v6212_v27  ;;  %v5855_v28 = vadd.f32 %v5798_v51, %v5494_v46  ;;  %v17680_v52 = vrot.slane %v17679_v58, 7  ;;  %v7455_v7 = vadd.f32 %v7399_v29, %v7096_v4  ;;  %v6250_v50 = vld [vmem:[#allocation3 + $0xf0] sm:$0x1]  ;;  %v17689_v51 = vld [vmem:[#allocation179_spill] sm:$0xff]  ;;  %v17701_v58 = vld [vmem:[#allocation225_spill] sm:$0xff] }
 0xb64   : > { %v6679_v32 = vsel %vm5395_vm7, %v6670_v40, %v17676_v39  ;;  %v7038_v57 = vsel %vm5619_vm9, %v7029_v12, %v17678_v25  ;;  %v7700_v40 = vmax.f32 %v15969_v23, 0.0  ;;  %v6356_v8 = vmul.f32 %v17681_v16, %v6249_v41  ;;  %v17698_v24 = vld [vmem:[#allocation159_spill] sm:$0xff] }
 0xb65   : > { %v7397_v22 = vsel %vm3683_vm1, %v7388_v9, %v17680_v52  ;;  %v6358_v49 = vmul.f32 %v17682_v15, %v6251_v31  ;;  %v7694_v56 = vmax.f32 %v7666_v14, 0.0  ;;  %v6734_v12 = vadd.f32 %v6675_v36, %v6375_v34  ;;  %v17686_v9 = vld [vmem:[#allocation97_spill] sm:$0xff]  ;;  %v17700_v14 = vld [vmem:[#allocation98_spill] sm:$0xff]  ;;  %v17702_v16 = vld [vmem:[#allocation155_spill] sm:$0xff] }
 0xb66   : > { %v6214_v17 = vadd.f32 %v6157_v55, %v5855_v28  ;;  %v6355_v54 = vmul.f32 %v17683_v53, %v6248_v47  ;;  %v7618_v0 = vadd.f32 %v17684_v44, %v7455_v7  ;;  %v7669_v30 = vadd.f32 %v17587_v10, %v17685_v21  ;;  %v7490_v28 = vld [vmem:[#allocation3 + $0x110] sm:$0x1]  ;;  %v17704_v15 = vld [vmem:[#allocation224_spill] sm:$0xff] }
 0xb67   : > { %v6384_v29 = vadd.f32 %v6356_v8, %v17686_v9  ;;  %v6386_v23 = vadd.f32 %v6358_v49, %v17687_v45  ;;  %v7778_v35 = vpack.c.bf16 %v7698_v48, %v7694_v56  ;;  %v7093_v43 = vadd.f32 %v7034_v13, %v6734_v12  ;;  %v17694_v48 = vld [vmem:[#allocation178_spill] sm:$0xff]  ;;  %v17710_v21 = vld [vmem:[#allocation40_spill] sm:$0xff] }
 0xb68   : > { %v6377_v20 = vadd.f32 %v6349_v37, %v6214_v17  ;;  %v6383_v11 = vadd.f32 %v6355_v54, %v17688_v62  ;;  %v7668_v36 = vadd.f32 %v17452_v3, %v7618_v0  ;;  %v17690_v18 = vrot.slane %v17689_v51, 1  ;;  %v17696_v37 = vld [vmem:[#allocation157_spill] sm:$0xff]  ;;  %v17706_v12 = vld [vmem:[#allocation230_spill] sm:$0xff]  ;;  %v17708_v54 = vld [vmem:[#allocation180_spill] sm:$0xff] }
 0xb69   : > { %v17692_v55 = vrot.slane %v17691_v59, 1  ;;  %v6357_v27 = vmul.f32 %v17693_v61, %v6250_v50  ;;  %v7598_v46 = vmul.f32 %v15872_v1, %v7491_v63  ;;  %8032 = vmatprep.mubr.bf16.mxu1 %v7778_v35  ;;  %v7452_v41 = vadd.f32 %v7393_v19, %v7093_v43  ;;  %v17713_v45 = vld [vmem:[#allocation250_spill] sm:$0xff]  ;;  %v17717_v59 = vld [vmem:[#allocation251_spill] sm:$0xff] }
 0xb6a   : > { %v6743_v5 = vadd.f32 %v17690_v18, %v6384_v29  ;;  %v6736_v31 = vadd.f32 %v6679_v32, %v6377_v20  ;;  %v17695_v13 = vrot.slane %v17694_v48, 1  ;;  %v7696_v2 = vmax.f32 %v7668_v36, 0.0  ;;  %v17714_v43 = vld [vmem:[#allocation158_spill] sm:$0xff]  ;;  %v17716_v36 = vld [vmem:[#allocation232_spill] sm:$0xff] }
 0xb6b   : > { %v6745_v38 = vadd.f32 %v17692_v55, %v6386_v23  ;;  %v17697_v33 = vrot.slane %v17696_v37, 6  ;;  %v17699_v25 = vrot.slane %v17698_v24, 6  ;;  %v6385_v34 = vadd.f32 %v6357_v27, %v17700_v14 }
 0xb6c   : > { %v6742_v4 = vadd.f32 %v17695_v13, %v6383_v11  ;;  %v7615_v52 = vadd.f32 %v17701_v58, %v7452_v41  ;;  %v7697_v7 = vmax.f32 %v7669_v30, 0.0  ;;  %v7095_v1 = vadd.f32 %v7038_v57, %v6736_v31  ;;  %v17711_v57 = vld [vmem:[#allocation223_spill] sm:$0xff] }
 0xb6d   : > { %v7102_v39 = vadd.f32 %v17697_v33, %v6743_v5  ;;  %v7104_v47 = vadd.f32 %v17699_v25, %v6745_v38  ;;  %v17703_v19 = vrot.slane %v17702_v16, 6  ;;  %v7780_v8 = vpack.c.bf16 %v7700_v40, %v7696_v2 }
 0xb6e   : > { %v17705_v49 = vrot.slane %v17704_v15, 7  ;;  %v17707_v17 = vrot.slane %v17706_v12, 7  ;;  %v17709_v50 = vrot.slane %v17708_v54, 1  ;;  %v7665_v44 = vadd.f32 %v17587_v10, %v7615_v52  ;;  %v17720_v12 = vld [vmem:[#allocation160_spill] sm:$0xff]  ;;  %v17721_v54 = vld [vmem:[#allocation161_spill] sm:$0xff] }
 0xb6f   : > { %v7101_v32 = vadd.f32 %v17703_v19, %v6742_v4  ;;  %v7454_v0 = vadd.f32 %v7397_v22, %v7095_v1  ;;  %v7671_v30 = vadd.f32 %v15475_v60, %v17710_v21  ;;  %v17712_v9 = vrot.slane %v17711_v57, 7  ;;  %8096 = vmatprep.mubr.bf16.mxu0 %v7780_v8  ;;  %v16085_v19 = vld [vmem:[%s16146_s23] ss:$0 sm:$0xff] }
 0xb70   : > { %v7461_v56 = vadd.f32 %v17705_v49, %v7102_v39  ;;  %v7463_v53 = vadd.f32 %v17707_v17, %v7104_v47  ;;  %v6744_v63 = vadd.f32 %v17709_v50, %v6385_v34  ;;  %v7597_v40 = vmul.f32 %v17713_v45, %v7490_v28 }
 0xb71   : > { %v7460_v29 = vadd.f32 %v17712_v9, %v7101_v32  ;;  %v17715_v20 = vrot.slane %v17714_v43, 6  ;;  %v7693_v11 = vmax.f32 %v7665_v44, 0.0  ;;  %v7617_v51 = vadd.f32 %v17716_v36, %v7454_v0 }
 0xb72   : > { %v7624_v23 = vadd.f32 %v15926_v26, %v7461_v56  ;;  %v7626_v35 = vadd.f32 %v7598_v46, %v7463_v53  ;;  %v17718_v55 = vrot.slane %v17717_v59, 7  ;;  %v7699_v26 = vmax.f32 %v7671_v30, 0.0 }
 0xb73   : > { %v7103_v62 = vadd.f32 %v17715_v20, %v6744_v63  ;;  %v7623_v22 = vadd.f32 %v15913_v6, %v7460_v29  ;;  %v7777_v61 = vpack.c.bf16 %v7697_v7, %v7693_v11  ;;  %v7667_v27 = vadd.f32 %v15475_v60, %v7617_v51  ;;  %v17722_v51 = vld [vmem:[#allocation163_spill] sm:$0xff] }
 0xb74   : > { %v7674_v18 = vadd.f32 %v17408_v42, %v7624_v23  ;;  %v7676_v5 = vadd.f32 %v17452_v3, %v7626_v35 }
 0xb75   : > { %v7462_v38 = vadd.f32 %v17718_v55, %v7103_v62  ;;  %v7673_v46 = vadd.f32 %v17587_v10, %v7623_v22  ;;  %8033 = vmatmul.mubr.bf16.gmra.mrb[104].mxu1 %v7777_v61  ;;  %v7695_v13 = vmax.f32 %v7667_v27, 0.0 }
 0xb76   : > { %v7702_v41 = vmax.f32 %v7674_v18, 0.0  ;;  %v7704_v31 = vmax.f32 %v7676_v5, 0.0  ;;  %v17723_v5 = vld [vmem:[#allocation162_spill] sm:$0xff] }
 0xb77   : > { %v7625_v48 = vadd.f32 %v7597_v40, %v7462_v38  ;;  %v7779_v6 = vpack.c.bf16 %v7699_v26, %v7695_v13  ;;  %v7701_v2 = vmax.f32 %v7673_v46, 0.0 }
 0xb78   : > { %v7782_v4 = vpack.c.bf16 %v7702_v41, %v7702_v41  ;;  %v7784_v3 = vpack.c.bf16 %v7704_v31, %v7704_v31 }
 0xb79   : > { %v7675_v42 = vadd.f32 %v15475_v60, %v7625_v48  ;;  %8097 = vmatmul.mubr.bf16.gmra.mrb[88].mxu0 %v7779_v6  ;;  %v7781_v37 = vpack.c.bf16 %v7701_v2, %v7701_v2  ;;  %v16078_v60 = vld [vmem:[%s16145_s22] ss:$0 sm:$0xff] }
 0xb7a   : > { %8040 = vmatprep.mubr.bf16.mxu1 %v7782_v4  ;;  %8104 = vmatprep.mubr.bf16.mxu0 %v7784_v3 }
 0xb7b   : > { %v7703_v33 = vmax.f32 %v7675_v42, 0.0 }
 0xb7d   : > { %8041 = vmatmul.mubr.bf16.gmra.mrb[108].mxu1 %v7781_v37  ;;  %v7783_v39 = vpack.c.bf16 %v7703_v33, %v7703_v33 }
 0xb81   : > { %8105 = vmatmul.mubr.bf16.gmra.mrb[92].mxu0 %v7783_v39 }
 0xbd0   : > { %v8847_v10 = vpop.f32.mrb[96].mxu1 }
 0xbd1   : > { %v8848_v24 = vpop.f32.mrb[97].mxu1 }
 0xbd2   : > { %v8849_v25 = vadd.f32 %v8848_v24, %v8847_v10  ;;  %v8850_v47 = vpop.f32.mrb[98].mxu1 }
 0xbd3   : > { %v8851_v14 = vpop.f32.mrb[99].mxu1 }
 0xbd4   : > { %v8852_v34 = vadd.f32 %v8851_v14, %v8850_v47  ;;  %v8019_v58 = vadd.f32 %v8849_v25, %v16078_v60  ;;  %v17724_v14 = vld [vmem:[#allocation164_spill] sm:$0xff] }
 0xbd6   : > { %v8022_v16 = vadd.f32 %v8852_v34, %v16078_v60 }
 0xbe1   : > { %v8887_v28 = vpop.f32.mrb[80].mxu0 }
 0xbe2   : > { %v8888_v52 = vpop.f32.mrb[81].mxu0 }
 0xbe3   : > { %v8889_v7 = vadd.f32 %v8888_v52, %v8887_v28  ;;  %v8890_v1 = vpop.f32.mrb[82].mxu0 }
 0xbe4   : > { %v8891_v32 = vpop.f32.mrb[83].mxu0 }
 0xbe5   : > { %v8083_v8 = vadd.f32 %v8889_v7, %v8019_v58  ;;  %v8892_v15 = vadd.f32 %v8891_v32, %v8890_v1  ;;  %v17725_v1 = vld [vmem:[#allocation165_spill] sm:$0xff] }
 0xbe7   : > { %v8119_v49 = vmul.f32 %v16085_v19, %v8083_v8  ;;  %v8086_v56 = vadd.f32 %v8892_v15, %v8022_v16 }
 0xbe9   : > { %v8126_v17 = vadd.f32 %v8119_v49, %v17720_v12  ;;  %v8120_v53 = vmul.f32 %v16085_v19, %v8086_v56  ;;  %v17726_v12 = vld [vmem:[#allocation166_spill] sm:$0xff] }
 0xbeb   : > { %8133 = vst [vmem:[%s16093_s0] sm:$0xff] %v8126_v17  ;;  %v8127_v50 = vadd.f32 %v8120_v53, %v17721_v54 }
 0xbed   : > { %8134 = vst [vmem:[%s16093_s0 + $0x8] sm:$0xff] %v8127_v50 }
 0xc18   : > { %v8853_v63 = vpop.f32.mrb[100].mxu1 }
 0xc19   : > { %v8854_v44 = vpop.f32.mrb[101].mxu1 }
 0xc1a   : > { %v8855_v0 = vadd.f32 %v8854_v44, %v8853_v63  ;;  %v8856_v21 = vpop.f32.mrb[102].mxu1 }
 0xc1b   : > { %v8857_v30 = vpop.f32.mrb[103].mxu1 }
 0xc1c   : > { %v8858_v57 = vadd.f32 %v8857_v30, %v8856_v21  ;;  %v8027_v29 = vadd.f32 %v8855_v0, %v16078_v60 }
 0xc1e   : > { %v8030_v35 = vadd.f32 %v8858_v57, %v16078_v60 }
 0xc30   : > { %v8893_v9 = vpop.f32.mrb[84].mxu0 }
 0xc31   : > { %v8894_v45 = vpop.f32.mrb[85].mxu0 }
 0xc32   : > { %v8895_v40 = vadd.f32 %v8894_v45, %v8893_v9  ;;  %v8896_v23 = vpop.f32.mrb[86].mxu0 }
 0xc33   : > { %v8897_v43 = vpop.f32.mrb[87].mxu0 }
 0xc34   : > { %v8091_v20 = vadd.f32 %v8895_v40, %v8027_v29  ;;  %v8898_v62 = vadd.f32 %v8897_v43, %v8896_v23 }
 0xc36   : > { %v8121_v11 = vmul.f32 %v16085_v19, %v8091_v20  ;;  %v8094_v36 = vadd.f32 %v8898_v62, %v8030_v35 }
 0xc38   : > { %v8128_v22 = vadd.f32 %v8121_v11, %v17722_v51  ;;  %v8122_v18 = vmul.f32 %v16085_v19, %v8094_v36 }
 0xc3a   : > { %8135 = vst [vmem:[%s16093_s0 + $0x10] sm:$0xff] %v8128_v22  ;;  %v8129_v59 = vadd.f32 %v8122_v18, %v17723_v5 }
 0xc3c   : > { %8136 = vst [vmem:[%s16093_s0 + $0x18] sm:$0xff] %v8129_v59 }
 0xc48   : > { %v8859_v55 = vpop.f32.mrb[104].mxu1 }
 0xc49   : > { %v8860_v38 = vpop.f32.mrb[105].mxu1 }
 0xc4a   : > { %v8861_v61 = vadd.f32 %v8860_v38, %v8859_v55  ;;  %v8862_v27 = vpop.f32.mrb[106].mxu1 }
 0xc4b   : > { %v8863_v26 = vpop.f32.mrb[107].mxu1 }
 0xc4c   : > { %v8899_v46 = vpop.f32.mrb[88].mxu0  ;;  %v8035_v41 = vadd.f32 %v8861_v61, %v16078_v60  ;;  %v8864_v31 = vadd.f32 %v8863_v26, %v8862_v27 }
 0xc4d   : > { %v8900_v48 = vpop.f32.mrb[89].mxu0 }
 0xc4e   : > { %v8901_v13 = vadd.f32 %v8900_v48, %v8899_v46  ;;  %v8902_v4 = vpop.f32.mrb[90].mxu0  ;;  %v8038_v6 = vadd.f32 %v8864_v31, %v16078_v60 }
 0xc4f   : > { %v8903_v2 = vpop.f32.mrb[91].mxu0 }
 0xc50   : > { %v8099_v42 = vadd.f32 %v8901_v13, %v8035_v41  ;;  %v8904_v3 = vadd.f32 %v8903_v2, %v8902_v4  ;;  %v8865_v37 = vpop.f32.mrb[108].mxu1 }
 0xc51   : > { %v8866_v33 = vpop.f32.mrb[109].mxu1 }
 0xc52   : > { %v8123_v39 = vmul.f32 %v16085_v19, %v8099_v42  ;;  %v8102_v10 = vadd.f32 %v8904_v3, %v8038_v6  ;;  %v8867_v24 = vadd.f32 %v8866_v33, %v8865_v37  ;;  %v8868_v25 = vpop.f32.mrb[110].mxu1 }
 0xc53   : > { %v8869_v47 = vpop.f32.mrb[111].mxu1 }
 0xc54   : > { %v8130_v34 = vadd.f32 %v8123_v39, %v17724_v14  ;;  %v8124_v28 = vmul.f32 %v16085_v19, %v8102_v10  ;;  %v8905_v58 = vpop.f32.mrb[92].mxu0  ;;  %v8043_v52 = vadd.f32 %v8867_v24, %v16078_v60 }
 0xc55   : > { %v8906_v7 = vpop.f32.mrb[93].mxu0 }
 0xc56   : > { %8137 = vst [vmem:[%s16093_s0 + $0x20] sm:$0xff] %v8130_v34  ;;  %v8131_v16 = vadd.f32 %v8124_v28, %v17725_v1  ;;  %v8907_v32 = vadd.f32 %v8906_v7, %v8905_v58  ;;  %v8908_v8 = vpop.f32.mrb[94].mxu0 }
 0xc57   : > { %v8909_v15 = vpop.f32.mrb[95].mxu0 }
 0xc58   : > { %8138 = vst [vmem:[%s16093_s0 + $0x28] sm:$0xff] %v8131_v16  ;;  %v8107_v49 = vadd.f32 %v8907_v32, %v8043_v52 }
 0xc5a   : > { %v8125_v56 = vmul.f32 %v16085_v19, %v8107_v49 }
 0xc5c   : > { %v8132_v17 = vadd.f32 %v8125_v56, %v17726_v12 }
 0xc5e   : > { %8139 = vst [vmem:[%s16093_s0 + $0x30] sm:$0x1] %v8132_v17 }
 0xc5f PF: > { %s17727_s26 = sld [smem:[#allocation11_spill]] }
 0xc65   : > { %s36_s5 = sadd.s32 1, %s17727_s26  }
 0xc66   : > { %p33_p8 = scmp.ge.s32.totalorder %s36_s5, 4  }
 0xc68   :  { %35 = sbr.rel (!%p33_p8) target bundleno = 15 (0xf), region = 176 }
 0xc6f   :  { %8161 = vsyncpa [#allocation5], 1 }
 0xc70   :  { %8163 = vsyncpa [#allocation5 + $0x1], 1 }
 0xc71   :  { %8164 = vsyncpa [#allocation7], 1 }

</bundles_post_ra>
